<compile_context>
chip_gen: v7x
topology: tpu7x:2x2x1
jax: 0.10.0
libtpu: 0.0.40
codegen_flags: <defaults>
</compile_context>

<pallas_src>
import functools

import jax
import jax.numpy as jnp
import numpy as np
from jax import lax
from jax.experimental import pallas as pl
from jax.experimental.pallas import tpu as pltpu


# ------------------------------ fused kernel --------------------------------

def _decoder_block_kernel(x_ref, enc_ref, u3t_ref, w1_ref, w2_ref, pp_ref,
                          o_ref, *, D, H, W, Cin, Cout, K, P):
    HW = H * W
    S3 = D * HW
    wl = W.bit_length() - 1          # log2(W)    (W power of two, asserted)
    hwl = HW.bit_length() - 1        # log2(H*W)

    # ---- geometry: lane -> (d, h, w) decode + the K^3 hoisted tap masks ----
    lane = lax.broadcasted_iota(jnp.int32, (1, S3), 1)
    ww_i = lane & (W - 1)
    hh_i = (lane >> wl) & (H - 1)
    dd_i = lane >> hwl

    taps = []                        # (lane shift, boundary mask or None)
    for kd in range(K):
        od = kd - P
        for kh in range(K):
            oh = kh - P
            for kw in range(K):
                ow = kw - P
                off = od * HW + oh * W + ow
                conds = []
                if od < 0:
                    conds.append(dd_i >= -od)
                if od > 0:
                    conds.append(dd_i < D - od)
                if oh < 0:
                    conds.append(hh_i >= -oh)
                if oh > 0:
                    conds.append(hh_i < H - oh)
                if ow < 0:
                    conds.append(ww_i >= -ow)
                if ow > 0:
                    conds.append(ww_i < W - ow)
                mask = None
                for c in conds:
                    mask = c if mask is None else (mask & c)
                taps.append(((-off) % S3, mask))

    # ---- packed small params (GN affines, conv3 bias, group-fold matrices) --
    pp = pp_ref[...]
    g1, be1 = pp[0:Cin, 0:1], pp[0:Cin, 1:2]
    g2, be2 = pp[0:Cout, 2:3], pp[0:Cout, 3:4]
    g3, be3 = pp[0:Cout, 4:5], pp[0:Cout, 5:6]
    g4, be4 = pp[0:Cout, 6:7], pp[0:Cout, 7:8]
    b5 = pp[0:Cout, 8:9]
    gm_in = pp[0:Cin, 16:16 + Cin]                   # pre-scaled 1/(S3*Cpg)
    gm_out = pp[0:Cout, 16 + Cin:16 + Cin + Cout]

    def gn(a, gamma, beta, gm):
        # torch GroupNorm: per-(sample, group) mean / biased var, eps=1e-5,
        # per-channel affine.  Lane (spatial) sums are taken FIRST, so the
        # group fold only ever touches tiny (C,1) stat columns (no full-size
        # (C,S3) GN matmuls).  The fold dot is widened to one native lane tile
        # (128 identical columns) to stay on well-trodden matmul shapes; its
        # cost is negligible.
        C = a.shape[0]

        def fold(col):                                           # (C,1)
            wide = jnp.dot(gm, jnp.broadcast_to(col, (C, 128)),
                           preferred_element_type=jnp.float32)   # (C,128)
            return wide[:, 0:1]

        s = jnp.sum(a, axis=1, keepdims=True)                    # (C,1)
        mean = fold(s)
        d = a - mean
        var = fold(jnp.sum(d * d, axis=1, keepdims=True))        # (C,1)
        return d * (lax.rsqrt(var + 1e-5) * gamma) + beta

    def conv(a, wp):
        # 'same' 3D conv as ONE MXU dot: im2col stack (K^3*C, S3) built from
        # the hoisted roll+mask taps, times the lane-dense (Cout, K^3*C)
        # repacked weight.  Accumulation happens inside the MXU.
        parts = []
        for shift, mask in taps:
            xs = a if shift == 0 else pltpu.roll(a, shift, 1)
            if mask is not None:
                xs = jnp.where(mask, xs, 0.0)
            parts.append(xs)
        stk = jnp.concatenate(parts, axis=0)                     # (K^3*C, S3)
        return jnp.dot(wp, stk, preferred_element_type=jnp.float32)

    # ---- trilinear upsample (align_corners=False) as one MXU dot -----------
    x = jnp.dot(x_ref[...], u3t_ref[...],
                preferred_element_type=jnp.float32)              # (Cin, S3)
    enc = enc_ref[...]                                           # (Cout, S3)

    # ---- deconv_module (DoubleConvolution, decoder): [GN -> Conv -> ReLU] x2
    v = gn(x, g1, be1, gm_in)
    v = jnp.maximum(conv(v, w1_ref[...]), 0.0)
    v = gn(v, g2, be2, gm_out)
    v = jnp.maximum(conv(v, w2_ref[0]), 0.0)
    v = v + enc                                      # encoder residual

    # ---- deconv_res_module (RecurrentDoubleConvolution, decoder) -----------
    r = v
    y = gn(v, g3, be3, gm_out)
    y = jnp.maximum(conv(y, w2_ref[1]), 0.0)
    y = gn(y, g4, be4, gm_out)
    y = jnp.maximum(conv(y, w2_ref[2]), 0.0)
    y = conv(y, w2_ref[3]) + b5                      # conv3 ('3c', bias=True)
    o_ref[...] = jnp.maximum(y + r, 0.0)             # + input residual, ReLU


# ------------------------------ host-side helpers ---------------------------

def _up_mat(in_size, out_size):
    # PyTorch nn.Upsample(mode='*linear', align_corners=False) per-axis lerp as
    # a dense (out, in) interpolation matrix (host numpy, built once).
    scale = in_size / out_size
    U = np.zeros((out_size, in_size), np.float32)
    for dst in range(out_size):
        src = max((dst + 0.5) * scale - 0.5, 0.0)
        i0 = min(int(np.floor(src)), in_size - 1)
        i1 = min(i0 + 1, in_size - 1)
        w1 = np.float32(src - i0)
        U[dst, i0] += np.float32(1.0) - w1
        U[dst, i1] += w1
    return U


def decoder_block_rcnn_forward(params, encoder_features, x, *, size, padding,
                               num_group):
    """DecoderBlockRCNN.forward (components='3gcr', dropout=None), NCDHW I/O."""
    N, Cin = x.shape[0], x.shape[1]
    Din, Hin, Win = x.shape[2], x.shape[3], x.shape[4]
    Cout = encoder_features.shape[1]
    D = H = W = int(size)
    S3 = D * H * W
    S_in = Din * Hin * Win
    K = params["w1"].shape[0]
    K3 = K ** 3
    P = int(padding)
    G = int(num_group)

    assert K == 2 * P + 1, "only 'same' convolutions supported"
    assert Cin % G == 0 and Cout % G == 0
    assert (H & (H - 1)) == 0 and (W & (W - 1)) == 0, "H, W must be powers of 2"
    assert encoder_features.shape == (N, Cout, D, H, W)

    # channels-first flat activations (lane-dense spatial axis)
    xf = x.reshape(N, Cin, S_in)                      # pre-upsample, 8x smaller
    ef = encoder_features.reshape(N, Cout, S3)

    # combined trilinear-upsample matrix (Kronecker of the 3 per-axis lerps),
    # applied in-kernel as one (Cin, S_in) x (S_in, S3) MXU dot.
    u3t = jnp.asarray(
        np.kron(_up_mat(Din, D), np.kron(_up_mat(Hin, H), _up_mat(Win, W))).T)

    # Pack GN affine params, conv3 bias and pre-scaled group-fold matrices into
    # one small (rows, 16+Cin+Cout) array (built once host-side).
    RP = max(Cin, Cout)

    def col(v):
        return jnp.pad(v.astype(jnp.float32), (0, RP - v.shape[0]))

    dyn = jnp.stack(
        [col(params["gn1_g"]), col(params["gn1_b"]),
         col(params["gn2_g"]), col(params["gn2_b"]),
         col(params["gn3_g"]), col(params["gn3_b"]),
         col(params["gn4_g"]), col(params["gn4_b"]),
         col(params["b5"])], axis=1)                  # (RP, 9)

    gm_np = np.zeros((RP, 7 + Cin + Cout), np.float32)  # global cols 9..15+Cin+Cout
    ci = np.arange(Cin)
    gm_np[:Cin, 7:7 + Cin] = (
        (ci[:, None] // (Cin // G) == ci[None, :] // (Cin // G)).astype(np.float32)
        / float(S3 * (Cin // G)))
    co = np.arange(Cout)
    gm_np[:Cout, 7 + Cin:7 + Cin + Cout] = (
        (co[:, None] // (Cout // G) == co[None, :] // (Cout // G)).astype(np.float32)
        / float(S3 * (Cout // G)))
    pp = jnp.concatenate([dyn, jnp.asarray(gm_np)], axis=1)  # (RP, 16+Cin+Cout)

    # Lane-dense fused-K weight packing: each conv becomes one
    # (Cout, K^3*C) x (K^3*C, S3) dot.  Row order matches the kernel's tap
    # enumeration (kd, kh, kw) with channel fastest.
    def pack_w(w, cin_):
        return jnp.transpose(w.reshape(K3, cin_, Cout),
                             (2, 0, 1)).reshape(Cout, K3 * cin_)

    w1p = pack_w(params["w1"], Cin)                            # (Cout, K^3*Cin)
    w2p = jnp.stack([pack_w(params[k], Cout)
                     for k in ("w2", "w3", "w4", "w5")])       # (4, Cout, K^3*Cout)

    kernel = functools.partial(_decoder_block_kernel, D=D, H=H, W=W,
                               Cin=Cin, Cout=Cout, K=K, P=P)
    out = pl.pallas_call(
        kernel,
        out_shape=jax.ShapeDtypeStruct((N, Cout, S3), jnp.float32),
        grid=(N,),
        in_specs=[
            pl.BlockSpec((pl.Squeezed(), Cin, S_in), lambda n: (n, 0, 0)),
            pl.BlockSpec((pl.Squeezed(), Cout, S3), lambda n: (n, 0, 0)),
            pl.BlockSpec((S_in, S3), lambda n: (0, 0)),
            pl.BlockSpec((Cout, K3 * Cin), lambda n: (0, 0)),
            pl.BlockSpec((4, Cout, K3 * Cout), lambda n: (0, 0, 0)),
            pl.BlockSpec((RP, 16 + Cin + Cout), lambda n: (0, 0)),
        ],
        out_specs=pl.BlockSpec((pl.Squeezed(), Cout, S3), lambda n: (n, 0, 0)),
        compiler_params=pltpu.CompilerParams(
            dimension_semantics=("parallel",),
            vmem_limit_bytes=32 * 1024 * 1024),
    )(xf, ef, u3t, w1p, w2p, pp)

    # dropout is None in this config -> identity.  Kernel layout is already
    # channels-first, so this is NCDHW with no transposes.
    return out.reshape(N, Cout, D, H, W)


# ----------------------------- pure-JAX reference ---------------------------

def _upsample_1d_indices(in_size, out_size):
    # PyTorch align_corners=False source-index rule.
    scale = in_size / out_size
    dst = jnp.arange(out_size, dtype=jnp.float32)
    src = jnp.maximum((dst + 0.5) * scale - 0.5, 0.0)
    i0 = jnp.clip(jnp.floor(src).astype(jnp.int32), 0, in_size - 1)
    i1 = jnp.minimum(i0 + 1, in_size - 1)
    w1 = src - i0.astype(jnp.float32)
    return i0, i1, 1.0 - w1, w1


def upsample_trilinear(x, size):
    for axis in (2, 3, 4):                    # NCDHW spatial axes
        in_size = x.shape[axis]
        i0, i1, w0, w1 = _upsample_1d_indices(in_size, size)
        x0 = jnp.take(x, i0, axis=axis)
        x1 = jnp.take(x, i1, axis=axis)
        shape = [1] * x.ndim
        shape[axis] = size
        x = x0 * w0.reshape(shape) + x1 * w1.reshape(shape)
    return x


def _ref_forward(params, encoder_features, x, *, size, padding, num_group):
    x = upsample_trilinear(x, size)
    x = jnp.transpose(x, (0, 2, 3, 4, 1))
    enc = jnp.transpose(encoder_features, (0, 2, 3, 4, 1))

    def gn(v, g, b):
        N, D, H, W, C = v.shape
        vg = v.reshape(N, D * H * W, num_group, C // num_group)
        mean = vg.mean(axis=(1, 3), keepdims=True)
        var = vg.var(axis=(1, 3), keepdims=True)
        vg = (vg - mean) / jnp.sqrt(var + 1e-5)
        return vg.reshape(N, D, H, W, C) * g + b

    def conv(v, w, b):
        y = lax.conv_general_dilated(
            v, w, (1, 1, 1), [(padding, padding)] * 3,
            dimension_numbers=("NDHWC", "DHWIO", "NDHWC"))
        return y if b is None else y + b

    x = jax.nn.relu(conv(gn(x, params["gn1_g"], params["gn1_b"]), params["w1"], None))
    x = jax.nn.relu(conv(gn(x, params["gn2_g"], params["gn2_b"]), params["w2"], None))
    x = enc + x
    r = x
    y = jax.nn.relu(conv(gn(x, params["gn3_g"], params["gn3_b"]), params["w3"], None))
    y = jax.nn.relu(conv(gn(y, params["gn4_g"], params["gn4_b"]), params["w4"], None))
    y = jax.nn.relu(conv(y, params["w5"], params["b5"]) + r)
    return jnp.transpose(y, (0, 4, 1, 2, 3))


# ----------------------------------- main -----------------------------------

if __name__ == "__main__":
    # DecoderBlockRCNN(in_ch=16, out_ch=8, conv_kernel=3, padding=1, size=8,
    #                  components='3gcr', num_group=4, dropout=None)
    in_ch, out_ch, K, P, size, G = 16, 8, 3, 1, 8, 4
    N, spatial_in = 2, 4

    ks = jax.random.split(jax.random.PRNGKey(0), 16)

    def mk_w(k, ci, co):
        return 0.1 * jax.random.normal(k, (K, K, K, ci, co), jnp.float32)

    params = {
        "gn1_g": 1.0 + 0.1 * jax.random.normal(ks[0], (in_ch,), jnp.float32),
        "gn1_b": 0.1 * jax.random.normal(ks[1], (in_ch,), jnp.float32),
        "w1": mk_w(ks[2], in_ch, out_ch),
        "gn2_g": 1.0 + 0.1 * jax.random.normal(ks[3], (out_ch,), jnp.float32),
        "gn2_b": 0.1 * jax.random.normal(ks[4], (out_ch,), jnp.float32),
        "w2": mk_w(ks[5], out_ch, out_ch),
        "gn3_g": 1.0 + 0.1 * jax.random.normal(ks[6], (out_ch,), jnp.float32),
        "gn3_b": 0.1 * jax.random.normal(ks[7], (out_ch,), jnp.float32),
        "w3": mk_w(ks[8], out_ch, out_ch),
        "gn4_g": 1.0 + 0.1 * jax.random.normal(ks[9], (out_ch,), jnp.float32),
        "gn4_b": 0.1 * jax.random.normal(ks[10], (out_ch,), jnp.float32),
        "w4": mk_w(ks[11], out_ch, out_ch),
        "w5": mk_w(ks[12], out_ch, out_ch),
        "b5": 0.1 * jax.random.normal(ks[13], (out_ch,), jnp.float32),
    }

    x = jax.random.normal(ks[14], (N, in_ch, spatial_in, spatial_in, spatial_in),
                          jnp.float32)
    enc = jax.random.normal(ks[15], (N, out_ch, size, size, size), jnp.float32)

    @jax.jit
    def fwd(p, e, xx):
        return decoder_block_rcnn_forward(p, e, xx, size=size, padding=P,
                                          num_group=G)

    out = jax.block_until_ready(fwd(params, enc, x))
    ref = jax.block_until_ready(
        _ref_forward(params, enc, x, size=size, padding=P, num_group=G))

    assert out.shape == (N, out_ch, size, size, size)
    np.testing.assert_allclose(np.asarray(out), np.asarray(ref),
                               rtol=1e-3, atol=1e-3)
    print("KERNEL_OK")
</pallas_src>

<mosaic_0001>
module attributes {stable_mosaic.version = 11 : i64} {
  func.func @_decoder_block_kernel(%arg0: i32, %arg1: memref<1x16x64xf32, #tpu.memory_space<vmem>>, %arg2: memref<1x8x512xf32, #tpu.memory_space<vmem>>, %arg3: memref<64x512xf32, #tpu.memory_space<vmem>>, %arg4: memref<8x432xf32, #tpu.memory_space<vmem>>, %arg5: memref<4x8x216xf32, #tpu.memory_space<vmem>>, %arg6: memref<16x40xf32, #tpu.memory_space<vmem>>, %arg7: memref<1x8x512xf32, #tpu.memory_space<vmem>>) attributes {dimension_semantics = [#tpu.dimension_semantics<parallel>], iteration_bounds = array<i64: 2>, scalar_prefetch = 0 : i64, scratch_operands = 0 : i64, tpu.core_type = #tpu.core_type<tc>, window_params = [{transform_indices = @transform_0, window_bounds = array<i64: 1, 16, 64>}, {transform_indices = @transform_1, window_bounds = array<i64: 1, 8, 512>}, {pipeline_mode = #tpu.pipeline_mode<synchronous>, transform_indices = @transform_2, window_bounds = array<i64: 64, 512>}, {pipeline_mode = #tpu.pipeline_mode<synchronous>, transform_indices = @transform_3, window_bounds = array<i64: 8, 432>}, {pipeline_mode = #tpu.pipeline_mode<synchronous>, transform_indices = @transform_4, window_bounds = array<i64: 4, 8, 216>}, {pipeline_mode = #tpu.pipeline_mode<synchronous>, transform_indices = @transform_5, window_bounds = array<i64: 16, 40>}, {transform_indices = @transform_6, window_bounds = array<i64: 1, 8, 512>}]} {
    %0 = tpu.iota {dimensions = array<i32: 1>} : vector<1x512xi32>
    %c7_i32 = arith.constant 7 : i32
    %1 = vector.broadcast %c7_i32 : i32 to vector<1x512xi32>
    %2 = arith.andi %0, %1 : vector<1x512xi32>
    %c3_i32 = arith.constant 3 : i32
    %3 = vector.broadcast %c3_i32 : i32 to vector<1x512xi32>
    %4 = arith.shrsi %0, %3 : vector<1x512xi32>
    %c7_i32_0 = arith.constant 7 : i32
    %5 = vector.broadcast %c7_i32_0 : i32 to vector<1x512xi32>
    %6 = arith.andi %4, %5 : vector<1x512xi32>
    %c6_i32 = arith.constant 6 : i32
    %7 = vector.broadcast %c6_i32 : i32 to vector<1x512xi32>
    %8 = arith.shrsi %0, %7 : vector<1x512xi32>
    %c1_i32 = arith.constant 1 : i32
    %9 = vector.broadcast %c1_i32 : i32 to vector<1x512xi32>
    %10 = arith.cmpi sge, %8, %9 : vector<1x512xi32>
    %c1_i32_1 = arith.constant 1 : i32
    %11 = vector.broadcast %c1_i32_1 : i32 to vector<1x512xi32>
    %12 = arith.cmpi sge, %6, %11 : vector<1x512xi32>
    %c1_i32_2 = arith.constant 1 : i32
    %13 = vector.broadcast %c1_i32_2 : i32 to vector<1x512xi32>
    %14 = arith.cmpi sge, %2, %13 : vector<1x512xi32>
    %15 = arith.andi %10, %12 : vector<1x512xi1>
    %16 = arith.andi %15, %14 : vector<1x512xi1>
    %c1_i32_3 = arith.constant 1 : i32
    %17 = vector.broadcast %c1_i32_3 : i32 to vector<1x512xi32>
    %18 = arith.cmpi sge, %8, %17 : vector<1x512xi32>
    %c1_i32_4 = arith.constant 1 : i32
    %19 = vector.broadcast %c1_i32_4 : i32 to vector<1x512xi32>
    %20 = arith.cmpi sge, %6, %19 : vector<1x512xi32>
    %21 = arith.andi %18, %20 : vector<1x512xi1>
    %c1_i32_5 = arith.constant 1 : i32
    %22 = vector.broadcast %c1_i32_5 : i32 to vector<1x512xi32>
    %23 = arith.cmpi sge, %8, %22 : vector<1x512xi32>
    %c1_i32_6 = arith.constant 1 : i32
    %24 = vector.broadcast %c1_i32_6 : i32 to vector<1x512xi32>
    %25 = arith.cmpi sge, %6, %24 : vector<1x512xi32>
    %c7_i32_7 = arith.constant 7 : i32
    %26 = vector.broadcast %c7_i32_7 : i32 to vector<1x512xi32>
    %27 = arith.cmpi slt, %2, %26 : vector<1x512xi32>
    %28 = arith.andi %23, %25 : vector<1x512xi1>
    %29 = arith.andi %28, %27 : vector<1x512xi1>
    %c1_i32_8 = arith.constant 1 : i32
    %30 = vector.broadcast %c1_i32_8 : i32 to vector<1x512xi32>
    %31 = arith.cmpi sge, %8, %30 : vector<1x512xi32>
    %c1_i32_9 = arith.constant 1 : i32
    %32 = vector.broadcast %c1_i32_9 : i32 to vector<1x512xi32>
    %33 = arith.cmpi sge, %2, %32 : vector<1x512xi32>
    %34 = arith.andi %31, %33 : vector<1x512xi1>
    %c1_i32_10 = arith.constant 1 : i32
    %35 = vector.broadcast %c1_i32_10 : i32 to vector<1x512xi32>
    %36 = arith.cmpi sge, %8, %35 : vector<1x512xi32>
    %c1_i32_11 = arith.constant 1 : i32
    %37 = vector.broadcast %c1_i32_11 : i32 to vector<1x512xi32>
    %38 = arith.cmpi sge, %8, %37 : vector<1x512xi32>
    %c7_i32_12 = arith.constant 7 : i32
    %39 = vector.broadcast %c7_i32_12 : i32 to vector<1x512xi32>
    %40 = arith.cmpi slt, %2, %39 : vector<1x512xi32>
    %41 = arith.andi %38, %40 : vector<1x512xi1>
    %c1_i32_13 = arith.constant 1 : i32
    %42 = vector.broadcast %c1_i32_13 : i32 to vector<1x512xi32>
    %43 = arith.cmpi sge, %8, %42 : vector<1x512xi32>
    %c7_i32_14 = arith.constant 7 : i32
    %44 = vector.broadcast %c7_i32_14 : i32 to vector<1x512xi32>
    %45 = arith.cmpi slt, %6, %44 : vector<1x512xi32>
    %c1_i32_15 = arith.constant 1 : i32
    %46 = vector.broadcast %c1_i32_15 : i32 to vector<1x512xi32>
    %47 = arith.cmpi sge, %2, %46 : vector<1x512xi32>
    %48 = arith.andi %43, %45 : vector<1x512xi1>
    %49 = arith.andi %48, %47 : vector<1x512xi1>
    %c1_i32_16 = arith.constant 1 : i32
    %50 = vector.broadcast %c1_i32_16 : i32 to vector<1x512xi32>
    %51 = arith.cmpi sge, %8, %50 : vector<1x512xi32>
    %c7_i32_17 = arith.constant 7 : i32
    %52 = vector.broadcast %c7_i32_17 : i32 to vector<1x512xi32>
    %53 = arith.cmpi slt, %6, %52 : vector<1x512xi32>
    %54 = arith.andi %51, %53 : vector<1x512xi1>
    %c1_i32_18 = arith.constant 1 : i32
    %55 = vector.broadcast %c1_i32_18 : i32 to vector<1x512xi32>
    %56 = arith.cmpi sge, %8, %55 : vector<1x512xi32>
    %c7_i32_19 = arith.constant 7 : i32
    %57 = vector.broadcast %c7_i32_19 : i32 to vector<1x512xi32>
    %58 = arith.cmpi slt, %6, %57 : vector<1x512xi32>
    %c7_i32_20 = arith.constant 7 : i32
    %59 = vector.broadcast %c7_i32_20 : i32 to vector<1x512xi32>
    %60 = arith.cmpi slt, %2, %59 : vector<1x512xi32>
    %61 = arith.andi %56, %58 : vector<1x512xi1>
    %62 = arith.andi %61, %60 : vector<1x512xi1>
    %c1_i32_21 = arith.constant 1 : i32
    %63 = vector.broadcast %c1_i32_21 : i32 to vector<1x512xi32>
    %64 = arith.cmpi sge, %6, %63 : vector<1x512xi32>
    %c1_i32_22 = arith.constant 1 : i32
    %65 = vector.broadcast %c1_i32_22 : i32 to vector<1x512xi32>
    %66 = arith.cmpi sge, %2, %65 : vector<1x512xi32>
    %67 = arith.andi %64, %66 : vector<1x512xi1>
    %c1_i32_23 = arith.constant 1 : i32
    %68 = vector.broadcast %c1_i32_23 : i32 to vector<1x512xi32>
    %69 = arith.cmpi sge, %6, %68 : vector<1x512xi32>
    %c1_i32_24 = arith.constant 1 : i32
    %70 = vector.broadcast %c1_i32_24 : i32 to vector<1x512xi32>
    %71 = arith.cmpi sge, %6, %70 : vector<1x512xi32>
    %c7_i32_25 = arith.constant 7 : i32
    %72 = vector.broadcast %c7_i32_25 : i32 to vector<1x512xi32>
    %73 = arith.cmpi slt, %2, %72 : vector<1x512xi32>
    %74 = arith.andi %71, %73 : vector<1x512xi1>
    %c1_i32_26 = arith.constant 1 : i32
    %75 = vector.broadcast %c1_i32_26 : i32 to vector<1x512xi32>
    %76 = arith.cmpi sge, %2, %75 : vector<1x512xi32>
    %c7_i32_27 = arith.constant 7 : i32
    %77 = vector.broadcast %c7_i32_27 : i32 to vector<1x512xi32>
    %78 = arith.cmpi slt, %2, %77 : vector<1x512xi32>
    %c7_i32_28 = arith.constant 7 : i32
    %79 = vector.broadcast %c7_i32_28 : i32 to vector<1x512xi32>
    %80 = arith.cmpi slt, %6, %79 : vector<1x512xi32>
    %c1_i32_29 = arith.constant 1 : i32
    %81 = vector.broadcast %c1_i32_29 : i32 to vector<1x512xi32>
    %82 = arith.cmpi sge, %2, %81 : vector<1x512xi32>
    %83 = arith.andi %80, %82 : vector<1x512xi1>
    %c7_i32_30 = arith.constant 7 : i32
    %84 = vector.broadcast %c7_i32_30 : i32 to vector<1x512xi32>
    %85 = arith.cmpi slt, %6, %84 : vector<1x512xi32>
    %c7_i32_31 = arith.constant 7 : i32
    %86 = vector.broadcast %c7_i32_31 : i32 to vector<1x512xi32>
    %87 = arith.cmpi slt, %6, %86 : vector<1x512xi32>
    %c7_i32_32 = arith.constant 7 : i32
    %88 = vector.broadcast %c7_i32_32 : i32 to vector<1x512xi32>
    %89 = arith.cmpi slt, %2, %88 : vector<1x512xi32>
    %90 = arith.andi %87, %89 : vector<1x512xi1>
    %c7_i32_33 = arith.constant 7 : i32
    %91 = vector.broadcast %c7_i32_33 : i32 to vector<1x512xi32>
    %92 = arith.cmpi slt, %8, %91 : vector<1x512xi32>
    %c1_i32_34 = arith.constant 1 : i32
    %93 = vector.broadcast %c1_i32_34 : i32 to vector<1x512xi32>
    %94 = arith.cmpi sge, %6, %93 : vector<1x512xi32>
    %c1_i32_35 = arith.constant 1 : i32
    %95 = vector.broadcast %c1_i32_35 : i32 to vector<1x512xi32>
    %96 = arith.cmpi sge, %2, %95 : vector<1x512xi32>
    %97 = arith.andi %92, %94 : vector<1x512xi1>
    %98 = arith.andi %97, %96 : vector<1x512xi1>
    %c7_i32_36 = arith.constant 7 : i32
    %99 = vector.broadcast %c7_i32_36 : i32 to vector<1x512xi32>
    %100 = arith.cmpi slt, %8, %99 : vector<1x512xi32>
    %c1_i32_37 = arith.constant 1 : i32
    %101 = vector.broadcast %c1_i32_37 : i32 to vector<1x512xi32>
    %102 = arith.cmpi sge, %6, %101 : vector<1x512xi32>
    %103 = arith.andi %100, %102 : vector<1x512xi1>
    %c7_i32_38 = arith.constant 7 : i32
    %104 = vector.broadcast %c7_i32_38 : i32 to vector<1x512xi32>
    %105 = arith.cmpi slt, %8, %104 : vector<1x512xi32>
    %c1_i32_39 = arith.constant 1 : i32
    %106 = vector.broadcast %c1_i32_39 : i32 to vector<1x512xi32>
    %107 = arith.cmpi sge, %6, %106 : vector<1x512xi32>
    %c7_i32_40 = arith.constant 7 : i32
    %108 = vector.broadcast %c7_i32_40 : i32 to vector<1x512xi32>
    %109 = arith.cmpi slt, %2, %108 : vector<1x512xi32>
    %110 = arith.andi %105, %107 : vector<1x512xi1>
    %111 = arith.andi %110, %109 : vector<1x512xi1>
    %c7_i32_41 = arith.constant 7 : i32
    %112 = vector.broadcast %c7_i32_41 : i32 to vector<1x512xi32>
    %113 = arith.cmpi slt, %8, %112 : vector<1x512xi32>
    %c1_i32_42 = arith.constant 1 : i32
    %114 = vector.broadcast %c1_i32_42 : i32 to vector<1x512xi32>
    %115 = arith.cmpi sge, %2, %114 : vector<1x512xi32>
    %116 = arith.andi %113, %115 : vector<1x512xi1>
    %c7_i32_43 = arith.constant 7 : i32
    %117 = vector.broadcast %c7_i32_43 : i32 to vector<1x512xi32>
    %118 = arith.cmpi slt, %8, %117 : vector<1x512xi32>
    %c7_i32_44 = arith.constant 7 : i32
    %119 = vector.broadcast %c7_i32_44 : i32 to vector<1x512xi32>
    %120 = arith.cmpi slt, %8, %119 : vector<1x512xi32>
    %c7_i32_45 = arith.constant 7 : i32
    %121 = vector.broadcast %c7_i32_45 : i32 to vector<1x512xi32>
    %122 = arith.cmpi slt, %2, %121 : vector<1x512xi32>
    %123 = arith.andi %120, %122 : vector<1x512xi1>
    %c7_i32_46 = arith.constant 7 : i32
    %124 = vector.broadcast %c7_i32_46 : i32 to vector<1x512xi32>
    %125 = arith.cmpi slt, %8, %124 : vector<1x512xi32>
    %c7_i32_47 = arith.constant 7 : i32
    %126 = vector.broadcast %c7_i32_47 : i32 to vector<1x512xi32>
    %127 = arith.cmpi slt, %6, %126 : vector<1x512xi32>
    %c1_i32_48 = arith.constant 1 : i32
    %128 = vector.broadcast %c1_i32_48 : i32 to vector<1x512xi32>
    %129 = arith.cmpi sge, %2, %128 : vector<1x512xi32>
    %130 = arith.andi %125, %127 : vector<1x512xi1>
    %131 = arith.andi %130, %129 : vector<1x512xi1>
    %c7_i32_49 = arith.constant 7 : i32
    %132 = vector.broadcast %c7_i32_49 : i32 to vector<1x512xi32>
    %133 = arith.cmpi slt, %8, %132 : vector<1x512xi32>
    %c7_i32_50 = arith.constant 7 : i32
    %134 = vector.broadcast %c7_i32_50 : i32 to vector<1x512xi32>
    %135 = arith.cmpi slt, %6, %134 : vector<1x512xi32>
    %136 = arith.andi %133, %135 : vector<1x512xi1>
    %c7_i32_51 = arith.constant 7 : i32
    %137 = vector.broadcast %c7_i32_51 : i32 to vector<1x512xi32>
    %138 = arith.cmpi slt, %8, %137 : vector<1x512xi32>
    %c7_i32_52 = arith.constant 7 : i32
    %139 = vector.broadcast %c7_i32_52 : i32 to vector<1x512xi32>
    %140 = arith.cmpi slt, %6, %139 : vector<1x512xi32>
    %c7_i32_53 = arith.constant 7 : i32
    %141 = vector.broadcast %c7_i32_53 : i32 to vector<1x512xi32>
    %142 = arith.cmpi slt, %2, %141 : vector<1x512xi32>
    %143 = arith.andi %138, %140 : vector<1x512xi1>
    %144 = arith.andi %143, %142 : vector<1x512xi1>
    %c0 = arith.constant 0 : index
    %c0_54 = arith.constant 0 : index
    %145 = vector.load %arg6[%c0, %c0_54] : memref<16x40xf32, #tpu.memory_space<vmem>>, vector<16x40xf32>
    %146 = vector.extract_strided_slice %145 {offsets = [0, 0], sizes = [16, 1], strides = [1, 1]} : vector<16x40xf32> to vector<16x1xf32>
    %147 = vector.extract_strided_slice %145 {offsets = [0, 1], sizes = [16, 1], strides = [1, 1]} : vector<16x40xf32> to vector<16x1xf32>
    %148 = vector.extract_strided_slice %145 {offsets = [0, 2], sizes = [8, 1], strides = [1, 1]} : vector<16x40xf32> to vector<8x1xf32>
    %149 = vector.extract_strided_slice %145 {offsets = [0, 3], sizes = [8, 1], strides = [1, 1]} : vector<16x40xf32> to vector<8x1xf32>
    %150 = vector.extract_strided_slice %145 {offsets = [0, 4], sizes = [8, 1], strides = [1, 1]} : vector<16x40xf32> to vector<8x1xf32>
    %151 = vector.extract_strided_slice %145 {offsets = [0, 5], sizes = [8, 1], strides = [1, 1]} : vector<16x40xf32> to vector<8x1xf32>
    %152 = vector.extract_strided_slice %145 {offsets = [0, 6], sizes = [8, 1], strides = [1, 1]} : vector<16x40xf32> to vector<8x1xf32>
    %153 = vector.extract_strided_slice %145 {offsets = [0, 7], sizes = [8, 1], strides = [1, 1]} : vector<16x40xf32> to vector<8x1xf32>
    %154 = vector.extract_strided_slice %145 {offsets = [0, 8], sizes = [8, 1], strides = [1, 1]} : vector<16x40xf32> to vector<8x1xf32>
    %155 = vector.extract_strided_slice %145 {offsets = [0, 16], sizes = [16, 16], strides = [1, 1]} : vector<16x40xf32> to vector<16x16xf32>
    %156 = vector.extract_strided_slice %145 {offsets = [0, 32], sizes = [8, 8], strides = [1, 1]} : vector<16x40xf32> to vector<8x8xf32>
    %c0_55 = arith.constant 0 : index
    %c0_56 = arith.constant 0 : index
    %c0_57 = arith.constant 0 : index
    %157 = vector.load %arg1[%c0_55, %c0_56, %c0_57] : memref<1x16x64xf32, #tpu.memory_space<vmem>>, vector<1x16x64xf32>
    %158 = vector.shape_cast %157 : vector<1x16x64xf32> to vector<16x64xf32>
    %c0_58 = arith.constant 0 : index
    %c0_59 = arith.constant 0 : index
    %159 = vector.load %arg3[%c0_58, %c0_59] : memref<64x512xf32, #tpu.memory_space<vmem>>, vector<64x512xf32>
    %cst = arith.constant dense<0.000000e+00> : vector<16x512xf32>
    %160 = tpu.matmul %158, %159, %cst {dimension_numbers = #tpu.dot_dimension_numbers<[1], [0], [0], [1], [0, 0, 1, 1], [], []>} : vector<16x64xf32>, vector<64x512xf32>, vector<16x512xf32> -> vector<16x512xf32>
    %c0_60 = arith.constant 0 : index
    %c0_61 = arith.constant 0 : index
    %c0_62 = arith.constant 0 : index
    %161 = vector.load %arg2[%c0_60, %c0_61, %c0_62] : memref<1x8x512xf32, #tpu.memory_space<vmem>>, vector<1x8x512xf32>
    %162 = vector.shape_cast %161 : vector<1x8x512xf32> to vector<8x512xf32>
    %cst_63 = arith.constant dense<0.000000e+00> : vector<16xf32>
    %163 = vector.multi_reduction <add>, %160, %cst_63 [1] : vector<16x512xf32> to vector<16xf32>
    %164 = vector.shape_cast %163 : vector<16xf32> to vector<16x1xf32>
    %165 = vector.shape_cast %164 : vector<16x1xf32> to vector<16x1xf32>
    %166 = vector.broadcast %165 : vector<16x1xf32> to vector<16x128xf32>
    %cst_64 = arith.constant dense<0.000000e+00> : vector<16x128xf32>
    %167 = tpu.matmul %155, %166, %cst_64 {dimension_numbers = #tpu.dot_dimension_numbers<[1], [0], [0], [1], [0, 0, 1, 1], [], []>} : vector<16x16xf32>, vector<16x128xf32>, vector<16x128xf32> -> vector<16x128xf32>
    %168 = vector.extract_strided_slice %167 {offsets = [0, 0], sizes = [16, 1], strides = [1, 1]} : vector<16x128xf32> to vector<16x1xf32>
    %169 = vector.broadcast %168 : vector<16x1xf32> to vector<16x512xf32>
    %170 = arith.subf %160, %169 : vector<16x512xf32>
    %171 = arith.mulf %170, %170 : vector<16x512xf32>
    %cst_65 = arith.constant dense<0.000000e+00> : vector<16xf32>
    %172 = vector.multi_reduction <add>, %171, %cst_65 [1] : vector<16x512xf32> to vector<16xf32>
    %173 = vector.shape_cast %172 : vector<16xf32> to vector<16x1xf32>
    %174 = vector.shape_cast %173 : vector<16x1xf32> to vector<16x1xf32>
    %175 = vector.broadcast %174 : vector<16x1xf32> to vector<16x128xf32>
    %cst_66 = arith.constant dense<0.000000e+00> : vector<16x128xf32>
    %176 = tpu.matmul %155, %175, %cst_66 {dimension_numbers = #tpu.dot_dimension_numbers<[1], [0], [0], [1], [0, 0, 1, 1], [], []>} : vector<16x16xf32>, vector<16x128xf32>, vector<16x128xf32> -> vector<16x128xf32>
    %177 = vector.extract_strided_slice %176 {offsets = [0, 0], sizes = [16, 1], strides = [1, 1]} : vector<16x128xf32> to vector<16x1xf32>
    %cst_67 = arith.constant 9.99999974E-6 : f32
    %178 = vector.broadcast %cst_67 : f32 to vector<16x1xf32>
    %179 = arith.addf %177, %178 : vector<16x1xf32>
    %180 = math.rsqrt %179 : vector<16x1xf32>
    %181 = arith.mulf %180, %146 : vector<16x1xf32>
    %182 = vector.broadcast %181 : vector<16x1xf32> to vector<16x512xf32>
    %183 = arith.mulf %170, %182 : vector<16x512xf32>
    %184 = vector.broadcast %147 : vector<16x1xf32> to vector<16x512xf32>
    %185 = arith.addf %183, %184 : vector<16x512xf32>
    %c0_68 = arith.constant 0 : index
    %c0_69 = arith.constant 0 : index
    %186 = vector.load %arg4[%c0_68, %c0_69] : memref<8x432xf32, #tpu.memory_space<vmem>>, vector<8x432xf32>
    %c73_i32 = arith.constant 73 : i32
    %187 = tpu.dynamic_rotate %185 by %c73_i32 dim 1 : vector<16x512xf32>, i32 -> vector<16x512xf32>
    %cst_70 = arith.constant 0.000000e+00 : f32
    %188 = vector.shape_cast %16 : vector<1x512xi1> to vector<1x512xi1>
    %189 = vector.broadcast %188 : vector<1x512xi1> to vector<16x512xi1>
    %190 = vector.broadcast %cst_70 : f32 to vector<16x512xf32>
    %191 = arith.select %189, %187, %190 : vector<16x512xi1>, vector<16x512xf32>
    %c72_i32 = arith.constant 72 : i32
    %192 = tpu.dynamic_rotate %185 by %c72_i32 dim 1 : vector<16x512xf32>, i32 -> vector<16x512xf32>
    %cst_71 = arith.constant 0.000000e+00 : f32
    %193 = vector.shape_cast %21 : vector<1x512xi1> to vector<1x512xi1>
    %194 = vector.broadcast %193 : vector<1x512xi1> to vector<16x512xi1>
    %195 = vector.broadcast %cst_71 : f32 to vector<16x512xf32>
    %196 = arith.select %194, %192, %195 : vector<16x512xi1>, vector<16x512xf32>
    %c71_i32 = arith.constant 71 : i32
    %197 = tpu.dynamic_rotate %185 by %c71_i32 dim 1 : vector<16x512xf32>, i32 -> vector<16x512xf32>
    %cst_72 = arith.constant 0.000000e+00 : f32
    %198 = vector.shape_cast %29 : vector<1x512xi1> to vector<1x512xi1>
    %199 = vector.broadcast %198 : vector<1x512xi1> to vector<16x512xi1>
    %200 = vector.broadcast %cst_72 : f32 to vector<16x512xf32>
    %201 = arith.select %199, %197, %200 : vector<16x512xi1>, vector<16x512xf32>
    %c65_i32 = arith.constant 65 : i32
    %202 = tpu.dynamic_rotate %185 by %c65_i32 dim 1 : vector<16x512xf32>, i32 -> vector<16x512xf32>
    %cst_73 = arith.constant 0.000000e+00 : f32
    %203 = vector.shape_cast %34 : vector<1x512xi1> to vector<1x512xi1>
    %204 = vector.broadcast %203 : vector<1x512xi1> to vector<16x512xi1>
    %205 = vector.broadcast %cst_73 : f32 to vector<16x512xf32>
    %206 = arith.select %204, %202, %205 : vector<16x512xi1>, vector<16x512xf32>
    %c64_i32 = arith.constant 64 : i32
    %207 = tpu.dynamic_rotate %185 by %c64_i32 dim 1 : vector<16x512xf32>, i32 -> vector<16x512xf32>
    %cst_74 = arith.constant 0.000000e+00 : f32
    %208 = vector.shape_cast %36 : vector<1x512xi1> to vector<1x512xi1>
    %209 = vector.broadcast %208 : vector<1x512xi1> to vector<16x512xi1>
    %210 = vector.broadcast %cst_74 : f32 to vector<16x512xf32>
    %211 = arith.select %209, %207, %210 : vector<16x512xi1>, vector<16x512xf32>
    %c63_i32 = arith.constant 63 : i32
    %212 = tpu.dynamic_rotate %185 by %c63_i32 dim 1 : vector<16x512xf32>, i32 -> vector<16x512xf32>
    %cst_75 = arith.constant 0.000000e+00 : f32
    %213 = vector.shape_cast %41 : vector<1x512xi1> to vector<1x512xi1>
    %214 = vector.broadcast %213 : vector<1x512xi1> to vector<16x512xi1>
    %215 = vector.broadcast %cst_75 : f32 to vector<16x512xf32>
    %216 = arith.select %214, %212, %215 : vector<16x512xi1>, vector<16x512xf32>
    %c57_i32 = arith.constant 57 : i32
    %217 = tpu.dynamic_rotate %185 by %c57_i32 dim 1 : vector<16x512xf32>, i32 -> vector<16x512xf32>
    %cst_76 = arith.constant 0.000000e+00 : f32
    %218 = vector.shape_cast %49 : vector<1x512xi1> to vector<1x512xi1>
    %219 = vector.broadcast %218 : vector<1x512xi1> to vector<16x512xi1>
    %220 = vector.broadcast %cst_76 : f32 to vector<16x512xf32>
    %221 = arith.select %219, %217, %220 : vector<16x512xi1>, vector<16x512xf32>
    %c56_i32 = arith.constant 56 : i32
    %222 = tpu.dynamic_rotate %185 by %c56_i32 dim 1 : vector<16x512xf32>, i32 -> vector<16x512xf32>
    %cst_77 = arith.constant 0.000000e+00 : f32
    %223 = vector.shape_cast %54 : vector<1x512xi1> to vector<1x512xi1>
    %224 = vector.broadcast %223 : vector<1x512xi1> to vector<16x512xi1>
    %225 = vector.broadcast %cst_77 : f32 to vector<16x512xf32>
    %226 = arith.select %224, %222, %225 : vector<16x512xi1>, vector<16x512xf32>
    %c55_i32 = arith.constant 55 : i32
    %227 = tpu.dynamic_rotate %185 by %c55_i32 dim 1 : vector<16x512xf32>, i32 -> vector<16x512xf32>
    %cst_78 = arith.constant 0.000000e+00 : f32
    %228 = vector.shape_cast %62 : vector<1x512xi1> to vector<1x512xi1>
    %229 = vector.broadcast %228 : vector<1x512xi1> to vector<16x512xi1>
    %230 = vector.broadcast %cst_78 : f32 to vector<16x512xf32>
    %231 = arith.select %229, %227, %230 : vector<16x512xi1>, vector<16x512xf32>
    %c9_i32 = arith.constant 9 : i32
    %232 = tpu.dynamic_rotate %185 by %c9_i32 dim 1 : vector<16x512xf32>, i32 -> vector<16x512xf32>
    %cst_79 = arith.constant 0.000000e+00 : f32
    %233 = vector.shape_cast %67 : vector<1x512xi1> to vector<1x512xi1>
    %234 = vector.broadcast %233 : vector<1x512xi1> to vector<16x512xi1>
    %235 = vector.broadcast %cst_79 : f32 to vector<16x512xf32>
    %236 = arith.select %234, %232, %235 : vector<16x512xi1>, vector<16x512xf32>
    %c8_i32 = arith.constant 8 : i32
    %237 = tpu.dynamic_rotate %185 by %c8_i32 dim 1 : vector<16x512xf32>, i32 -> vector<16x512xf32>
    %cst_80 = arith.constant 0.000000e+00 : f32
    %238 = vector.shape_cast %69 : vector<1x512xi1> to vector<1x512xi1>
    %239 = vector.broadcast %238 : vector<1x512xi1> to vector<16x512xi1>
    %240 = vector.broadcast %cst_80 : f32 to vector<16x512xf32>
    %241 = arith.select %239, %237, %240 : vector<16x512xi1>, vector<16x512xf32>
    %c7_i32_81 = arith.constant 7 : i32
    %242 = tpu.dynamic_rotate %185 by %c7_i32_81 dim 1 : vector<16x512xf32>, i32 -> vector<16x512xf32>
    %cst_82 = arith.constant 0.000000e+00 : f32
    %243 = vector.shape_cast %74 : vector<1x512xi1> to vector<1x512xi1>
    %244 = vector.broadcast %243 : vector<1x512xi1> to vector<16x512xi1>
    %245 = vector.broadcast %cst_82 : f32 to vector<16x512xf32>
    %246 = arith.select %244, %242, %245 : vector<16x512xi1>, vector<16x512xf32>
    %c1_i32_83 = arith.constant 1 : i32
    %247 = tpu.dynamic_rotate %185 by %c1_i32_83 dim 1 : vector<16x512xf32>, i32 -> vector<16x512xf32>
    %cst_84 = arith.constant 0.000000e+00 : f32
    %248 = vector.shape_cast %76 : vector<1x512xi1> to vector<1x512xi1>
    %249 = vector.broadcast %248 : vector<1x512xi1> to vector<16x512xi1>
    %250 = vector.broadcast %cst_84 : f32 to vector<16x512xf32>
    %251 = arith.select %249, %247, %250 : vector<16x512xi1>, vector<16x512xf32>
    %c511_i32 = arith.constant 511 : i32
    %252 = tpu.dynamic_rotate %185 by %c511_i32 dim 1 : vector<16x512xf32>, i32 -> vector<16x512xf32>
    %cst_85 = arith.constant 0.000000e+00 : f32
    %253 = vector.shape_cast %78 : vector<1x512xi1> to vector<1x512xi1>
    %254 = vector.broadcast %253 : vector<1x512xi1> to vector<16x512xi1>
    %255 = vector.broadcast %cst_85 : f32 to vector<16x512xf32>
    %256 = arith.select %254, %252, %255 : vector<16x512xi1>, vector<16x512xf32>
    %c505_i32 = arith.constant 505 : i32
    %257 = tpu.dynamic_rotate %185 by %c505_i32 dim 1 : vector<16x512xf32>, i32 -> vector<16x512xf32>
    %cst_86 = arith.constant 0.000000e+00 : f32
    %258 = vector.shape_cast %83 : vector<1x512xi1> to vector<1x512xi1>
    %259 = vector.broadcast %258 : vector<1x512xi1> to vector<16x512xi1>
    %260 = vector.broadcast %cst_86 : f32 to vector<16x512xf32>
    %261 = arith.select %259, %257, %260 : vector<16x512xi1>, vector<16x512xf32>
    %c504_i32 = arith.constant 504 : i32
    %262 = tpu.dynamic_rotate %185 by %c504_i32 dim 1 : vector<16x512xf32>, i32 -> vector<16x512xf32>
    %cst_87 = arith.constant 0.000000e+00 : f32
    %263 = vector.shape_cast %85 : vector<1x512xi1> to vector<1x512xi1>
    %264 = vector.broadcast %263 : vector<1x512xi1> to vector<16x512xi1>
    %265 = vector.broadcast %cst_87 : f32 to vector<16x512xf32>
    %266 = arith.select %264, %262, %265 : vector<16x512xi1>, vector<16x512xf32>
    %c503_i32 = arith.constant 503 : i32
    %267 = tpu.dynamic_rotate %185 by %c503_i32 dim 1 : vector<16x512xf32>, i32 -> vector<16x512xf32>
    %cst_88 = arith.constant 0.000000e+00 : f32
    %268 = vector.shape_cast %90 : vector<1x512xi1> to vector<1x512xi1>
    %269 = vector.broadcast %268 : vector<1x512xi1> to vector<16x512xi1>
    %270 = vector.broadcast %cst_88 : f32 to vector<16x512xf32>
    %271 = arith.select %269, %267, %270 : vector<16x512xi1>, vector<16x512xf32>
    %c457_i32 = arith.constant 457 : i32
    %272 = tpu.dynamic_rotate %185 by %c457_i32 dim 1 : vector<16x512xf32>, i32 -> vector<16x512xf32>
    %cst_89 = arith.constant 0.000000e+00 : f32
    %273 = vector.shape_cast %98 : vector<1x512xi1> to vector<1x512xi1>
    %274 = vector.broadcast %273 : vector<1x512xi1> to vector<16x512xi1>
    %275 = vector.broadcast %cst_89 : f32 to vector<16x512xf32>
    %276 = arith.select %274, %272, %275 : vector<16x512xi1>, vector<16x512xf32>
    %c456_i32 = arith.constant 456 : i32
    %277 = tpu.dynamic_rotate %185 by %c456_i32 dim 1 : vector<16x512xf32>, i32 -> vector<16x512xf32>
    %cst_90 = arith.constant 0.000000e+00 : f32
    %278 = vector.shape_cast %103 : vector<1x512xi1> to vector<1x512xi1>
    %279 = vector.broadcast %278 : vector<1x512xi1> to vector<16x512xi1>
    %280 = vector.broadcast %cst_90 : f32 to vector<16x512xf32>
    %281 = arith.select %279, %277, %280 : vector<16x512xi1>, vector<16x512xf32>
    %c455_i32 = arith.constant 455 : i32
    %282 = tpu.dynamic_rotate %185 by %c455_i32 dim 1 : vector<16x512xf32>, i32 -> vector<16x512xf32>
    %cst_91 = arith.constant 0.000000e+00 : f32
    %283 = vector.shape_cast %111 : vector<1x512xi1> to vector<1x512xi1>
    %284 = vector.broadcast %283 : vector<1x512xi1> to vector<16x512xi1>
    %285 = vector.broadcast %cst_91 : f32 to vector<16x512xf32>
    %286 = arith.select %284, %282, %285 : vector<16x512xi1>, vector<16x512xf32>
    %c449_i32 = arith.constant 449 : i32
    %287 = tpu.dynamic_rotate %185 by %c449_i32 dim 1 : vector<16x512xf32>, i32 -> vector<16x512xf32>
    %cst_92 = arith.constant 0.000000e+00 : f32
    %288 = vector.shape_cast %116 : vector<1x512xi1> to vector<1x512xi1>
    %289 = vector.broadcast %288 : vector<1x512xi1> to vector<16x512xi1>
    %290 = vector.broadcast %cst_92 : f32 to vector<16x512xf32>
    %291 = arith.select %289, %287, %290 : vector<16x512xi1>, vector<16x512xf32>
    %c448_i32 = arith.constant 448 : i32
    %292 = tpu.dynamic_rotate %185 by %c448_i32 dim 1 : vector<16x512xf32>, i32 -> vector<16x512xf32>
    %cst_93 = arith.constant 0.000000e+00 : f32
    %293 = vector.shape_cast %118 : vector<1x512xi1> to vector<1x512xi1>
    %294 = vector.broadcast %293 : vector<1x512xi1> to vector<16x512xi1>
    %295 = vector.broadcast %cst_93 : f32 to vector<16x512xf32>
    %296 = arith.select %294, %292, %295 : vector<16x512xi1>, vector<16x512xf32>
    %c447_i32 = arith.constant 447 : i32
    %297 = tpu.dynamic_rotate %185 by %c447_i32 dim 1 : vector<16x512xf32>, i32 -> vector<16x512xf32>
    %cst_94 = arith.constant 0.000000e+00 : f32
    %298 = vector.shape_cast %123 : vector<1x512xi1> to vector<1x512xi1>
    %299 = vector.broadcast %298 : vector<1x512xi1> to vector<16x512xi1>
    %300 = vector.broadcast %cst_94 : f32 to vector<16x512xf32>
    %301 = arith.select %299, %297, %300 : vector<16x512xi1>, vector<16x512xf32>
    %c441_i32 = arith.constant 441 : i32
    %302 = tpu.dynamic_rotate %185 by %c441_i32 dim 1 : vector<16x512xf32>, i32 -> vector<16x512xf32>
    %cst_95 = arith.constant 0.000000e+00 : f32
    %303 = vector.shape_cast %131 : vector<1x512xi1> to vector<1x512xi1>
    %304 = vector.broadcast %303 : vector<1x512xi1> to vector<16x512xi1>
    %305 = vector.broadcast %cst_95 : f32 to vector<16x512xf32>
    %306 = arith.select %304, %302, %305 : vector<16x512xi1>, vector<16x512xf32>
    %c440_i32 = arith.constant 440 : i32
    %307 = tpu.dynamic_rotate %185 by %c440_i32 dim 1 : vector<16x512xf32>, i32 -> vector<16x512xf32>
    %cst_96 = arith.constant 0.000000e+00 : f32
    %308 = vector.shape_cast %136 : vector<1x512xi1> to vector<1x512xi1>
    %309 = vector.broadcast %308 : vector<1x512xi1> to vector<16x512xi1>
    %310 = vector.broadcast %cst_96 : f32 to vector<16x512xf32>
    %311 = arith.select %309, %307, %310 : vector<16x512xi1>, vector<16x512xf32>
    %c439_i32 = arith.constant 439 : i32
    %312 = tpu.dynamic_rotate %185 by %c439_i32 dim 1 : vector<16x512xf32>, i32 -> vector<16x512xf32>
    %cst_97 = arith.constant 0.000000e+00 : f32
    %313 = vector.shape_cast %144 : vector<1x512xi1> to vector<1x512xi1>
    %314 = vector.broadcast %313 : vector<1x512xi1> to vector<16x512xi1>
    %315 = vector.broadcast %cst_97 : f32 to vector<16x512xf32>
    %316 = arith.select %314, %312, %315 : vector<16x512xi1>, vector<16x512xf32>
    %317 = tpu.concatenate %191, %196, %201, %206, %211, %216, %221, %226, %231, %236, %241, %246, %251, %185, %256, %261 in 0 : vector<16x512xf32>, vector<16x512xf32>, vector<16x512xf32>, vector<16x512xf32>, vector<16x512xf32>, vector<16x512xf32>, vector<16x512xf32>, vector<16x512xf32>, vector<16x512xf32>, vector<16x512xf32>, vector<16x512xf32>, vector<16x512xf32>, vector<16x512xf32>, vector<16x512xf32>, vector<16x512xf32>, vector<16x512xf32> -> vector<256x512xf32>
    %318 = tpu.concatenate %266, %271, %276, %281, %286, %291, %296, %301, %306, %311, %316 in 0 : vector<16x512xf32>, vector<16x512xf32>, vector<16x512xf32>, vector<16x512xf32>, vector<16x512xf32>, vector<16x512xf32>, vector<16x512xf32>, vector<16x512xf32>, vector<16x512xf32>, vector<16x512xf32>, vector<16x512xf32> -> vector<176x512xf32>
    %319 = tpu.concatenate %317, %318 in 0 : vector<256x512xf32>, vector<176x512xf32> -> vector<432x512xf32>
    %cst_98 = arith.constant dense<0.000000e+00> : vector<8x512xf32>
    %320 = tpu.matmul %186, %319, %cst_98 {dimension_numbers = #tpu.dot_dimension_numbers<[1], [0], [0], [1], [0, 0, 1, 1], [], []>} : vector<8x432xf32>, vector<432x512xf32>, vector<8x512xf32> -> vector<8x512xf32>
    %cst_99 = arith.constant 0.000000e+00 : f32
    %321 = vector.broadcast %cst_99 : f32 to vector<8x512xf32>
    %322 = arith.maximumf %320, %321 : vector<8x512xf32>
    %cst_100 = arith.constant dense<0.000000e+00> : vector<8xf32>
    %323 = vector.multi_reduction <add>, %322, %cst_100 [1] : vector<8x512xf32> to vector<8xf32>
    %324 = vector.shape_cast %323 : vector<8xf32> to vector<8x1xf32>
    %325 = vector.shape_cast %324 : vector<8x1xf32> to vector<8x1xf32>
    %326 = vector.broadcast %325 : vector<8x1xf32> to vector<8x128xf32>
    %cst_101 = arith.constant dense<0.000000e+00> : vector<8x128xf32>
    %327 = tpu.matmul %156, %326, %cst_101 {dimension_numbers = #tpu.dot_dimension_numbers<[1], [0], [0], [1], [0, 0, 1, 1], [], []>} : vector<8x8xf32>, vector<8x128xf32>, vector<8x128xf32> -> vector<8x128xf32>
    %328 = vector.extract_strided_slice %327 {offsets = [0, 0], sizes = [8, 1], strides = [1, 1]} : vector<8x128xf32> to vector<8x1xf32>
    %329 = vector.broadcast %328 : vector<8x1xf32> to vector<8x512xf32>
    %330 = arith.subf %322, %329 : vector<8x512xf32>
    %331 = arith.mulf %330, %330 : vector<8x512xf32>
    %cst_102 = arith.constant dense<0.000000e+00> : vector<8xf32>
    %332 = vector.multi_reduction <add>, %331, %cst_102 [1] : vector<8x512xf32> to vector<8xf32>
    %333 = vector.shape_cast %332 : vector<8xf32> to vector<8x1xf32>
    %334 = vector.shape_cast %333 : vector<8x1xf32> to vector<8x1xf32>
    %335 = vector.broadcast %334 : vector<8x1xf32> to vector<8x128xf32>
    %cst_103 = arith.constant dense<0.000000e+00> : vector<8x128xf32>
    %336 = tpu.matmul %156, %335, %cst_103 {dimension_numbers = #tpu.dot_dimension_numbers<[1], [0], [0], [1], [0, 0, 1, 1], [], []>} : vector<8x8xf32>, vector<8x128xf32>, vector<8x128xf32> -> vector<8x128xf32>
    %337 = vector.extract_strided_slice %336 {offsets = [0, 0], sizes = [8, 1], strides = [1, 1]} : vector<8x128xf32> to vector<8x1xf32>
    %cst_104 = arith.constant 9.99999974E-6 : f32
    %338 = vector.broadcast %cst_104 : f32 to vector<8x1xf32>
    %339 = arith.addf %337, %338 : vector<8x1xf32>
    %340 = math.rsqrt %339 : vector<8x1xf32>
    %341 = arith.mulf %340, %148 : vector<8x1xf32>
    %342 = vector.broadcast %341 : vector<8x1xf32> to vector<8x512xf32>
    %343 = arith.mulf %330, %342 : vector<8x512xf32>
    %344 = vector.broadcast %149 : vector<8x1xf32> to vector<8x512xf32>
    %345 = arith.addf %343, %344 : vector<8x512xf32>
    %c0_105 = arith.constant 0 : index
    %c0_106 = arith.constant 0 : index
    %c0_107 = arith.constant 0 : index
    %346 = vector.load %arg5[%c0_105, %c0_106, %c0_107] : memref<4x8x216xf32, #tpu.memory_space<vmem>>, vector<1x8x216xf32>
    %347 = vector.shape_cast %346 : vector<1x8x216xf32> to vector<8x216xf32>
    %c73_i32_108 = arith.constant 73 : i32
    %348 = tpu.dynamic_rotate %345 by %c73_i32_108 dim 1 : vector<8x512xf32>, i32 -> vector<8x512xf32>
    %cst_109 = arith.constant 0.000000e+00 : f32
    %349 = vector.shape_cast %16 : vector<1x512xi1> to vector<1x512xi1>
    %350 = vector.broadcast %349 : vector<1x512xi1> to vector<8x512xi1>
    %351 = vector.broadcast %cst_109 : f32 to vector<8x512xf32>
    %352 = arith.select %350, %348, %351 : vector<8x512xi1>, vector<8x512xf32>
    %c72_i32_110 = arith.constant 72 : i32
    %353 = tpu.dynamic_rotate %345 by %c72_i32_110 dim 1 : vector<8x512xf32>, i32 -> vector<8x512xf32>
    %cst_111 = arith.constant 0.000000e+00 : f32
    %354 = vector.shape_cast %21 : vector<1x512xi1> to vector<1x512xi1>
    %355 = vector.broadcast %354 : vector<1x512xi1> to vector<8x512xi1>
    %356 = vector.broadcast %cst_111 : f32 to vector<8x512xf32>
    %357 = arith.select %355, %353, %356 : vector<8x512xi1>, vector<8x512xf32>
    %c71_i32_112 = arith.constant 71 : i32
    %358 = tpu.dynamic_rotate %345 by %c71_i32_112 dim 1 : vector<8x512xf32>, i32 -> vector<8x512xf32>
    %cst_113 = arith.constant 0.000000e+00 : f32
    %359 = vector.shape_cast %29 : vector<1x512xi1> to vector<1x512xi1>
    %360 = vector.broadcast %359 : vector<1x512xi1> to vector<8x512xi1>
    %361 = vector.broadcast %cst_113 : f32 to vector<8x512xf32>
    %362 = arith.select %360, %358, %361 : vector<8x512xi1>, vector<8x512xf32>
    %c65_i32_114 = arith.constant 65 : i32
    %363 = tpu.dynamic_rotate %345 by %c65_i32_114 dim 1 : vector<8x512xf32>, i32 -> vector<8x512xf32>
    %cst_115 = arith.constant 0.000000e+00 : f32
    %364 = vector.shape_cast %34 : vector<1x512xi1> to vector<1x512xi1>
    %365 = vector.broadcast %364 : vector<1x512xi1> to vector<8x512xi1>
    %366 = vector.broadcast %cst_115 : f32 to vector<8x512xf32>
    %367 = arith.select %365, %363, %366 : vector<8x512xi1>, vector<8x512xf32>
    %c64_i32_116 = arith.constant 64 : i32
    %368 = tpu.dynamic_rotate %345 by %c64_i32_116 dim 1 : vector<8x512xf32>, i32 -> vector<8x512xf32>
    %cst_117 = arith.constant 0.000000e+00 : f32
    %369 = vector.shape_cast %36 : vector<1x512xi1> to vector<1x512xi1>
    %370 = vector.broadcast %369 : vector<1x512xi1> to vector<8x512xi1>
    %371 = vector.broadcast %cst_117 : f32 to vector<8x512xf32>
    %372 = arith.select %370, %368, %371 : vector<8x512xi1>, vector<8x512xf32>
    %c63_i32_118 = arith.constant 63 : i32
    %373 = tpu.dynamic_rotate %345 by %c63_i32_118 dim 1 : vector<8x512xf32>, i32 -> vector<8x512xf32>
    %cst_119 = arith.constant 0.000000e+00 : f32
    %374 = vector.shape_cast %41 : vector<1x512xi1> to vector<1x512xi1>
    %375 = vector.broadcast %374 : vector<1x512xi1> to vector<8x512xi1>
    %376 = vector.broadcast %cst_119 : f32 to vector<8x512xf32>
    %377 = arith.select %375, %373, %376 : vector<8x512xi1>, vector<8x512xf32>
    %c57_i32_120 = arith.constant 57 : i32
    %378 = tpu.dynamic_rotate %345 by %c57_i32_120 dim 1 : vector<8x512xf32>, i32 -> vector<8x512xf32>
    %cst_121 = arith.constant 0.000000e+00 : f32
    %379 = vector.shape_cast %49 : vector<1x512xi1> to vector<1x512xi1>
    %380 = vector.broadcast %379 : vector<1x512xi1> to vector<8x512xi1>
    %381 = vector.broadcast %cst_121 : f32 to vector<8x512xf32>
    %382 = arith.select %380, %378, %381 : vector<8x512xi1>, vector<8x512xf32>
    %c56_i32_122 = arith.constant 56 : i32
    %383 = tpu.dynamic_rotate %345 by %c56_i32_122 dim 1 : vector<8x512xf32>, i32 -> vector<8x512xf32>
    %cst_123 = arith.constant 0.000000e+00 : f32
    %384 = vector.shape_cast %54 : vector<1x512xi1> to vector<1x512xi1>
    %385 = vector.broadcast %384 : vector<1x512xi1> to vector<8x512xi1>
    %386 = vector.broadcast %cst_123 : f32 to vector<8x512xf32>
    %387 = arith.select %385, %383, %386 : vector<8x512xi1>, vector<8x512xf32>
    %c55_i32_124 = arith.constant 55 : i32
    %388 = tpu.dynamic_rotate %345 by %c55_i32_124 dim 1 : vector<8x512xf32>, i32 -> vector<8x512xf32>
    %cst_125 = arith.constant 0.000000e+00 : f32
    %389 = vector.shape_cast %62 : vector<1x512xi1> to vector<1x512xi1>
    %390 = vector.broadcast %389 : vector<1x512xi1> to vector<8x512xi1>
    %391 = vector.broadcast %cst_125 : f32 to vector<8x512xf32>
    %392 = arith.select %390, %388, %391 : vector<8x512xi1>, vector<8x512xf32>
    %c9_i32_126 = arith.constant 9 : i32
    %393 = tpu.dynamic_rotate %345 by %c9_i32_126 dim 1 : vector<8x512xf32>, i32 -> vector<8x512xf32>
    %cst_127 = arith.constant 0.000000e+00 : f32
    %394 = vector.shape_cast %67 : vector<1x512xi1> to vector<1x512xi1>
    %395 = vector.broadcast %394 : vector<1x512xi1> to vector<8x512xi1>
    %396 = vector.broadcast %cst_127 : f32 to vector<8x512xf32>
    %397 = arith.select %395, %393, %396 : vector<8x512xi1>, vector<8x512xf32>
    %c8_i32_128 = arith.constant 8 : i32
    %398 = tpu.dynamic_rotate %345 by %c8_i32_128 dim 1 : vector<8x512xf32>, i32 -> vector<8x512xf32>
    %cst_129 = arith.constant 0.000000e+00 : f32
    %399 = vector.shape_cast %69 : vector<1x512xi1> to vector<1x512xi1>
    %400 = vector.broadcast %399 : vector<1x512xi1> to vector<8x512xi1>
    %401 = vector.broadcast %cst_129 : f32 to vector<8x512xf32>
    %402 = arith.select %400, %398, %401 : vector<8x512xi1>, vector<8x512xf32>
    %c7_i32_130 = arith.constant 7 : i32
    %403 = tpu.dynamic_rotate %345 by %c7_i32_130 dim 1 : vector<8x512xf32>, i32 -> vector<8x512xf32>
    %cst_131 = arith.constant 0.000000e+00 : f32
    %404 = vector.shape_cast %74 : vector<1x512xi1> to vector<1x512xi1>
    %405 = vector.broadcast %404 : vector<1x512xi1> to vector<8x512xi1>
    %406 = vector.broadcast %cst_131 : f32 to vector<8x512xf32>
    %407 = arith.select %405, %403, %406 : vector<8x512xi1>, vector<8x512xf32>
    %c1_i32_132 = arith.constant 1 : i32
    %408 = tpu.dynamic_rotate %345 by %c1_i32_132 dim 1 : vector<8x512xf32>, i32 -> vector<8x512xf32>
    %cst_133 = arith.constant 0.000000e+00 : f32
    %409 = vector.shape_cast %76 : vector<1x512xi1> to vector<1x512xi1>
    %410 = vector.broadcast %409 : vector<1x512xi1> to vector<8x512xi1>
    %411 = vector.broadcast %cst_133 : f32 to vector<8x512xf32>
    %412 = arith.select %410, %408, %411 : vector<8x512xi1>, vector<8x512xf32>
    %c511_i32_134 = arith.constant 511 : i32
    %413 = tpu.dynamic_rotate %345 by %c511_i32_134 dim 1 : vector<8x512xf32>, i32 -> vector<8x512xf32>
    %cst_135 = arith.constant 0.000000e+00 : f32
    %414 = vector.shape_cast %78 : vector<1x512xi1> to vector<1x512xi1>
    %415 = vector.broadcast %414 : vector<1x512xi1> to vector<8x512xi1>
    %416 = vector.broadcast %cst_135 : f32 to vector<8x512xf32>
    %417 = arith.select %415, %413, %416 : vector<8x512xi1>, vector<8x512xf32>
    %c505_i32_136 = arith.constant 505 : i32
    %418 = tpu.dynamic_rotate %345 by %c505_i32_136 dim 1 : vector<8x512xf32>, i32 -> vector<8x512xf32>
    %cst_137 = arith.constant 0.000000e+00 : f32
    %419 = vector.shape_cast %83 : vector<1x512xi1> to vector<1x512xi1>
    %420 = vector.broadcast %419 : vector<1x512xi1> to vector<8x512xi1>
    %421 = vector.broadcast %cst_137 : f32 to vector<8x512xf32>
    %422 = arith.select %420, %418, %421 : vector<8x512xi1>, vector<8x512xf32>
    %c504_i32_138 = arith.constant 504 : i32
    %423 = tpu.dynamic_rotate %345 by %c504_i32_138 dim 1 : vector<8x512xf32>, i32 -> vector<8x512xf32>
    %cst_139 = arith.constant 0.000000e+00 : f32
    %424 = vector.shape_cast %85 : vector<1x512xi1> to vector<1x512xi1>
    %425 = vector.broadcast %424 : vector<1x512xi1> to vector<8x512xi1>
    %426 = vector.broadcast %cst_139 : f32 to vector<8x512xf32>
    %427 = arith.select %425, %423, %426 : vector<8x512xi1>, vector<8x512xf32>
    %c503_i32_140 = arith.constant 503 : i32
    %428 = tpu.dynamic_rotate %345 by %c503_i32_140 dim 1 : vector<8x512xf32>, i32 -> vector<8x512xf32>
    %cst_141 = arith.constant 0.000000e+00 : f32
    %429 = vector.shape_cast %90 : vector<1x512xi1> to vector<1x512xi1>
    %430 = vector.broadcast %429 : vector<1x512xi1> to vector<8x512xi1>
    %431 = vector.broadcast %cst_141 : f32 to vector<8x512xf32>
    %432 = arith.select %430, %428, %431 : vector<8x512xi1>, vector<8x512xf32>
    %c457_i32_142 = arith.constant 457 : i32
    %433 = tpu.dynamic_rotate %345 by %c457_i32_142 dim 1 : vector<8x512xf32>, i32 -> vector<8x512xf32>
    %cst_143 = arith.constant 0.000000e+00 : f32
    %434 = vector.shape_cast %98 : vector<1x512xi1> to vector<1x512xi1>
    %435 = vector.broadcast %434 : vector<1x512xi1> to vector<8x512xi1>
    %436 = vector.broadcast %cst_143 : f32 to vector<8x512xf32>
    %437 = arith.select %435, %433, %436 : vector<8x512xi1>, vector<8x512xf32>
    %c456_i32_144 = arith.constant 456 : i32
    %438 = tpu.dynamic_rotate %345 by %c456_i32_144 dim 1 : vector<8x512xf32>, i32 -> vector<8x512xf32>
    %cst_145 = arith.constant 0.000000e+00 : f32
    %439 = vector.shape_cast %103 : vector<1x512xi1> to vector<1x512xi1>
    %440 = vector.broadcast %439 : vector<1x512xi1> to vector<8x512xi1>
    %441 = vector.broadcast %cst_145 : f32 to vector<8x512xf32>
    %442 = arith.select %440, %438, %441 : vector<8x512xi1>, vector<8x512xf32>
    %c455_i32_146 = arith.constant 455 : i32
    %443 = tpu.dynamic_rotate %345 by %c455_i32_146 dim 1 : vector<8x512xf32>, i32 -> vector<8x512xf32>
    %cst_147 = arith.constant 0.000000e+00 : f32
    %444 = vector.shape_cast %111 : vector<1x512xi1> to vector<1x512xi1>
    %445 = vector.broadcast %444 : vector<1x512xi1> to vector<8x512xi1>
    %446 = vector.broadcast %cst_147 : f32 to vector<8x512xf32>
    %447 = arith.select %445, %443, %446 : vector<8x512xi1>, vector<8x512xf32>
    %c449_i32_148 = arith.constant 449 : i32
    %448 = tpu.dynamic_rotate %345 by %c449_i32_148 dim 1 : vector<8x512xf32>, i32 -> vector<8x512xf32>
    %cst_149 = arith.constant 0.000000e+00 : f32
    %449 = vector.shape_cast %116 : vector<1x512xi1> to vector<1x512xi1>
    %450 = vector.broadcast %449 : vector<1x512xi1> to vector<8x512xi1>
    %451 = vector.broadcast %cst_149 : f32 to vector<8x512xf32>
    %452 = arith.select %450, %448, %451 : vector<8x512xi1>, vector<8x512xf32>
    %c448_i32_150 = arith.constant 448 : i32
    %453 = tpu.dynamic_rotate %345 by %c448_i32_150 dim 1 : vector<8x512xf32>, i32 -> vector<8x512xf32>
    %cst_151 = arith.constant 0.000000e+00 : f32
    %454 = vector.shape_cast %118 : vector<1x512xi1> to vector<1x512xi1>
    %455 = vector.broadcast %454 : vector<1x512xi1> to vector<8x512xi1>
    %456 = vector.broadcast %cst_151 : f32 to vector<8x512xf32>
    %457 = arith.select %455, %453, %456 : vector<8x512xi1>, vector<8x512xf32>
    %c447_i32_152 = arith.constant 447 : i32
    %458 = tpu.dynamic_rotate %345 by %c447_i32_152 dim 1 : vector<8x512xf32>, i32 -> vector<8x512xf32>
    %cst_153 = arith.constant 0.000000e+00 : f32
    %459 = vector.shape_cast %123 : vector<1x512xi1> to vector<1x512xi1>
    %460 = vector.broadcast %459 : vector<1x512xi1> to vector<8x512xi1>
    %461 = vector.broadcast %cst_153 : f32 to vector<8x512xf32>
    %462 = arith.select %460, %458, %461 : vector<8x512xi1>, vector<8x512xf32>
    %c441_i32_154 = arith.constant 441 : i32
    %463 = tpu.dynamic_rotate %345 by %c441_i32_154 dim 1 : vector<8x512xf32>, i32 -> vector<8x512xf32>
    %cst_155 = arith.constant 0.000000e+00 : f32
    %464 = vector.shape_cast %131 : vector<1x512xi1> to vector<1x512xi1>
    %465 = vector.broadcast %464 : vector<1x512xi1> to vector<8x512xi1>
    %466 = vector.broadcast %cst_155 : f32 to vector<8x512xf32>
    %467 = arith.select %465, %463, %466 : vector<8x512xi1>, vector<8x512xf32>
    %c440_i32_156 = arith.constant 440 : i32
    %468 = tpu.dynamic_rotate %345 by %c440_i32_156 dim 1 : vector<8x512xf32>, i32 -> vector<8x512xf32>
    %cst_157 = arith.constant 0.000000e+00 : f32
    %469 = vector.shape_cast %136 : vector<1x512xi1> to vector<1x512xi1>
    %470 = vector.broadcast %469 : vector<1x512xi1> to vector<8x512xi1>
    %471 = vector.broadcast %cst_157 : f32 to vector<8x512xf32>
    %472 = arith.select %470, %468, %471 : vector<8x512xi1>, vector<8x512xf32>
    %c439_i32_158 = arith.constant 439 : i32
    %473 = tpu.dynamic_rotate %345 by %c439_i32_158 dim 1 : vector<8x512xf32>, i32 -> vector<8x512xf32>
    %cst_159 = arith.constant 0.000000e+00 : f32
    %474 = vector.shape_cast %144 : vector<1x512xi1> to vector<1x512xi1>
    %475 = vector.broadcast %474 : vector<1x512xi1> to vector<8x512xi1>
    %476 = vector.broadcast %cst_159 : f32 to vector<8x512xf32>
    %477 = arith.select %475, %473, %476 : vector<8x512xi1>, vector<8x512xf32>
    %478 = tpu.concatenate %352, %357, %362, %367, %372, %377, %382, %387, %392, %397, %402, %407, %412, %345, %417, %422 in 0 : vector<8x512xf32>, vector<8x512xf32>, vector<8x512xf32>, vector<8x512xf32>, vector<8x512xf32>, vector<8x512xf32>, vector<8x512xf32>, vector<8x512xf32>, vector<8x512xf32>, vector<8x512xf32>, vector<8x512xf32>, vector<8x512xf32>, vector<8x512xf32>, vector<8x512xf32>, vector<8x512xf32>, vector<8x512xf32> -> vector<128x512xf32>
    %479 = tpu.concatenate %427, %432, %437, %442, %447, %452, %457, %462, %467, %472, %477 in 0 : vector<8x512xf32>, vector<8x512xf32>, vector<8x512xf32>, vector<8x512xf32>, vector<8x512xf32>, vector<8x512xf32>, vector<8x512xf32>, vector<8x512xf32>, vector<8x512xf32>, vector<8x512xf32>, vector<8x512xf32> -> vector<88x512xf32>
    %480 = tpu.concatenate %478, %479 in 0 : vector<128x512xf32>, vector<88x512xf32> -> vector<216x512xf32>
    %cst_160 = arith.constant dense<0.000000e+00> : vector<8x512xf32>
    %481 = tpu.matmul %347, %480, %cst_160 {dimension_numbers = #tpu.dot_dimension_numbers<[1], [0], [0], [1], [0, 0, 1, 1], [], []>} : vector<8x216xf32>, vector<216x512xf32>, vector<8x512xf32> -> vector<8x512xf32>
    %cst_161 = arith.constant 0.000000e+00 : f32
    %482 = vector.broadcast %cst_161 : f32 to vector<8x512xf32>
    %483 = arith.maximumf %481, %482 : vector<8x512xf32>
    %484 = arith.addf %483, %162 : vector<8x512xf32>
    %cst_162 = arith.constant dense<0.000000e+00> : vector<8xf32>
    %485 = vector.multi_reduction <add>, %484, %cst_162 [1] : vector<8x512xf32> to vector<8xf32>
    %486 = vector.shape_cast %485 : vector<8xf32> to vector<8x1xf32>
    %487 = vector.shape_cast %486 : vector<8x1xf32> to vector<8x1xf32>
    %488 = vector.broadcast %487 : vector<8x1xf32> to vector<8x128xf32>
    %cst_163 = arith.constant dense<0.000000e+00> : vector<8x128xf32>
    %489 = tpu.matmul %156, %488, %cst_163 {dimension_numbers = #tpu.dot_dimension_numbers<[1], [0], [0], [1], [0, 0, 1, 1], [], []>} : vector<8x8xf32>, vector<8x128xf32>, vector<8x128xf32> -> vector<8x128xf32>
    %490 = vector.extract_strided_slice %489 {offsets = [0, 0], sizes = [8, 1], strides = [1, 1]} : vector<8x128xf32> to vector<8x1xf32>
    %491 = vector.broadcast %490 : vector<8x1xf32> to vector<8x512xf32>
    %492 = arith.subf %484, %491 : vector<8x512xf32>
    %493 = arith.mulf %492, %492 : vector<8x512xf32>
    %cst_164 = arith.constant dense<0.000000e+00> : vector<8xf32>
    %494 = vector.multi_reduction <add>, %493, %cst_164 [1] : vector<8x512xf32> to vector<8xf32>
    %495 = vector.shape_cast %494 : vector<8xf32> to vector<8x1xf32>
    %496 = vector.shape_cast %495 : vector<8x1xf32> to vector<8x1xf32>
    %497 = vector.broadcast %496 : vector<8x1xf32> to vector<8x128xf32>
    %cst_165 = arith.constant dense<0.000000e+00> : vector<8x128xf32>
    %498 = tpu.matmul %156, %497, %cst_165 {dimension_numbers = #tpu.dot_dimension_numbers<[1], [0], [0], [1], [0, 0, 1, 1], [], []>} : vector<8x8xf32>, vector<8x128xf32>, vector<8x128xf32> -> vector<8x128xf32>
    %499 = vector.extract_strided_slice %498 {offsets = [0, 0], sizes = [8, 1], strides = [1, 1]} : vector<8x128xf32> to vector<8x1xf32>
    %cst_166 = arith.constant 9.99999974E-6 : f32
    %500 = vector.broadcast %cst_166 : f32 to vector<8x1xf32>
    %501 = arith.addf %499, %500 : vector<8x1xf32>
    %502 = math.rsqrt %501 : vector<8x1xf32>
    %503 = arith.mulf %502, %150 : vector<8x1xf32>
    %504 = vector.broadcast %503 : vector<8x1xf32> to vector<8x512xf32>
    %505 = arith.mulf %492, %504 : vector<8x512xf32>
    %506 = vector.broadcast %151 : vector<8x1xf32> to vector<8x512xf32>
    %507 = arith.addf %505, %506 : vector<8x512xf32>
    %c1 = arith.constant 1 : index
    %c0_167 = arith.constant 0 : index
    %c0_168 = arith.constant 0 : index
    %508 = vector.load %arg5[%c1, %c0_167, %c0_168] : memref<4x8x216xf32, #tpu.memory_space<vmem>>, vector<1x8x216xf32>
    %509 = vector.shape_cast %508 : vector<1x8x216xf32> to vector<8x216xf32>
    %c73_i32_169 = arith.constant 73 : i32
    %510 = tpu.dynamic_rotate %507 by %c73_i32_169 dim 1 : vector<8x512xf32>, i32 -> vector<8x512xf32>
    %cst_170 = arith.constant 0.000000e+00 : f32
    %511 = vector.shape_cast %16 : vector<1x512xi1> to vector<1x512xi1>
    %512 = vector.broadcast %511 : vector<1x512xi1> to vector<8x512xi1>
    %513 = vector.broadcast %cst_170 : f32 to vector<8x512xf32>
    %514 = arith.select %512, %510, %513 : vector<8x512xi1>, vector<8x512xf32>
    %c72_i32_171 = arith.constant 72 : i32
    %515 = tpu.dynamic_rotate %507 by %c72_i32_171 dim 1 : vector<8x512xf32>, i32 -> vector<8x512xf32>
    %cst_172 = arith.constant 0.000000e+00 : f32
    %516 = vector.shape_cast %21 : vector<1x512xi1> to vector<1x512xi1>
    %517 = vector.broadcast %516 : vector<1x512xi1> to vector<8x512xi1>
    %518 = vector.broadcast %cst_172 : f32 to vector<8x512xf32>
    %519 = arith.select %517, %515, %518 : vector<8x512xi1>, vector<8x512xf32>
    %c71_i32_173 = arith.constant 71 : i32
    %520 = tpu.dynamic_rotate %507 by %c71_i32_173 dim 1 : vector<8x512xf32>, i32 -> vector<8x512xf32>
    %cst_174 = arith.constant 0.000000e+00 : f32
    %521 = vector.shape_cast %29 : vector<1x512xi1> to vector<1x512xi1>
    %522 = vector.broadcast %521 : vector<1x512xi1> to vector<8x512xi1>
    %523 = vector.broadcast %cst_174 : f32 to vector<8x512xf32>
    %524 = arith.select %522, %520, %523 : vector<8x512xi1>, vector<8x512xf32>
    %c65_i32_175 = arith.constant 65 : i32
    %525 = tpu.dynamic_rotate %507 by %c65_i32_175 dim 1 : vector<8x512xf32>, i32 -> vector<8x512xf32>
    %cst_176 = arith.constant 0.000000e+00 : f32
    %526 = vector.shape_cast %34 : vector<1x512xi1> to vector<1x512xi1>
    %527 = vector.broadcast %526 : vector<1x512xi1> to vector<8x512xi1>
    %528 = vector.broadcast %cst_176 : f32 to vector<8x512xf32>
    %529 = arith.select %527, %525, %528 : vector<8x512xi1>, vector<8x512xf32>
    %c64_i32_177 = arith.constant 64 : i32
    %530 = tpu.dynamic_rotate %507 by %c64_i32_177 dim 1 : vector<8x512xf32>, i32 -> vector<8x512xf32>
    %cst_178 = arith.constant 0.000000e+00 : f32
    %531 = vector.shape_cast %36 : vector<1x512xi1> to vector<1x512xi1>
    %532 = vector.broadcast %531 : vector<1x512xi1> to vector<8x512xi1>
    %533 = vector.broadcast %cst_178 : f32 to vector<8x512xf32>
    %534 = arith.select %532, %530, %533 : vector<8x512xi1>, vector<8x512xf32>
    %c63_i32_179 = arith.constant 63 : i32
    %535 = tpu.dynamic_rotate %507 by %c63_i32_179 dim 1 : vector<8x512xf32>, i32 -> vector<8x512xf32>
    %cst_180 = arith.constant 0.000000e+00 : f32
    %536 = vector.shape_cast %41 : vector<1x512xi1> to vector<1x512xi1>
    %537 = vector.broadcast %536 : vector<1x512xi1> to vector<8x512xi1>
    %538 = vector.broadcast %cst_180 : f32 to vector<8x512xf32>
    %539 = arith.select %537, %535, %538 : vector<8x512xi1>, vector<8x512xf32>
    %c57_i32_181 = arith.constant 57 : i32
    %540 = tpu.dynamic_rotate %507 by %c57_i32_181 dim 1 : vector<8x512xf32>, i32 -> vector<8x512xf32>
    %cst_182 = arith.constant 0.000000e+00 : f32
    %541 = vector.shape_cast %49 : vector<1x512xi1> to vector<1x512xi1>
    %542 = vector.broadcast %541 : vector<1x512xi1> to vector<8x512xi1>
    %543 = vector.broadcast %cst_182 : f32 to vector<8x512xf32>
    %544 = arith.select %542, %540, %543 : vector<8x512xi1>, vector<8x512xf32>
    %c56_i32_183 = arith.constant 56 : i32
    %545 = tpu.dynamic_rotate %507 by %c56_i32_183 dim 1 : vector<8x512xf32>, i32 -> vector<8x512xf32>
    %cst_184 = arith.constant 0.000000e+00 : f32
    %546 = vector.shape_cast %54 : vector<1x512xi1> to vector<1x512xi1>
    %547 = vector.broadcast %546 : vector<1x512xi1> to vector<8x512xi1>
    %548 = vector.broadcast %cst_184 : f32 to vector<8x512xf32>
    %549 = arith.select %547, %545, %548 : vector<8x512xi1>, vector<8x512xf32>
    %c55_i32_185 = arith.constant 55 : i32
    %550 = tpu.dynamic_rotate %507 by %c55_i32_185 dim 1 : vector<8x512xf32>, i32 -> vector<8x512xf32>
    %cst_186 = arith.constant 0.000000e+00 : f32
    %551 = vector.shape_cast %62 : vector<1x512xi1> to vector<1x512xi1>
    %552 = vector.broadcast %551 : vector<1x512xi1> to vector<8x512xi1>
    %553 = vector.broadcast %cst_186 : f32 to vector<8x512xf32>
    %554 = arith.select %552, %550, %553 : vector<8x512xi1>, vector<8x512xf32>
    %c9_i32_187 = arith.constant 9 : i32
    %555 = tpu.dynamic_rotate %507 by %c9_i32_187 dim 1 : vector<8x512xf32>, i32 -> vector<8x512xf32>
    %cst_188 = arith.constant 0.000000e+00 : f32
    %556 = vector.shape_cast %67 : vector<1x512xi1> to vector<1x512xi1>
    %557 = vector.broadcast %556 : vector<1x512xi1> to vector<8x512xi1>
    %558 = vector.broadcast %cst_188 : f32 to vector<8x512xf32>
    %559 = arith.select %557, %555, %558 : vector<8x512xi1>, vector<8x512xf32>
    %c8_i32_189 = arith.constant 8 : i32
    %560 = tpu.dynamic_rotate %507 by %c8_i32_189 dim 1 : vector<8x512xf32>, i32 -> vector<8x512xf32>
    %cst_190 = arith.constant 0.000000e+00 : f32
    %561 = vector.shape_cast %69 : vector<1x512xi1> to vector<1x512xi1>
    %562 = vector.broadcast %561 : vector<1x512xi1> to vector<8x512xi1>
    %563 = vector.broadcast %cst_190 : f32 to vector<8x512xf32>
    %564 = arith.select %562, %560, %563 : vector<8x512xi1>, vector<8x512xf32>
    %c7_i32_191 = arith.constant 7 : i32
    %565 = tpu.dynamic_rotate %507 by %c7_i32_191 dim 1 : vector<8x512xf32>, i32 -> vector<8x512xf32>
    %cst_192 = arith.constant 0.000000e+00 : f32
    %566 = vector.shape_cast %74 : vector<1x512xi1> to vector<1x512xi1>
    %567 = vector.broadcast %566 : vector<1x512xi1> to vector<8x512xi1>
    %568 = vector.broadcast %cst_192 : f32 to vector<8x512xf32>
    %569 = arith.select %567, %565, %568 : vector<8x512xi1>, vector<8x512xf32>
    %c1_i32_193 = arith.constant 1 : i32
    %570 = tpu.dynamic_rotate %507 by %c1_i32_193 dim 1 : vector<8x512xf32>, i32 -> vector<8x512xf32>
    %cst_194 = arith.constant 0.000000e+00 : f32
    %571 = vector.shape_cast %76 : vector<1x512xi1> to vector<1x512xi1>
    %572 = vector.broadcast %571 : vector<1x512xi1> to vector<8x512xi1>
    %573 = vector.broadcast %cst_194 : f32 to vector<8x512xf32>
    %574 = arith.select %572, %570, %573 : vector<8x512xi1>, vector<8x512xf32>
    %c511_i32_195 = arith.constant 511 : i32
    %575 = tpu.dynamic_rotate %507 by %c511_i32_195 dim 1 : vector<8x512xf32>, i32 -> vector<8x512xf32>
    %cst_196 = arith.constant 0.000000e+00 : f32
    %576 = vector.shape_cast %78 : vector<1x512xi1> to vector<1x512xi1>
    %577 = vector.broadcast %576 : vector<1x512xi1> to vector<8x512xi1>
    %578 = vector.broadcast %cst_196 : f32 to vector<8x512xf32>
    %579 = arith.select %577, %575, %578 : vector<8x512xi1>, vector<8x512xf32>
    %c505_i32_197 = arith.constant 505 : i32
    %580 = tpu.dynamic_rotate %507 by %c505_i32_197 dim 1 : vector<8x512xf32>, i32 -> vector<8x512xf32>
    %cst_198 = arith.constant 0.000000e+00 : f32
    %581 = vector.shape_cast %83 : vector<1x512xi1> to vector<1x512xi1>
    %582 = vector.broadcast %581 : vector<1x512xi1> to vector<8x512xi1>
    %583 = vector.broadcast %cst_198 : f32 to vector<8x512xf32>
    %584 = arith.select %582, %580, %583 : vector<8x512xi1>, vector<8x512xf32>
    %c504_i32_199 = arith.constant 504 : i32
    %585 = tpu.dynamic_rotate %507 by %c504_i32_199 dim 1 : vector<8x512xf32>, i32 -> vector<8x512xf32>
    %cst_200 = arith.constant 0.000000e+00 : f32
    %586 = vector.shape_cast %85 : vector<1x512xi1> to vector<1x512xi1>
    %587 = vector.broadcast %586 : vector<1x512xi1> to vector<8x512xi1>
    %588 = vector.broadcast %cst_200 : f32 to vector<8x512xf32>
    %589 = arith.select %587, %585, %588 : vector<8x512xi1>, vector<8x512xf32>
    %c503_i32_201 = arith.constant 503 : i32
    %590 = tpu.dynamic_rotate %507 by %c503_i32_201 dim 1 : vector<8x512xf32>, i32 -> vector<8x512xf32>
    %cst_202 = arith.constant 0.000000e+00 : f32
    %591 = vector.shape_cast %90 : vector<1x512xi1> to vector<1x512xi1>
    %592 = vector.broadcast %591 : vector<1x512xi1> to vector<8x512xi1>
    %593 = vector.broadcast %cst_202 : f32 to vector<8x512xf32>
    %594 = arith.select %592, %590, %593 : vector<8x512xi1>, vector<8x512xf32>
    %c457_i32_203 = arith.constant 457 : i32
    %595 = tpu.dynamic_rotate %507 by %c457_i32_203 dim 1 : vector<8x512xf32>, i32 -> vector<8x512xf32>
    %cst_204 = arith.constant 0.000000e+00 : f32
    %596 = vector.shape_cast %98 : vector<1x512xi1> to vector<1x512xi1>
    %597 = vector.broadcast %596 : vector<1x512xi1> to vector<8x512xi1>
    %598 = vector.broadcast %cst_204 : f32 to vector<8x512xf32>
    %599 = arith.select %597, %595, %598 : vector<8x512xi1>, vector<8x512xf32>
    %c456_i32_205 = arith.constant 456 : i32
    %600 = tpu.dynamic_rotate %507 by %c456_i32_205 dim 1 : vector<8x512xf32>, i32 -> vector<8x512xf32>
    %cst_206 = arith.constant 0.000000e+00 : f32
    %601 = vector.shape_cast %103 : vector<1x512xi1> to vector<1x512xi1>
    %602 = vector.broadcast %601 : vector<1x512xi1> to vector<8x512xi1>
    %603 = vector.broadcast %cst_206 : f32 to vector<8x512xf32>
    %604 = arith.select %602, %600, %603 : vector<8x512xi1>, vector<8x512xf32>
    %c455_i32_207 = arith.constant 455 : i32
    %605 = tpu.dynamic_rotate %507 by %c455_i32_207 dim 1 : vector<8x512xf32>, i32 -> vector<8x512xf32>
    %cst_208 = arith.constant 0.000000e+00 : f32
    %606 = vector.shape_cast %111 : vector<1x512xi1> to vector<1x512xi1>
    %607 = vector.broadcast %606 : vector<1x512xi1> to vector<8x512xi1>
    %608 = vector.broadcast %cst_208 : f32 to vector<8x512xf32>
    %609 = arith.select %607, %605, %608 : vector<8x512xi1>, vector<8x512xf32>
    %c449_i32_209 = arith.constant 449 : i32
    %610 = tpu.dynamic_rotate %507 by %c449_i32_209 dim 1 : vector<8x512xf32>, i32 -> vector<8x512xf32>
    %cst_210 = arith.constant 0.000000e+00 : f32
    %611 = vector.shape_cast %116 : vector<1x512xi1> to vector<1x512xi1>
    %612 = vector.broadcast %611 : vector<1x512xi1> to vector<8x512xi1>
    %613 = vector.broadcast %cst_210 : f32 to vector<8x512xf32>
    %614 = arith.select %612, %610, %613 : vector<8x512xi1>, vector<8x512xf32>
    %c448_i32_211 = arith.constant 448 : i32
    %615 = tpu.dynamic_rotate %507 by %c448_i32_211 dim 1 : vector<8x512xf32>, i32 -> vector<8x512xf32>
    %cst_212 = arith.constant 0.000000e+00 : f32
    %616 = vector.shape_cast %118 : vector<1x512xi1> to vector<1x512xi1>
    %617 = vector.broadcast %616 : vector<1x512xi1> to vector<8x512xi1>
    %618 = vector.broadcast %cst_212 : f32 to vector<8x512xf32>
    %619 = arith.select %617, %615, %618 : vector<8x512xi1>, vector<8x512xf32>
    %c447_i32_213 = arith.constant 447 : i32
    %620 = tpu.dynamic_rotate %507 by %c447_i32_213 dim 1 : vector<8x512xf32>, i32 -> vector<8x512xf32>
    %cst_214 = arith.constant 0.000000e+00 : f32
    %621 = vector.shape_cast %123 : vector<1x512xi1> to vector<1x512xi1>
    %622 = vector.broadcast %621 : vector<1x512xi1> to vector<8x512xi1>
    %623 = vector.broadcast %cst_214 : f32 to vector<8x512xf32>
    %624 = arith.select %622, %620, %623 : vector<8x512xi1>, vector<8x512xf32>
    %c441_i32_215 = arith.constant 441 : i32
    %625 = tpu.dynamic_rotate %507 by %c441_i32_215 dim 1 : vector<8x512xf32>, i32 -> vector<8x512xf32>
    %cst_216 = arith.constant 0.000000e+00 : f32
    %626 = vector.shape_cast %131 : vector<1x512xi1> to vector<1x512xi1>
    %627 = vector.broadcast %626 : vector<1x512xi1> to vector<8x512xi1>
    %628 = vector.broadcast %cst_216 : f32 to vector<8x512xf32>
    %629 = arith.select %627, %625, %628 : vector<8x512xi1>, vector<8x512xf32>
    %c440_i32_217 = arith.constant 440 : i32
    %630 = tpu.dynamic_rotate %507 by %c440_i32_217 dim 1 : vector<8x512xf32>, i32 -> vector<8x512xf32>
    %cst_218 = arith.constant 0.000000e+00 : f32
    %631 = vector.shape_cast %136 : vector<1x512xi1> to vector<1x512xi1>
    %632 = vector.broadcast %631 : vector<1x512xi1> to vector<8x512xi1>
    %633 = vector.broadcast %cst_218 : f32 to vector<8x512xf32>
    %634 = arith.select %632, %630, %633 : vector<8x512xi1>, vector<8x512xf32>
    %c439_i32_219 = arith.constant 439 : i32
    %635 = tpu.dynamic_rotate %507 by %c439_i32_219 dim 1 : vector<8x512xf32>, i32 -> vector<8x512xf32>
    %cst_220 = arith.constant 0.000000e+00 : f32
    %636 = vector.shape_cast %144 : vector<1x512xi1> to vector<1x512xi1>
    %637 = vector.broadcast %636 : vector<1x512xi1> to vector<8x512xi1>
    %638 = vector.broadcast %cst_220 : f32 to vector<8x512xf32>
    %639 = arith.select %637, %635, %638 : vector<8x512xi1>, vector<8x512xf32>
    %640 = tpu.concatenate %514, %519, %524, %529, %534, %539, %544, %549, %554, %559, %564, %569, %574, %507, %579, %584 in 0 : vector<8x512xf32>, vector<8x512xf32>, vector<8x512xf32>, vector<8x512xf32>, vector<8x512xf32>, vector<8x512xf32>, vector<8x512xf32>, vector<8x512xf32>, vector<8x512xf32>, vector<8x512xf32>, vector<8x512xf32>, vector<8x512xf32>, vector<8x512xf32>, vector<8x512xf32>, vector<8x512xf32>, vector<8x512xf32> -> vector<128x512xf32>
    %641 = tpu.concatenate %589, %594, %599, %604, %609, %614, %619, %624, %629, %634, %639 in 0 : vector<8x512xf32>, vector<8x512xf32>, vector<8x512xf32>, vector<8x512xf32>, vector<8x512xf32>, vector<8x512xf32>, vector<8x512xf32>, vector<8x512xf32>, vector<8x512xf32>, vector<8x512xf32>, vector<8x512xf32> -> vector<88x512xf32>
    %642 = tpu.concatenate %640, %641 in 0 : vector<128x512xf32>, vector<88x512xf32> -> vector<216x512xf32>
    %cst_221 = arith.constant dense<0.000000e+00> : vector<8x512xf32>
    %643 = tpu.matmul %509, %642, %cst_221 {dimension_numbers = #tpu.dot_dimension_numbers<[1], [0], [0], [1], [0, 0, 1, 1], [], []>} : vector<8x216xf32>, vector<216x512xf32>, vector<8x512xf32> -> vector<8x512xf32>
    %cst_222 = arith.constant 0.000000e+00 : f32
    %644 = vector.broadcast %cst_222 : f32 to vector<8x512xf32>
    %645 = arith.maximumf %643, %644 : vector<8x512xf32>
    %cst_223 = arith.constant dense<0.000000e+00> : vector<8xf32>
    %646 = vector.multi_reduction <add>, %645, %cst_223 [1] : vector<8x512xf32> to vector<8xf32>
    %647 = vector.shape_cast %646 : vector<8xf32> to vector<8x1xf32>
    %648 = vector.shape_cast %647 : vector<8x1xf32> to vector<8x1xf32>
    %649 = vector.broadcast %648 : vector<8x1xf32> to vector<8x128xf32>
    %cst_224 = arith.constant dense<0.000000e+00> : vector<8x128xf32>
    %650 = tpu.matmul %156, %649, %cst_224 {dimension_numbers = #tpu.dot_dimension_numbers<[1], [0], [0], [1], [0, 0, 1, 1], [], []>} : vector<8x8xf32>, vector<8x128xf32>, vector<8x128xf32> -> vector<8x128xf32>
    %651 = vector.extract_strided_slice %650 {offsets = [0, 0], sizes = [8, 1], strides = [1, 1]} : vector<8x128xf32> to vector<8x1xf32>
    %652 = vector.broadcast %651 : vector<8x1xf32> to vector<8x512xf32>
    %653 = arith.subf %645, %652 : vector<8x512xf32>
    %654 = arith.mulf %653, %653 : vector<8x512xf32>
    %cst_225 = arith.constant dense<0.000000e+00> : vector<8xf32>
    %655 = vector.multi_reduction <add>, %654, %cst_225 [1] : vector<8x512xf32> to vector<8xf32>
    %656 = vector.shape_cast %655 : vector<8xf32> to vector<8x1xf32>
    %657 = vector.shape_cast %656 : vector<8x1xf32> to vector<8x1xf32>
    %658 = vector.broadcast %657 : vector<8x1xf32> to vector<8x128xf32>
    %cst_226 = arith.constant dense<0.000000e+00> : vector<8x128xf32>
    %659 = tpu.matmul %156, %658, %cst_226 {dimension_numbers = #tpu.dot_dimension_numbers<[1], [0], [0], [1], [0, 0, 1, 1], [], []>} : vector<8x8xf32>, vector<8x128xf32>, vector<8x128xf32> -> vector<8x128xf32>
    %660 = vector.extract_strided_slice %659 {offsets = [0, 0], sizes = [8, 1], strides = [1, 1]} : vector<8x128xf32> to vector<8x1xf32>
    %cst_227 = arith.constant 9.99999974E-6 : f32
    %661 = vector.broadcast %cst_227 : f32 to vector<8x1xf32>
    %662 = arith.addf %660, %661 : vector<8x1xf32>
    %663 = math.rsqrt %662 : vector<8x1xf32>
    %664 = arith.mulf %663, %152 : vector<8x1xf32>
    %665 = vector.broadcast %664 : vector<8x1xf32> to vector<8x512xf32>
    %666 = arith.mulf %653, %665 : vector<8x512xf32>
    %667 = vector.broadcast %153 : vector<8x1xf32> to vector<8x512xf32>
    %668 = arith.addf %666, %667 : vector<8x512xf32>
    %c2 = arith.constant 2 : index
    %c0_228 = arith.constant 0 : index
    %c0_229 = arith.constant 0 : index
    %669 = vector.load %arg5[%c2, %c0_228, %c0_229] : memref<4x8x216xf32, #tpu.memory_space<vmem>>, vector<1x8x216xf32>
    %670 = vector.shape_cast %669 : vector<1x8x216xf32> to vector<8x216xf32>
    %c73_i32_230 = arith.constant 73 : i32
    %671 = tpu.dynamic_rotate %668 by %c73_i32_230 dim 1 : vector<8x512xf32>, i32 -> vector<8x512xf32>
    %cst_231 = arith.constant 0.000000e+00 : f32
    %672 = vector.shape_cast %16 : vector<1x512xi1> to vector<1x512xi1>
    %673 = vector.broadcast %672 : vector<1x512xi1> to vector<8x512xi1>
    %674 = vector.broadcast %cst_231 : f32 to vector<8x512xf32>
    %675 = arith.select %673, %671, %674 : vector<8x512xi1>, vector<8x512xf32>
    %c72_i32_232 = arith.constant 72 : i32
    %676 = tpu.dynamic_rotate %668 by %c72_i32_232 dim 1 : vector<8x512xf32>, i32 -> vector<8x512xf32>
    %cst_233 = arith.constant 0.000000e+00 : f32
    %677 = vector.shape_cast %21 : vector<1x512xi1> to vector<1x512xi1>
    %678 = vector.broadcast %677 : vector<1x512xi1> to vector<8x512xi1>
    %679 = vector.broadcast %cst_233 : f32 to vector<8x512xf32>
    %680 = arith.select %678, %676, %679 : vector<8x512xi1>, vector<8x512xf32>
    %c71_i32_234 = arith.constant 71 : i32
    %681 = tpu.dynamic_rotate %668 by %c71_i32_234 dim 1 : vector<8x512xf32>, i32 -> vector<8x512xf32>
    %cst_235 = arith.constant 0.000000e+00 : f32
    %682 = vector.shape_cast %29 : vector<1x512xi1> to vector<1x512xi1>
    %683 = vector.broadcast %682 : vector<1x512xi1> to vector<8x512xi1>
    %684 = vector.broadcast %cst_235 : f32 to vector<8x512xf32>
    %685 = arith.select %683, %681, %684 : vector<8x512xi1>, vector<8x512xf32>
    %c65_i32_236 = arith.constant 65 : i32
    %686 = tpu.dynamic_rotate %668 by %c65_i32_236 dim 1 : vector<8x512xf32>, i32 -> vector<8x512xf32>
    %cst_237 = arith.constant 0.000000e+00 : f32
    %687 = vector.shape_cast %34 : vector<1x512xi1> to vector<1x512xi1>
    %688 = vector.broadcast %687 : vector<1x512xi1> to vector<8x512xi1>
    %689 = vector.broadcast %cst_237 : f32 to vector<8x512xf32>
    %690 = arith.select %688, %686, %689 : vector<8x512xi1>, vector<8x512xf32>
    %c64_i32_238 = arith.constant 64 : i32
    %691 = tpu.dynamic_rotate %668 by %c64_i32_238 dim 1 : vector<8x512xf32>, i32 -> vector<8x512xf32>
    %cst_239 = arith.constant 0.000000e+00 : f32
    %692 = vector.shape_cast %36 : vector<1x512xi1> to vector<1x512xi1>
    %693 = vector.broadcast %692 : vector<1x512xi1> to vector<8x512xi1>
    %694 = vector.broadcast %cst_239 : f32 to vector<8x512xf32>
    %695 = arith.select %693, %691, %694 : vector<8x512xi1>, vector<8x512xf32>
    %c63_i32_240 = arith.constant 63 : i32
    %696 = tpu.dynamic_rotate %668 by %c63_i32_240 dim 1 : vector<8x512xf32>, i32 -> vector<8x512xf32>
    %cst_241 = arith.constant 0.000000e+00 : f32
    %697 = vector.shape_cast %41 : vector<1x512xi1> to vector<1x512xi1>
    %698 = vector.broadcast %697 : vector<1x512xi1> to vector<8x512xi1>
    %699 = vector.broadcast %cst_241 : f32 to vector<8x512xf32>
    %700 = arith.select %698, %696, %699 : vector<8x512xi1>, vector<8x512xf32>
    %c57_i32_242 = arith.constant 57 : i32
    %701 = tpu.dynamic_rotate %668 by %c57_i32_242 dim 1 : vector<8x512xf32>, i32 -> vector<8x512xf32>
    %cst_243 = arith.constant 0.000000e+00 : f32
    %702 = vector.shape_cast %49 : vector<1x512xi1> to vector<1x512xi1>
    %703 = vector.broadcast %702 : vector<1x512xi1> to vector<8x512xi1>
    %704 = vector.broadcast %cst_243 : f32 to vector<8x512xf32>
    %705 = arith.select %703, %701, %704 : vector<8x512xi1>, vector<8x512xf32>
    %c56_i32_244 = arith.constant 56 : i32
    %706 = tpu.dynamic_rotate %668 by %c56_i32_244 dim 1 : vector<8x512xf32>, i32 -> vector<8x512xf32>
    %cst_245 = arith.constant 0.000000e+00 : f32
    %707 = vector.shape_cast %54 : vector<1x512xi1> to vector<1x512xi1>
    %708 = vector.broadcast %707 : vector<1x512xi1> to vector<8x512xi1>
    %709 = vector.broadcast %cst_245 : f32 to vector<8x512xf32>
    %710 = arith.select %708, %706, %709 : vector<8x512xi1>, vector<8x512xf32>
    %c55_i32_246 = arith.constant 55 : i32
    %711 = tpu.dynamic_rotate %668 by %c55_i32_246 dim 1 : vector<8x512xf32>, i32 -> vector<8x512xf32>
    %cst_247 = arith.constant 0.000000e+00 : f32
    %712 = vector.shape_cast %62 : vector<1x512xi1> to vector<1x512xi1>
    %713 = vector.broadcast %712 : vector<1x512xi1> to vector<8x512xi1>
    %714 = vector.broadcast %cst_247 : f32 to vector<8x512xf32>
    %715 = arith.select %713, %711, %714 : vector<8x512xi1>, vector<8x512xf32>
    %c9_i32_248 = arith.constant 9 : i32
    %716 = tpu.dynamic_rotate %668 by %c9_i32_248 dim 1 : vector<8x512xf32>, i32 -> vector<8x512xf32>
    %cst_249 = arith.constant 0.000000e+00 : f32
    %717 = vector.shape_cast %67 : vector<1x512xi1> to vector<1x512xi1>
    %718 = vector.broadcast %717 : vector<1x512xi1> to vector<8x512xi1>
    %719 = vector.broadcast %cst_249 : f32 to vector<8x512xf32>
    %720 = arith.select %718, %716, %719 : vector<8x512xi1>, vector<8x512xf32>
    %c8_i32_250 = arith.constant 8 : i32
    %721 = tpu.dynamic_rotate %668 by %c8_i32_250 dim 1 : vector<8x512xf32>, i32 -> vector<8x512xf32>
    %cst_251 = arith.constant 0.000000e+00 : f32
    %722 = vector.shape_cast %69 : vector<1x512xi1> to vector<1x512xi1>
    %723 = vector.broadcast %722 : vector<1x512xi1> to vector<8x512xi1>
    %724 = vector.broadcast %cst_251 : f32 to vector<8x512xf32>
    %725 = arith.select %723, %721, %724 : vector<8x512xi1>, vector<8x512xf32>
    %c7_i32_252 = arith.constant 7 : i32
    %726 = tpu.dynamic_rotate %668 by %c7_i32_252 dim 1 : vector<8x512xf32>, i32 -> vector<8x512xf32>
    %cst_253 = arith.constant 0.000000e+00 : f32
    %727 = vector.shape_cast %74 : vector<1x512xi1> to vector<1x512xi1>
    %728 = vector.broadcast %727 : vector<1x512xi1> to vector<8x512xi1>
    %729 = vector.broadcast %cst_253 : f32 to vector<8x512xf32>
    %730 = arith.select %728, %726, %729 : vector<8x512xi1>, vector<8x512xf32>
    %c1_i32_254 = arith.constant 1 : i32
    %731 = tpu.dynamic_rotate %668 by %c1_i32_254 dim 1 : vector<8x512xf32>, i32 -> vector<8x512xf32>
    %cst_255 = arith.constant 0.000000e+00 : f32
    %732 = vector.shape_cast %76 : vector<1x512xi1> to vector<1x512xi1>
    %733 = vector.broadcast %732 : vector<1x512xi1> to vector<8x512xi1>
    %734 = vector.broadcast %cst_255 : f32 to vector<8x512xf32>
    %735 = arith.select %733, %731, %734 : vector<8x512xi1>, vector<8x512xf32>
    %c511_i32_256 = arith.constant 511 : i32
    %736 = tpu.dynamic_rotate %668 by %c511_i32_256 dim 1 : vector<8x512xf32>, i32 -> vector<8x512xf32>
    %cst_257 = arith.constant 0.000000e+00 : f32
    %737 = vector.shape_cast %78 : vector<1x512xi1> to vector<1x512xi1>
    %738 = vector.broadcast %737 : vector<1x512xi1> to vector<8x512xi1>
    %739 = vector.broadcast %cst_257 : f32 to vector<8x512xf32>
    %740 = arith.select %738, %736, %739 : vector<8x512xi1>, vector<8x512xf32>
    %c505_i32_258 = arith.constant 505 : i32
    %741 = tpu.dynamic_rotate %668 by %c505_i32_258 dim 1 : vector<8x512xf32>, i32 -> vector<8x512xf32>
    %cst_259 = arith.constant 0.000000e+00 : f32
    %742 = vector.shape_cast %83 : vector<1x512xi1> to vector<1x512xi1>
    %743 = vector.broadcast %742 : vector<1x512xi1> to vector<8x512xi1>
    %744 = vector.broadcast %cst_259 : f32 to vector<8x512xf32>
    %745 = arith.select %743, %741, %744 : vector<8x512xi1>, vector<8x512xf32>
    %c504_i32_260 = arith.constant 504 : i32
    %746 = tpu.dynamic_rotate %668 by %c504_i32_260 dim 1 : vector<8x512xf32>, i32 -> vector<8x512xf32>
    %cst_261 = arith.constant 0.000000e+00 : f32
    %747 = vector.shape_cast %85 : vector<1x512xi1> to vector<1x512xi1>
    %748 = vector.broadcast %747 : vector<1x512xi1> to vector<8x512xi1>
    %749 = vector.broadcast %cst_261 : f32 to vector<8x512xf32>
    %750 = arith.select %748, %746, %749 : vector<8x512xi1>, vector<8x512xf32>
    %c503_i32_262 = arith.constant 503 : i32
    %751 = tpu.dynamic_rotate %668 by %c503_i32_262 dim 1 : vector<8x512xf32>, i32 -> vector<8x512xf32>
    %cst_263 = arith.constant 0.000000e+00 : f32
    %752 = vector.shape_cast %90 : vector<1x512xi1> to vector<1x512xi1>
    %753 = vector.broadcast %752 : vector<1x512xi1> to vector<8x512xi1>
    %754 = vector.broadcast %cst_263 : f32 to vector<8x512xf32>
    %755 = arith.select %753, %751, %754 : vector<8x512xi1>, vector<8x512xf32>
    %c457_i32_264 = arith.constant 457 : i32
    %756 = tpu.dynamic_rotate %668 by %c457_i32_264 dim 1 : vector<8x512xf32>, i32 -> vector<8x512xf32>
    %cst_265 = arith.constant 0.000000e+00 : f32
    %757 = vector.shape_cast %98 : vector<1x512xi1> to vector<1x512xi1>
    %758 = vector.broadcast %757 : vector<1x512xi1> to vector<8x512xi1>
    %759 = vector.broadcast %cst_265 : f32 to vector<8x512xf32>
    %760 = arith.select %758, %756, %759 : vector<8x512xi1>, vector<8x512xf32>
    %c456_i32_266 = arith.constant 456 : i32
    %761 = tpu.dynamic_rotate %668 by %c456_i32_266 dim 1 : vector<8x512xf32>, i32 -> vector<8x512xf32>
    %cst_267 = arith.constant 0.000000e+00 : f32
    %762 = vector.shape_cast %103 : vector<1x512xi1> to vector<1x512xi1>
    %763 = vector.broadcast %762 : vector<1x512xi1> to vector<8x512xi1>
    %764 = vector.broadcast %cst_267 : f32 to vector<8x512xf32>
    %765 = arith.select %763, %761, %764 : vector<8x512xi1>, vector<8x512xf32>
    %c455_i32_268 = arith.constant 455 : i32
    %766 = tpu.dynamic_rotate %668 by %c455_i32_268 dim 1 : vector<8x512xf32>, i32 -> vector<8x512xf32>
    %cst_269 = arith.constant 0.000000e+00 : f32
    %767 = vector.shape_cast %111 : vector<1x512xi1> to vector<1x512xi1>
    %768 = vector.broadcast %767 : vector<1x512xi1> to vector<8x512xi1>
    %769 = vector.broadcast %cst_269 : f32 to vector<8x512xf32>
    %770 = arith.select %768, %766, %769 : vector<8x512xi1>, vector<8x512xf32>
    %c449_i32_270 = arith.constant 449 : i32
    %771 = tpu.dynamic_rotate %668 by %c449_i32_270 dim 1 : vector<8x512xf32>, i32 -> vector<8x512xf32>
    %cst_271 = arith.constant 0.000000e+00 : f32
    %772 = vector.shape_cast %116 : vector<1x512xi1> to vector<1x512xi1>
    %773 = vector.broadcast %772 : vector<1x512xi1> to vector<8x512xi1>
    %774 = vector.broadcast %cst_271 : f32 to vector<8x512xf32>
    %775 = arith.select %773, %771, %774 : vector<8x512xi1>, vector<8x512xf32>
    %c448_i32_272 = arith.constant 448 : i32
    %776 = tpu.dynamic_rotate %668 by %c448_i32_272 dim 1 : vector<8x512xf32>, i32 -> vector<8x512xf32>
    %cst_273 = arith.constant 0.000000e+00 : f32
    %777 = vector.shape_cast %118 : vector<1x512xi1> to vector<1x512xi1>
    %778 = vector.broadcast %777 : vector<1x512xi1> to vector<8x512xi1>
    %779 = vector.broadcast %cst_273 : f32 to vector<8x512xf32>
    %780 = arith.select %778, %776, %779 : vector<8x512xi1>, vector<8x512xf32>
    %c447_i32_274 = arith.constant 447 : i32
    %781 = tpu.dynamic_rotate %668 by %c447_i32_274 dim 1 : vector<8x512xf32>, i32 -> vector<8x512xf32>
    %cst_275 = arith.constant 0.000000e+00 : f32
    %782 = vector.shape_cast %123 : vector<1x512xi1> to vector<1x512xi1>
    %783 = vector.broadcast %782 : vector<1x512xi1> to vector<8x512xi1>
    %784 = vector.broadcast %cst_275 : f32 to vector<8x512xf32>
    %785 = arith.select %783, %781, %784 : vector<8x512xi1>, vector<8x512xf32>
    %c441_i32_276 = arith.constant 441 : i32
    %786 = tpu.dynamic_rotate %668 by %c441_i32_276 dim 1 : vector<8x512xf32>, i32 -> vector<8x512xf32>
    %cst_277 = arith.constant 0.000000e+00 : f32
    %787 = vector.shape_cast %131 : vector<1x512xi1> to vector<1x512xi1>
    %788 = vector.broadcast %787 : vector<1x512xi1> to vector<8x512xi1>
    %789 = vector.broadcast %cst_277 : f32 to vector<8x512xf32>
    %790 = arith.select %788, %786, %789 : vector<8x512xi1>, vector<8x512xf32>
    %c440_i32_278 = arith.constant 440 : i32
    %791 = tpu.dynamic_rotate %668 by %c440_i32_278 dim 1 : vector<8x512xf32>, i32 -> vector<8x512xf32>
    %cst_279 = arith.constant 0.000000e+00 : f32
    %792 = vector.shape_cast %136 : vector<1x512xi1> to vector<1x512xi1>
    %793 = vector.broadcast %792 : vector<1x512xi1> to vector<8x512xi1>
    %794 = vector.broadcast %cst_279 : f32 to vector<8x512xf32>
    %795 = arith.select %793, %791, %794 : vector<8x512xi1>, vector<8x512xf32>
    %c439_i32_280 = arith.constant 439 : i32
    %796 = tpu.dynamic_rotate %668 by %c439_i32_280 dim 1 : vector<8x512xf32>, i32 -> vector<8x512xf32>
    %cst_281 = arith.constant 0.000000e+00 : f32
    %797 = vector.shape_cast %144 : vector<1x512xi1> to vector<1x512xi1>
    %798 = vector.broadcast %797 : vector<1x512xi1> to vector<8x512xi1>
    %799 = vector.broadcast %cst_281 : f32 to vector<8x512xf32>
    %800 = arith.select %798, %796, %799 : vector<8x512xi1>, vector<8x512xf32>
    %801 = tpu.concatenate %675, %680, %685, %690, %695, %700, %705, %710, %715, %720, %725, %730, %735, %668, %740, %745 in 0 : vector<8x512xf32>, vector<8x512xf32>, vector<8x512xf32>, vector<8x512xf32>, vector<8x512xf32>, vector<8x512xf32>, vector<8x512xf32>, vector<8x512xf32>, vector<8x512xf32>, vector<8x512xf32>, vector<8x512xf32>, vector<8x512xf32>, vector<8x512xf32>, vector<8x512xf32>, vector<8x512xf32>, vector<8x512xf32> -> vector<128x512xf32>
    %802 = tpu.concatenate %750, %755, %760, %765, %770, %775, %780, %785, %790, %795, %800 in 0 : vector<8x512xf32>, vector<8x512xf32>, vector<8x512xf32>, vector<8x512xf32>, vector<8x512xf32>, vector<8x512xf32>, vector<8x512xf32>, vector<8x512xf32>, vector<8x512xf32>, vector<8x512xf32>, vector<8x512xf32> -> vector<88x512xf32>
    %803 = tpu.concatenate %801, %802 in 0 : vector<128x512xf32>, vector<88x512xf32> -> vector<216x512xf32>
    %cst_282 = arith.constant dense<0.000000e+00> : vector<8x512xf32>
    %804 = tpu.matmul %670, %803, %cst_282 {dimension_numbers = #tpu.dot_dimension_numbers<[1], [0], [0], [1], [0, 0, 1, 1], [], []>} : vector<8x216xf32>, vector<216x512xf32>, vector<8x512xf32> -> vector<8x512xf32>
    %cst_283 = arith.constant 0.000000e+00 : f32
    %805 = vector.broadcast %cst_283 : f32 to vector<8x512xf32>
    %806 = arith.maximumf %804, %805 : vector<8x512xf32>
    %c3 = arith.constant 3 : index
    %c0_284 = arith.constant 0 : index
    %c0_285 = arith.constant 0 : index
    %807 = vector.load %arg5[%c3, %c0_284, %c0_285] : memref<4x8x216xf32, #tpu.memory_space<vmem>>, vector<1x8x216xf32>
    %808 = vector.shape_cast %807 : vector<1x8x216xf32> to vector<8x216xf32>
    %c73_i32_286 = arith.constant 73 : i32
    %809 = tpu.dynamic_rotate %806 by %c73_i32_286 dim 1 : vector<8x512xf32>, i32 -> vector<8x512xf32>
    %cst_287 = arith.constant 0.000000e+00 : f32
    %810 = vector.shape_cast %16 : vector<1x512xi1> to vector<1x512xi1>
    %811 = vector.broadcast %810 : vector<1x512xi1> to vector<8x512xi1>
    %812 = vector.broadcast %cst_287 : f32 to vector<8x512xf32>
    %813 = arith.select %811, %809, %812 : vector<8x512xi1>, vector<8x512xf32>
    %c72_i32_288 = arith.constant 72 : i32
    %814 = tpu.dynamic_rotate %806 by %c72_i32_288 dim 1 : vector<8x512xf32>, i32 -> vector<8x512xf32>
    %cst_289 = arith.constant 0.000000e+00 : f32
    %815 = vector.shape_cast %21 : vector<1x512xi1> to vector<1x512xi1>
    %816 = vector.broadcast %815 : vector<1x512xi1> to vector<8x512xi1>
    %817 = vector.broadcast %cst_289 : f32 to vector<8x512xf32>
    %818 = arith.select %816, %814, %817 : vector<8x512xi1>, vector<8x512xf32>
    %c71_i32_290 = arith.constant 71 : i32
    %819 = tpu.dynamic_rotate %806 by %c71_i32_290 dim 1 : vector<8x512xf32>, i32 -> vector<8x512xf32>
    %cst_291 = arith.constant 0.000000e+00 : f32
    %820 = vector.shape_cast %29 : vector<1x512xi1> to vector<1x512xi1>
    %821 = vector.broadcast %820 : vector<1x512xi1> to vector<8x512xi1>
    %822 = vector.broadcast %cst_291 : f32 to vector<8x512xf32>
    %823 = arith.select %821, %819, %822 : vector<8x512xi1>, vector<8x512xf32>
    %c65_i32_292 = arith.constant 65 : i32
    %824 = tpu.dynamic_rotate %806 by %c65_i32_292 dim 1 : vector<8x512xf32>, i32 -> vector<8x512xf32>
    %cst_293 = arith.constant 0.000000e+00 : f32
    %825 = vector.shape_cast %34 : vector<1x512xi1> to vector<1x512xi1>
    %826 = vector.broadcast %825 : vector<1x512xi1> to vector<8x512xi1>
    %827 = vector.broadcast %cst_293 : f32 to vector<8x512xf32>
    %828 = arith.select %826, %824, %827 : vector<8x512xi1>, vector<8x512xf32>
    %c64_i32_294 = arith.constant 64 : i32
    %829 = tpu.dynamic_rotate %806 by %c64_i32_294 dim 1 : vector<8x512xf32>, i32 -> vector<8x512xf32>
    %cst_295 = arith.constant 0.000000e+00 : f32
    %830 = vector.shape_cast %36 : vector<1x512xi1> to vector<1x512xi1>
    %831 = vector.broadcast %830 : vector<1x512xi1> to vector<8x512xi1>
    %832 = vector.broadcast %cst_295 : f32 to vector<8x512xf32>
    %833 = arith.select %831, %829, %832 : vector<8x512xi1>, vector<8x512xf32>
    %c63_i32_296 = arith.constant 63 : i32
    %834 = tpu.dynamic_rotate %806 by %c63_i32_296 dim 1 : vector<8x512xf32>, i32 -> vector<8x512xf32>
    %cst_297 = arith.constant 0.000000e+00 : f32
    %835 = vector.shape_cast %41 : vector<1x512xi1> to vector<1x512xi1>
    %836 = vector.broadcast %835 : vector<1x512xi1> to vector<8x512xi1>
    %837 = vector.broadcast %cst_297 : f32 to vector<8x512xf32>
    %838 = arith.select %836, %834, %837 : vector<8x512xi1>, vector<8x512xf32>
    %c57_i32_298 = arith.constant 57 : i32
    %839 = tpu.dynamic_rotate %806 by %c57_i32_298 dim 1 : vector<8x512xf32>, i32 -> vector<8x512xf32>
    %cst_299 = arith.constant 0.000000e+00 : f32
    %840 = vector.shape_cast %49 : vector<1x512xi1> to vector<1x512xi1>
    %841 = vector.broadcast %840 : vector<1x512xi1> to vector<8x512xi1>
    %842 = vector.broadcast %cst_299 : f32 to vector<8x512xf32>
    %843 = arith.select %841, %839, %842 : vector<8x512xi1>, vector<8x512xf32>
    %c56_i32_300 = arith.constant 56 : i32
    %844 = tpu.dynamic_rotate %806 by %c56_i32_300 dim 1 : vector<8x512xf32>, i32 -> vector<8x512xf32>
    %cst_301 = arith.constant 0.000000e+00 : f32
    %845 = vector.shape_cast %54 : vector<1x512xi1> to vector<1x512xi1>
    %846 = vector.broadcast %845 : vector<1x512xi1> to vector<8x512xi1>
    %847 = vector.broadcast %cst_301 : f32 to vector<8x512xf32>
    %848 = arith.select %846, %844, %847 : vector<8x512xi1>, vector<8x512xf32>
    %c55_i32_302 = arith.constant 55 : i32
    %849 = tpu.dynamic_rotate %806 by %c55_i32_302 dim 1 : vector<8x512xf32>, i32 -> vector<8x512xf32>
    %cst_303 = arith.constant 0.000000e+00 : f32
    %850 = vector.shape_cast %62 : vector<1x512xi1> to vector<1x512xi1>
    %851 = vector.broadcast %850 : vector<1x512xi1> to vector<8x512xi1>
    %852 = vector.broadcast %cst_303 : f32 to vector<8x512xf32>
    %853 = arith.select %851, %849, %852 : vector<8x512xi1>, vector<8x512xf32>
    %c9_i32_304 = arith.constant 9 : i32
    %854 = tpu.dynamic_rotate %806 by %c9_i32_304 dim 1 : vector<8x512xf32>, i32 -> vector<8x512xf32>
    %cst_305 = arith.constant 0.000000e+00 : f32
    %855 = vector.shape_cast %67 : vector<1x512xi1> to vector<1x512xi1>
    %856 = vector.broadcast %855 : vector<1x512xi1> to vector<8x512xi1>
    %857 = vector.broadcast %cst_305 : f32 to vector<8x512xf32>
    %858 = arith.select %856, %854, %857 : vector<8x512xi1>, vector<8x512xf32>
    %c8_i32_306 = arith.constant 8 : i32
    %859 = tpu.dynamic_rotate %806 by %c8_i32_306 dim 1 : vector<8x512xf32>, i32 -> vector<8x512xf32>
    %cst_307 = arith.constant 0.000000e+00 : f32
    %860 = vector.shape_cast %69 : vector<1x512xi1> to vector<1x512xi1>
    %861 = vector.broadcast %860 : vector<1x512xi1> to vector<8x512xi1>
    %862 = vector.broadcast %cst_307 : f32 to vector<8x512xf32>
    %863 = arith.select %861, %859, %862 : vector<8x512xi1>, vector<8x512xf32>
    %c7_i32_308 = arith.constant 7 : i32
    %864 = tpu.dynamic_rotate %806 by %c7_i32_308 dim 1 : vector<8x512xf32>, i32 -> vector<8x512xf32>
    %cst_309 = arith.constant 0.000000e+00 : f32
    %865 = vector.shape_cast %74 : vector<1x512xi1> to vector<1x512xi1>
    %866 = vector.broadcast %865 : vector<1x512xi1> to vector<8x512xi1>
    %867 = vector.broadcast %cst_309 : f32 to vector<8x512xf32>
    %868 = arith.select %866, %864, %867 : vector<8x512xi1>, vector<8x512xf32>
    %c1_i32_310 = arith.constant 1 : i32
    %869 = tpu.dynamic_rotate %806 by %c1_i32_310 dim 1 : vector<8x512xf32>, i32 -> vector<8x512xf32>
    %cst_311 = arith.constant 0.000000e+00 : f32
    %870 = vector.shape_cast %76 : vector<1x512xi1> to vector<1x512xi1>
    %871 = vector.broadcast %870 : vector<1x512xi1> to vector<8x512xi1>
    %872 = vector.broadcast %cst_311 : f32 to vector<8x512xf32>
    %873 = arith.select %871, %869, %872 : vector<8x512xi1>, vector<8x512xf32>
    %c511_i32_312 = arith.constant 511 : i32
    %874 = tpu.dynamic_rotate %806 by %c511_i32_312 dim 1 : vector<8x512xf32>, i32 -> vector<8x512xf32>
    %cst_313 = arith.constant 0.000000e+00 : f32
    %875 = vector.shape_cast %78 : vector<1x512xi1> to vector<1x512xi1>
    %876 = vector.broadcast %875 : vector<1x512xi1> to vector<8x512xi1>
    %877 = vector.broadcast %cst_313 : f32 to vector<8x512xf32>
    %878 = arith.select %876, %874, %877 : vector<8x512xi1>, vector<8x512xf32>
    %c505_i32_314 = arith.constant 505 : i32
    %879 = tpu.dynamic_rotate %806 by %c505_i32_314 dim 1 : vector<8x512xf32>, i32 -> vector<8x512xf32>
    %cst_315 = arith.constant 0.000000e+00 : f32
    %880 = vector.shape_cast %83 : vector<1x512xi1> to vector<1x512xi1>
    %881 = vector.broadcast %880 : vector<1x512xi1> to vector<8x512xi1>
    %882 = vector.broadcast %cst_315 : f32 to vector<8x512xf32>
    %883 = arith.select %881, %879, %882 : vector<8x512xi1>, vector<8x512xf32>
    %c504_i32_316 = arith.constant 504 : i32
    %884 = tpu.dynamic_rotate %806 by %c504_i32_316 dim 1 : vector<8x512xf32>, i32 -> vector<8x512xf32>
    %cst_317 = arith.constant 0.000000e+00 : f32
    %885 = vector.shape_cast %85 : vector<1x512xi1> to vector<1x512xi1>
    %886 = vector.broadcast %885 : vector<1x512xi1> to vector<8x512xi1>
    %887 = vector.broadcast %cst_317 : f32 to vector<8x512xf32>
    %888 = arith.select %886, %884, %887 : vector<8x512xi1>, vector<8x512xf32>
    %c503_i32_318 = arith.constant 503 : i32
    %889 = tpu.dynamic_rotate %806 by %c503_i32_318 dim 1 : vector<8x512xf32>, i32 -> vector<8x512xf32>
    %cst_319 = arith.constant 0.000000e+00 : f32
    %890 = vector.shape_cast %90 : vector<1x512xi1> to vector<1x512xi1>
    %891 = vector.broadcast %890 : vector<1x512xi1> to vector<8x512xi1>
    %892 = vector.broadcast %cst_319 : f32 to vector<8x512xf32>
    %893 = arith.select %891, %889, %892 : vector<8x512xi1>, vector<8x512xf32>
    %c457_i32_320 = arith.constant 457 : i32
    %894 = tpu.dynamic_rotate %806 by %c457_i32_320 dim 1 : vector<8x512xf32>, i32 -> vector<8x512xf32>
    %cst_321 = arith.constant 0.000000e+00 : f32
    %895 = vector.shape_cast %98 : vector<1x512xi1> to vector<1x512xi1>
    %896 = vector.broadcast %895 : vector<1x512xi1> to vector<8x512xi1>
    %897 = vector.broadcast %cst_321 : f32 to vector<8x512xf32>
    %898 = arith.select %896, %894, %897 : vector<8x512xi1>, vector<8x512xf32>
    %c456_i32_322 = arith.constant 456 : i32
    %899 = tpu.dynamic_rotate %806 by %c456_i32_322 dim 1 : vector<8x512xf32>, i32 -> vector<8x512xf32>
    %cst_323 = arith.constant 0.000000e+00 : f32
    %900 = vector.shape_cast %103 : vector<1x512xi1> to vector<1x512xi1>
    %901 = vector.broadcast %900 : vector<1x512xi1> to vector<8x512xi1>
    %902 = vector.broadcast %cst_323 : f32 to vector<8x512xf32>
    %903 = arith.select %901, %899, %902 : vector<8x512xi1>, vector<8x512xf32>
    %c455_i32_324 = arith.constant 455 : i32
    %904 = tpu.dynamic_rotate %806 by %c455_i32_324 dim 1 : vector<8x512xf32>, i32 -> vector<8x512xf32>
    %cst_325 = arith.constant 0.000000e+00 : f32
    %905 = vector.shape_cast %111 : vector<1x512xi1> to vector<1x512xi1>
    %906 = vector.broadcast %905 : vector<1x512xi1> to vector<8x512xi1>
    %907 = vector.broadcast %cst_325 : f32 to vector<8x512xf32>
    %908 = arith.select %906, %904, %907 : vector<8x512xi1>, vector<8x512xf32>
    %c449_i32_326 = arith.constant 449 : i32
    %909 = tpu.dynamic_rotate %806 by %c449_i32_326 dim 1 : vector<8x512xf32>, i32 -> vector<8x512xf32>
    %cst_327 = arith.constant 0.000000e+00 : f32
    %910 = vector.shape_cast %116 : vector<1x512xi1> to vector<1x512xi1>
    %911 = vector.broadcast %910 : vector<1x512xi1> to vector<8x512xi1>
    %912 = vector.broadcast %cst_327 : f32 to vector<8x512xf32>
    %913 = arith.select %911, %909, %912 : vector<8x512xi1>, vector<8x512xf32>
    %c448_i32_328 = arith.constant 448 : i32
    %914 = tpu.dynamic_rotate %806 by %c448_i32_328 dim 1 : vector<8x512xf32>, i32 -> vector<8x512xf32>
    %cst_329 = arith.constant 0.000000e+00 : f32
    %915 = vector.shape_cast %118 : vector<1x512xi1> to vector<1x512xi1>
    %916 = vector.broadcast %915 : vector<1x512xi1> to vector<8x512xi1>
    %917 = vector.broadcast %cst_329 : f32 to vector<8x512xf32>
    %918 = arith.select %916, %914, %917 : vector<8x512xi1>, vector<8x512xf32>
    %c447_i32_330 = arith.constant 447 : i32
    %919 = tpu.dynamic_rotate %806 by %c447_i32_330 dim 1 : vector<8x512xf32>, i32 -> vector<8x512xf32>
    %cst_331 = arith.constant 0.000000e+00 : f32
    %920 = vector.shape_cast %123 : vector<1x512xi1> to vector<1x512xi1>
    %921 = vector.broadcast %920 : vector<1x512xi1> to vector<8x512xi1>
    %922 = vector.broadcast %cst_331 : f32 to vector<8x512xf32>
    %923 = arith.select %921, %919, %922 : vector<8x512xi1>, vector<8x512xf32>
    %c441_i32_332 = arith.constant 441 : i32
    %924 = tpu.dynamic_rotate %806 by %c441_i32_332 dim 1 : vector<8x512xf32>, i32 -> vector<8x512xf32>
    %cst_333 = arith.constant 0.000000e+00 : f32
    %925 = vector.shape_cast %131 : vector<1x512xi1> to vector<1x512xi1>
    %926 = vector.broadcast %925 : vector<1x512xi1> to vector<8x512xi1>
    %927 = vector.broadcast %cst_333 : f32 to vector<8x512xf32>
    %928 = arith.select %926, %924, %927 : vector<8x512xi1>, vector<8x512xf32>
    %c440_i32_334 = arith.constant 440 : i32
    %929 = tpu.dynamic_rotate %806 by %c440_i32_334 dim 1 : vector<8x512xf32>, i32 -> vector<8x512xf32>
    %cst_335 = arith.constant 0.000000e+00 : f32
    %930 = vector.shape_cast %136 : vector<1x512xi1> to vector<1x512xi1>
    %931 = vector.broadcast %930 : vector<1x512xi1> to vector<8x512xi1>
    %932 = vector.broadcast %cst_335 : f32 to vector<8x512xf32>
    %933 = arith.select %931, %929, %932 : vector<8x512xi1>, vector<8x512xf32>
    %c439_i32_336 = arith.constant 439 : i32
    %934 = tpu.dynamic_rotate %806 by %c439_i32_336 dim 1 : vector<8x512xf32>, i32 -> vector<8x512xf32>
    %cst_337 = arith.constant 0.000000e+00 : f32
    %935 = vector.shape_cast %144 : vector<1x512xi1> to vector<1x512xi1>
    %936 = vector.broadcast %935 : vector<1x512xi1> to vector<8x512xi1>
    %937 = vector.broadcast %cst_337 : f32 to vector<8x512xf32>
    %938 = arith.select %936, %934, %937 : vector<8x512xi1>, vector<8x512xf32>
    %939 = tpu.concatenate %813, %818, %823, %828, %833, %838, %843, %848, %853, %858, %863, %868, %873, %806, %878, %883 in 0 : vector<8x512xf32>, vector<8x512xf32>, vector<8x512xf32>, vector<8x512xf32>, vector<8x512xf32>, vector<8x512xf32>, vector<8x512xf32>, vector<8x512xf32>, vector<8x512xf32>, vector<8x512xf32>, vector<8x512xf32>, vector<8x512xf32>, vector<8x512xf32>, vector<8x512xf32>, vector<8x512xf32>, vector<8x512xf32> -> vector<128x512xf32>
    %940 = tpu.concatenate %888, %893, %898, %903, %908, %913, %918, %923, %928, %933, %938 in 0 : vector<8x512xf32>, vector<8x512xf32>, vector<8x512xf32>, vector<8x512xf32>, vector<8x512xf32>, vector<8x512xf32>, vector<8x512xf32>, vector<8x512xf32>, vector<8x512xf32>, vector<8x512xf32>, vector<8x512xf32> -> vector<88x512xf32>
    %941 = tpu.concatenate %939, %940 in 0 : vector<128x512xf32>, vector<88x512xf32> -> vector<216x512xf32>
    %cst_338 = arith.constant dense<0.000000e+00> : vector<8x512xf32>
    %942 = tpu.matmul %808, %941, %cst_338 {dimension_numbers = #tpu.dot_dimension_numbers<[1], [0], [0], [1], [0, 0, 1, 1], [], []>} : vector<8x216xf32>, vector<216x512xf32>, vector<8x512xf32> -> vector<8x512xf32>
    %943 = vector.broadcast %154 : vector<8x1xf32> to vector<8x512xf32>
    %944 = arith.addf %942, %943 : vector<8x512xf32>
    %945 = arith.addf %944, %484 : vector<8x512xf32>
    %cst_339 = arith.constant 0.000000e+00 : f32
    %946 = vector.broadcast %cst_339 : f32 to vector<8x512xf32>
    %947 = arith.maximumf %945, %946 : vector<8x512xf32>
    %c0_340 = arith.constant 0 : index
    %c0_341 = arith.constant 0 : index
    %c0_342 = arith.constant 0 : index
    %948 = vector.load %arg7[%c0_340, %c0_341, %c0_342] : memref<1x8x512xf32, #tpu.memory_space<vmem>>, vector<1x8x512xf32>
    %949 = vector.shape_cast %948 : vector<1x8x512xf32> to vector<8x512xf32>
    %950 = vector.shape_cast %947 : vector<8x512xf32> to vector<1x8x512xf32>
    tpu.vector_store %arg7[%c0_340, %c0_341, %c0_342], %950 {strides = array<i32>} : memref<1x8x512xf32, #tpu.memory_space<vmem>>, vector<1x8x512xf32>,
    return
  }
  func.func @transform_0(%arg0: i32) -> (i32, i32, i32) {
    %c0_i32 = arith.constant 0 : i32
    %c0_i32_0 = arith.constant 0 : i32
    %c0_i32_1 = arith.constant 0 : i32
    return %arg0, %c0_i32, %c0_i32_0 : i32, i32, i32
  }
  func.func @transform_1(%arg0: i32) -> (i32, i32, i32) {
    %c0_i32 = arith.constant 0 : i32
    %c0_i32_0 = arith.constant 0 : i32
    %c0_i32_1 = arith.constant 0 : i32
    return %arg0, %c0_i32, %c0_i32_0 : i32, i32, i32
  }
  func.func @transform_2(%arg0: i32) -> (i32, i32) {
    %c0_i32 = arith.constant 0 : i32
    %c0_i32_0 = arith.constant 0 : i32
    %c0_i32_1 = arith.constant 0 : i32
    return %c0_i32, %c0_i32_0 : i32, i32
  }
  func.func @transform_3(%arg0: i32) -> (i32, i32) {
    %c0_i32 = arith.constant 0 : i32
    %c0_i32_0 = arith.constant 0 : i32
    %c0_i32_1 = arith.constant 0 : i32
    return %c0_i32, %c0_i32_0 : i32, i32
  }
  func.func @transform_4(%arg0: i32) -> (i32, i32, i32) {
    %c0_i32 = arith.constant 0 : i32
    %c0_i32_0 = arith.constant 0 : i32
    %c0_i32_1 = arith.constant 0 : i32
    %c0_i32_2 = arith.constant 0 : i32
    return %c0_i32, %c0_i32_0, %c0_i32_1 : i32, i32, i32
  }
  func.func @transform_5(%arg0: i32) -> (i32, i32) {
    %c0_i32 = arith.constant 0 : i32
    %c0_i32_0 = arith.constant 0 : i32
    %c0_i32_1 = arith.constant 0 : i32
    return %c0_i32, %c0_i32_0 : i32, i32
  }
  func.func @transform_6(%arg0: i32) -> (i32, i32, i32) {
    %c0_i32 = arith.constant 0 : i32
    %c0_i32_0 = arith.constant 0 : i32
    %c0_i32_1 = arith.constant 0 : i32
    return %arg0, %c0_i32, %c0_i32_0 : i32, i32, i32
  }
}

</mosaic_0001>

<bundles_post_ra>
// kernel: fwd.1
= control target key start
LH: loop header
LB: loop body
LE: loop exit
PB: predicated region body
PF: predicated region fallthrough
CT: control target
= control target key end

     0   :  { %s7295_s21 = smov 0   ;;  %s11633_s0 = inlined_call_operand.vmem [shape: f32[2,16,64], index: 0, kind: input, shape index: {}]   ;;  %s11634_s1 = inlined_call_operand.vmem [shape: f32[2,8,512], index: 1, kind: input, shape index: {}]   ;;  %s11635_s2 = inlined_call_operand.vmem [shape: f32[64,512], index: 2, kind: input, shape index: {}]   ;;  %s11636_s3 = inlined_call_operand.vmem [shape: f32[8,432], index: 3, kind: input, shape index: {}]   ;;  %s11637_s4 = inlined_call_operand.vmem [shape: f32[4,8,216], index: 4, kind: input, shape index: {}]   ;;  %s11638_s5 = inlined_call_operand.vmem [shape: f32[16,40], index: 5, kind: input, shape index: {}]   ;;  %s11639_s6 = inlined_call_operand.vmem [shape: f32[2,8,512], index: 6, kind: output, shape index: {}]  }
   0x1 LB: > { %s4468_s22 = sadd.s32 4294967295, %s7227_s21   ;;  %p4472_p0 = scmp.ge.s32.totalorder %s7227_s21, 1  ;;  %s7227_s21 = sphi %s7295_s21, %s16_s21  }
   0x2   : > { %p222_p1 = scmp.lt.s32.totalorder %s7227_s21, 3 }
   0x4   : > { %p223_p2 = pnand %p4472_p0, %p222_p1 }
   0x6   : > { %226 = sbr.rel (%p223_p2) target bundleno = 6625 (0x19e1), region = 44 }
   0xd   : > { %v402_v0 = vld [vmem:[%s11635_s2 + $0x8] sm:$0xff]  ;;  %v401_v2 = vld [vmem:[%s11635_s2] sm:$0xff]  ;;  %v404_v5 = vld [vmem:[%s11635_s2 + $0x18] sm:$0xff]  ;;  %v11656_v7 = vmov 0.0   ;;  %p7334_p3 = scmp.lt.s32.totalorder %s4468_s22, 1  ;;  %vm433_vm0 = vcmask 523264  }
   0xe   : > { %v406_v1 = vld [vmem:[%s11635_s2 + $0x28] sm:$0xff]  ;;  %v405_v4 = vld [vmem:[%s11635_s2 + $0x20] sm:$0xff]  ;;  %v408_v6 = vld [vmem:[%s11635_s2 + $0x38] sm:$0xff]  ;;  %504 = vmatprep.mubr.f32.mxu0 %v11656_v7  ;;  %581 = vmatprep.mubr.f32.mxu1 %v11656_v7  ;;  %s7230_s17 = smov 112   ;;  %vm614_vm1 = vcmask 130048   ;;  %s7233_s7 = smov 73  }
   0xf   : > { %v5202_v3 = vpack.c.bf16 %v406_v1, %v402_v0  ;;  %v5204_v8 = vpack.c.bf16 %v405_v4, %v401_v2  ;;  %v5218_v9 = vpack.c.bf16 %v408_v6, %v404_v5  ;;  %v403_v10 = vld [vmem:[%s11635_s2 + $0x10] sm:$0xff]  ;;  %v410_v12 = vld [vmem:[%s11635_s2 + $0x48] sm:$0xff]  ;;  %v409_v15 = vld [vmem:[%s11635_s2 + $0x40] sm:$0xff]  ;;  %s13647_s22 = smov (!%p7334_p3, %s4468_s22), 1  ;;  %v11655_v4 = vmov 0   ;;  %s7234_s8 = smov 72  }
  0x10   : > { %v407_v11 = vld [vmem:[%s11635_s2 + $0x30] sm:$0xff]  ;;  %v414_v14 = vld [vmem:[%s11635_s2 + $0x68] sm:$0xff]  ;;  %v413_v16 = vld [vmem:[%s11635_s2 + $0x60] sm:$0xff]  ;;  %s5135_s23 = sshll.u32 %s13647_s22, 4  ;;  %6230 = vset.pattern.permute.xlu1 %v11655_v4  ;;  %6229 = vset.pattern.permute.xlu0 %v11655_v4  ;;  %s7235_s9 = smov 71  }
  0x11   : > { %5203 = vmatprep.subr.bf16.mxu0 %v5202_v3  ;;  %v5220_v13 = vpack.c.bf16 %v407_v11, %v403_v10  ;;  %5219 = vmatprep.subr.bf16.mxu1 %v5218_v9  ;;  %v5206_v17 = vpack.c.bf16 %v414_v14, %v410_v12  ;;  %v5208_v18 = vpack.c.bf16 %v413_v16, %v409_v15  ;;  %v412_v19 = vld [vmem:[%s11635_s2 + $0x58] sm:$0xff]  ;;  %v411_v21 = vld [vmem:[%s11635_s2 + $0x50] sm:$0xff]  ;;  %v418_v24 = vld [vmem:[%s11635_s2 + $0x88] sm:$0xff]  ;;  %s261_s26 = scalar_lea.vmem %s11633_s0, %s5135_s23  ;;  %s7236_s10 = smov 65  }
  0x12   : > { %5205 = vmatpush1.bf16.msra.mxu0 %v5204_v8  ;;  %v416_v20 = vld [vmem:[%s11635_s2 + $0x78] sm:$0xff]  ;;  %v415_v23 = vld [vmem:[%s11635_s2 + $0x70] sm:$0xff]  ;;  %v422_v25 = vld [vmem:[%s11635_s2 + $0xa8] sm:$0xff]  ;;  %s7237_s11 = smov 64   ;;  %s7238_s12 = smov 63  }
  0x13   : > { %5221 = vmatpush1.bf16.msra.mxu1 %v5220_v13  ;;  %v5222_v22 = vpack.c.bf16 %v416_v20, %v412_v19  ;;  %5207 = vmatprep.subr.bf16.mxu0 %v5206_v17  ;;  %v5224_v26 = vpack.c.bf16 %v415_v23, %v411_v21  ;;  %v5210_v27 = vpack.c.bf16 %v422_v25, %v418_v24  ;;  %v417_v28 = vld [vmem:[%s11635_s2 + $0x80] sm:$0xff]  ;;  %v420_v30 = vld [vmem:[%s11635_s2 + $0x98] sm:$0xff]  ;;  %v419_v32 = vld [vmem:[%s11635_s2 + $0x90] sm:$0xff]  ;;  %s7239_s13 = smov 57   ;;  %s7240_s14 = smov 56  }
  0x14   : > { %v421_v29 = vld [vmem:[%s11635_s2 + $0xa0] sm:$0xff]  ;;  %v424_v31 = vld [vmem:[%s11635_s2 + $0xb8] sm:$0xff]  ;;  %v423_v33 = vld [vmem:[%s11635_s2 + $0xb0] sm:$0xff]  ;;  %s7241_s15 = smov 55   ;;  %s7242_s16 = smov 9  }
  0x15   : > { %5223 = vmatprep.subr.bf16.mxu1 %v5222_v22  ;;  %v5212_v34 = vpack.c.bf16 %v421_v29, %v417_v28  ;;  %v5226_v35 = vpack.c.bf16 %v424_v31, %v420_v30  ;;  %v426_v36 = vld [vmem:[%s11635_s2 + $0xc8] sm:$0xff]  ;;  %v425_v38 = vld [vmem:[%s11635_s2 + $0xc0] sm:$0xff]  ;;  %v5228_v39 = vpack.c.bf16 %v423_v33, %v419_v32  ;;  %v428_v42 = vld [vmem:[%s11635_s2 + $0xd8] sm:$0xff]  ;;  %s7243_s18 = smov 8   ;;  %s7244_s19 = smov 7  }
  0x16   : > { %5209 = vmatpush1.bf16.msra.mxu0 %v5208_v18  ;;  %v430_v37 = vld [vmem:[%s11635_s2 + $0xe8] sm:$0xff]  ;;  %v429_v41 = vld [vmem:[%s11635_s2 + $0xe0] sm:$0xff]  ;;  %v432_v43 = vld [vmem:[%s11635_s2 + $0xf8] sm:$0xff]  ;;  %s7245_s20 = smov 1   ;;  %s7246_s23 = smov 127  }
  0x17   : > { %5225 = vmatpush1.bf16.msra.mxu1 %v5224_v26  ;;  %5211 = vmatprep.subr.bf16.mxu0 %v5210_v27  ;;  %v5214_v40 = vpack.c.bf16 %v430_v37, %v426_v36  ;;  %v5230_v44 = vpack.c.bf16 %v432_v43, %v428_v42  ;;  %v427_v45 = vld [vmem:[%s11635_s2 + $0xd0] sm:$0xff]  ;;  %v5216_v47 = vpack.c.bf16 %v429_v41, %v425_v38  ;;  %v399_v49 = vld [vmem:[%s261_s26] sm:$0xff]  ;;  %v400_v50 = vld [vmem:[%s261_s26 + $0x8] sm:$0xff]  ;;  %s7247_s24 = smov 121   ;;  %s7248_s27 = smov 120  }
  0x18   : > { %5227 = vmatprep.subr.bf16.mxu1 %v5226_v35  ;;  %v431_v46 = vld [vmem:[%s11635_s2 + $0xf0] sm:$0xff]  ;;  %v7422_v51 = vld [vmem:[%s11638_s5] sm:$0xff]  ;;  %v7428_v52 = vld [vmem:[%s11638_s5 + $0x8] sm:$0xff]  ;;  %s7249_s28 = smov 119   ;;  %s7250_s25 = smov 96  }
  0x19   : > { %v5232_v48 = vpack.c.bf16 %v431_v46, %v427_v45  ;;  %610 = vrot.lane.b32.xlu1 %v7422_v51, %s7230_s17  ;;  %s7252_s26 = smov 126  }
  0x1a   : > { %5213 = vmatpush1.bf16.msra.mxu0 %v5212_v34 }
  0x1b   : > { %5229 = vmatpush1.bf16.msra.mxu1 %v5228_v39  ;;  %5215 = vmatprep.subr.bf16.mxu0 %v5214_v40  ;;  %v7232_v39 = vmov 1  }
  0x1c   : > { %5231 = vmatprep.subr.bf16.mxu1 %v5230_v44 }
  0x1d   : > { %612 = vrot.lane.b32.xlu1 %v7428_v52, %s7230_s17 }
  0x1e   : > { %5217 = vmatpush1.bf16.msra.mxu0 %v5216_v47 }
  0x1f   : > { %5233 = vmatpush1.bf16.msra.mxu1 %v5232_v48 }
  0x21   : > { %4479 = vmatmul.mubr.msk.f32.vlgmr.msra.gmra.mrb[0].mxu0 %vm433_vm0, %v399_v49 }
  0x22   : > { %4481 = vmatmul.mubr.msk.f32.vlgmr.msra.gmra.mrb[0].mxu1 %vm433_vm0, %v399_v49  ;;  %510 = vmatprep.mubr.f32.mxu0 %v11656_v7 }
  0x23   : > { %587 = vmatprep.mubr.f32.mxu1 %v11656_v7 }
  0x25   : > { %4480 = vmatmul.mubr.msk.f32.gmra.mrb[2].mxu0 %vm433_vm0, %v400_v50 }
  0x26   : > { %4482 = vmatmul.mubr.msk.f32.gmra.mrb[2].mxu1 %vm433_vm0, %v400_v50 }
  0x8b   : > { %v611_v3 = vpop.permute.xlu1 %610 }
  0x8c   : > { %5162 = vmatprep.mubr.msk.f32.mxu0 %vm614_vm1, %v611_v3  ;;  %5169 = vmatprep.mubr.msk.f32.mxu1 %vm614_vm1, %v611_v3 }
  0x8f   : > { %v613_v9 = vpop.permute.xlu1 %612 }
  0xf4   : > { %v506_v53 = vpop.f32.mrb[0].mxu0 }
  0xf5   : > { %v508_v54 = vpop.f32.mrb[1].mxu0  ;;  %v583_v55 = vpop.f32.mrb[0].mxu1 }
  0xf6   : > { %v598_v56 = vadd.f32 %v508_v54, %v506_v53  ;;  %v585_v57 = vpop.f32.mrb[1].mxu1 }
  0xf8   : > { %v599_v58 = vadd.f32 %v598_v56, %v583_v55  ;;  %v512_v59 = vpop.f32.mrb[2].mxu0 }
  0xf9   : > { %v514_v60 = vpop.f32.mrb[3].mxu0  ;;  %v589_v61 = vpop.f32.mrb[2].mxu1 }
  0xfa   : > { %v603_v62 = vadd.f32 %v514_v60, %v512_v59  ;;  %v591_v63 = vpop.f32.mrb[3].mxu1  ;;  %v600_v0 = vadd.f32 %v599_v58, %v585_v57 }
  0xfc   : > { %v604_v1 = vadd.f32 %v603_v62, %v589_v61  ;;  %601 = vadd.xlane.f32.xlu0 %v600_v0 }
  0xfe   : > { %v605_v2 = vadd.f32 %v604_v1, %v591_v63 }
 0x100   : > { %606 = vadd.xlane.f32.xlu0 %v605_v2 }
 0x189   : > { %v602_v5 = vpop.xlane.xlu0 %601 }
 0x18d   : > { %v607_v6 = vpop.xlane.xlu0 %606 }
 0x18e   : > { %v5234_v8 = vpack.c.bf16 %v607_v6, %v602_v5 }
 0x190   : > { %5235 = vmatprep.subr.bf16.mxu0 %v5234_v8 }
 0x191   : > { %5237 = vmatpush3.bf16.msra.mxu0 %v5234_v8 }
 0x194   : > { %5163 = vmatmul.mubr.msk.f32.vlgmr.msra.gmra.mrb[4].mxu0 %vm614_vm1, %v613_v9 }
 0x267   : > { %v5164_v10 = vpop.f32.mrb[4].mxu0 }
 0x268   : > { %701 = vperm.xlu1 %6230, %v5164_v10   ;;  %v685_v11 = vpop.f32.mrb[5].mxu0 }
 0x269   : > { %696 = vperm.xlu0 %6229, %v685_v11  }
 0x26d   : > { %6231 = vset.pattern.permute.xlu0 %v7232_v39  ;;  %v12142_v39 = vmov 0 }
 0x26e   : > { %830 = vperm.xlu0 %6231, %v7422_v51  }
 0x272   : > { %834 = vperm.xlu0 %6231, %v7428_v52  }
 0x276   : > { %6232 = vset.pattern.permute.xlu0 %v11655_v4 }
 0x2e7   : > { %v702_v12 = vpop.permute.xlu1 %701 }
 0x2e8   : > { %v708_v13 = vsub.f32 %v512_v59, %v702_v12  ;;  %v709_v14 = vsub.f32 %v514_v60, %v702_v12  ;;  %v697_v15 = vpop.permute.xlu0 %696  ;;  %v710_v24 = vsub.f32 %v589_v61, %v702_v12  ;;  %v711_v30 = vsub.f32 %v591_v63, %v702_v12 }
 0x2e9   : > { %v704_v16 = vsub.f32 %v506_v53, %v697_v15  ;;  %v705_v17 = vsub.f32 %v508_v54, %v697_v15  ;;  %v706_v18 = vsub.f32 %v583_v55, %v697_v15  ;;  %v707_v21 = vsub.f32 %v585_v57, %v697_v15 }
 0x2ea   : > { %v716_v19 = vmul.f32 %v708_v13, %v708_v13  ;;  %v717_v20 = vmul.f32 %v709_v14, %v709_v14  ;;  %v718_v31 = vmul.f32 %v710_v24, %v710_v24  ;;  %v719_v34 = vmul.f32 %v711_v30, %v711_v30 }
 0x2eb   : > { %v712_v22 = vmul.f32 %v704_v16, %v704_v16  ;;  %v713_v23 = vmul.f32 %v705_v17, %v705_v17  ;;  %v714_v25 = vmul.f32 %v706_v18, %v706_v18  ;;  %v715_v28 = vmul.f32 %v707_v21, %v707_v21 }
 0x2ec   : > { %v725_v27 = vadd.f32 %v717_v20, %v716_v19 }
 0x2ed   : > { %v720_v26 = vadd.f32 %v713_v23, %v712_v22  ;;  %v831_v48 = vpop.permute.xlu0 %830 }
 0x2ee   : > { %v726_v33 = vadd.f32 %v725_v27, %v718_v31  ;;  %v12131_v27 = vmov 0 }
 0x2ef   : > { %v721_v29 = vadd.f32 %v720_v26, %v714_v25 }
 0x2f0   : > { %v727_v35 = vadd.f32 %v726_v33, %v719_v34 }
 0x2f1   : > { %v722_v32 = vadd.f32 %v721_v29, %v715_v28  ;;  %v835_v49 = vpop.permute.xlu0 %834  ;;  %v12133_v28 = vmov 0 }
 0x2f3   : > { %723 = vadd.xlane.f32.xlu1 %v722_v32 }
 0x2f7   : > { %728 = vadd.xlane.f32.xlu1 %v727_v35 }
 0x380   : > { %v724_v36 = vpop.xlane.xlu1 %723 }
 0x384   : > { %v729_v37 = vpop.xlane.xlu1 %728 }
 0x385   : > { %v5238_v38 = vpack.c.bf16 %v729_v37, %v724_v36  ;;  %v12136_v36 = vmov 0  ;;  %v12139_v37 = vmov 0 }
 0x387   : > { %5239 = vmatprep.subr.bf16.mxu1 %v5238_v38 }
 0x388   : > { %5241 = vmatpush3.bf16.msra.mxu1 %v5238_v38 }
 0x38b   : > { %5170 = vmatmul.mubr.msk.f32.vlgmr.msra.gmra.mrb[4].mxu1 %vm614_vm1, %v613_v9 }
 0x45e   : > { %v5171_v40 = vpop.f32.mrb[4].mxu1 }
 0x45f   : > { %v806_v41 = vadd.f32 1e-05, %v5171_v40  ;;  %v796_v42 = vpop.f32.mrb[5].mxu1 }
 0x460   : > { %v805_v43 = vadd.f32 1e-05, %v796_v42 }
 0x461   : > { %7209 = vrsqrt.f32 %v806_v41 }
 0x462   : > { %7211 = vrsqrt.f32 %v805_v43  ;;  %v12145_v43 = vmov 0 }
 0x46b   : > { %v7210_v44 = vpop.eup %7209 }
 0x46c   : > { %v7212_v45 = vpop.eup %7211  ;;  %v810_v46 = vmul.f32 %v7210_v44, %v7428_v52  ;;  %v12147_v44 = vmov 0 }
 0x46d   : > { %v809_v47 = vmul.f32 %v7212_v45, %v7422_v51 }
 0x46e   : > { %818 = vperm.xlu1 %6230, %v810_v46  }
 0x46f   : > { %813 = vperm.xlu0 %6232, %v809_v47  }
 0x4ed   : > { %v819_v50 = vpop.permute.xlu1 %818 }
 0x4ee   : > { %v825_v53 = vmul.f32 %v819_v50, %v708_v13  ;;  %v826_v54 = vmul.f32 %v819_v50, %v709_v14  ;;  %v827_v55 = vmul.f32 %v819_v50, %v710_v24  ;;  %v828_v56 = vmul.f32 %v819_v50, %v711_v30  ;;  %v814_v57 = vpop.permute.xlu0 %813 }
 0x4ef   : > { %v821_v58 = vmul.f32 %v814_v57, %v704_v16  ;;  %v822_v59 = vmul.f32 %v814_v57, %v705_v17  ;;  %v823_v60 = vmul.f32 %v814_v57, %v706_v18  ;;  %v824_v61 = vmul.f32 %v814_v57, %v707_v21 }
 0x4f0   : > { %v7442_v62 = vadd.f32 %v835_v49, %v825_v53  ;;  %v7444_v63 = vadd.f32 %v835_v49, %v826_v54  ;;  %v7450_v0 = vadd.f32 %v835_v49, %v827_v55  ;;  %v7452_v1 = vadd.f32 %v835_v49, %v828_v56 }
 0x4f1   : > { %v7446_v52 = vadd.f32 %v831_v48, %v821_v58  ;;  %v7448_v51 = vadd.f32 %v831_v48, %v822_v59  ;;  %v7454_v2 = vadd.f32 %v831_v48, %v823_v60  ;;  %v7456_v3 = vadd.f32 %v831_v48, %v824_v61 }
 0x4f2   : > { %v272_v14 = vlaneseq  ;;  %v12128_v24 = vmov 0  ;;  %v12150_v49 = vmov 0  ;;  %v12153_v50 = vmov 0 }
 0x4f3   : > { %v7460_v5 = vpack.i.bf16 %v7444_v63, %v7448_v51  ;;  %v7464_v6 = vpack.i.bf16 %v7442_v62, %v7446_v52  ;;  %v7472_v8 = vpack.i.bf16 %v7450_v0, %v7454_v2  ;;  %v7476_v9 = vpack.i.bf16 %v7452_v1, %v7456_v3 }
 0x4f4   : > { %v7574_v15 = vand.u32 127, %v272_v14  ;;  %v12155_v53 = vmov 0  ;;  %v12158_v56 = vmov 0  ;;  %v12160_v57 = vmov 0  ;;  %v846_v14 = vld [vmem:[%s11636_s3 + $0x8] sm:$0xff] }
 0x4f5   : > { %6239 = vrot.lane.b32.xlu1 %v7460_v5, %s7233_s7  ;;  %6234 = vrot.lane.b32.xlu0 %v7464_v6, %s7233_s7  ;;  %v12163_v61 = vmov 0  ;;  %v12209_v13 = vmov 0 }
 0x4f6   : > { %v7581_v16 = vadd.s32 128, %v7574_v15  ;;  %v7596_v20 = vadd.s32 384, %v7574_v15  ;;  %v7599_v21 = vadd.s32 256, %v7574_v15  ;;  %v281_v23 = vshra.s32 %v7574_v15, 3  ;;  %1758 = vmatprep.mubr.f32.mxu0 %v846_v14  ;;  %1900 = vmatprep.mubr.f32.mxu1 %v846_v14 }
 0x4f7   : > { %v11659_v30 = vshra.s32 %v7574_v15, 6  ;;  %v277_v33 = vand.u32 7, %v7574_v15  ;;  %vm11644_vm11 = vcmp.lt.s32.totalorder %v7574_v15, 73 }
 0x4f8   : > { %v282_v17 = vshra.s32 %v7581_v16, 3  ;;  %v11670_v19 = vshra.s32 %v7581_v16, 6  ;;  %v278_v22 = vand.u32 7, %v7581_v16  ;;  %v284_v25 = vshra.s32 %v7596_v20, 3 }
 0x4f9   : > { %6249 = vrot.lane.b32.xlu1 %v7472_v8, %s7233_s7  ;;  %6244 = vrot.lane.b32.xlu0 %v7476_v9, %s7233_s7  ;;  %v283_v26 = vshra.s32 %v7599_v21, 3  ;;  %v7634_v29 = vand.u32 7, %v281_v23  ;;  %v11663_v32 = vshra.s32 %v7596_v20, 6  ;;  %v11658_v35 = vshra.s32 %v7599_v21, 6 }
 0x4fa   : > { %v7592_v18 = vand.u32 7, %v282_v17  ;;  %vm7609_vm2 = vcmp.ge.s32.totalorder %v11670_v19, 1  ;;  %vm7622_vm4 = vcmp.ge.s32.totalorder %v278_v22, 1  ;;  %v7637_v31 = vand.u32 7, %v284_v25 }
 0x4fb   : > { %v12129_v24 = vsel %vm7609_vm2, 4294967295, %v12128_v24  ;;  %v12132_v27 = vsel %vm7622_vm4, 4294967295, %v12131_v27  ;;  %v7641_v34 = vand.u32 7, %v283_v26  ;;  %vm7658_vm7 = vcmp.ge.s32.totalorder %v11659_v30, 1 }
 0x4fc   : > { %12130 = vst [vmem:[#allocation2_spill] sm:$0xff] %v12129_v24  ;;  %vm11641_vm3 = vcmp.ge.s32.totalorder %v7592_v18, 1  ;;  %v12140_v37 = vsel %vm7658_vm7, 4294967295, %v12139_v37  ;;  %vm11640_vm8 = vcmp.ge.s32.totalorder %v7634_v29, 1  ;;  %v280_v38 = vand.u32 7, %v7596_v20 }
 0x4fd   : > { %6259 = vrot.lane.b32.xlu1 %v7460_v5, %s7234_s8  ;;  %6254 = vrot.lane.b32.xlu0 %v7464_v6, %s7234_s8  ;;  %vm7630_vm5 = vmand %vm7609_vm2, %vm11641_vm3  ;;  %12141 = vst [vmem:[#allocation5_spill] sm:$0xff] %v12140_v37  ;;  %vm7666_vm9 = vcmp.ge.s32.totalorder %v11663_v32, 1  ;;  %vm11642_vm10 = vcmp.ge.s32.totalorder %v7637_v31, 1  ;;  %v279_v40 = vand.u32 7, %v7599_v21  ;;  %vm7678_vm13 = vcmp.ge.s32.totalorder %v277_v33, 1 }
 0x4fe   : > { %v12134_v28 = vsel %vm7630_vm5, 4294967295, %v12133_v28  ;;  %vm7648_vm6 = vmand %vm7630_vm5, %vm7622_vm4  ;;  %v12143_v39 = vsel %vm7666_vm9, 4294967295, %v12142_v39  ;;  %v12146_v43 = vsel %vm7678_vm13, 4294967295, %v12145_v43  ;;  %vm7684_vm14 = vcmp.ge.s32.totalorder %v11658_v35, 1 }
 0x4ff   : > { %12135 = vst [vmem:[#allocation3_spill] sm:$0xff] %v12134_v28  ;;  %v12137_v36 = vsel %vm7648_vm6, 4294967295, %v12136_v36  ;;  %12144 = vst [vmem:[#allocation6_spill] sm:$0xff] %v12143_v39  ;;  %v12148_v44 = vsel %vm7684_vm14, 4294967295, %v12147_v44  ;;  %vm11643_vm15 = vcmp.ge.s32.totalorder %v7641_v34, 1  ;;  %vm7703_vm1 = vcmp.ge.s32.totalorder %v280_v38, 1 }
 0x500   : > { %12138 = vst [vmem:[#allocation4_spill] sm:$0xff] %v12137_v36  ;;  %12149 = vst [vmem:[#allocation7_spill] sm:$0xff] %v12148_v44  ;;  %v12154_v50 = vsel %vm7703_vm1, 4294967295, %v12153_v50  ;;  %vm7721_vm3 = vcmp.ge.s32.totalorder %v279_v40, 1  ;;  %v12279_v24 = vmov 0 }
 0x501   : > { %6269 = vrot.lane.b32.xlu1 %v7472_v8, %s7234_s8  ;;  %6264 = vrot.lane.b32.xlu0 %v7476_v9, %s7234_s8  ;;  %vm7693_vm0 = vmand %vm7658_vm7, %vm11640_vm8  ;;  %v12159_v56 = vsel %vm7721_vm3, 4294967295, %v12158_v56 }
 0x502   : > { %v12151_v49 = vsel %vm7693_vm0, 4294967295, %v12150_v49  ;;  %vm7711_vm8 = vmand %vm7666_vm9, %vm11642_vm10  ;;  %vm12172_vm9 = vcmp.lt.s32.totalorder %v7574_v15, 73 }
 0x503   : > { %12152 = vst [vmem:[#allocation8_spill] sm:$0xff] %v12151_v49  ;;  %v12156_v53 = vsel %vm7711_vm8, 4294967295, %v12155_v53  ;;  %vm7729_vm10 = vmand %vm7684_vm14, %vm11643_vm15 }
 0x504   : > { %12157 = vst [vmem:[#allocation9_spill] sm:$0xff] %v12156_v53  ;;  %v12161_v57 = vsel %vm7729_vm10, 4294967295, %v12160_v57  ;;  %vm7739_vm12 = vmand %vm7693_vm0, %vm7678_vm13 }
 0x505   : > { %6279 = vrot.lane.b32.xlu1 %v7460_v5, %s7235_s9  ;;  %6274 = vrot.lane.b32.xlu0 %v7464_v6, %s7235_s9  ;;  %12162 = vst [vmem:[#allocation10_spill] sm:$0xff] %v12161_v57  ;;  %v12164_v61 = vsel %vm7739_vm12, 4294967295, %v12163_v61  ;;  %vm7750_vm15 = vmand %vm7711_vm8, %vm7703_vm1 }
 0x506   : > { %12165 = vst [vmem:[#allocation11_spill] sm:$0xff] %v12164_v61  ;;  %vm7763_vm14 = vmand %vm7729_vm10, %vm7721_vm3 }
 0x507   : > { %vm12173_vm1 = vmmov %vm12172_vm9 }
 0x508   : > { %vm12174_vm7 = vmmov %vm12173_vm1 }
 0x509   : > { %6289 = vrot.lane.b32.xlu1 %v7472_v8, %s7235_s9  ;;  %6284 = vrot.lane.b32.xlu0 %v7476_v9, %s7235_s9  ;;  %vm12175_vm13 = vmmov %vm12173_vm1 }
 0x50d   : > { %6299 = vrot.lane.b32.xlu1 %v7460_v5, %s7236_s10  ;;  %6294 = vrot.lane.b32.xlu0 %v7464_v6, %s7236_s10 }
 0x511   : > { %6309 = vrot.lane.b32.xlu1 %v7472_v8, %s7236_s10  ;;  %6304 = vrot.lane.b32.xlu0 %v7476_v9, %s7236_s10 }
 0x515   : > { %6319 = vrot.lane.b32.xlu1 %v7460_v5, %s7237_s11  ;;  %6314 = vrot.lane.b32.xlu0 %v7464_v6, %s7237_s11 }
 0x519   : > { %6329 = vrot.lane.b32.xlu1 %v7472_v8, %s7237_s11  ;;  %6324 = vrot.lane.b32.xlu0 %v7476_v9, %s7237_s11 }
 0x51d   : > { %6339 = vrot.lane.b32.xlu1 %v7460_v5, %s7238_s12  ;;  %6334 = vrot.lane.b32.xlu0 %v7464_v6, %s7238_s12 }
 0x521   : > { %6349 = vrot.lane.b32.xlu1 %v7472_v8, %s7238_s12  ;;  %6344 = vrot.lane.b32.xlu0 %v7476_v9, %s7238_s12 }
 0x525   : > { %6359 = vrot.lane.b32.xlu1 %v7460_v5, %s7239_s13  ;;  %6354 = vrot.lane.b32.xlu0 %v7464_v6, %s7239_s13 }
 0x529   : > { %6369 = vrot.lane.b32.xlu1 %v7472_v8, %s7239_s13  ;;  %6364 = vrot.lane.b32.xlu0 %v7476_v9, %s7239_s13 }
 0x52d   : > { %6379 = vrot.lane.b32.xlu1 %v7460_v5, %s7240_s14  ;;  %6374 = vrot.lane.b32.xlu0 %v7464_v6, %s7240_s14 }
 0x531   : > { %6389 = vrot.lane.b32.xlu1 %v7472_v8, %s7240_s14  ;;  %6384 = vrot.lane.b32.xlu0 %v7476_v9, %s7240_s14 }
 0x535   : > { %6399 = vrot.lane.b32.xlu1 %v7460_v5, %s7241_s15  ;;  %6394 = vrot.lane.b32.xlu0 %v7464_v6, %s7241_s15 }
 0x539   : > { %6409 = vrot.lane.b32.xlu1 %v7472_v8, %s7241_s15  ;;  %6404 = vrot.lane.b32.xlu0 %v7476_v9, %s7241_s15 }
 0x53d   : > { %6419 = vrot.lane.b32.xlu1 %v7460_v5, %s7242_s16  ;;  %6414 = vrot.lane.b32.xlu0 %v7464_v6, %s7242_s16 }
 0x541   : > { %6429 = vrot.lane.b32.xlu1 %v7472_v8, %s7242_s16  ;;  %6424 = vrot.lane.b32.xlu0 %v7476_v9, %s7242_s16 }
 0x545   : > { %6439 = vrot.lane.b32.xlu1 %v7460_v5, %s7243_s18  ;;  %6434 = vrot.lane.b32.xlu0 %v7464_v6, %s7243_s18 }
 0x549   : > { %6449 = vrot.lane.b32.xlu1 %v7472_v8, %s7243_s18  ;;  %6444 = vrot.lane.b32.xlu0 %v7476_v9, %s7243_s18 }
 0x54d   : > { %6459 = vrot.lane.b32.xlu1 %v7460_v5, %s7244_s19  ;;  %6454 = vrot.lane.b32.xlu0 %v7464_v6, %s7244_s19 }
 0x551   : > { %6469 = vrot.lane.b32.xlu1 %v7472_v8, %s7244_s19  ;;  %6464 = vrot.lane.b32.xlu0 %v7476_v9, %s7244_s19 }
 0x555   : > { %6479 = vrot.lane.b32.xlu1 %v7460_v5, %s7245_s20  ;;  %6474 = vrot.lane.b32.xlu0 %v7464_v6, %s7245_s20 }
 0x559   : > { %6489 = vrot.lane.b32.xlu1 %v7472_v8, %s7245_s20  ;;  %6484 = vrot.lane.b32.xlu0 %v7476_v9, %s7245_s20 }
 0x55d   : > { %6499 = vrot.lane.b32.xlu1 %v7472_v8, %s7246_s23  ;;  %6494 = vrot.lane.b32.xlu0 %v7460_v5, %s7246_s23 }
 0x561   : > { %6509 = vrot.lane.b32.xlu1 %v7476_v9, %s7246_s23  ;;  %6504 = vrot.lane.b32.xlu0 %v7464_v6, %s7246_s23 }
 0x565   : > { %6519 = vrot.lane.b32.xlu1 %v7472_v8, %s7247_s24  ;;  %6514 = vrot.lane.b32.xlu0 %v7460_v5, %s7247_s24 }
 0x567   : > { %v6240_v41 = vpop.permute.xlu1 %6239  ;;  %v6235_v42 = vpop.permute.xlu0 %6234 }
 0x568   : > { %v6242_v45 = vunpack.i.h.bf16 %v6240_v41  ;;  %v6241_v46 = vunpack.i.l.bf16 %v6240_v41  ;;  %v6237_v47 = vunpack.i.h.bf16 %v6235_v42  ;;  %v6236_v48 = vunpack.i.l.bf16 %v6235_v42 }
 0x569   : > { %6529 = vrot.lane.b32.xlu1 %v7476_v9, %s7247_s24  ;;  %6524 = vrot.lane.b32.xlu0 %v7464_v6, %s7247_s24  ;;  %v12166_v41 = vmov 0  ;;  %v12169_v42 = vmov 0 }
 0x56a   : > { %v871_v54 = vsel %vm11644_vm11, %v6237_v47, %v6242_v45  ;;  %v870_v55 = vsel %vm11644_vm11, %v6236_v48, %v6241_v46  ;;  %v12167_v41 = vsel %vm7750_vm15, 4294967295, %v12166_v41  ;;  %v12170_v42 = vsel %vm7763_vm14, 4294967295, %v12169_v42  ;;  %vm12176_vm11 = vmpackc.low %vm7648_vm6, %vm7648_vm6 }
 0x56b   : > { %v6250_v58 = vpop.permute.xlu1 %6249  ;;  %v6245_v59 = vpop.permute.xlu0 %6244  ;;  %v7733_v60 = vpack.c.bf16 %v871_v54, %v870_v55  ;;  %12168 = vst [vmem:[#allocation12_spill] sm:$0xff] %v12167_v41  ;;  %12171 = vst [vmem:[#allocation13_spill] sm:$0xff] %v12170_v42 }
 0x56c   : > { %v6252_v17 = vunpack.i.h.bf16 %v6250_v58  ;;  %v6251_v23 = vunpack.i.l.bf16 %v6250_v58  ;;  %v6247_v25 = vunpack.i.h.bf16 %v6245_v59  ;;  %v6246_v26 = vunpack.i.l.bf16 %v6245_v59  ;;  %vm5409_vm6 = vmpackc.low %vm7711_vm8, %vm7711_vm8 }
 0x56d   : > { %6539 = vrot.lane.b32.xlu1 %v7472_v8, %s7248_s27  ;;  %6534 = vrot.lane.b32.xlu0 %v7460_v5, %s7248_s27 }
 0x56e   : > { %v868_v54 = vsel %vm12172_vm9, %v6241_v46, %v6251_v23  ;;  %v869_v55 = vsel %vm12173_vm1, %v6242_v45, %v6252_v17  ;;  %v867_v58 = vsel %vm12174_vm7, %v6252_v17, %v6247_v25  ;;  %v866_v59 = vsel %vm12175_vm13, %v6251_v23, %v6246_v26  ;;  %5244 = vmatprep.subr.msk.bf16.mxu0 %vm12176_vm11, %v7733_v60  ;;  %vm5246_vm9 = vmpackc.low %vm7739_vm12, %vm7739_vm12 }
 0x56f   : > { %v7784_v46 = vpack.c.bf16 %v869_v55, %v868_v54  ;;  %v872_v45 = vsel %vm12173_vm1, %v6246_v26, %v6236_v48  ;;  %vm12177_vm7 = vmmov %vm12173_vm1  ;;  %v6260_v17 = vpop.permute.xlu1 %6259  ;;  %v6255_v23 = vpop.permute.xlu0 %6254  ;;  %v7790_v4 = vpack.c.bf16 %v867_v58, %v866_v59  ;;  %vm12178_vm1 = vcmp.lt.s32.totalorder %v7574_v15, 72 }
 0x570   : > { %v873_v14 = vsel %vm12177_vm7, %v6247_v25, %v6237_v47  ;;  %vm5403_vm11 = vmpackc.low %vm7750_vm15, %vm7750_vm15  ;;  %v6262_v35 = vunpack.i.h.bf16 %v6260_v17  ;;  %v6261_v30 = vunpack.i.l.bf16 %v6260_v17  ;;  %v6257_v54 = vunpack.i.h.bf16 %v6255_v23 }
 0x571   : > { %v7795_v7 = vpack.c.bf16 %v873_v14, %v872_v45  ;;  %vm5406_vm13 = vmpackc.low %vm7763_vm14, %vm7763_vm14  ;;  %v6256_v48 = vunpack.i.l.bf16 %v6255_v23  ;;  %6549 = vrot.lane.b32.xlu1 %v7476_v9, %s7248_s27  ;;  %6544 = vrot.lane.b32.xlu0 %v7464_v6, %s7248_s27  ;;  %vm7818_vm14 = vcmp.lt.s32.totalorder %v278_v22, 7  ;;  %v12180_v58 = vmov 0 }
 0x572   : > { %v912_v47 = vsel %vm12178_vm1, %v6257_v54, %v6262_v35  ;;  %5404 = vmatprep.subr.msk.bf16.mxu1 %vm5403_vm11, %v7790_v4  ;;  %vm12179_vm7 = vmmov %vm12178_vm1  ;;  %v12181_v58 = vsel %vm7818_vm14, 4294967295, %v12180_v58  ;;  %vm7837_vm1 = vcmp.lt.s32.totalorder %v277_v33, 7  ;;  %v12182_v22 = vmov 0 }
 0x573   : > { %5247 = vmatpush1.bf16.msk.msra.mxu0 %vm5246_vm9, %v7795_v7  ;;  %v911_v25 = vsel %vm12179_vm7, %v6256_v48, %v6261_v30  ;;  %5407 = vmatpush1.bf16.msk.msra.mxu1 %vm5406_vm13, %v7784_v46  ;;  %v6270_v26 = vpop.permute.xlu1 %6269  ;;  %v6265_v55 = vpop.permute.xlu0 %6264  ;;  %v12183_v22 = vsel %vm7837_vm1, 4294967295, %v12182_v22  ;;  %vm7843_vm7 = vcmp.lt.s32.totalorder %v280_v38, 7  ;;  %vm12186_vm9 = vcmp.lt.s32.totalorder %v7574_v15, 72  ;;  %vm7859_vm12 = vmand %vm7630_vm5, %vm7818_vm14 }
 0x574   : > { %v6272_v59 = vunpack.i.h.bf16 %v6270_v26  ;;  %v6271_v45 = vunpack.i.l.bf16 %v6270_v26  ;;  %v6267_v14 = vunpack.i.h.bf16 %v6265_v55  ;;  %v6266_v17 = vunpack.i.l.bf16 %v6265_v55  ;;  %vm12187_vm11 = vmmov %vm12186_vm9 }
 0x575   : > { %6559 = vrot.lane.b32.xlu1 %v7472_v8, %s7249_s28  ;;  %6554 = vrot.lane.b32.xlu0 %v7460_v5, %s7249_s28  ;;  %v7829_v23 = vpack.c.bf16 %v912_v47, %v911_v25  ;;  %v12184_v8 = vmov 0  ;;  %vm12188_vm13 = vmmov %vm12186_vm9  ;;  %v12190_v38 = vmov 0 }
 0x576   : > { %v12185_v8 = vsel %vm7843_vm7, 4294967295, %v12184_v8  ;;  %v909_v5 = vsel %vm12186_vm9, %v6261_v30, %v6271_v45  ;;  %v910_v47 = vsel %vm12187_vm11, %v6262_v35, %v6272_v59  ;;  %v908_v25 = vsel %vm12188_vm13, %v6272_v59, %v6267_v14  ;;  %vm12189_vm15 = vmmov %vm12186_vm9 }
 0x577   : > { %v907_v33 = vsel %vm12189_vm15, %v6271_v45, %v6266_v17  ;;  %v12191_v38 = vsel %vm7859_vm12, 4294967295, %v12190_v38  ;;  %vm7867_vm9 = vmand %vm7609_vm2, %vm7622_vm4  ;;  %v12193_v30 = vmov 0  ;;  %v7871_v35 = vpack.c.bf16 %v910_v47, %v909_v5  ;;  %v6280_v59 = vpop.permute.xlu1 %6279  ;;  %v6275_v45 = vpop.permute.xlu0 %6274 }
 0x578   : > { %12192 = vst [vmem:[#allocation14_spill] sm:$0xff] %v12191_v38  ;;  %v12194_v30 = vsel %vm7867_vm9, 4294967295, %v12193_v30  ;;  %vm12196_vm15 = vmmov %vm12187_vm11  ;;  %v914_v55 = vsel %vm12187_vm11, %v6267_v14, %v6257_v54  ;;  %v7883_v32 = vpack.c.bf16 %v908_v25, %v907_v33  ;;  %v6277_v54 = vunpack.i.h.bf16 %v6275_v45 }
 0x579   : > { %12195 = vst [vmem:[#allocation15_spill] sm:$0xff] %v12194_v30  ;;  %v913_v26 = vsel %vm12196_vm15, %v6266_v17, %v6256_v48  ;;  %vm12197_vm13 = vmpackc.low %vm7630_vm5, %vm7630_vm5  ;;  %v6282_v48 = vunpack.i.h.bf16 %v6280_v59  ;;  %v6281_v17 = vunpack.i.l.bf16 %v6280_v59  ;;  %v6276_v14 = vunpack.i.l.bf16 %v6275_v45  ;;  %6569 = vrot.lane.b32.xlu1 %v7476_v9, %s7249_s28  ;;  %6564 = vrot.lane.b32.xlu0 %v7464_v6, %s7249_s28 }
 0x57a   : > { %5250 = vmatprep.subr.msk.bf16.mxu0 %vm12197_vm13, %v7829_v23  ;;  %v7888_v5 = vpack.c.bf16 %v914_v55, %v913_v26  ;;  %vm5412_vm15 = vmpackc.low %vm7729_vm10, %vm7729_vm10  ;;  %vm7902_vm13 = vcmp.lt.s32.totalorder %v279_v40, 7  ;;  %v12198_v47 = vmov 0  ;;  %vm12200_vm5 = vcmp.lt.s32.totalorder %v7574_v15, 71  ;;  %5410 = vmatprep.subr.msk.bf16.mxu1 %vm5409_vm6, %v7883_v32 }
 0x57b   : > { %v12199_v47 = vsel %vm7902_vm13, 4294967295, %v12198_v47  ;;  %v953_v25 = vsel %vm12200_vm5, %v6277_v54, %v6282_v48  ;;  %vm12201_vm4 = vmpackc.low %vm7693_vm0, %vm7693_vm0  ;;  %v12202_v6 = vmov 0  ;;  %5413 = vmatpush1.bf16.msk.msra.mxu1 %vm5412_vm15, %v7871_v35  ;;  %v6290_v40 = vpop.permute.xlu1 %6289  ;;  %v6285_v33 = vpop.permute.xlu0 %6284  ;;  %v12206_v26 = vmov 0 }
 0x57c   : > { %5253 = vmatpush1.bf16.msk.msra.mxu0 %vm12201_vm4, %v7888_v5  ;;  %vm7919_vm11 = vmand %vm7693_vm0, %vm7837_vm1  ;;  %v6292_v55 = vunpack.i.h.bf16 %v6290_v40  ;;  %v6291_v59 = vunpack.i.l.bf16 %v6290_v40  ;;  %v6287_v45 = vunpack.i.h.bf16 %v6285_v33  ;;  %v6286_v19 = vunpack.i.l.bf16 %v6285_v33 }
 0x57d   : > { %v12203_v6 = vsel %vm7919_vm11, 4294967295, %v12202_v6  ;;  %vm12205_vm14 = vmmov %vm12200_vm5  ;;  %v12233_v38 = vmov 0 }
 0x57e   : > { %12204 = vst [vmem:[#allocation16_spill] sm:$0xff] %v12203_v6  ;;  %v952_v9 = vsel %vm12205_vm14, %v6276_v14, %v6281_v17  ;;  %vm7930_vm4 = vmand %vm7711_vm8, %vm7843_vm7 }
 0x57f   : > { %v12207_v26 = vsel %vm7930_vm4, 4294967295, %v12206_v26  ;;  %vm7938_vm5 = vmand %vm7729_vm10, %vm7902_vm13  ;;  %v7942_v12 = vpack.c.bf16 %v953_v25, %v952_v9 }
 0x580   : > { %12208 = vst [vmem:[#allocation17_spill] sm:$0xff] %v12207_v26  ;;  %v12210_v13 = vsel %vm7938_vm5, 4294967295, %v12209_v13  ;;  %vm12212_vm15 = vmmov %vm12205_vm14 }
 0x581   : > { %12211 = vst [vmem:[#allocation18_spill] sm:$0xff] %v12210_v13  ;;  %v950_v40 = vsel %vm12212_vm15, %v6281_v17, %v6291_v59  ;;  %vm12213_vm8 = vmmov %vm12205_vm14 }
 0x582   : > { %v951_v33 = vsel %vm12213_vm8, %v6282_v48, %v6292_v55  ;;  %vm12214_vm0 = vmmov %vm12213_vm8  ;;  %v6300_v48 = vpop.permute.xlu1 %6299 }
 0x583   : > { %v949_v11 = vsel %vm12214_vm0, %v6292_v55, %v6287_v45  ;;  %vm12215_vm10 = vmmov %vm12214_vm0  ;;  %v7959_v25 = vpack.c.bf16 %v951_v33, %v950_v40  ;;  %v6295_v55 = vpop.permute.xlu0 %6294 }
 0x584   : > { %v948_v10 = vsel %vm12215_vm10, %v6291_v59, %v6286_v19  ;;  %vm5415_vm6 = vmpackc.low %vm7930_vm4, %vm7930_vm4  ;;  %vm12228_vm4 = vnez %v12143_v39 }
 0x585   : > { %vm12216_vm14 = vmmov %vm12214_vm0  ;;  %v7971_v59 = vpack.c.bf16 %v949_v11, %v948_v10  ;;  %v12223_v11 = vmov 0 }
 0x586   : > { %v954_v9 = vsel %vm12216_vm14, %v6286_v19, %v6276_v14  ;;  %vm12217_vm15 = vmmov %vm12214_vm0  ;;  %v6302_v19 = vunpack.i.h.bf16 %v6300_v48  ;;  %v6301_v14 = vunpack.i.l.bf16 %v6300_v48  ;;  %vm12219_vm14 = vcmp.lt.s32.totalorder %v7574_v15, 65 }
 0x587   : > { %v955_v17 = vsel %vm12217_vm15, %v6287_v45, %v6277_v54  ;;  %vm12218_vm8 = vmpackc.low %vm7859_vm12, %vm7859_vm12  ;;  %v6297_v54 = vunpack.i.h.bf16 %v6295_v55  ;;  %v6296_v45 = vunpack.i.l.bf16 %v6295_v55  ;;  %5416 = vmatprep.subr.msk.bf16.mxu1 %vm5415_vm6, %v7971_v59  ;;  %vm12222_vm6 = vnez %v12140_v37 }
 0x588   : > { %5256 = vmatprep.subr.msk.bf16.mxu0 %vm12218_vm8, %v7942_v12  ;;  %vm5418_vm10 = vmpackc.low %vm7938_vm5, %vm7938_vm5  ;;  %v7976_v40 = vpack.c.bf16 %v955_v17, %v954_v9  ;;  %vm12221_vm8 = vnez %v12146_v43  ;;  %v6310_v9 = vpop.permute.xlu1 %6309  ;;  %v6305_v17 = vpop.permute.xlu0 %6304  ;;  %v12229_v48 = vmov 0 }
 0x589   : > { %v994_v10 = vsel %vm12219_vm14, %v6297_v54, %v6302_v19  ;;  %vm12220_vm15 = vmpackc.low %vm7919_vm11, %vm7919_vm11  ;;  %5419 = vmatpush1.bf16.msk.msra.mxu1 %vm5418_vm10, %v7959_v25  ;;  %v6312_v55 = vunpack.i.h.bf16 %v6310_v9  ;;  %v6311_v13 = vunpack.i.l.bf16 %v6310_v9  ;;  %v6307_v26 = vunpack.i.h.bf16 %v6305_v17 }
 0x58a   : > { %5259 = vmatpush1.bf16.msk.msra.mxu0 %vm12220_vm15, %v7976_v40  ;;  %vm7995_vm5 = vmand %vm12222_vm6, %vm12221_vm8  ;;  %v6306_v6 = vunpack.i.l.bf16 %v6305_v17  ;;  %vm12232_vm10 = vnez %v12148_v44 }
 0x58b   : > { %v12224_v11 = vsel %vm7995_vm5, 4294967295, %v12223_v11  ;;  %vm12226_vm0 = vmmov %vm12219_vm14  ;;  %vm12227_vm14 = vnez %v12154_v50 }
 0x58c   : > { %12225 = vst [vmem:[#allocation19_spill] sm:$0xff] %v12224_v11  ;;  %v993_v33 = vsel %vm12226_vm0, %v6296_v45, %v6301_v14  ;;  %vm8005_vm15 = vmand %vm12228_vm4, %vm12227_vm14  ;;  %v12251_v11 = vmov 0 }
 0x58d   : > { %v12230_v48 = vsel %vm8005_vm15, 4294967295, %v12229_v48  ;;  %vm8013_vm11 = vmand %vm12232_vm10, %vm7721_vm3  ;;  %v8017_v57 = vpack.c.bf16 %v994_v10, %v993_v33 }
 0x58e   : > { %12231 = vst [vmem:[#allocation20_spill] sm:$0xff] %v12230_v48  ;;  %v12234_v38 = vsel %vm8013_vm11, 4294967295, %v12233_v38  ;;  %vm12236_vm14 = vmmov %vm12226_vm0 }
 0x58f   : > { %12235 = vst [vmem:[#allocation21_spill] sm:$0xff] %v12234_v38  ;;  %v991_v9 = vsel %vm12236_vm14, %v6301_v14, %v6311_v13  ;;  %vm12237_vm8 = vmmov %vm12226_vm0 }
 0x590   : > { %v992_v17 = vsel %vm12237_vm8, %v6302_v19, %v6312_v55  ;;  %vm12238_vm13 = vmmov %vm12226_vm0  ;;  %v6315_v19 = vpop.permute.xlu0 %6314 }
 0x591   : > { %v990_v42 = vsel %vm12238_vm13, %v6312_v55, %v6307_v26  ;;  %vm12239_vm3 = vmmov %vm12226_vm0  ;;  %v8034_v10 = vpack.c.bf16 %v992_v17, %v991_v9 }
 0x592   : > { %v989_v53 = vsel %vm12239_vm3, %v6311_v13, %v6306_v6  ;;  %vm5421_vm0 = vmpackc.low %vm8005_vm15, %vm8005_vm15  ;;  %v6320_v13 = vpop.permute.xlu1 %6319 }
 0x593   : > { %vm12240_vm12 = vmmov %vm12239_vm3  ;;  %v8046_v55 = vpack.c.bf16 %v990_v42, %v989_v53 }
 0x594   : > { %v995_v33 = vsel %vm12240_vm12, %v6306_v6, %v6296_v45  ;;  %vm12241_vm14 = vmmov %vm12239_vm3  ;;  %v6322_v6 = vunpack.i.h.bf16 %v6320_v13  ;;  %v6321_v45 = vunpack.i.l.bf16 %v6320_v13 }
 0x595   : > { %v996_v14 = vsel %vm12241_vm14, %v6307_v26, %v6297_v54  ;;  %vm12242_vm13 = vmpackc.low %vm7867_vm9, %vm7867_vm9  ;;  %12243 = vst [vmem:[#allocation22_spill] sm:$0xff] %v8046_v55  ;;  %v6317_v26 = vunpack.i.h.bf16 %v6315_v19  ;;  %v6316_v54 = vunpack.i.l.bf16 %v6315_v19  ;;  %5422 = vmatprep.subr.msk.bf16.mxu1 %vm5421_vm0, %v8046_v55  ;;  %vm12244_vm14 = vcmp.lt.s32.totalorder %v7574_v15, 64 }
 0x596   : > { %5262 = vmatprep.subr.msk.bf16.mxu0 %vm12242_vm13, %v8017_v57  ;;  %vm5424_vm3 = vmpackc.low %vm8013_vm11, %vm8013_vm11  ;;  %v8051_v9 = vpack.c.bf16 %v996_v14, %v995_v33  ;;  %v6330_v17 = vpop.permute.xlu1 %6329  ;;  %v6325_v33 = vpop.permute.xlu0 %6324  ;;  %v12248_v14 = vmov 0  ;;  %vm11699_vm0 = vcmp.lt.s32.totalorder %v7592_v18, 7 }
 0x597   : > { %v1035_v53 = vsel %vm12244_vm14, %v6317_v26, %v6322_v6  ;;  %vm12245_vm13 = vmpackc.low %vm7995_vm5, %vm7995_vm5  ;;  %5425 = vmatpush1.bf16.msk.msra.mxu1 %vm5424_vm3, %v8034_v10  ;;  %v6332_v13 = vunpack.i.h.bf16 %v6330_v17  ;;  %v6331_v19 = vunpack.i.l.bf16 %v6330_v17  ;;  %v6327_v38 = vunpack.i.h.bf16 %v6325_v33 }
 0x598   : > { %5265 = vmatpush1.bf16.msk.msra.mxu0 %vm12245_vm13, %v8051_v9  ;;  %vm12246_vm12 = vmmov %vm12244_vm14  ;;  %vm12247_vm14 = vnez %v12181_v58  ;;  %v6326_v48 = vunpack.i.l.bf16 %v6325_v33 }
 0x599   : > { %v1034_v42 = vsel %vm12246_vm12, %v6316_v54, %v6321_v45  ;;  %vm8078_vm8 = vmand %vm7609_vm2, %vm12247_vm14 }
 0x59a   : > { %v12249_v14 = vsel %vm8078_vm8, 4294967295, %v12248_v14  ;;  %vm8086_vm3 = vmand %vm12222_vm6, %vm7837_vm1  ;;  %v8090_v30 = vpack.c.bf16 %v1035_v53, %v1034_v42 }
 0x59b   : > { %12250 = vst [vmem:[#allocation23_spill] sm:$0xff] %v12249_v14  ;;  %v12252_v11 = vsel %vm8086_vm3, 4294967295, %v12251_v11  ;;  %vm12255_vm11 = vmmov %vm12246_vm12  ;;  %v12314_v14 = vmov 0 }
 0x59c   : > { %12253 = vst [vmem:[#allocation24_spill] sm:$0xff] %v12252_v11  ;;  %12254 = vst [vmem:[#allocation25_spill] sm:$0xff] %v8090_v30  ;;  %v1032_v17 = vsel %vm12255_vm11, %v6321_v45, %v6331_v19 }
 0x59d   : > { %vm12256_vm15 = vmmov %vm12255_vm11 }
 0x59e   : > { %v1033_v33 = vsel %vm12256_vm15, %v6322_v6, %v6332_v13  ;;  %vm12257_vm5 = vmmov %vm12255_vm11  ;;  %v6340_v6 = vpop.permute.xlu1 %6339 }
 0x59f   : > { %v1031_v41 = vsel %vm12257_vm5, %v6332_v13, %v6327_v38  ;;  %vm12258_vm9 = vmmov %vm12257_vm5  ;;  %v8108_v42 = vpack.c.bf16 %v1033_v33, %v1032_v17  ;;  %v6335_v13 = vpop.permute.xlu0 %6334 }
 0x5a0   : > { %v1030_v53 = vsel %vm12258_vm9, %v6331_v19, %v6326_v48  ;;  %vm12259_vm13 = vmmov %vm12257_vm5  ;;  %v6336_v33 = vunpack.i.l.bf16 %v6335_v13  ;;  %vm12274_vm9 = vnez %v12199_v47 }
 0x5a1   : > { %v1036_v49 = vsel %vm12259_vm13, %v6326_v48, %v6316_v54  ;;  %vm12260_vm11 = vmmov %vm12257_vm5  ;;  %v8120_v19 = vpack.c.bf16 %v1031_v41, %v1030_v53  ;;  %v6342_v48 = vunpack.i.h.bf16 %v6340_v6  ;;  %v6341_v54 = vunpack.i.l.bf16 %v6340_v6 }
 0x5a2   : > { %v1037_v45 = vsel %vm12260_vm11, %v6327_v38, %v6317_v26  ;;  %vm12261_vm5 = vmpackc.low %vm7609_vm2, %vm7609_vm2  ;;  %v6337_v38 = vunpack.i.h.bf16 %v6335_v13  ;;  %v12264_v26 = vmov 0  ;;  %v12275_v53 = vmov 0  ;;  %v6350_v6 = vpop.permute.xlu1 %6349 }
 0x5a3   : > { %5268 = vmatprep.subr.msk.bf16.mxu0 %vm12261_vm5, %v8090_v30  ;;  %12262 = vst [vmem:[#allocation26_spill] sm:$0xff] %v8120_v19  ;;  %v8125_v17 = vpack.c.bf16 %v1037_v45, %v1036_v49  ;;  %vm8131_vm15 = vmand %vm7609_vm2, %vm11699_vm0  ;;  %v12268_v49 = vmov 0  ;;  %vm12271_vm5 = vcmp.lt.s32.totalorder %v7574_v15, 63  ;;  %v6345_v13 = vpop.permute.xlu0 %6344  ;;  %v6352_v61 = vunpack.i.h.bf16 %v6350_v6 }
 0x5a4   : > { %v12265_v26 = vsel %vm8131_vm15, 4294967295, %v12264_v26  ;;  %vm12267_vm13 = vmpackc.low %vm12228_vm4, %vm12228_vm4  ;;  %v1076_v41 = vsel %vm12271_vm5, %v6337_v38, %v6342_v48  ;;  %v1075_v45 = vsel %vm12271_vm5, %v6336_v33, %v6341_v54  ;;  %v6351_v28 = vunpack.i.l.bf16 %v6350_v6 }
 0x5a5   : > { %12263 = vst [vmem:[#allocation27_spill] sm:$0xff] %v8125_v17  ;;  %12266 = vst [vmem:[#allocation28_spill] sm:$0xff] %v12265_v26  ;;  %5428 = vmatprep.subr.msk.bf16.mxu1 %vm12267_vm13, %v8120_v19  ;;  %v6347_v36 = vunpack.i.h.bf16 %v6345_v13  ;;  %v6346_v19 = vunpack.i.l.bf16 %v6345_v13  ;;  %v8185_v30 = vpack.c.bf16 %v1076_v41, %v1075_v45 }
 0x5a6   : > { %vm8145_vm11 = vmand %vm12228_vm4, %vm7843_vm7  ;;  %vm11715_vm7 = vcmp.lt.s32.totalorder %v7637_v31, 7 }
 0x5a7   : > { %v12269_v49 = vsel %vm8145_vm11, 4294967295, %v12268_v49  ;;  %vm12272_vm0 = vmpackc.low %vm12222_vm6, %vm12222_vm6  ;;  %12282 = vst [vmem:[#allocation32_spill] sm:$0xff] %v8185_v30 }
 0x5a8   : > { %12270 = vst [vmem:[#allocation29_spill] sm:$0xff] %v12269_v49  ;;  %5271 = vmatpush1.bf16.msk.msra.mxu0 %vm12272_vm0, %v8125_v17  ;;  %vm12273_vm13 = vmpackc.low %vm12232_vm10, %vm12232_vm10  ;;  %vm12278_vm0 = vnez %v12132_v27 }
 0x5a9   : > { %5431 = vmatpush1.bf16.msk.msra.mxu1 %vm12273_vm13, %v8108_v42  ;;  %vm8167_vm12 = vmand %vm12232_vm10, %vm12274_vm9  ;;  %vm11716_vm13 = vcmp.lt.s32.totalorder %v7641_v34, 7 }
 0x5aa   : > { %v12276_v53 = vsel %vm8167_vm12, 4294967295, %v12275_v53  ;;  %vm8177_vm2 = vmand %vm8131_vm15, %vm12278_vm0 }
 0x5ab   : > { %12277 = vst [vmem:[#allocation30_spill] sm:$0xff] %v12276_v53  ;;  %v12280_v24 = vsel %vm8177_vm2, 4294967295, %v12279_v24  ;;  %vm12283_vm1 = vmmov %vm12271_vm5  ;;  %v12310_v53 = vmov 0 }
 0x5ac   : > { %12281 = vst [vmem:[#allocation31_spill] sm:$0xff] %v12280_v24  ;;  %v1073_v6 = vsel %vm12283_vm1, %v6341_v54, %v6351_v28  ;;  %vm12284_vm14 = vmmov %vm12283_vm1  ;;  %v1078_v54 = vsel %vm12283_vm1, %v6347_v36, %v6337_v38 }
 0x5ad   : > { %v1074_v13 = vsel %vm12284_vm14, %v6342_v48, %v6352_v61  ;;  %vm12285_vm5 = vmmov %vm12283_vm1 }
 0x5ae   : > { %v1072_v41 = vsel %vm12285_vm5, %v6352_v61, %v6347_v36  ;;  %vm12286_vm15 = vmmov %vm12283_vm1  ;;  %v8204_v17 = vpack.c.bf16 %v1074_v13, %v1073_v6  ;;  %v6355_v61 = vpop.permute.xlu0 %6354  ;;  %v12295_v13 = vmov 0 }
 0x5af   : > { %v1071_v45 = vsel %vm12286_vm15, %v6351_v28, %v6346_v19  ;;  %vm12287_vm9 = vmmov %vm12283_vm1  ;;  %v6360_v28 = vpop.permute.xlu1 %6359  ;;  %vm12290_vm15 = vcmp.lt.s32.totalorder %v7634_v29, 7  ;;  %v6357_v6 = vunpack.i.h.bf16 %v6355_v61 }
 0x5b0   : > { %v1077_v55 = vsel %vm12287_vm9, %v6346_v19, %v6336_v33  ;;  %vm12288_vm14 = vmpackc.low %vm8078_vm8, %vm8078_vm8  ;;  %v8216_v48 = vpack.c.bf16 %v1072_v41, %v1071_v45  ;;  %v12291_v19 = vmov 0  ;;  %v6362_v38 = vunpack.i.h.bf16 %v6360_v28 }
 0x5b1   : > { %5274 = vmatprep.subr.msk.bf16.mxu0 %vm12288_vm14, %v8185_v30  ;;  %vm8222_vm5 = vmand %vm12222_vm6, %vm12290_vm15  ;;  %v8226_v36 = vpack.c.bf16 %v1078_v54, %v1077_v55  ;;  %v6361_v33 = vunpack.i.l.bf16 %v6360_v28  ;;  %v6356_v41 = vunpack.i.l.bf16 %v6355_v61  ;;  %v12299_v55 = vmov 0 }
 0x5b2   : > { %12289 = vst [vmem:[#allocation33_spill] sm:$0xff] %v8216_v48  ;;  %v12292_v19 = vsel %vm8222_vm5, 4294967295, %v12291_v19  ;;  %vm8232_vm9 = vmand %vm12228_vm4, %vm11715_vm7  ;;  %vm12302_vm15 = vcmp.lt.s32.totalorder %v7574_v15, 57  ;;  %v12306_v54 = vmov 0  ;;  %v6365_v44 = vpop.permute.xlu0 %6364 }
 0x5b3   : > { %12293 = vst [vmem:[#allocation34_spill] sm:$0xff] %v12292_v19  ;;  %12294 = vst [vmem:[#allocation35_spill] sm:$0xff] %v8226_v36  ;;  %v12296_v13 = vsel %vm8232_vm9, 4294967295, %v12295_v13  ;;  %v1117_v45 = vsel %vm12302_vm15, %v6357_v6, %v6362_v38  ;;  %v1116_v28 = vsel %vm12302_vm15, %v6356_v41, %v6361_v33  ;;  %v6370_v61 = vpop.permute.xlu1 %6369  ;;  %v6367_v11 = vunpack.i.h.bf16 %v6365_v44 }
 0x5b4   : > { %12297 = vst [vmem:[#allocation36_spill] sm:$0xff] %v12296_v13  ;;  %vm12298_vm1 = vmpackc.low %vm8145_vm11, %vm8145_vm11  ;;  %v6372_v49 = vunpack.i.h.bf16 %v6370_v61  ;;  %v6371_v39 = vunpack.i.l.bf16 %v6370_v61  ;;  %v6366_v37 = vunpack.i.l.bf16 %v6365_v44  ;;  %v12357_v13 = vmov 0 }
 0x5b5   : > { %5434 = vmatprep.subr.msk.bf16.mxu1 %vm12298_vm1, %v8216_v48  ;;  %vm8246_vm14 = vmand %vm12232_vm10, %vm11716_vm13  ;;  %vm12305_vm13 = vnez %v12146_v43  ;;  %v8290_v48 = vpack.c.bf16 %v1117_v45, %v1116_v28 }
 0x5b6   : > { %v12300_v55 = vsel %vm8246_vm14, 4294967295, %v12299_v55  ;;  %vm12303_vm7 = vmpackc.low %vm8086_vm3, %vm8086_vm3 }
 0x5b7   : > { %12301 = vst [vmem:[#allocation37_spill] sm:$0xff] %v12300_v55  ;;  %5277 = vmatpush1.bf16.msk.msra.mxu0 %vm12303_vm7, %v8226_v36  ;;  %vm12304_vm1 = vmpackc.low %vm8167_vm12, %vm8167_vm12  ;;  %vm12309_vm7 = vnez %v12154_v50 }
 0x5b8   : > { %5437 = vmatpush1.bf16.msk.msra.mxu1 %vm12304_vm1, %v8204_v17  ;;  %vm8268_vm0 = vmand %vm8222_vm5, %vm12305_vm13  ;;  %vm12313_vm1 = vnez %v12159_v56  ;;  %12317 = vst [vmem:[#allocation41_spill] sm:$0xff] %v8290_v48 }
 0x5b9   : > { %v12307_v54 = vsel %vm8268_vm0, 4294967295, %v12306_v54  ;;  %vm8278_vm10 = vmand %vm8232_vm9, %vm12309_vm7 }
 0x5ba   : > { %12308 = vst [vmem:[#allocation38_spill] sm:$0xff] %v12307_v54  ;;  %v12311_v53 = vsel %vm8278_vm10, 4294967295, %v12310_v53  ;;  %vm8286_vm12 = vmand %vm8246_vm14, %vm12313_vm1 }
 0x5bb   : > { %12312 = vst [vmem:[#allocation39_spill] sm:$0xff] %v12311_v53  ;;  %v12315_v14 = vsel %vm8286_vm12, 4294967295, %v12314_v14  ;;  %vm12318_vm4 = vmmov %vm12302_vm15 }
 0x5bc   : > { %12316 = vst [vmem:[#allocation40_spill] sm:$0xff] %v12315_v14  ;;  %v1114_v61 = vsel %vm12318_vm4, %v6361_v33, %v6371_v39  ;;  %vm12319_vm3 = vmmov %vm12318_vm4 }
 0x5bd   : > { %v1115_v44 = vsel %vm12319_vm3, %v6362_v38, %v6372_v49  ;;  %vm12320_vm6 = vmmov %vm12319_vm3 }
 0x5be   : > { %v1113_v30 = vsel %vm12320_vm6, %v6372_v49, %v6367_v11  ;;  %vm12321_vm8 = vmmov %vm12319_vm3  ;;  %v8307_v45 = vpack.c.bf16 %v1115_v44, %v1114_v61  ;;  %v6375_v49 = vpop.permute.xlu0 %6374 }
 0x5bf   : > { %v1112_v36 = vsel %vm12321_vm8, %v6371_v39, %v6366_v37  ;;  %vm5439_vm15 = vmpackc.low %vm8278_vm10, %vm8278_vm10  ;;  %v6380_v39 = vpop.permute.xlu1 %6379 }
 0x5c0   : > { %vm12322_vm11 = vmmov %vm12319_vm3  ;;  %v8319_v38 = vpack.c.bf16 %v1113_v30, %v1112_v36 }
 0x5c1   : > { %v1118_v28 = vsel %vm12322_vm11, %v6366_v37, %v6356_v41  ;;  %vm12323_vm4 = vmmov %vm12319_vm3  ;;  %v6382_v37 = vunpack.i.h.bf16 %v6380_v39  ;;  %v6381_v41 = vunpack.i.l.bf16 %v6380_v39  ;;  %vm12327_vm3 = vcmp.lt.s32.totalorder %v7574_v15, 56 }
 0x5c2   : > { %v1119_v33 = vsel %vm12323_vm4, %v6367_v11, %v6357_v6  ;;  %vm12324_vm6 = vmpackc.low %vm8177_vm2, %vm8177_vm2  ;;  %12325 = vst [vmem:[#allocation42_spill] sm:$0xff] %v8319_v38  ;;  %v6377_v11 = vunpack.i.h.bf16 %v6375_v49  ;;  %v6376_v6 = vunpack.i.l.bf16 %v6375_v49  ;;  %5440 = vmatprep.subr.msk.bf16.mxu1 %vm5439_vm15, %v8319_v38  ;;  %vm12351_vm2 = vnez %v12185_v8 }
 0x5c3   : > { %5280 = vmatprep.subr.msk.bf16.mxu0 %vm12324_vm6, %v8290_v48  ;;  %vm5442_vm8 = vmpackc.low %vm8286_vm12, %vm8286_vm12  ;;  %v8324_v61 = vpack.c.bf16 %v1119_v33, %v1118_v28  ;;  %v6390_v36 = vpop.permute.xlu1 %6389  ;;  %v6385_v28 = vpop.permute.xlu0 %6384  ;;  %vm12330_vm6 = vnez %v12265_v26 }
 0x5c4   : > { %v1158_v44 = vsel %vm12327_vm3, %v6377_v11, %v6382_v37  ;;  %vm12328_vm11 = vmpackc.low %vm8268_vm0, %vm8268_vm0  ;;  %5443 = vmatpush1.bf16.msk.msra.mxu1 %vm5442_vm8, %v8307_v45  ;;  %v6392_v33 = vunpack.i.h.bf16 %v6390_v36  ;;  %v6391_v39 = vunpack.i.l.bf16 %v6390_v36  ;;  %v6387_v49 = vunpack.i.h.bf16 %v6385_v28 }
 0x5c5   : > { %12326 = vst [vmem:[#allocation43_spill] sm:$0xff] %v8324_v61  ;;  %5283 = vmatpush1.bf16.msk.msra.mxu0 %vm12328_vm11, %v8324_v61  ;;  %vm12329_vm4 = vmmov %vm12327_vm3  ;;  %v6386_v14 = vunpack.i.l.bf16 %v6385_v28  ;;  %vm12349_vm0 = vcmp.lt.s32.totalorder %v7574_v15, 55 }
 0x5c6   : > { %v1157_v30 = vsel %vm12329_vm4, %v6376_v6, %v6381_v41  ;;  %vm5445_vm11 = vmpackc.low %vm8232_vm9, %vm8232_vm9 }
 0x5c7   : > { %v8344_v53 = vpack.c.bf16 %v1158_v44, %v1157_v30  ;;  %vm12332_vm4 = vmmov %vm12327_vm3  ;;  %v12337_v44 = vmov 0 }
 0x5c8   : > { %v1155_v54 = vsel %vm12332_vm4, %v6381_v41, %v6391_v39  ;;  %vm12333_vm15 = vmmov %vm12327_vm3  ;;  %v1159_v41 = vsel %vm12332_vm4, %v6386_v14, %v6376_v6 }
 0x5c9   : > { %12331 = vst [vmem:[#allocation44_spill] sm:$0xff] %v8344_v53  ;;  %v1156_v36 = vsel %vm12333_vm15, %v6382_v37, %v6392_v33  ;;  %vm12334_vm12 = vmmov %vm12327_vm3 }
 0x5ca   : > { %v1154_v28 = vsel %vm12334_vm12, %v6392_v33, %v6387_v49  ;;  %vm12335_vm10 = vmmov %vm12327_vm3  ;;  %vm12336_vm3 = vnez %v12181_v58  ;;  %v8366_v30 = vpack.c.bf16 %v1156_v36, %v1155_v54  ;;  %v6400_v33 = vpop.permute.xlu1 %6399 }
 0x5cb   : > { %v1153_v24 = vsel %vm12335_vm10, %v6391_v39, %v6386_v14  ;;  %vm8362_vm8 = vmand %vm12330_vm6, %vm12336_vm3  ;;  %v6395_v39 = vpop.permute.xlu0 %6394  ;;  %v6402_v14 = vunpack.i.h.bf16 %v6400_v33  ;;  %v6401_v6 = vunpack.i.l.bf16 %v6400_v33 }
 0x5cc   : > { %v12338_v44 = vsel %vm8362_vm8, 4294967295, %v12337_v44  ;;  %12340 = vst [vmem:[#allocation46_spill] sm:$0xff] %v8366_v30  ;;  %vm12341_vm15 = vmmov %vm12332_vm4  ;;  %v8378_v38 = vpack.c.bf16 %v1154_v28, %v1153_v24  ;;  %vm12345_vm4 = vnez %v12183_v22  ;;  %v6396_v36 = vunpack.i.l.bf16 %v6395_v39 }
 0x5cd   : > { %12339 = vst [vmem:[#allocation45_spill] sm:$0xff] %v12338_v44  ;;  %v1160_v37 = vsel %vm12341_vm15, %v6387_v49, %v6377_v11  ;;  %vm12342_vm10 = vmpackc.low %vm12330_vm6, %vm12330_vm6  ;;  %v6397_v11 = vunpack.i.h.bf16 %v6395_v39  ;;  %v12346_v49 = vmov 0  ;;  %v12352_v28 = vmov 0 }
 0x5ce   : > { %5286 = vmatprep.subr.msk.bf16.mxu0 %vm12342_vm10, %v8344_v53  ;;  %12343 = vst [vmem:[#allocation47_spill] sm:$0xff] %v8378_v38  ;;  %vm5448_vm12 = vmpackc.low %vm8246_vm14, %vm8246_vm14  ;;  %v8383_v54 = vpack.c.bf16 %v1160_v37, %v1159_v41  ;;  %5446 = vmatprep.subr.msk.bf16.mxu1 %vm5445_vm11, %v8378_v38  ;;  %v6410_v37 = vpop.permute.xlu1 %6409  ;;  %v12388_v44 = vmov 0 }
 0x5cf   : > { %vm8389_vm15 = vmand %vm8222_vm5, %vm12345_vm4  ;;  %v1199_v24 = vsel %vm12349_vm0, %v6397_v11, %v6402_v14  ;;  %5449 = vmatpush1.bf16.msk.msra.mxu1 %vm5448_vm12, %v8366_v30  ;;  %v6405_v33 = vpop.permute.xlu0 %6404  ;;  %v6412_v39 = vunpack.i.h.bf16 %v6410_v37  ;;  %v6411_v19 = vunpack.i.l.bf16 %v6410_v37 }
 0x5d0   : > { %12344 = vst [vmem:[#allocation48_spill] sm:$0xff] %v8383_v54  ;;  %v12347_v49 = vsel %vm8389_vm15, 4294967295, %v12346_v49  ;;  %vm12350_vm6 = vmpackc.low %vm8222_vm5, %vm8222_vm5  ;;  %v6407_v26 = vunpack.i.h.bf16 %v6405_v33  ;;  %v6406_v38 = vunpack.i.l.bf16 %v6405_v33 }
 0x5d1   : > { %12348 = vst [vmem:[#allocation49_spill] sm:$0xff] %v12347_v49  ;;  %5289 = vmatpush1.bf16.msk.msra.mxu0 %vm12350_vm6, %v8383_v54  ;;  %vm8415_vm11 = vmand %vm8232_vm9, %vm12351_vm2  ;;  %vm12356_vm6 = vnez %v12199_v47 }
 0x5d2   : > { %v12353_v28 = vsel %vm8415_vm11, 4294967295, %v12352_v28  ;;  %vm12355_vm10 = vmmov %vm12349_vm0 }
 0x5d3   : > { %12354 = vst [vmem:[#allocation50_spill] sm:$0xff] %v12353_v28  ;;  %v1198_v41 = vsel %vm12355_vm10, %v6396_v36, %v6401_v6  ;;  %vm8428_vm12 = vmand %vm8246_vm14, %vm12356_vm6  ;;  %vm12365_vm6 = vnez %v12132_v27 }
 0x5d4   : > { %v12358_v13 = vsel %vm8428_vm12, 4294967295, %v12357_v13  ;;  %v8432_v53 = vpack.c.bf16 %v1199_v24, %v1198_v41  ;;  %vm5451_vm0 = vmpackc.low %vm8415_vm11, %vm8415_vm11  ;;  %v12367_v24 = vmov 0 }
 0x5d5   : > { %12359 = vst [vmem:[#allocation51_spill] sm:$0xff] %v12358_v13  ;;  %vm12361_vm9 = vmmov %vm12355_vm10  ;;  %vm12366_vm10 = vcmp.ge.s32.totalorder %v7592_v18, 1 }
 0x5d6   : > { %12360 = vst [vmem:[#allocation52_spill] sm:$0xff] %v8432_v53  ;;  %v1196_v37 = vsel %vm12361_vm9, %v6401_v6, %v6411_v19  ;;  %vm12362_vm5 = vmmov %vm12361_vm9 }
 0x5d7   : > { %v1197_v33 = vsel %vm12362_vm5, %v6402_v14, %v6412_v39  ;;  %vm12363_vm2 = vmmov %vm12362_vm5 }
 0x5d8   : > { %v1195_v55 = vsel %vm12363_vm2, %v6412_v39, %v6407_v26  ;;  %vm12364_vm14 = vmmov %vm12363_vm2  ;;  %v8454_v41 = vpack.c.bf16 %v1197_v33, %v1196_v37  ;;  %v6415_v39 = vpop.permute.xlu0 %6414 }
 0x5d9   : > { %v1194_v54 = vsel %vm12364_vm14, %v6411_v19, %v6406_v38  ;;  %vm8450_vm4 = vmand %vm12366_vm10, %vm12365_vm6  ;;  %v6420_v19 = vpop.permute.xlu1 %6419 }
 0x5da   : > { %v12368_v24 = vsel %vm8450_vm4, 4294967295, %v12367_v24  ;;  %12370 = vst [vmem:[#allocation54_spill] sm:$0xff] %v8454_v41  ;;  %vm12371_vm9 = vmmov %vm12363_vm2  ;;  %v8466_v30 = vpack.c.bf16 %v1195_v55, %v1194_v54  ;;  %v12379_v54 = vmov 0 }
 0x5db   : > { %12369 = vst [vmem:[#allocation53_spill] sm:$0xff] %v12368_v24  ;;  %v1200_v6 = vsel %vm12371_vm9, %v6406_v38, %v6396_v36  ;;  %vm12372_vm5 = vmmov %vm12363_vm2  ;;  %v6422_v38 = vunpack.i.h.bf16 %v6420_v19  ;;  %v6421_v36 = vunpack.i.l.bf16 %v6420_v19  ;;  %vm12376_vm9 = vcmp.lt.s32.totalorder %v7574_v15, 9 }
 0x5dc   : > { %v1201_v14 = vsel %vm12372_vm5, %v6407_v26, %v6397_v11  ;;  %vm12373_vm2 = vmpackc.low %vm8362_vm8, %vm8362_vm8  ;;  %12374 = vst [vmem:[#allocation55_spill] sm:$0xff] %v8466_v30  ;;  %v6417_v26 = vunpack.i.h.bf16 %v6415_v39  ;;  %v6416_v11 = vunpack.i.l.bf16 %v6415_v39  ;;  %5452 = vmatprep.subr.msk.bf16.mxu1 %vm5451_vm0, %v8466_v30  ;;  %vm12378_vm0 = vcmp.ge.s32.totalorder %v7634_v29, 1 }
 0x5dd   : > { %5292 = vmatprep.subr.msk.bf16.mxu0 %vm12373_vm2, %v8432_v53  ;;  %vm5454_vm14 = vmpackc.low %vm8428_vm12, %vm8428_vm12  ;;  %v8471_v37 = vpack.c.bf16 %v1201_v14, %v1200_v6  ;;  %v6430_v6 = vpop.permute.xlu1 %6429  ;;  %v6425_v14 = vpop.permute.xlu0 %6424  ;;  %v12384_v19 = vmov 0 }
 0x5de   : > { %v1240_v55 = vsel %vm12376_vm9, %v6417_v26, %v6422_v38  ;;  %vm12377_vm5 = vmpackc.low %vm8389_vm15, %vm8389_vm15  ;;  %5455 = vmatpush1.bf16.msk.msra.mxu1 %vm5454_vm14, %v8454_v41  ;;  %v6432_v39 = vunpack.i.h.bf16 %v6430_v6  ;;  %v6431_v13 = vunpack.i.l.bf16 %v6430_v6  ;;  %v6427_v28 = vunpack.i.h.bf16 %v6425_v14 }
 0x5df   : > { %12375 = vst [vmem:[#allocation56_spill] sm:$0xff] %v8471_v37  ;;  %5295 = vmatpush1.bf16.msk.msra.mxu0 %vm12377_vm5, %v8471_v37  ;;  %vm8495_vm2 = vmand %vm12378_vm0, %vm12305_vm13  ;;  %v6426_v49 = vunpack.i.l.bf16 %v6425_v14  ;;  %vm12387_vm14 = vcmp.ge.s32.totalorder %v7641_v34, 1 }
 0x5e0   : > { %v12380_v54 = vsel %vm8495_vm2, 4294967295, %v12379_v54  ;;  %vm12382_vm10 = vmmov %vm12376_vm9  ;;  %vm12383_vm9 = vcmp.ge.s32.totalorder %v7637_v31, 1 }
 0x5e1   : > { %12381 = vst [vmem:[#allocation57_spill] sm:$0xff] %v12380_v54  ;;  %v1239_v33 = vsel %vm12382_vm10, %v6416_v11, %v6421_v36  ;;  %vm8505_vm5 = vmand %vm12383_vm9, %vm12309_vm7 }
 0x5e2   : > { %v12385_v19 = vsel %vm8505_vm5, 4294967295, %v12384_v19  ;;  %vm8513_vm0 = vmand %vm12387_vm14, %vm12313_vm1  ;;  %v5296_v30 = vpack.c.bf16 %v1240_v55, %v1239_v33 }
 0x5e3   : > { %12386 = vst [vmem:[#allocation58_spill] sm:$0xff] %v12385_v19  ;;  %v12389_v44 = vsel %vm8513_vm0, 4294967295, %v12388_v44  ;;  %vm12391_vm12 = vmmov %vm12382_vm10 }
 0x5e4   : > { %12390 = vst [vmem:[#allocation59_spill] sm:$0xff] %v12389_v44  ;;  %v1237_v6 = vsel %vm12391_vm12, %v6421_v36, %v6431_v13  ;;  %vm12392_vm11 = vmmov %vm12382_vm10 }
 0x5e5   : > { %v1238_v14 = vsel %vm12392_vm11, %v6422_v38, %v6432_v39  ;;  %vm12393_vm15 = vmmov %vm12382_vm10  ;;  %v6440_v38 = vpop.permute.xlu1 %6439 }
 0x5e6   : > { %v1236_v53 = vsel %vm12393_vm15, %v6432_v39, %v6427_v28  ;;  %vm12394_vm14 = vmmov %vm12382_vm10  ;;  %v5459_v55 = vpack.c.bf16 %v1238_v14, %v1237_v6  ;;  %v6435_v39 = vpop.permute.xlu0 %6434  ;;  %v6442_v14 = vunpack.i.h.bf16 %v6440_v38  ;;  %v6441_v19 = vunpack.i.l.bf16 %v6440_v38 }
 0x5e7   : > { %v1235_v37 = vsel %vm12394_vm14, %v6431_v13, %v6426_v49  ;;  %vm5457_vm10 = vmpackc.low %vm8505_vm5, %vm8505_vm5  ;;  %vm12401_vm14 = vcmp.ge.s32.totalorder %v7592_v18, 1 }
 0x5e8   : > { %vm12395_vm8 = vmmov %vm12392_vm11  ;;  %v5456_v13 = vpack.c.bf16 %v1236_v53, %v1235_v37 }
 0x5e9   : > { %v1241_v33 = vsel %vm12395_vm8, %v6426_v49, %v6416_v11  ;;  %vm12396_vm9 = vmmov %vm12395_vm8  ;;  %v6437_v49 = vunpack.i.h.bf16 %v6435_v39  ;;  %v6436_v11 = vunpack.i.l.bf16 %v6435_v39  ;;  %vm12398_vm8 = vcmp.lt.s32.totalorder %v7574_v15, 8 }
 0x5ea   : > { %v1242_v36 = vsel %vm12396_vm9, %v6427_v28, %v6417_v26  ;;  %vm12397_vm11 = vmpackc.low %vm8450_vm4, %vm8450_vm4  ;;  %5458 = vmatprep.subr.msk.bf16.mxu1 %vm5457_vm10, %v5456_v13  ;;  %v6445_v37 = vpop.permute.xlu0 %6444  ;;  %vm12404_vm10 = vcmp.ge.s32.totalorder %v7634_v29, 1 }
 0x5eb   : > { %5298 = vmatprep.subr.msk.bf16.mxu0 %vm12397_vm11, %v5296_v30  ;;  %vm5460_vm15 = vmpackc.low %vm8513_vm0, %vm8513_vm0  ;;  %v5299_v6 = vpack.c.bf16 %v1242_v36, %v1241_v33  ;;  %v1281_v28 = vsel %vm12398_vm8, %v6437_v49, %v6442_v14  ;;  %v6450_v30 = vpop.permute.xlu1 %6449  ;;  %v6447_v38 = vunpack.i.h.bf16 %v6445_v37  ;;  %v6446_v39 = vunpack.i.l.bf16 %v6445_v37 }
 0x5ec   : > { %vm12399_vm12 = vmpackc.low %vm8495_vm2, %vm8495_vm2  ;;  %5461 = vmatpush1.bf16.msk.msra.mxu1 %vm5460_vm15, %v5459_v55  ;;  %v6452_v33 = vunpack.i.h.bf16 %v6450_v30  ;;  %v6451_v36 = vunpack.i.l.bf16 %v6450_v30 }
 0x5ed   : > { %5301 = vmatpush1.bf16.msk.msra.mxu0 %vm12399_vm12, %v5299_v6  ;;  %vm12400_vm9 = vmmov %vm12398_vm8  ;;  %vm12407_vm12 = vcmp.ge.s32.totalorder %v7637_v31, 1 }
 0x5ee   : > { %v1280_v53 = vsel %vm12400_vm9, %v6436_v11, %v6441_v19  ;;  %vm8556_vm11 = vmpackc.low %vm12401_vm14, %vm12401_vm14 }
 0x5ef   : > { %vm8563_vm15 = vmpackc.low %vm12404_vm10, %vm12404_vm10  ;;  %v5302_v13 = vpack.c.bf16 %v1281_v28, %v1280_v53  ;;  %v12415_v53 = vmov 0 }
 0x5f0   : > { %vm8571_vm9 = vmpackc.low %vm12407_vm12, %vm12407_vm12 }
 0x5f1   : > { %vm12410_vm14 = vmmov %vm12398_vm8  ;;  %5304 = vmatprep.subr.msk.bf16.mxu0 %vm8556_vm11, %v5302_v13  ;;  %vm12420_vm11 = vcmp.lt.s32.totalorder %v7574_v15, 7  ;;  %v12434_v13 = vmov 0 }
 0x5f2   : > { %v1278_v30 = vsel %vm12410_vm14, %v6441_v19, %v6451_v36  ;;  %vm12411_vm0 = vmmov %vm12398_vm8  ;;  %vm12414_vm8 = vcmp.ge.s32.totalorder %v7592_v18, 1 }
 0x5f3   : > { %v1279_v37 = vsel %vm12411_vm0, %v6442_v14, %v6452_v33  ;;  %vm12412_vm10 = vmmov %vm12411_vm0  ;;  %v1283_v14 = vsel %vm12411_vm0, %v6447_v38, %v6437_v49 }
 0x5f4   : > { %v1277_v44 = vsel %vm12412_vm10, %v6452_v33, %v6447_v38  ;;  %vm12413_vm5 = vmmov %vm12411_vm0  ;;  %v5465_v54 = vpack.c.bf16 %v1279_v37, %v1278_v30  ;;  %v6460_v33 = vpop.permute.xlu1 %6459  ;;  %vm12427_vm10 = vnez %v12185_v8 }
 0x5f5   : > { %v1276_v28 = vsel %vm12413_vm5, %v6451_v36, %v6446_v39  ;;  %vm8587_vm12 = vmand %vm12414_vm8, %vm12336_vm3  ;;  %v6455_v36 = vpop.permute.xlu0 %6454  ;;  %vm12419_vm5 = vcmp.ge.s32.totalorder %v7641_v34, 1  ;;  %v6462_v48 = vunpack.i.h.bf16 %v6460_v33  ;;  %v6461_v61 = vunpack.i.l.bf16 %v6460_v33 }
 0x5f6   : > { %v12416_v53 = vsel %vm8587_vm12, 4294967295, %v12415_v53  ;;  %vm12418_vm14 = vmmov %vm12411_vm0  ;;  %v5462_v24 = vpack.c.bf16 %v1277_v44, %v1276_v28  ;;  %v6457_v30 = vunpack.i.h.bf16 %v6455_v36  ;;  %v6456_v37 = vunpack.i.l.bf16 %v6455_v36 }
 0x5f7   : > { %12417 = vst [vmem:[#allocation60_spill] sm:$0xff] %v12416_v53  ;;  %v1282_v19 = vsel %vm12418_vm14, %v6446_v39, %v6436_v11  ;;  %vm5466_vm8 = vmpackc.low %vm12419_vm5, %vm12419_vm5  ;;  %vm12421_vm14 = vnez %v12183_v22  ;;  %vm12422_vm0 = vcmp.ge.s32.totalorder %v7634_v29, 1  ;;  %v12423_v44 = vmov 0 }
 0x5f8   : > { %v5305_v41 = vpack.c.bf16 %v1283_v14, %v1282_v19  ;;  %5464 = vmatprep.subr.msk.bf16.mxu1 %vm8571_vm9, %v5462_v24  ;;  %v1322_v49 = vsel %vm12420_vm11, %v6457_v30, %v6462_v48  ;;  %vm8613_vm5 = vmand %vm12422_vm0, %vm12421_vm14  ;;  %v6470_v11 = vpop.permute.xlu1 %6469 }
 0x5f9   : > { %5467 = vmatpush1.bf16.msk.msra.mxu1 %vm5466_vm8, %v5465_v54  ;;  %v12424_v44 = vsel %vm8613_vm5, 4294967295, %v12423_v44  ;;  %vm12426_vm9 = vmmov %vm12420_vm11  ;;  %v6465_v26 = vpop.permute.xlu0 %6464  ;;  %vm12428_vm11 = vcmp.ge.s32.totalorder %v7637_v31, 1  ;;  %v6472_v54 = vunpack.i.h.bf16 %v6470_v11  ;;  %v6471_v38 = vunpack.i.l.bf16 %v6470_v11 }
 0x5fa   : > { %5307 = vmatpush1.bf16.msk.msra.mxu0 %vm8563_vm15, %v5305_v41  ;;  %12425 = vst [vmem:[#allocation61_spill] sm:$0xff] %v12424_v44  ;;  %v1321_v24 = vsel %vm12426_vm9, %v6456_v37, %v6461_v61  ;;  %vm8623_vm2 = vmand %vm12428_vm11, %vm12427_vm10  ;;  %v12429_v41 = vmov 0  ;;  %v6467_v39 = vunpack.i.h.bf16 %v6465_v26  ;;  %v6466_v55 = vunpack.i.l.bf16 %v6465_v26 }
 0x5fb   : > { %v12430_v41 = vsel %vm8623_vm2, 4294967295, %v12429_v41  ;;  %vm12432_vm15 = vnez %v12199_v47  ;;  %vm12433_vm8 = vcmp.ge.s32.totalorder %v7641_v34, 1  ;;  %v5308_v6 = vpack.c.bf16 %v1322_v49, %v1321_v24  ;;  %vm12437_vm4 = vmmov %vm12426_vm9 }
 0x5fc   : > { %12431 = vst [vmem:[#allocation62_spill] sm:$0xff] %v12430_v41  ;;  %vm8631_vm0 = vmand %vm12433_vm8, %vm12432_vm15  ;;  %v1319_v28 = vsel %vm12437_vm4, %v6461_v61, %v6471_v38 }
 0x5fd   : > { %v12435_v13 = vsel %vm8631_vm0, 4294967295, %v12434_v13  ;;  %vm12438_vm10 = vmmov %vm12437_vm4  ;;  %v6475_v24 = vpop.permute.xlu0 %6474 }
 0x5fe   : > { %12436 = vst [vmem:[#allocation63_spill] sm:$0xff] %v12435_v13  ;;  %v1320_v19 = vsel %vm12438_vm10, %v6462_v48, %v6472_v54  ;;  %vm12439_vm14 = vmmov %vm12437_vm4  ;;  %v6480_v48 = vpop.permute.xlu1 %6479 }
 0x5ff   : > { %v1318_v14 = vsel %vm12439_vm14, %v6472_v54, %v6467_v39  ;;  %vm12440_vm8 = vmmov %vm12437_vm4  ;;  %v5471_v36 = vpack.c.bf16 %v1320_v19, %v1319_v28  ;;  %v6482_v54 = vunpack.i.h.bf16 %v6480_v48  ;;  %vm12444_vm14 = vcmp.lt.s32.totalorder %v7574_v15, 1 }
 0x600   : > { %v1317_v33 = vsel %vm12440_vm8, %v6471_v38, %v6466_v55  ;;  %vm5469_vm9 = vmpackc.low %vm8623_vm2, %vm8623_vm2  ;;  %v6481_v38 = vunpack.i.l.bf16 %v6480_v48 }
 0x601   : > { %vm12441_vm15 = vmmov %vm12437_vm4  ;;  %v5468_v11 = vpack.c.bf16 %v1318_v14, %v1317_v33  ;;  %v6485_v28 = vpop.permute.xlu0 %6484 }
 0x602   : > { %v1323_v49 = vsel %vm12441_vm15, %v6466_v55, %v6456_v37  ;;  %vm12442_vm11 = vmmov %vm12437_vm4  ;;  %v6477_v37 = vunpack.i.h.bf16 %v6475_v24  ;;  %v6476_v55 = vunpack.i.l.bf16 %v6475_v24  ;;  %v6487_v33 = vunpack.i.h.bf16 %v6485_v28 }
 0x603   : > { %v1324_v61 = vsel %vm12442_vm11, %v6467_v39, %v6457_v30  ;;  %vm12443_vm4 = vmpackc.low %vm8587_vm12, %vm8587_vm12  ;;  %5470 = vmatprep.subr.msk.bf16.mxu1 %vm5469_vm9, %v5468_v11 }
 0x604   : > { %5310 = vmatprep.subr.msk.bf16.mxu0 %vm12443_vm4, %v5308_v6  ;;  %vm5472_vm10 = vmpackc.low %vm8631_vm0, %vm8631_vm0  ;;  %v5311_v26 = vpack.c.bf16 %v1324_v61, %v1323_v49  ;;  %v1363_v30 = vsel %vm12444_vm14, %v6477_v37, %v6482_v54  ;;  %v6490_v6 = vpop.permute.xlu1 %6489  ;;  %v6486_v49 = vunpack.i.l.bf16 %v6485_v28 }
 0x605   : > { %vm12445_vm15 = vmpackc.low %vm8613_vm5, %vm8613_vm5  ;;  %5473 = vmatpush1.bf16.msk.msra.mxu1 %vm5472_vm10, %v5471_v36  ;;  %v6492_v19 = vunpack.i.h.bf16 %v6490_v6  ;;  %v6491_v14 = vunpack.i.l.bf16 %v6490_v6 }
 0x606   : > { %5313 = vmatpush1.bf16.msk.msra.mxu0 %vm12445_vm15, %v5311_v26  ;;  %vm12446_vm11 = vmmov %vm12444_vm14 }
 0x607   : > { %v1362_v39 = vsel %vm12446_vm11, %v6476_v55, %v6481_v38  ;;  %vm5315_vm9 = vmpackc.low %vm12365_vm6, %vm12365_vm6 }
 0x608   : > { %v5314_v61 = vpack.c.bf16 %v1363_v30, %v1362_v39  ;;  %vm12447_vm10 = vmmov %vm12446_vm11  ;;  %v6500_v39 = vpop.permute.xlu1 %6499 }
 0x609   : > { %v1360_v36 = vsel %vm12447_vm10, %v6481_v38, %v6491_v14  ;;  %vm12448_vm14 = vmmov %vm12447_vm10 }
 0x60a   : > { %v1361_v48 = vsel %vm12448_vm14, %v6482_v54, %v6492_v19  ;;  %vm12449_vm15 = vmmov %vm12447_vm10  ;;  %5316 = vmatprep.subr.msk.bf16.mxu0 %vm5315_vm9, %v5314_v61  ;;  %v6495_v54 = vpop.permute.xlu0 %6494  ;;  %vm12455_vm14 = vnez %v12183_v22 }
 0x60b   : > { %v1359_v24 = vsel %vm12449_vm15, %v6492_v19, %v6487_v33  ;;  %vm12450_vm11 = vmmov %vm12447_vm10  ;;  %v5477_v26 = vpack.c.bf16 %v1361_v48, %v1360_v36  ;;  %v6502_v19 = vunpack.i.h.bf16 %v6500_v39  ;;  %v6497_v13 = vunpack.i.h.bf16 %v6495_v54 }
 0x60c   : > { %v1358_v11 = vsel %vm12450_vm11, %v6491_v14, %v6486_v49  ;;  %vm5475_vm8 = vmpackc.low %vm12309_vm7, %vm12309_vm7  ;;  %v6501_v14 = vunpack.i.l.bf16 %v6500_v39  ;;  %v6496_v41 = vunpack.i.l.bf16 %v6495_v54  ;;  %v12458_v36 = vpack.c.bf16 %v7452_v1, %v7456_v3 }
 0x60d   : > { %vm12451_vm0 = vmmov %vm12447_vm10  ;;  %v5474_v6 = vpack.c.bf16 %v1359_v24, %v1358_v11  ;;  %vm12459_vm11 = vcmp.lt.s32.totalorder %v7592_v18, 7  ;;  %v12460_v48 = vmov 0  ;;  %v12469_v39 = vpack.c.bf16 %v7442_v62, %v7446_v52 }
 0x60e   : > { %v1364_v30 = vsel %vm12451_vm0, %v6486_v49, %v6476_v55  ;;  %vm12452_vm4 = vmmov %vm12451_vm0  ;;  %v6510_v49 = vpop.permute.xlu1 %6509  ;;  %v6505_v61 = vpop.permute.xlu0 %6504  ;;  %vm12465_vm0 = vcmp.lt.s32.totalorder %v7574_v15, 127  ;;  %v12472_v62 = vpack.c.bf16 %v7450_v0, %v7454_v2  ;;  %v12478_v0 = vmov 0 }
 0x60f   : > { %v1365_v38 = vsel %vm12452_vm4, %v6487_v33, %v6477_v37  ;;  %vm5478_vm10 = vmpackc.low %vm12313_vm1, %vm12313_vm1  ;;  %5476 = vmatprep.subr.msk.bf16.mxu1 %vm5475_vm8, %v5474_v6  ;;  %vm12453_vm4 = vcmp.lt.s32.totalorder %v7574_v15, 127  ;;  %v12457_v33 = vpack.c.bf16 %v7444_v63, %v7448_v51  ;;  %v6512_v24 = vunpack.i.h.bf16 %v6510_v49 }
 0x610   : > { %v5317_v28 = vpack.c.bf16 %v1365_v38, %v1364_v30  ;;  %v1402_v37 = vsel %vm12453_vm4, %v6497_v13, %v6502_v19  ;;  %vm12454_vm9 = vmpackc.low %vm12305_vm13, %vm12305_vm13  ;;  %5479 = vmatpush1.bf16.msk.msra.mxu1 %vm5478_vm10, %v5477_v26  ;;  %v6511_v11 = vunpack.i.l.bf16 %v6510_v49  ;;  %v6507_v26 = vunpack.i.h.bf16 %v6505_v61 }
 0x611   : > { %vm12456_vm8 = vmmov %vm12453_vm4  ;;  %5481 = vmatprep.subr.bf16.mxu1 %v12458_v36  ;;  %v6506_v30 = vunpack.i.l.bf16 %v6505_v61  ;;  %vm12463_vm4 = vnez %v12185_v8  ;;  %v12482_v49 = vmov 0 }
 0x612   : > { %5319 = vmatpush1.bf16.msk.msra.mxu0 %vm12454_vm9, %v5317_v28  ;;  %v1401_v55 = vsel %vm12456_vm8, %v6496_v41, %v6501_v14  ;;  %vm8721_vm10 = vmand %vm12459_vm11, %vm12365_vm6  ;;  %vm12464_vm8 = vnez %v12199_v47  ;;  %v1399_v51 = vsel %vm12465_vm0, %v6501_v14, %v6511_v11  ;;  %v1404_v6 = vsel %vm12465_vm0, %v6507_v26, %v6497_v13  ;;  %v6520_v52 = vpop.permute.xlu1 %6519 }
 0x613   : > { %5321 = vmatprep.subr.bf16.mxu0 %v12457_v33  ;;  %v12461_v48 = vsel %vm8721_vm10, 4294967295, %v12460_v48  ;;  %v5324_v63 = vpack.c.bf16 %v1402_v37, %v1401_v55  ;;  %vm12466_vm11 = vmmov %vm12465_vm0  ;;  %v12474_v13 = vmov 0  ;;  %v6522_v14 = vunpack.i.h.bf16 %v6520_v52 }
 0x614   : > { %12462 = vst [vmem:[#allocation64_spill] sm:$0xff] %v12461_v48  ;;  %v1400_v1 = vsel %vm12466_vm11, %v6502_v19, %v6512_v24  ;;  %vm12467_vm2 = vmmov %vm12465_vm0  ;;  %5483 = vmatpush1.bf16.msra.mxu1 %v12472_v62  ;;  %v6521_v37 = vunpack.i.l.bf16 %v6520_v52  ;;  %v12499_v62 = vmov 0 }
 0x615   : > { %v1406_v3 = vsel %vm12467_vm2, %v6512_v24, %v6507_v26  ;;  %vm12468_vm5 = vmmov %vm12465_vm0  ;;  %v5487_v54 = vpack.c.bf16 %v1400_v1, %v1399_v51  ;;  %v12487_v26 = vshra.s32 %v7581_v16, 6 }
 0x616   : > { %v1403_v38 = vsel %vm12468_vm5, %v6506_v30, %v6496_v41  ;;  %5323 = vmatpush1.bf16.msra.mxu0 %v12469_v39  ;;  %vm12470_vm11 = vmmov %vm12465_vm0  ;;  %vm11784_vm5 = vcmp.lt.s32.totalorder %v7574_v15, 121  ;;  %v6515_v41 = vpop.permute.xlu0 %6514  ;;  %vm12473_vm0 = vcmp.lt.s32.totalorder %v7634_v29, 7  ;;  %v6530_v24 = vpop.permute.xlu1 %6529 }
 0x617   : > { %v1405_v28 = vsel %vm12470_vm11, %v6511_v11, %v6506_v30  ;;  %vm12471_vm2 = vmpackc.low %vm12336_vm3, %vm12336_vm3  ;;  %v5327_v19 = vpack.c.bf16 %v1404_v6, %v1403_v38  ;;  %v6517_v55 = vunpack.i.h.bf16 %v6515_v41  ;;  %vm12477_vm11 = vcmp.lt.s32.totalorder %v7637_v31, 7 }
 0x618   : > { %5326 = vmatprep.subr.msk.bf16.mxu0 %vm12471_vm2, %v5324_v63  ;;  %vm8762_vm15 = vmand %vm12473_vm0, %vm12305_vm13  ;;  %v6516_v2 = vunpack.i.l.bf16 %v6515_v41  ;;  %v5484_v33 = vpack.c.bf16 %v1406_v3, %v1405_v28  ;;  %vm12481_vm0 = vcmp.lt.s32.totalorder %v7641_v34, 7  ;;  %v12488_v30 = vmov 0 }
 0x619   : > { %v12475_v13 = vsel %vm8762_vm15, 4294967295, %v12474_v13  ;;  %vm8770_vm2 = vmand %vm12477_vm11, %vm12309_vm7  ;;  %v1443_v61 = vsel %vm11784_vm5, %v6517_v55, %v6522_v14  ;;  %v6532_v63 = vunpack.i.h.bf16 %v6530_v24  ;;  %v6531_v51 = vunpack.i.l.bf16 %v6530_v24 }
 0x61a   : > { %12476 = vst [vmem:[#allocation65_spill] sm:$0xff] %v12475_v13  ;;  %v12479_v0 = vsel %vm8770_vm2, 4294967295, %v12478_v0  ;;  %vm8778_vm9 = vmand %vm12481_vm0, %vm12313_vm1  ;;  %v1442_v36 = vsel %vm11784_vm5, %v6516_v2, %v6521_v37  ;;  %v6525_v11 = vpop.permute.xlu0 %6524  ;;  %vm12491_vm1 = vcmp.lt.s32.totalorder %v7592_v18, 7  ;;  %vm12494_vm13 = vcmp.lt.s32.totalorder %v7574_v15, 121 }
 0x61b   : > { %12480 = vst [vmem:[#allocation66_spill] sm:$0xff] %v12479_v0  ;;  %v12483_v49 = vsel %vm8778_vm9, 4294967295, %v12482_v49  ;;  %vm12485_vm11 = vmpackc.low %vm12455_vm14, %vm12455_vm14  ;;  %v6527_v1 = vunpack.i.h.bf16 %v6525_v11  ;;  %v6526_v3 = vunpack.i.l.bf16 %v6525_v11  ;;  %v5330_v38 = vpack.c.bf16 %v1443_v61, %v1442_v36 }
 0x61c   : > { %12484 = vst [vmem:[#allocation67_spill] sm:$0xff] %v12483_v49  ;;  %5329 = vmatpush1.bf16.msk.msra.mxu0 %vm12485_vm11, %v5327_v19  ;;  %vm12486_vm0 = vmpackc.low %vm12463_vm4, %vm12463_vm4  ;;  %vm8804_vm11 = vcmp.lt.s32.totalorder %v12487_v26, 7  ;;  %v1440_v39 = vsel %vm12494_vm13, %v6521_v37, %v6531_v51  ;;  %v12511_v11 = vmov 0  ;;  %v12513_v26 = vmov 0 }
 0x61d   : > { %5486 = vmatprep.subr.msk.bf16.mxu1 %vm12486_vm0, %v5484_v33  ;;  %v12489_v30 = vsel %vm8804_vm11, 4294967295, %v12488_v30  ;;  %vm12490_vm12 = vmpackc.low %vm12464_vm8, %vm12464_vm8 }
 0x61e   : > { %5489 = vmatpush1.bf16.msk.msra.mxu1 %vm12490_vm12, %v5487_v54  ;;  %vm8819_vm5 = vmpackc.low %vm12491_vm1, %vm12491_vm1  ;;  %v6535_v37 = vpop.permute.xlu0 %6534 }
 0x61f   : > { %vm12495_vm12 = vmmov %vm12494_vm13  ;;  %v6537_v24 = vunpack.i.h.bf16 %v6535_v37 }
 0x620   : > { %v1441_v54 = vsel %vm12495_vm12, %v6522_v14, %v6532_v63  ;;  %vm12496_vm7 = vmmov %vm12495_vm12  ;;  %v6540_v14 = vpop.permute.xlu1 %6539 }
 0x621   : > { %v1447_v6 = vsel %vm12496_vm7, %v6532_v63, %v6527_v1  ;;  %vm12497_vm8 = vmmov %vm12496_vm7  ;;  %v5493_v52 = vpack.c.bf16 %v1441_v54, %v1440_v39  ;;  %v6542_v61 = vunpack.i.h.bf16 %v6540_v14  ;;  %v6541_v36 = vunpack.i.l.bf16 %v6540_v14 }
 0x622   : > { %v1444_v28 = vsel %vm12497_vm8, %v6526_v3, %v6516_v2  ;;  %vm12498_vm0 = vmmov %vm12491_vm1  ;;  %v6536_v63 = vunpack.i.l.bf16 %v6535_v37  ;;  %v12521_v39 = vmov 0  ;;  %v6545_v37 = vpop.permute.xlu0 %6544 }
 0x623   : > { %vm8835_vm1 = vmand %vm12498_vm0, %vm12336_vm3  ;;  %vm12504_vm0 = vcmp.lt.s32.totalorder %v7634_v29, 7  ;;  %v6547_v48 = vunpack.i.h.bf16 %v6545_v37  ;;  %v6546_v44 = vunpack.i.l.bf16 %v6545_v37 }
 0x624   : > { %v12500_v62 = vsel %vm8835_vm1, 4294967295, %v12499_v62  ;;  %vm12501_vm13 = vmmov %vm12496_vm7  ;;  %v6550_v14 = vpop.permute.xlu1 %6549  ;;  %vm12553_vm1 = vcmp.ge.s32.totalorder %v7641_v34, 1 }
 0x625   : > { %v1445_v41 = vsel %vm12501_vm13, %v6527_v1, %v6517_v55  ;;  %vm12502_vm12 = vmmov %vm12496_vm7  ;;  %vm12507_vm13 = vcmp.ge.s32.totalorder %v7592_v18, 1  ;;  %v12508_v55 = vmov 0  ;;  %v12516_v1 = vmov 0 }
 0x626   : > { %v1446_v19 = vsel %vm12502_vm12, %v6531_v51, %v6526_v3  ;;  %vm12503_vm7 = vmpackc.low %vm8721_vm10, %vm8721_vm10  ;;  %v5333_v33 = vpack.c.bf16 %v1445_v41, %v1444_v28  ;;  %v12518_v3 = vmov 0  ;;  %v12528_v28 = vshra.s32 %v7574_v15, 6  ;;  %v6555_v53 = vpop.permute.xlu0 %6554 }
 0x627   : > { %5332 = vmatprep.subr.msk.bf16.mxu0 %vm12503_vm7, %v5330_v38  ;;  %vm8852_vm3 = vmpackc.low %vm12504_vm0, %vm12504_vm0  ;;  %vm12510_vm7 = vcmp.lt.s32.totalorder %v7637_v31, 7  ;;  %v5490_v51 = vpack.c.bf16 %v1447_v6, %v1446_v19  ;;  %v12520_v38 = vshra.s32 %v7596_v20, 6  ;;  %v845_v6 = vld [vmem:[%s11636_s3] sm:$0xff]  ;;  %v12526_v20 = vmov 0 }
 0x628   : > { %vm8860_vm12 = vmand %vm8804_vm11, %vm12507_vm13  ;;  %vm12515_vm13 = vcmp.lt.s32.totalorder %v7641_v34, 7  ;;  %v12529_v41 = vmov 0  ;;  %v6552_v0 = vunpack.i.h.bf16 %v6550_v14  ;;  %v6551_v13 = vunpack.i.l.bf16 %v6550_v14 }
 0x629   : > { %v12509_v55 = vsel %vm8860_vm12, 4294967295, %v12508_v55  ;;  %vm8867_vm8 = vmpackc.low %vm12510_vm7, %vm12510_vm7 }
 0x62a   : > { %v12512_v11 = vsel %vm8867_vm8, 4294967295, %v12511_v11  ;;  %vm8875_vm10 = vmand %vm12504_vm0, %vm12455_vm14  ;;  %vm8896_vm0 = vcmp.lt.s32.totalorder %v12520_v38, 7  ;;  %vm12524_vm14 = vcmp.lt.s32.totalorder %v7574_v15, 120  ;;  %v12538_v38 = vshra.s32 %v7599_v21, 6 }
 0x62b   : > { %v12514_v26 = vsel %vm8875_vm10, 4294967295, %v12513_v26  ;;  %vm8882_vm11 = vmpackc.low %vm12515_vm13, %vm12515_vm13  ;;  %v12522_v39 = vsel %vm8896_vm0, 4294967295, %v12521_v39  ;;  %v1484_v54 = vsel %vm12524_vm14, %v6537_v24, %v6542_v61  ;;  %vm8920_vm14 = vcmp.lt.s32.totalorder %v12528_v28, 7 }
 0x62c   : > { %v12517_v1 = vsel %vm8882_vm11, 4294967295, %v12516_v1  ;;  %vm8890_vm8 = vmand %vm12510_vm7, %vm12463_vm4  ;;  %12523 = vst [vmem:[#allocation68_spill] sm:$0xff] %v12522_v39  ;;  %v12530_v41 = vsel %vm8920_vm14, 4294967295, %v12529_v41  ;;  %vm12535_vm4 = vcmp.lt.s32.totalorder %v7641_v34, 7  ;;  %vm8941_vm11 = vcmp.lt.s32.totalorder %v12538_v38, 7 }
 0x62d   : > { %v12519_v3 = vsel %vm8890_vm8, 4294967295, %v12518_v3  ;;  %vm12525_vm13 = vmpackc.low %vm8762_vm15, %vm8762_vm15  ;;  %12531 = vst [vmem:[#allocation69_spill] sm:$0xff] %v12530_v41  ;;  %v12539_v28 = vmov 0  ;;  %v12544_v21 = vmov 0 }
 0x62e   : > { %5335 = vmatpush1.bf16.msk.msra.mxu0 %vm12525_vm13, %v5333_v33  ;;  %vm8914_vm7 = vmand %vm8860_vm12, %vm12365_vm6  ;;  %vm12532_vm13 = vcmp.lt.s32.totalorder %v7574_v15, 120  ;;  %vm12534_vm6 = vnez %v12199_v47  ;;  %v12536_v33 = vmov 0  ;;  %v12540_v28 = vsel %vm8941_vm11, 4294967295, %v12539_v28 }
 0x62f   : > { %v12527_v20 = vsel %vm8914_vm7, 4294967295, %v12526_v20  ;;  %v1483_v19 = vsel %vm12532_vm13, %v6536_v63, %v6541_v36  ;;  %vm12533_vm15 = vmpackc.low %vm8770_vm2, %vm8770_vm2  ;;  %12541 = vst [vmem:[#allocation70_spill] sm:$0xff] %v12540_v28  ;;  %vm12543_vm2 = vcmp.ge.s32.totalorder %v7637_v31, 1 }
 0x630   : > { %5492 = vmatprep.subr.msk.bf16.mxu1 %vm12533_vm15, %v5490_v51  ;;  %vm8935_vm12 = vmand %vm12535_vm4, %vm12534_vm6  ;;  %v848_v51 = vld [vmem:[%s11636_s3 + $0x18] sm:$0xff]  ;;  %v5336_v38 = vpack.c.bf16 %v1484_v54, %v1483_v19  ;;  %vm12549_vm4 = vcmp.lt.s32.totalorder %v7574_v15, 120  ;;  %v12554_v19 = vmov 0 }
 0x631   : > { %v12537_v33 = vsel %vm8935_vm12, 4294967295, %v12536_v33  ;;  %vm12542_vm13 = vmpackc.low %vm8778_vm9, %vm8778_vm9  ;;  %1759 = vmatmul.mubr.f32.vlgmr.msra.gmra.mrb[6].mxu0 %v845_v6  ;;  %v1481_v14 = vsel %vm12549_vm4, %v6541_v36, %v6551_v13 }
 0x632   : > { %5495 = vmatpush1.bf16.msk.msra.mxu1 %vm12542_vm13, %v5493_v52  ;;  %vm8960_vm6 = vmand %vm8896_vm0, %vm12543_vm2  ;;  %vm12546_vm13 = vcmp.ge.s32.totalorder %v7634_v29, 1  ;;  %v12547_v52 = vmov 0  ;;  %5338 = vmatprep.subr.msk.bf16.mxu0 %vm8819_vm5, %v5336_v38  ;;  %v6556_v38 = vunpack.i.l.bf16 %v6555_v53 }
 0x633   : > { %v12545_v21 = vsel %vm8960_vm6, 4294967295, %v12544_v21  ;;  %vm8968_vm15 = vmand %vm8920_vm14, %vm12546_vm13  ;;  %vm12556_vm14 = vcmask 392192  }
 0x634   : > { %v12548_v52 = vsel %vm8968_vm15, 4294967295, %v12547_v52  ;;  %vm12550_vm9 = vmmov %vm12549_vm4  ;;  %4591 = vmatprep.mubr.msk.f32.mxu0 %vm12556_vm14, %v848_v51  ;;  %vm12562_vm14 = vnez %v12146_v43 }
 0x635   : > { %v1482_v37 = vsel %vm12550_vm9, %v6542_v61, %v6552_v0  ;;  %vm12551_vm2 = vmmov %vm12549_vm4  ;;  %1901 = vmatmul.mubr.f32.vlgmr.msra.gmra.mrb[6].mxu1 %v845_v6  ;;  %v12563_v6 = vmov 0 }
 0x636   : > { %v1488_v49 = vsel %vm12551_vm2, %v6552_v0, %v6547_v48  ;;  %vm12552_vm0 = vmmov %vm12551_vm2  ;;  %v5499_v36 = vpack.c.bf16 %v1482_v37, %v1481_v14  ;;  %vm12559_vm2 = vnez %v12154_v50  ;;  %v12567_v37 = vmov 0 }
 0x637   : > { %v1485_v54 = vsel %vm12552_vm0, %v6546_v44, %v6536_v63  ;;  %vm8984_vm13 = vmand %vm8941_vm11, %vm12553_vm1  ;;  %v6560_v63 = vpop.permute.xlu1 %6559  ;;  %vm12566_vm11 = vnez %v12159_v56 }
 0x638   : > { %v12555_v19 = vsel %vm8984_vm13, 4294967295, %v12554_v19  ;;  %vm12557_vm4 = vmmov %vm12552_vm0  ;;  %v6561_v16 = vunpack.i.l.bf16 %v6560_v63 }
 0x639   : > { %v1486_v61 = vsel %vm12557_vm4, %v6547_v48, %v6537_v24  ;;  %vm12558_vm9 = vmmov %vm12552_vm0  ;;  %v6557_v24 = vunpack.i.h.bf16 %v6555_v53  ;;  %vm12565_vm0 = vcmask 392192  }
 0x63a   : > { %v1487_v0 = vsel %vm12558_vm9, %v6551_v13, %v6546_v44  ;;  %vm9006_vm4 = vmand %vm8960_vm6, %vm12559_vm2  ;;  %v12560_v44 = vmov 0  ;;  %v5339_v48 = vpack.c.bf16 %v1486_v61, %v1485_v54  ;;  %v6562_v13 = vunpack.i.h.bf16 %v6560_v63  ;;  %4696 = vmatprep.mubr.msk.f32.mxu1 %vm12565_vm0, %v848_v51  ;;  %v6565_v51 = vpop.permute.xlu0 %6564 }
 0x63b   : > { %v12561_v44 = vsel %vm9006_vm4, 4294967295, %v12560_v44  ;;  %vm9020_vm1 = vmand %vm8968_vm15, %vm12562_vm14  ;;  %v5496_v14 = vpack.c.bf16 %v1488_v49, %v1487_v0  ;;  %vm12569_vm9 = vcmp.lt.s32.totalorder %v7574_v15, 119  ;;  %vm12571_vm2 = vnez %v12512_v11  ;;  %v6570_v49 = vpop.permute.xlu1 %6569 }
 0x63c   : > { %v12564_v6 = vsel %vm9020_vm1, 4294967295, %v12563_v6  ;;  %vm9029_vm5 = vmand %vm8984_vm13, %vm12566_vm11  ;;  %v1525_v54 = vsel %vm12569_vm9, %v6557_v24, %v6562_v13  ;;  %5341 = vmatpush1.bf16.msk.msra.mxu0 %vm8852_vm3, %v5339_v48  ;;  %v6572_v2 = vunpack.i.h.bf16 %v6570_v49  ;;  %v6571_v61 = vunpack.i.l.bf16 %v6570_v49 }
 0x63d   : > { %v12568_v37 = vsel %vm9029_vm5, 4294967295, %v12567_v37  ;;  %vm12570_vm14 = vmmov %vm12569_vm9  ;;  %5498 = vmatprep.subr.msk.bf16.mxu1 %vm12571_vm2, %v5496_v14  ;;  %vm12572_vm9 = vnez %v12517_v1  ;;  %v6567_v0 = vunpack.i.h.bf16 %v6565_v51  ;;  %v6566_v63 = vunpack.i.l.bf16 %v6565_v51 }
 0x63e   : > { %v1524_v53 = vsel %vm12570_vm14, %v6556_v38, %v6561_v16  ;;  %5501 = vmatpush1.bf16.msk.msra.mxu1 %vm12572_vm9, %v5499_v36  ;;  %vm12573_vm3 = vnez %v12509_v55  ;;  %vm12574_vm0 = vnez %v12181_v58  ;;  %v12575_v1 = vmov 0  ;;  %vm12577_vm1 = vmmov %vm12570_vm14 }
 0x63f   : > { %v5342_v11 = vpack.c.bf16 %v1525_v54, %v1524_v53  ;;  %vm9062_vm9 = vmand %vm12573_vm3, %vm12574_vm0  ;;  %v1522_v36 = vsel %vm12577_vm1, %v6561_v16, %v6571_v61  ;;  %vm12581_vm11 = vnez %v12185_v8  ;;  %v12582_v53 = vmov 0 }
 0x640   : > { %v12576_v1 = vsel %vm9062_vm9, 4294967295, %v12575_v1  ;;  %vm12578_vm14 = vmmov %vm12577_vm1  ;;  %v1527_v16 = vsel %vm12577_vm1, %v6567_v0, %v6557_v24 }
 0x641   : > { %v1523_v48 = vsel %vm12578_vm14, %v6562_v13, %v6572_v2  ;;  %vm12579_vm2 = vmmov %vm12577_vm1 }
 0x642   : > { %v1529_v14 = vsel %vm12579_vm2, %v6572_v2, %v6567_v0  ;;  %vm12580_vm5 = vmmov %vm12577_vm1  ;;  %v5505_v49 = vpack.c.bf16 %v1523_v48, %v1522_v36  ;;  %vm12585_vm2 = vnez %v12500_v62  ;;  %v12592_v2 = vmov 0  ;;  %v12698_v36 = vld [vmem:[#allocation35_spill] sm:$0xff] }
 0x643   : > { %v1526_v54 = vsel %vm12580_vm5, %v6566_v63, %v6556_v38  ;;  %vm9078_vm0 = vmand %vm8960_vm6, %vm12581_vm11  ;;  %vm12587_vm6 = vnez %v12183_v22  ;;  %v12588_v38 = vmov 0  ;;  %vm12591_vm11 = vnez %v12489_v30 }
 0x644   : > { %v12583_v53 = vsel %vm9078_vm0, 4294967295, %v12582_v53  ;;  %vm12584_vm14 = vmmov %vm12577_vm1  ;;  %v5345_v24 = vpack.c.bf16 %v1527_v16, %v1526_v54  ;;  %v12604_v0 = vmov 0  ;;  %v12704_v48 = vmov 0  ;;  %v12710_v54 = vld [vmem:[#allocation43_spill] sm:$0xff]  ;;  %v12719_v16 = vld [vmem:[#allocation46_spill] sm:$0xff] }
 0x645   : > { %v1528_v13 = vsel %vm12584_vm14, %v6571_v61, %v6566_v63  ;;  %vm12586_vm5 = vmpackc.low %vm12585_vm2, %vm12585_vm2  ;;  %v12595_v61 = vmov 0  ;;  %v12691_v63 = vld [vmem:[#allocation25_spill] sm:$0xff] }
 0x646   : > { %5344 = vmatprep.subr.msk.bf16.mxu0 %vm12586_vm5, %v5342_v11  ;;  %vm9098_vm3 = vmand %vm8968_vm15, %vm12587_vm6  ;;  %v5502_v51 = vpack.c.bf16 %v1529_v14, %v1528_v13  ;;  %vm12590_vm5 = vnez %v12132_v27  ;;  %vm12594_vm6 = vnez %v12199_v47  ;;  %v12695_v11 = vld [vmem:[#allocation26_spill] sm:$0xff]  ;;  %v12708_v14 = vld [vmem:[#allocation33_spill] sm:$0xff] }
 0x647   : > { %v12589_v38 = vsel %vm9098_vm3, 4294967295, %v12588_v38  ;;  %vm9112_vm2 = vmand %vm12591_vm11, %vm12590_vm5  ;;  %vm12603_vm5 = vnez %v12522_v39  ;;  %vm12611_vm3 = vnez %v12159_v56  ;;  %v12720_v13 = vld [vmem:[#allocation42_spill] sm:$0xff]  ;;  %v12790_v39 = vmov 0 }
 0x648   : > { %v12593_v2 = vsel %vm9112_vm2, 4294967295, %v12592_v2  ;;  %vm9120_vm15 = vmand %vm8984_vm13, %vm12594_vm6  ;;  %vm12620_vm2 = vnez %v12568_v37 }
 0x649   : > { %v12596_v61 = vsel %vm9120_vm15, 4294967295, %v12595_v61  ;;  %vm12598_vm14 = vmpackc.low %vm8875_vm10, %vm8875_vm10  ;;  %vm12618_vm15 = vnez %v12509_v55 }
 0x64a   : > { %12597 = vst [vmem:[#allocation71_spill] sm:$0xff] %v12596_v61  ;;  %5347 = vmatpush1.bf16.msk.msra.mxu0 %vm12598_vm14, %v5345_v24  ;;  %vm12599_vm1 = vmpackc.low %vm8890_vm8, %vm8890_vm8  ;;  %vm12602_vm8 = vnez %v12154_v50  ;;  %v12721_v24 = vld [vmem:[#allocation48_spill] sm:$0xff] }
 0x64b   : > { %5504 = vmatprep.subr.msk.bf16.mxu1 %vm12599_vm1, %v5502_v51  ;;  %vm12600_vm6 = vmpackc.low %vm8914_vm7, %vm8914_vm7  ;;  %vm12608_vm7 = vnez %v12530_v41  ;;  %v12723_v51 = vmov 0 }
 0x64c   : > { %5350 = vmatprep.subr.msk.bf16.mxu0 %vm12600_vm6, %v7784_v46  ;;  %vm12601_vm14 = vmpackc.low %vm8935_vm12, %vm8935_vm12  ;;  %vm12607_vm12 = vnez %v12146_v43  ;;  %v12609_v46 = vmov 0 }
 0x64d   : > { %5507 = vmatpush1.bf16.msk.msra.mxu1 %vm12601_vm14, %v5505_v49  ;;  %vm9155_vm10 = vmand %vm12603_vm5, %vm12602_vm8  ;;  %vm12616_vm14 = vnez %v12564_v6  ;;  %v12716_v49 = vld [vmem:[#allocation41_spill] sm:$0xff] }
 0x64e   : > { %v12605_v0 = vsel %vm9155_vm10, 4294967295, %v12604_v0  ;;  %vm12606_vm6 = vmpackc.low %vm9006_vm4, %vm9006_vm4 }
 0x64f   : > { %5510 = vmatprep.subr.msk.bf16.mxu1 %vm12606_vm6, %v7795_v7  ;;  %vm9175_vm8 = vmand %vm12608_vm7, %vm12607_vm12  ;;  %vm12612_vm6 = vnez %v12540_v28  ;;  %v12613_v7 = vmov 0  ;;  %vm12622_vm12 = vnez %v12545_v21 }
 0x650   : > { %v12610_v46 = vsel %vm9175_vm8, 4294967295, %v12609_v46  ;;  %vm9183_vm4 = vmand %vm12612_vm6, %vm12611_vm3 }
 0x651   : > { %v12614_v7 = vsel %vm9183_vm4, 4294967295, %v12613_v7  ;;  %vm12617_vm1 = vmpackc.low %vm12616_vm14, %vm12616_vm14 }
 0x652   : > { %12615 = vst [vmem:[#allocation72_spill] sm:$0xff] %v12614_v7  ;;  %5353 = vmatpush1.bf16.msk.msra.mxu0 %vm12617_vm1, %v7733_v60  ;;  %vm12619_vm3 = vmpackc.low %vm12618_vm15, %vm12618_vm15  ;;  %v12628_v60 = vmov 0 }
 0x653   : > { %5356 = vmatprep.subr.msk.bf16.mxu0 %vm12619_vm3, %v7871_v35  ;;  %vm12621_vm6 = vmpackc.low %vm12620_vm2, %vm12620_vm2  ;;  %vm12631_vm2 = vnez %v12548_v52  ;;  %v12634_v35 = vmov 0 }
 0x654   : > { %5513 = vmatpush1.bf16.msk.msra.mxu1 %vm12621_vm6, %v7790_v4  ;;  %vm12623_vm14 = vmpackc.low %vm12622_vm12, %vm12622_vm12  ;;  %vm12624_vm6 = vnez %v12181_v58  ;;  %v12625_v4 = vmov 0  ;;  %vm12627_vm12 = vcmp.lt.s32.totalorder %v7592_v18, 7 }
 0x655   : > { %5516 = vmatprep.subr.msk.bf16.mxu1 %vm12623_vm14, %v7888_v5  ;;  %vm9227_vm1 = vmand %vm12591_vm11, %vm12624_vm6  ;;  %vm12633_vm6 = vnez %v12185_v8  ;;  %v12650_v5 = vmov 0 }
 0x656   : > { %v12626_v4 = vsel %vm9227_vm1, 4294967295, %v12625_v4  ;;  %vm9238_vm3 = vmand %vm12591_vm11, %vm12627_vm12  ;;  %vm12661_vm1 = vnez %v12596_v61 }
 0x657   : > { %v12629_v60 = vsel %vm9238_vm3, 4294967295, %v12628_v60  ;;  %vm12632_vm15 = vmpackc.low %vm12631_vm2, %vm12631_vm2  ;;  %vm12644_vm2 = vnez %v12540_v28 }
 0x658   : > { %12630 = vst [vmem:[#allocation73_spill] sm:$0xff] %v12629_v60  ;;  %5359 = vmatpush1.bf16.msk.msra.mxu0 %vm12632_vm15, %v7829_v23  ;;  %vm9252_vm14 = vmand %vm12603_vm5, %vm12633_vm6  ;;  %vm12639_vm6 = vnez %v12183_v22  ;;  %v12640_v23 = vmov 0 }
 0x659   : > { %v12635_v35 = vsel %vm9252_vm14, 4294967295, %v12634_v35  ;;  %vm12637_vm12 = vmpackc.low %vm9062_vm9, %vm9062_vm9  ;;  %vm12645_vm9 = vnez %v12132_v27 }
 0x65a   : > { %12636 = vst [vmem:[#allocation74_spill] sm:$0xff] %v12635_v35  ;;  %5362 = vmatprep.subr.msk.bf16.mxu0 %vm12637_vm12, %v7959_v25  ;;  %vm12638_vm15 = vmpackc.low %vm8984_vm13, %vm8984_vm13  ;;  %vm12653_vm13 = vnez %v12589_v38  ;;  %v12656_v25 = vmov 0 }
 0x65b   : > { %5519 = vmatpush1.bf16.msk.msra.mxu1 %vm12638_vm15, %v7883_v32  ;;  %vm9275_vm4 = vmand %vm12608_vm7, %vm12639_vm6  ;;  %v12646_v32 = vmov 0 }
 0x65c   : > { %v12641_v23 = vsel %vm9275_vm4, 4294967295, %v12640_v23  ;;  %vm12643_vm12 = vmpackc.low %vm9078_vm0, %vm9078_vm0  ;;  %vm12649_vm0 = vnez %v12199_v47 }
 0x65d   : > { %12642 = vst [vmem:[#allocation75_spill] sm:$0xff] %v12641_v23  ;;  %5522 = vmatprep.subr.msk.bf16.mxu1 %vm12643_vm12, %v7976_v40  ;;  %vm9295_vm6 = vmand %vm9238_vm3, %vm12645_vm9  ;;  %vm12655_vm3 = vcmp.lt.s32.totalorder %v7637_v31, 7  ;;  %v12674_v40 = vmov 0  ;;  %v12811_v23 = vmov 0 }
 0x65e   : > { %v12647_v32 = vsel %vm9295_vm6, 4294967295, %v12646_v32  ;;  %vm9306_vm15 = vmand %vm12644_vm2, %vm12649_vm0  ;;  %vm12659_vm0 = vnez %v12593_v2 }
 0x65f   : > { %12648 = vst [vmem:[#allocation76_spill] sm:$0xff] %v12647_v32  ;;  %v12651_v5 = vsel %vm9306_vm15, 4294967295, %v12650_v5  ;;  %vm12654_vm9 = vmpackc.low %vm12653_vm13, %vm12653_vm13 }
 0x660   : > { %12652 = vst [vmem:[#allocation77_spill] sm:$0xff] %v12651_v5  ;;  %5365 = vmatpush1.bf16.msk.msra.mxu0 %vm12654_vm9, %v7942_v12  ;;  %vm9320_vm12 = vmand %vm12603_vm5, %vm12655_vm3  ;;  %v12665_v12 = vmov 0 }
 0x661   : > { %v12657_v25 = vsel %vm9320_vm12, 4294967295, %v12656_v25  ;;  %vm12660_vm14 = vmpackc.low %vm12659_vm0, %vm12659_vm0  ;;  %vm12668_vm0 = vnez %v12154_v50 }
 0x662   : > { %12658 = vst [vmem:[#allocation78_spill] sm:$0xff] %v12657_v25  ;;  %5368 = vmatprep.subr.msk.bf16.mxu0 %vm12660_vm14, %v8034_v10  ;;  %vm12662_vm9 = vmpackc.low %vm12661_vm1, %vm12661_vm1  ;;  %v12678_v10 = vld [vmem:[#allocation22_spill] sm:$0xff] }
 0x663   : > { %5525 = vmatpush1.bf16.msk.msra.mxu1 %vm12662_vm9, %v7971_v59  ;;  %vm12663_vm13 = vmpackc.low %vm9155_vm10, %vm9155_vm10  ;;  %vm12664_vm9 = vcmp.lt.s32.totalorder %v7634_v29, 7  ;;  %v12669_v59 = vmov 0 }
 0x664   : > { %5528 = vmatprep.subr.msk.bf16.mxu1 %vm12663_vm13, %v8051_v9  ;;  %vm9355_vm3 = vmand %vm12608_vm7, %vm12664_vm9  ;;  %vm12673_vm9 = vcmp.lt.s32.totalorder %v7641_v34, 7  ;;  %v12685_v9 = vld [vmem:[#allocation27_spill] sm:$0xff] }
 0x665   : > { %v12666_v12 = vsel %vm9355_vm3, 4294967295, %v12665_v12  ;;  %vm9363_vm13 = vmand %vm9320_vm12, %vm12668_vm0  ;;  %vm12679_vm0 = vnez %v12614_v7 }
 0x666   : > { %12667 = vst [vmem:[#allocation79_spill] sm:$0xff] %v12666_v12  ;;  %v12670_v59 = vsel %vm9363_vm13, 4294967295, %v12669_v59  ;;  %vm12672_vm1 = vmpackc.low %vm9175_vm8, %vm9175_vm8  ;;  %vm12681_vm8 = vnez %v12146_v43 }
 0x667   : > { %12671 = vst [vmem:[#allocation80_spill] sm:$0xff] %v12670_v59  ;;  %5371 = vmatpush1.bf16.msk.msra.mxu0 %vm12672_vm1, %v8017_v57  ;;  %vm9377_vm14 = vmand %vm12644_vm2, %vm12673_vm9  ;;  %v12682_v57 = vmov 0 }
 0x668   : > { %v12675_v40 = vsel %vm9377_vm14, 4294967295, %v12674_v40  ;;  %vm12677_vm10 = vmpackc.low %vm12591_vm11, %vm12591_vm11 }
 0x669   : > { %12676 = vst [vmem:[#allocation81_spill] sm:$0xff] %v12675_v40  ;;  %5374 = vmatprep.subr.msk.bf16.mxu0 %vm12677_vm10, %v8108_v42  ;;  %vm12680_vm1 = vmpackc.low %vm12679_vm0, %vm12679_vm0  ;;  %v12688_v42 = vmov 0  ;;  %vm12693_vm0 = vnez %v12626_v4 }
 0x66a   : > { %5531 = vmatpush1.bf16.msk.msra.mxu1 %vm12680_vm1, %v12678_v10  ;;  %vm9397_vm9 = vmand %vm9355_vm3, %vm12681_vm8  ;;  %vm12687_vm1 = vnez %v12159_v56  ;;  %v12727_v10 = vmov 0 }
 0x66b   : > { %v12683_v57 = vsel %vm9397_vm9, 4294967295, %v12682_v57  ;;  %vm12686_vm10 = vmpackc.low %vm12603_vm5, %vm12603_vm5 }
 0x66c   : > { %12684 = vst [vmem:[#allocation22_spill] sm:$0xff] %v12683_v57  ;;  %5534 = vmatprep.subr.msk.bf16.mxu1 %vm12686_vm10, %v12685_v9  ;;  %vm9414_vm11 = vmand %vm9377_vm14, %vm12687_vm1  ;;  %vm12699_vm10 = vnez %v12635_v35  ;;  %v12730_v9 = vld [vmem:[#allocation44_spill] sm:$0xff] }
 0x66d   : > { %v12689_v42 = vsel %vm9414_vm11, 4294967295, %v12688_v42  ;;  %vm12692_vm8 = vmpackc.low %vm12608_vm7, %vm12608_vm7 }
 0x66e   : > { %12690 = vst [vmem:[#allocation27_spill] sm:$0xff] %v12689_v42  ;;  %5377 = vmatpush1.bf16.msk.msra.mxu0 %vm12692_vm8, %v12691_v63  ;;  %vm12694_vm5 = vmpackc.low %vm12693_vm0, %vm12693_vm0  ;;  %vm12697_vm8 = vnez %v12629_v60  ;;  %vm12703_vm0 = vnez %v12181_v58  ;;  %v12731_v63 = vld [vmem:[#allocation54_spill] sm:$0xff] }
 0x66f   : > { %5380 = vmatprep.subr.msk.bf16.mxu0 %vm12694_vm5, %v8204_v17  ;;  %vm12696_vm1 = vmpackc.low %vm12644_vm2, %vm12644_vm2  ;;  %v12701_v17 = vld [vmem:[#allocation32_spill] sm:$0xff]  ;;  %v12771_v60 = vld [vmem:[#allocation10_spill] sm:$0xff] }
 0x670   : > { %5537 = vmatpush1.bf16.msk.msra.mxu1 %vm12696_vm1, %v12695_v11  ;;  %vm5391_vm7 = vmpackc.low %vm12697_vm8, %vm12697_vm8  ;;  %v12732_v11 = vld [vmem:[#allocation47_spill] sm:$0xff] }
 0x671   : > { %vm12700_vm14 = vmpackc.low %vm12699_vm10, %vm12699_vm10 }
 0x672   : > { %5540 = vmatprep.subr.msk.bf16.mxu1 %vm12700_vm14, %v12698_v36  ;;  %vm5548_vm5 = vmpackc.low %vm9414_vm11, %vm9414_vm11  ;;  %v12733_v36 = vld [vmem:[#allocation56_spill] sm:$0xff] }
 0x673   : > { %vm5551_vm2 = vmpackc.low %vm9320_vm12, %vm9320_vm12 }
 0x674   : > { %vm12702_vm1 = vmpackc.low %vm9275_vm4, %vm9275_vm4 }
 0x675   : > { %5383 = vmatpush1.bf16.msk.msra.mxu0 %vm12702_vm1, %v12701_v17  ;;  %vm9464_vm14 = vmand %vm12697_vm8, %vm12703_vm0  ;;  %v12734_v17 = vld [vmem:[#allocation52_spill] sm:$0xff] }
 0x676   : > { %v12705_v48 = vsel %vm9464_vm14, 4294967295, %v12704_v48  ;;  %vm12707_vm11 = vmpackc.low %vm9295_vm6, %vm9295_vm6 }
 0x677   : > { %12706 = vst [vmem:[#allocation25_spill] sm:$0xff] %v12705_v48  ;;  %5386 = vmatprep.subr.msk.bf16.mxu0 %vm12707_vm11, %v8307_v45  ;;  %vm12709_vm1 = vmpackc.low %vm9306_vm15, %vm9306_vm15  ;;  %vm12712_vm11 = vnez %v12185_v8  ;;  %v12713_v45 = vmov 0 }
 0x678   : > { %5543 = vmatpush1.bf16.msk.msra.mxu1 %vm12709_vm1, %v12708_v14  ;;  %vm5394_vm8 = vmpackc.low %vm9355_vm3, %vm9355_vm3  ;;  %v847_v14 = vld [vmem:[%s11636_s3 + $0x10] sm:$0xff] }
 0x679   : > { %vm12711_vm10 = vmpackc.low %vm9363_vm13, %vm9363_vm13 }
 0x67a   : > { %5546 = vmatprep.subr.msk.bf16.mxu1 %vm12711_vm10, %v12710_v54  ;;  %vm9493_vm6 = vmand %vm9320_vm12, %vm12712_vm11  ;;  %vm12718_vm10 = vnez %v12675_v40  ;;  %v12735_v54 = vld [vmem:[#allocation55_spill] sm:$0xff] }
 0x67b   : > { %v12714_v45 = vsel %vm9493_vm6, 4294967295, %v12713_v45  ;;  %vm5397_vm1 = vmpackc.low %vm9464_vm14, %vm9464_vm14  ;;  %vm12722_vm14 = vnez %v12183_v22 }
 0x67c   : > { %12715 = vst [vmem:[#allocation26_spill] sm:$0xff] %v12714_v45  ;;  %vm12717_vm15 = vmpackc.low %vm9397_vm9, %vm9397_vm9  ;;  %5549 = vmatpush1.bf16.msk.msra.mxu1 %vm5548_vm5, %v12720_v13 }
 0x67d   : > { %5389 = vmatpush1.bf16.msk.msra.mxu0 %vm12717_vm15, %v12716_v49  ;;  %vm5554_vm13 = vmpackc.low %vm12718_vm10, %vm12718_vm10  ;;  %5552 = vmatprep.subr.msk.bf16.mxu1 %vm5551_vm2, %v12721_v24  ;;  %vm12726_vm15 = vnez %v12199_v47  ;;  %v12736_v49 = vmov 0.0  }
 0x67e   : > { %5392 = vmatprep.subr.msk.bf16.mxu0 %vm5391_vm7, %v12719_v16  ;;  %vm5557_vm12 = vmpackc.low %vm9493_vm6, %vm9493_vm6  ;;  %v9551_v16 = vld [vmem:[%s11638_s5] sm:$0xff]  ;;  %vm12759_vm6 = vcmp.lt.s32.totalorder %v7574_v15, 73 }
 0x67f   : > { %vm9519_vm9 = vmand %vm9355_vm3, %vm12722_vm14  ;;  %12737 = vst [vmem:[#allocation33_spill] sm:$0xff] %v9551_v16  ;;  %1987 = vrot.lane.b32.xlu1 %v9551_v16, %s7250_s25  ;;  %s7255_s25 = smov 124  }
 0x680   : > { %v12724_v51 = vsel %vm9519_vm9, 4294967295, %v12723_v51  ;;  %vm9527_vm7 = vmand %vm12718_vm10, %vm12726_vm15  ;;  %5555 = vmatpush1.bf16.msk.msra.mxu1 %vm5554_vm13, %v12732_v11  ;;  %vm11891_vm13 = vcmask 64512  }
 0x681   : > { %12725 = vst [vmem:[#allocation35_spill] sm:$0xff] %v12724_v51  ;;  %v12728_v10 = vsel %vm9527_vm7, 4294967295, %v12727_v10  ;;  %5395 = vmatpush1.bf16.msk.msra.mxu0 %vm5394_vm8, %v12730_v9  ;;  %vm5400_vm2 = vmpackc.low %vm9519_vm9, %vm9519_vm9  ;;  %5558 = vmatprep.subr.msk.bf16.mxu1 %vm5557_vm12, %v12733_v36  ;;  %vm11892_vm12 = vmmov 0   ;;  %vm11896_vm8 = vcmask 719872  }
 0x682   : > { %12729 = vst [vmem:[#allocation32_spill] sm:$0xff] %v12728_v10  ;;  %5398 = vmatprep.subr.msk.bf16.mxu0 %vm5397_vm1, %v12731_v63  ;;  %vm5560_vm5 = vmpackc.low %vm9527_vm7, %vm9527_vm7  ;;  %vm12740_vm1 = vcmp.lt.s32.totalorder %v7574_v15, 72 }
 0x684   : > { %5561 = vmatpush1.bf16.msk.msra.mxu1 %vm5560_vm5, %v12735_v54 }
 0x685   : > { %5401 = vmatpush1.bf16.msk.msra.mxu0 %vm5400_vm2, %v12734_v17  ;;  %5177 = vmatprep.subr.mxu1 %v12736_v49  ;;  %vm12741_vm2 = vcmp.lt.s32.totalorder %v7574_v15, 73 }
 0x686   : > { %5172 = vmatprep.subr.mxu0 %v12736_v49 }
 0x687   : > { %1972 = vmatmul.mubr.f32.vlgmr.msra.gmra.mrb[6].mxu1 %v847_v14 }
 0x688   : > { %1830 = vmatmul.mubr.f32.vlgmr.msra.gmra.mrb[6].mxu0 %v847_v14  ;;  %5179 = vmatprep.mubr.msk.f32.mxu1 %vm11892_vm12, %v12736_v49 }
 0x689   : > { %5174 = vmatprep.mubr.msk.f32.mxu0 %vm11892_vm12, %v12736_v49 }
 0x6f1   : > { %v9558_v14 = vpop.permute.xlu1 %1987 }
 0x6f2   : > { %12738 = vst [vmem:[#allocation43_spill] sm:$0xff] %v9558_v14 }
 0x75a   : > { %v1973_v63 = vpop.f32.mrb[6].mxu1 }
 0x75b   : > { %v1831_v13 = vpop.f32.mrb[6].mxu0  ;;  %v1975_v36 = vpop.f32.mrb[7].mxu1  ;;  %v1980_v54 = vmax.f32 %v1973_v63, 0.0 }
 0x75c   : > { %v1978_v24 = vmax.f32 %v1831_v13, 0.0  ;;  %v1833_v9 = vpop.f32.mrb[7].mxu0  ;;  %v1981_v45 = vmax.f32 %v1975_v36, 0.0 }
 0x75d   : > { %v1979_v11 = vmax.f32 %v1833_v9, 0.0 }
 0x75f   : > { %v1982_v17 = vadd.f32 %v1979_v11, %v1978_v24 }
 0x761   : > { %v1983_v10 = vadd.f32 %v1982_v17, %v1980_v54 }
 0x763   : > { %v1984_v51 = vadd.f32 %v1983_v10, %v1981_v45 }
 0x765   : > { %1985 = vadd.xlane.f32.xlu0 %v1984_v51 }
 0x77b   : > { %2152 = vrot.lane.b32.xlu0 %v9551_v16, %s7252_s26  ;;  %s5136_s26 = sshll.u32 %s13647_s22, 5 }
 0x77c   : > { %s266_s30 = scalar_lea.vmem %s11634_s1, %s5136_s26 }
 0x7f2   : > { %v1986_v13 = vpop.xlane.xlu0 %1985 }
 0x7f3   : > { %5173 = vmatpush3.msra.mxu0 %v1986_v13 }
 0x7f4   : > { %5175 = vmatmul.mubr.msk.f32.vlgmr.msra.gmra.mrb[8].mxu0 %vm11891_vm13, %v9558_v14 }
 0x8c7   : > { %v2058_v9 = vpop.f32.mrb[8].mxu0 }
 0x8c8   : > { %2064 = vperm.xlu1 %6230, %v2058_v9   ;;  %v5176_v63 = vpop.f32.mrb[9].mxu0 }
 0x947   : > { %v2065_v10 = vpop.permute.xlu1 %2064 }
 0x948   : > { %v2067_v51 = vsub.f32 %v1978_v24, %v2065_v10  ;;  %v2068_v36 = vsub.f32 %v1979_v11, %v2065_v10  ;;  %v2069_v17 = vsub.f32 %v1980_v54, %v2065_v10  ;;  %v2070_v48 = vsub.f32 %v1981_v45, %v2065_v10 }
 0x949   : > { %v7253_v24 = vmov 3   ;;  %v12739_v45 = vmov 0  }
 0x94a   : > { %v2071_v40 = vmul.f32 %v2067_v51, %v2067_v51  ;;  %v2072_v42 = vmul.f32 %v2068_v36, %v2068_v36  ;;  %v2073_v25 = vmul.f32 %v2069_v17, %v2069_v17  ;;  %v2074_v59 = vmul.f32 %v2070_v48, %v2070_v48  ;;  %6573 = vset.pattern.permute.xlu0 %v7253_v24 }
 0x94b   : > { %2166 = vperm.xlu0 %6573, %v9551_v16  }
 0x94c   : > { %v2075_v49 = vadd.f32 %v2072_v42, %v2071_v40 }
 0x94e   : > { %v2076_v12 = vadd.f32 %v2075_v49, %v2073_v25  ;;  %v2153_v25 = vpop.permute.xlu0 %2152 }
 0x94f   : > { %6729 = vset.pattern.permute.xlu0 %v12739_v45 }
 0x950   : > { %v2077_v57 = vadd.f32 %v2076_v12, %v2074_v59 }
 0x952   : > { %2078 = vadd.xlane.f32.xlu1 %v2077_v57 }
 0x9ca   : > { %v2167_v49 = vpop.permute.xlu0 %2166 }
 0x9df   : > { %v2079_v13 = vpop.xlane.xlu1 %2078 }
 0x9e0   : > { %5178 = vmatpush3.msra.mxu1 %v2079_v13 }
 0x9e1   : > { %5180 = vmatmul.mubr.msk.f32.vlgmr.msra.gmra.mrb[8].mxu1 %vm11891_vm13, %v9558_v14  ;;  %v12749_v14 = vld [vmem:[#allocation11_spill] sm:$0xff] }
 0xab4   : > { %v2146_v11 = vpop.f32.mrb[8].mxu1 }
 0xab5   : > { %v2150_v40 = vadd.f32 1e-05, %v2146_v11  ;;  %v5181_v42 = vpop.f32.mrb[9].mxu1 }
 0xab7   : > { %7213 = vrsqrt.f32 %v2150_v40 }
 0xac1   : > { %v7214_v12 = vpop.eup %7213 }
 0xac2   : > { %v2155_v59 = vmul.f32 %v7214_v12, %v2153_v25 }
 0xac4   : > { %2158 = vperm.xlu1 %6230, %v2155_v59  }
 0xb43   : > { %v2159_v57 = vpop.permute.xlu1 %2158 }
 0xb44   : > { %v2161_v54 = vmul.f32 %v2159_v57, %v2067_v51  ;;  %v2162_v9 = vmul.f32 %v2159_v57, %v2068_v36  ;;  %v2163_v63 = vmul.f32 %v2159_v57, %v2069_v17  ;;  %v2164_v10 = vmul.f32 %v2159_v57, %v2070_v48  ;;  %v2174_v17 = vld [vmem:[%s11637_s4 + $0x8] sm:$0xff] }
 0xb45   : > { %4751 = vmatprep.mubr.msk.f32.mxu0 %vm11896_vm8, %v2174_v17  ;;  %4804 = vmatprep.mubr.msk.f32.mxu1 %vm11896_vm8, %v2174_v17 }
 0xb46   : > { %v9567_v13 = vadd.f32 %v2167_v49, %v2161_v54  ;;  %v9569_v24 = vadd.f32 %v2167_v49, %v2162_v9  ;;  %v9571_v16 = vadd.f32 %v2167_v49, %v2163_v63  ;;  %v9573_v45 = vadd.f32 %v2167_v49, %v2164_v10  ;;  %v12742_v9 = vld [vmem:[#allocation4_spill] sm:$0xff]  ;;  %v12744_v63 = vld [vmem:[#allocation3_spill] sm:$0xff] }
 0xb47   : > { %vm12743_vm5 = vnez %v12742_v9  ;;  %vm12745_vm13 = vnez %v12744_v63  ;;  %v12746_v10 = vmov 0  ;;  %v12751_v9 = vld [vmem:[#allocation8_spill] sm:$0xff]  ;;  %v12753_v63 = vmov 0 }
 0xb48   : > { %v6579_v11 = vpack.i.bf16 %v9569_v24, %v9567_v13  ;;  %v6589_v51 = vpack.i.bf16 %v9571_v16, %v9573_v45  ;;  %v6699_v48 = vpack.i.bf16 %v9571_v16, %v9569_v24  ;;  %v6709_v36 = vpack.i.bf16 %v9573_v45, %v9567_v13  ;;  %vm9639_vm12 = vmpackc.low %vm12745_vm13, %vm12743_vm5 }
 0xb49   : > { %v12747_v10 = vsel %vm9639_vm12, 4294967295, %v12746_v10  ;;  %vm12756_vm5 = vcmp.lt.s32.totalorder %v7574_v15, 72 }
 0xb4a   : > { %6580 = vrot.lane.b32.xlu1 %v6579_v11, %s7234_s8  ;;  %6575 = vrot.lane.b32.xlu0 %v6579_v11, %s7233_s7  ;;  %12748 = vst [vmem:[#allocation41_spill] sm:$0xff] %v12747_v10  ;;  %vm12757_vm8 = vmmov %vm12756_vm5  ;;  %v12760_v10 = vld [vmem:[#allocation12_spill] sm:$0xff] }
 0xb4b   : > { %vm12758_vm7 = vmmov %vm12756_vm5 }
 0xb4e   : > { %6590 = vrot.lane.b32.xlu1 %v6589_v51, %s7234_s8  ;;  %6585 = vrot.lane.b32.xlu0 %v6589_v51, %s7233_s7 }
 0xb52   : > { %6600 = vrot.lane.b32.xlu1 %v6579_v11, %s7236_s10  ;;  %6595 = vrot.lane.b32.xlu0 %v6579_v11, %s7235_s9 }
 0xb56   : > { %6610 = vrot.lane.b32.xlu1 %v6589_v51, %s7236_s10  ;;  %6605 = vrot.lane.b32.xlu0 %v6589_v51, %s7235_s9 }
 0xb5a   : > { %6620 = vrot.lane.b32.xlu1 %v6579_v11, %s7238_s12  ;;  %6615 = vrot.lane.b32.xlu0 %v6579_v11, %s7237_s11 }
 0xb5e   : > { %6630 = vrot.lane.b32.xlu1 %v6589_v51, %s7238_s12  ;;  %6625 = vrot.lane.b32.xlu0 %v6589_v51, %s7237_s11 }
 0xb62   : > { %6640 = vrot.lane.b32.xlu1 %v6579_v11, %s7240_s14  ;;  %6635 = vrot.lane.b32.xlu0 %v6579_v11, %s7239_s13 }
 0xb66   : > { %6650 = vrot.lane.b32.xlu1 %v6589_v51, %s7240_s14  ;;  %6645 = vrot.lane.b32.xlu0 %v6589_v51, %s7239_s13 }
 0xb6a   : > { %2305 = vrot.lane.b32.xlu1 %v9569_v24, %s7241_s15  ;;  %2303 = vrot.lane.b32.xlu0 %v9567_v13, %s7241_s15 }
 0xb6e   : > { %2309 = vrot.lane.b32.xlu1 %v9573_v45, %s7241_s15  ;;  %6655 = vrot.lane.b32.xlu0 %v6579_v11, %s7242_s16 }
 0xb72   : > { %2307 = vrot.lane.b32.xlu1 %v9571_v16, %s7241_s15  ;;  %6660 = vrot.lane.b32.xlu0 %v6589_v51, %s7242_s16 }
 0xb76   : > { %6670 = vrot.lane.b32.xlu1 %v6579_v11, %s7244_s19  ;;  %6665 = vrot.lane.b32.xlu0 %v6579_v11, %s7243_s18 }
 0xb7a   : > { %6680 = vrot.lane.b32.xlu1 %v6589_v51, %s7244_s19  ;;  %6675 = vrot.lane.b32.xlu0 %v6589_v51, %s7243_s18 }
 0xb7e   : > { %6690 = vrot.lane.b32.xlu1 %v6589_v51, %s7245_s20  ;;  %6685 = vrot.lane.b32.xlu0 %v6579_v11, %s7245_s20 }
 0xb82   : > { %6700 = vrot.lane.b32.xlu1 %v6699_v48, %s7247_s24  ;;  %6695 = vrot.lane.b32.xlu0 %v6699_v48, %s7246_s23 }
 0xb86   : > { %6710 = vrot.lane.b32.xlu1 %v6709_v36, %s7247_s24  ;;  %6705 = vrot.lane.b32.xlu0 %v6709_v36, %s7246_s23 }
 0xb8a   : > { %6720 = vrot.lane.b32.xlu1 %v6699_v48, %s7249_s28  ;;  %6715 = vrot.lane.b32.xlu0 %v6699_v48, %s7248_s27 }
 0xb8e   : > { %2431 = vrot.lane.b32.xlu1 %v9567_v13, %s7249_s28  ;;  %6725 = vrot.lane.b32.xlu0 %v6709_v36, %s7248_s27 }
 0xb92   : > { %2437 = vrot.lane.b32.xlu0 %v9573_v45, %s7249_s28 }
 0xbbc   : > { %v6581_v40 = vpop.permute.xlu1 %6580  ;;  %v6576_v42 = vpop.permute.xlu0 %6575 }
 0xbbd   : > { %v6583_v25 = vunpack.i.h.bf16 %v6581_v40  ;;  %v6582_v12 = vunpack.i.l.bf16 %v6581_v40  ;;  %v6578_v59 = vunpack.i.h.bf16 %v6576_v42  ;;  %v6577_v57 = vunpack.i.l.bf16 %v6576_v42 }
 0xbbf   : > { %v2201_v49 = vsel %vm12740_vm1, %v6582_v12, %v6583_v25  ;;  %v2185_v54 = vsel %vm12741_vm2, %v6577_v57, %v6578_v59  ;;  %vm12750_vm1 = vnez %v12749_v14  ;;  %vm12752_vm2 = vnez %v12751_v9  ;;  %v12762_v14 = vld [vmem:[#allocation9_spill] sm:$0xff] }
 0xbc0   : > { %v6591_v11 = vpop.permute.xlu1 %6590  ;;  %v6586_v51 = vpop.permute.xlu0 %6585  ;;  %v9643_v48 = vpack.c.bf16 %v2201_v49, %v2185_v54  ;;  %vm9652_vm13 = vmpackc.low %vm12752_vm2, %vm12750_vm1  ;;  %vm12763_vm9 = vnez %v12762_v14  ;;  %v12764_v9 = vmov 0 }
 0xbc1   : > { %v6593_v36 = vunpack.i.h.bf16 %v6591_v11  ;;  %v6592_v17 = vunpack.i.l.bf16 %v6591_v11  ;;  %v6588_v40 = vunpack.i.h.bf16 %v6586_v51  ;;  %v6587_v42 = vunpack.i.l.bf16 %v6586_v51  ;;  %vm12767_vm2 = vmmov %vm12759_vm6 }
 0xbc2   : > { %5564 = vmatprep.subr.msk.bf16.mxu0 %vm9639_vm12, %v9643_v48  ;;  %v12754_v63 = vsel %vm9652_vm13, 4294967295, %v12753_v63  ;;  %vm12761_vm12 = vnez %v12760_v10  ;;  %v12773_v10 = vmov 0 }
 0xbc3   : > { %12755 = vst [vmem:[#allocation46_spill] sm:$0xff] %v12754_v63  ;;  %v2199_v49 = vsel %vm12756_vm5, %v6593_v36, %v6592_v17  ;;  %v2200_v54 = vsel %vm12757_vm8, %v6583_v25, %v6593_v36  ;;  %v2202_v11 = vsel %vm12758_vm7, %v6592_v17, %v6582_v12  ;;  %v2183_v51 = vsel %vm12759_vm6, %v6588_v40, %v6587_v42  ;;  %vm9668_vm1 = vmpackc.low %vm12763_vm9, %vm12761_vm12  ;;  %v12769_v17 = vld [vmem:[#allocation13_spill] sm:$0xff] }
 0xbc4   : > { %v12765_v9 = vsel %vm9668_vm1, 4294967295, %v12764_v9  ;;  %v2184_v5 = vsel %vm12767_vm2, %v6578_v59, %v6588_v40  ;;  %vm12768_vm5 = vmmov %vm12767_vm2  ;;  %v6601_v36 = vpop.permute.xlu1 %6600  ;;  %v6596_v28 = vpop.permute.xlu0 %6595  ;;  %v9676_v12 = vpack.c.bf16 %v2199_v49, %v2183_v51  ;;  %vm12770_vm6 = vnez %v12769_v17 }
 0xbc5   : > { %12766 = vst [vmem:[#allocation42_spill] sm:$0xff] %v12765_v9  ;;  %v2186_v25 = vsel %vm12768_vm5, %v6587_v42, %v6577_v57  ;;  %vm12772_vm7 = vnez %v12771_v60  ;;  %v9688_v32 = vpack.c.bf16 %v2200_v54, %v2184_v5  ;;  %v6603_v59 = vunpack.i.h.bf16 %v6601_v36  ;;  %v12788_v9 = vld [vmem:[#allocation19_spill] sm:$0xff] }
 0xbc6   : > { %vm9682_vm8 = vmpackc.low %vm12772_vm7, %vm12770_vm6  ;;  %v9686_v14 = vpack.c.bf16 %v2202_v11, %v2186_v25  ;;  %v6602_v40 = vunpack.i.l.bf16 %v6601_v36  ;;  %v6598_v35 = vunpack.i.h.bf16 %v6596_v28  ;;  %v6597_v57 = vunpack.i.l.bf16 %v6596_v28  ;;  %5642 = vmatprep.subr.msk.bf16.mxu1 %vm9668_vm1, %v9676_v12  ;;  %v12778_v25 = vld [vmem:[#allocation14_spill] sm:$0xff]  ;;  %v12780_v36 = vld [vmem:[#allocation15_spill] sm:$0xff] }
 0xbc7   : > { %v12774_v10 = vsel %vm9682_vm8, 4294967295, %v12773_v10  ;;  %vm12776_vm9 = vcmp.lt.s32.totalorder %v7574_v15, 65  ;;  %5645 = vmatpush1.bf16.msk.msra.mxu1 %vm9682_vm8, %v9688_v32  ;;  %vm12777_vm12 = vcmp.lt.s32.totalorder %v7574_v15, 71  ;;  %vm12779_vm2 = vnez %v12778_v25 }
 0xbc8   : > { %12775 = vst [vmem:[#allocation48_spill] sm:$0xff] %v12774_v10  ;;  %v2233_v42 = vsel %vm12776_vm9, %v6602_v40, %v6603_v59  ;;  %5567 = vmatpush1.bf16.msk.msra.mxu0 %vm9652_vm13, %v9686_v14  ;;  %v2217_v60 = vsel %vm12777_vm12, %v6597_v57, %v6598_v35  ;;  %v6611_v5 = vpop.permute.xlu1 %6610  ;;  %v6606_v28 = vpop.permute.xlu0 %6605  ;;  %vm12781_vm5 = vnez %v12780_v36  ;;  %v12782_v17 = vmov 0  ;;  %v12786_v10 = vld [vmem:[#allocation16_spill] sm:$0xff] }
 0xbc9   : > { %v6613_v49 = vunpack.i.h.bf16 %v6611_v5  ;;  %v6612_v54 = vunpack.i.l.bf16 %v6611_v5  ;;  %v6608_v11 = vunpack.i.h.bf16 %v6606_v28  ;;  %v6607_v51 = vunpack.i.l.bf16 %v6606_v28  ;;  %vm9707_vm6 = vmpackc.low %vm12781_vm5, %vm12779_vm2 }
 0xbca   : > { %v12783_v17 = vsel %vm9707_vm6, 4294967295, %v12782_v17  ;;  %v9711_v63 = vpack.c.bf16 %v2233_v42, %v2217_v60  ;;  %vm12787_vm7 = vnez %v12786_v10  ;;  %vm12789_vm9 = vnez %v12788_v9  ;;  %v12797_v60 = vld [vmem:[#allocation17_spill] sm:$0xff]  ;;  %v12799_v10 = vld [vmem:[#allocation20_spill] sm:$0xff] }
 0xbcb   : > { %12784 = vst [vmem:[#allocation44_spill] sm:$0xff] %v12783_v17  ;;  %vm9717_vm12 = vmpackc.low %vm12789_vm9, %vm12787_vm7  ;;  %vm12793_vm8 = vcmp.lt.s32.totalorder %v7574_v15, 65  ;;  %vm12796_vm5 = vcmp.lt.s32.totalorder %v7574_v15, 71  ;;  %vm12798_vm1 = vnez %v12797_v60  ;;  %vm12800_vm10 = vnez %v12799_v10  ;;  %v12807_v60 = vld [vmem:[#allocation18_spill] sm:$0xff]  ;;  %v12809_v10 = vld [vmem:[#allocation21_spill] sm:$0xff] }
 0xbcc   : > { %12785 = vst [vmem:[#allocation54_spill] sm:$0xff] %v9711_v63  ;;  %v12791_v39 = vsel %vm9717_vm12, 4294967295, %v12790_v39  ;;  %v2231_v5 = vsel %vm12793_vm8, %v6613_v49, %v6612_v54  ;;  %vm12794_vm13 = vmmov %vm12793_vm8  ;;  %v2215_v42 = vsel %vm12796_vm5, %v6608_v11, %v6607_v51  ;;  %v12801_v9 = vmov 0  ;;  %5570 = vmatprep.subr.msk.bf16.mxu0 %vm9707_vm6, %v9711_v63 }
 0xbcd   : > { %12792 = vst [vmem:[#allocation47_spill] sm:$0xff] %v12791_v39  ;;  %v2232_v28 = vsel %vm12794_vm13, %v6603_v59, %v6613_v49  ;;  %vm12795_vm2 = vmmov %vm12793_vm8  ;;  %v6616_v49 = vpop.permute.xlu0 %6615  ;;  %vm12808_vm13 = vnez %v12807_v60  ;;  %v12817_v60 = vld [vmem:[#allocation2_spill] sm:$0xff]  ;;  %v12821_v39 = vmov 0  ;;  %v12850_v63 = vmov 0 }
 0xbce   : > { %v2234_v25 = vsel %vm12795_vm2, %v6612_v54, %v6602_v40  ;;  %vm9733_vm7 = vmpackc.low %vm12800_vm10, %vm12798_vm1  ;;  %v6621_v40 = vpop.permute.xlu1 %6620  ;;  %v9744_v54 = vpack.c.bf16 %v2231_v5, %v2215_v42  ;;  %vm12810_vm10 = vnez %v12809_v10  ;;  %v6618_v17 = vunpack.i.h.bf16 %v6616_v49  ;;  %v12819_v10 = vld [vmem:[#allocation23_spill] sm:$0xff] }
 0xbcf   : > { %v12802_v9 = vsel %vm9733_vm7, 4294967295, %v12801_v9  ;;  %vm12804_vm9 = vmmov %vm12796_vm5  ;;  %v6617_v41 = vunpack.i.l.bf16 %v6616_v49  ;;  %vm12815_vm2 = vcmp.lt.s32.totalorder %v7574_v15, 63 }
 0xbd0   : > { %12803 = vst [vmem:[#allocation56_spill] sm:$0xff] %v12802_v9  ;;  %v2216_v36 = vsel %vm12804_vm9, %v6598_v35, %v6608_v11  ;;  %vm12805_vm8 = vmmov %vm12796_vm5  ;;  %5648 = vmatprep.subr.msk.bf16.mxu1 %vm9733_vm7, %v9744_v54  ;;  %vm12816_vm5 = vcmp.lt.s32.totalorder %v7574_v15, 64  ;;  %vm12818_vm9 = vnez %v12817_v60 }
 0xbd1   : > { %v2218_v59 = vsel %vm12805_vm8, %v6607_v51, %v6597_v57  ;;  %12806 = vst [vmem:[#allocation52_spill] sm:$0xff] %v9744_v54  ;;  %vm9750_vm1 = vmpackc.low %vm12810_vm10, %vm12808_vm13  ;;  %v9756_v11 = vpack.c.bf16 %v2232_v28, %v2216_v36  ;;  %v6623_v57 = vunpack.i.h.bf16 %v6621_v40  ;;  %v6622_v51 = vunpack.i.l.bf16 %v6621_v40  ;;  %v6626_v42 = vpop.permute.xlu0 %6625  ;;  %v12827_v54 = vld [vmem:[#allocation24_spill] sm:$0xff] }
 0xbd2   : > { %v12812_v23 = vsel %vm9750_vm1, 4294967295, %v12811_v23  ;;  %v9754_v35 = vpack.c.bf16 %v2234_v25, %v2218_v59  ;;  %v2249_v28 = vsel %vm12816_vm5, %v6617_v41, %v6618_v17  ;;  %v6631_v25 = vpop.permute.xlu1 %6630  ;;  %v6628_v40 = vunpack.i.h.bf16 %v6626_v42 }
 0xbd3   : > { %12813 = vst [vmem:[#allocation55_spill] sm:$0xff] %v12812_v23  ;;  %v2265_v5 = vsel %vm12815_vm2, %v6622_v51, %v6623_v57  ;;  %5651 = vmatpush1.bf16.msk.msra.mxu1 %vm9750_vm1, %v9756_v11  ;;  %v6633_v36 = vunpack.i.h.bf16 %v6631_v25  ;;  %v6632_v59 = vunpack.i.l.bf16 %v6631_v25  ;;  %v6627_v49 = vunpack.i.l.bf16 %v6626_v42  ;;  %v12825_v23 = vld [vmem:[#allocation5_spill] sm:$0xff] }
 0xbd4   : > { %12814 = vst [vmem:[#allocation4_spill] sm:$0xff] %v9754_v35  ;;  %5573 = vmatpush1.bf16.msk.msra.mxu0 %vm9717_vm12, %v9754_v35  ;;  %vm12820_vm8 = vnez %v12819_v10  ;;  %v9779_v9 = vpack.c.bf16 %v2265_v5, %v2249_v28  ;;  %vm12826_vm10 = vnez %v12825_v23  ;;  %vm12828_vm2 = vnez %v12827_v54  ;;  %v12836_v28 = vld [vmem:[#allocation6_spill] sm:$0xff]  ;;  %v12838_v23 = vld [vmem:[#allocation29_spill] sm:$0xff] }
 0xbd5   : > { %vm9775_vm13 = vmpackc.low %vm12820_vm8, %vm12818_vm9  ;;  %v12829_v35 = vmov 0  ;;  %vm12832_vm1 = vcmp.lt.s32.totalorder %v7574_v15, 63  ;;  %vm12835_vm8 = vcmp.lt.s32.totalorder %v7574_v15, 64  ;;  %vm12837_vm7 = vnez %v12836_v28  ;;  %v12846_v28 = vld [vmem:[#allocation7_spill] sm:$0xff] }
 0xbd6   : > { %v12822_v39 = vsel %vm9775_vm13, 4294967295, %v12821_v39  ;;  %12824 = vst [vmem:[#allocation11_spill] sm:$0xff] %v9779_v9  ;;  %vm9785_vm5 = vmpackc.low %vm12828_vm2, %vm12826_vm10  ;;  %v2263_v25 = vsel %vm12832_vm1, %v6633_v36, %v6632_v59  ;;  %v2247_v5 = vsel %vm12835_vm8, %v6628_v40, %v6627_v49  ;;  %vm12839_vm6 = vnez %v12838_v23  ;;  %5576 = vmatprep.subr.msk.bf16.mxu0 %vm9775_vm13, %v9779_v9  ;;  %v12848_v23 = vld [vmem:[#allocation30_spill] sm:$0xff] }
 0xbd7   : > { %12823 = vst [vmem:[#allocation3_spill] sm:$0xff] %v12822_v39  ;;  %v12830_v35 = vsel %vm9785_vm5, 4294967295, %v12829_v35  ;;  %vm12833_vm12 = vmmov %vm12832_vm1  ;;  %v12840_v54 = vmov 0 }
 0xbd8   : > { %12831 = vst [vmem:[#allocation8_spill] sm:$0xff] %v12830_v35  ;;  %v2264_v42 = vsel %vm12833_vm12, %v6623_v57, %v6633_v36  ;;  %vm12834_vm9 = vmmov %vm12832_vm1  ;;  %v6636_v36 = vpop.permute.xlu0 %6635  ;;  %vm12847_vm12 = vnez %v12846_v28  ;;  %v12857_v28 = vld [vmem:[#allocation31_spill] sm:$0xff]  ;;  %v12861_v35 = vmov 0 }
 0xbd9   : > { %v2266_v60 = vsel %vm12834_vm9, %v6632_v59, %v6622_v51  ;;  %vm9801_vm10 = vmpackc.low %vm12839_vm6, %vm12837_vm7  ;;  %v6641_v51 = vpop.permute.xlu1 %6640  ;;  %v9812_v59 = vpack.c.bf16 %v2263_v25, %v2247_v5  ;;  %vm12849_vm6 = vnez %v12848_v23  ;;  %v6638_v39 = vunpack.i.h.bf16 %v6636_v36  ;;  %v12859_v23 = vld [vmem:[#allocation28_spill] sm:$0xff] }
 0xbda   : > { %v12841_v54 = vsel %vm9801_vm10, 4294967295, %v12840_v54  ;;  %vm12843_vm2 = vmmov %vm12835_vm8  ;;  %v6637_v9 = vunpack.i.l.bf16 %v6636_v36  ;;  %vm12855_vm9 = vcmp.lt.s32.totalorder %v7574_v15, 56  ;;  %vm12856_vm8 = vcmp.lt.s32.totalorder %v7574_v15, 57 }
 0xbdb   : > { %12842 = vst [vmem:[#allocation12_spill] sm:$0xff] %v12841_v54  ;;  %v2248_v10 = vsel %vm12843_vm2, %v6618_v17, %v6628_v40  ;;  %vm12844_vm1 = vmmov %vm12843_vm2  ;;  %5654 = vmatprep.subr.msk.bf16.mxu1 %vm9801_vm10, %v9812_v59  ;;  %vm12858_vm2 = vnez %v12857_v28 }
 0xbdc   : > { %v2250_v57 = vsel %vm12844_vm1, %v6627_v49, %v6617_v41  ;;  %12845 = vst [vmem:[#allocation9_spill] sm:$0xff] %v9812_v59  ;;  %vm9818_vm7 = vmpackc.low %vm12849_vm6, %vm12847_vm12  ;;  %v9824_v40 = vpack.c.bf16 %v2264_v42, %v2248_v10  ;;  %v6643_v41 = vunpack.i.h.bf16 %v6641_v51  ;;  %v6642_v49 = vunpack.i.l.bf16 %v6641_v51  ;;  %v6646_v5 = vpop.permute.xlu0 %6645  ;;  %v12867_v59 = vld [vmem:[#allocation34_spill] sm:$0xff] }
 0xbdd   : > { %v12851_v63 = vsel %vm9818_vm7, 4294967295, %v12850_v63  ;;  %v9822_v17 = vpack.c.bf16 %v2266_v60, %v2250_v57  ;;  %v2281_v42 = vsel %vm12856_vm8, %v6637_v9, %v6638_v39  ;;  %v6651_v60 = vpop.permute.xlu1 %6650  ;;  %v6648_v51 = vunpack.i.h.bf16 %v6646_v5 }
 0xbde   : > { %12852 = vst [vmem:[#allocation13_spill] sm:$0xff] %v12851_v63  ;;  %12854 = vst [vmem:[#allocation14_spill] sm:$0xff] %v9824_v40  ;;  %v2297_v25 = vsel %vm12855_vm9, %v6642_v49, %v6643_v41  ;;  %5657 = vmatpush1.bf16.msk.msra.mxu1 %vm9818_vm7, %v9824_v40  ;;  %v6653_v10 = vunpack.i.h.bf16 %v6651_v60  ;;  %v6652_v57 = vunpack.i.l.bf16 %v6651_v60  ;;  %v6647_v36 = vunpack.i.l.bf16 %v6646_v5  ;;  %v12865_v63 = vld [vmem:[#allocation38_spill] sm:$0xff] }
 0xbdf   : > { %12853 = vst [vmem:[#allocation10_spill] sm:$0xff] %v9822_v17  ;;  %5579 = vmatpush1.bf16.msk.msra.mxu0 %vm9785_vm5, %v9822_v17  ;;  %vm12860_vm1 = vnez %v12859_v23  ;;  %v9847_v54 = vpack.c.bf16 %v2297_v25, %v2281_v42  ;;  %vm12866_vm6 = vnez %v12865_v63  ;;  %vm12868_vm9 = vnez %v12867_v59  ;;  %v12876_v42 = vld [vmem:[#allocation39_spill] sm:$0xff]  ;;  %v12878_v63 = vld [vmem:[#allocation36_spill] sm:$0xff] }
 0xbe0   : > { %vm9843_vm12 = vmpackc.low %vm12860_vm1, %vm12858_vm2  ;;  %v12869_v17 = vmov 0  ;;  %vm12872_vm7 = vcmp.lt.s32.totalorder %v7574_v15, 56  ;;  %vm12875_vm1 = vcmp.lt.s32.totalorder %v7574_v15, 57  ;;  %vm12877_vm10 = vnez %v12876_v42  ;;  %v12886_v42 = vld [vmem:[#allocation40_spill] sm:$0xff] }
 0xbe1   : > { %v12862_v35 = vsel %vm9843_vm12, 4294967295, %v12861_v35  ;;  %12864 = vst [vmem:[#allocation16_spill] sm:$0xff] %v9847_v54  ;;  %vm9853_vm8 = vmpackc.low %vm12868_vm9, %vm12866_vm6  ;;  %v2295_v60 = vsel %vm12872_vm7, %v6653_v10, %v6652_v57  ;;  %v2279_v25 = vsel %vm12875_vm1, %v6648_v51, %v6647_v36  ;;  %vm12879_vm13 = vnez %v12878_v63  ;;  %5582 = vmatprep.subr.msk.bf16.mxu0 %vm9843_vm12, %v9847_v54  ;;  %v12888_v63 = vld [vmem:[#allocation37_spill] sm:$0xff] }
 0xbe2   : > { %12863 = vst [vmem:[#allocation15_spill] sm:$0xff] %v12862_v35  ;;  %v12870_v17 = vsel %vm9853_vm8, 4294967295, %v12869_v17  ;;  %vm12873_vm5 = vmmov %vm12872_vm7  ;;  %v12880_v59 = vmov 0  ;;  %v12890_v40 = vmov 0 }
 0xbe3   : > { %12871 = vst [vmem:[#allocation19_spill] sm:$0xff] %v12870_v17  ;;  %v2296_v5 = vsel %vm12873_vm5, %v6643_v41, %v6653_v10  ;;  %vm12874_vm2 = vmmov %vm12873_vm5  ;;  %v2304_v10 = vpop.permute.xlu0 %2303  ;;  %vm12887_vm5 = vnez %v12886_v42  ;;  %v12902_v42 = vmov 0 }
 0xbe4   : > { %v2298_v28 = vsel %vm12874_vm2, %v6652_v57, %v6642_v49  ;;  %vm9869_vm6 = vmpackc.low %vm12879_vm13, %vm12877_vm10  ;;  %v2306_v49 = vpop.permute.xlu1 %2305  ;;  %v9880_v57 = vpack.c.bf16 %v2295_v60, %v2279_v25  ;;  %vm12889_vm13 = vnez %v12888_v63  ;;  %vm12895_vm2 = vcmp.lt.s32.totalorder %v7574_v15, 55 }
 0xbe5   : > { %v12881_v59 = vsel %vm9869_vm6, 4294967295, %v12880_v59  ;;  %vm12883_vm9 = vmmov %vm12875_vm1 }
 0xbe6   : > { %12882 = vst [vmem:[#allocation17_spill] sm:$0xff] %v12881_v59  ;;  %v2280_v23 = vsel %vm12883_vm9, %v6638_v39, %v6648_v51  ;;  %vm12884_vm7 = vmmov %vm12875_vm1  ;;  %5660 = vmatprep.subr.msk.bf16.mxu1 %vm9869_vm6, %v9880_v57  ;;  %vm12897_vm1 = vcmp.lt.s32.totalorder %v7574_v15, 9 }
 0xbe7   : > { %v2282_v41 = vsel %vm12884_vm7, %v6647_v36, %v6637_v9  ;;  %12885 = vst [vmem:[#allocation20_spill] sm:$0xff] %v9880_v57  ;;  %vm9886_vm10 = vmpackc.low %vm12889_vm13, %vm12887_vm5  ;;  %v9892_v51 = vpack.c.bf16 %v2296_v5, %v2280_v23  ;;  %v6656_v36 = vpop.permute.xlu0 %6655  ;;  %v9905_v5 = vsel %vm12895_vm2, %v2304_v10, %v2306_v49  ;;  %v12898_v23 = vld [vmem:[#allocation45_spill] sm:$0xff] }
 0xbe8   : > { %v12891_v40 = vsel %vm9886_vm10, 4294967295, %v12890_v40  ;;  %v9890_v39 = vpack.c.bf16 %v2298_v28, %v2282_v41  ;;  %v2310_v9 = vpop.permute.xlu1 %2309  ;;  %v6658_v60 = vunpack.i.h.bf16 %v6656_v36  ;;  %v6657_v25 = vunpack.i.l.bf16 %v6656_v36  ;;  %12896 = vst [vmem:[#allocation23_spill] sm:$0xff] %v9905_v5  ;;  %v12900_v41 = vld [vmem:[#allocation53_spill] sm:$0xff]  ;;  %vm12905_vm13 = vmmov %vm12895_vm2 }
 0xbe9   : > { %12892 = vst [vmem:[#allocation18_spill] sm:$0xff] %v12891_v40  ;;  %12894 = vst [vmem:[#allocation2_spill] sm:$0xff] %v9892_v51  ;;  %5663 = vmatpush1.bf16.msk.msra.mxu1 %vm9886_vm10, %v9892_v51  ;;  %vm12899_vm9 = vnez %v12898_v23  ;;  %vm12901_vm7 = vnez %v12900_v41  ;;  %v9920_v35 = vsel %vm12905_vm13, %v2310_v9, %v2304_v10  ;;  %v12908_v23 = vld [vmem:[#allocation49_spill] sm:$0xff]  ;;  %vm12917_vm13 = vcmp.lt.s32.totalorder %v7574_v15, 9 }
 0xbea   : > { %12893 = vst [vmem:[#allocation21_spill] sm:$0xff] %v9890_v39  ;;  %5585 = vmatpush1.bf16.msk.msra.mxu0 %vm9853_vm8, %v9890_v39  ;;  %v2329_v28 = vsel %vm12897_vm1, %v6657_v25, %v6658_v60  ;;  %vm9913_vm5 = vmpackc.low %vm12901_vm7, %vm12899_vm9  ;;  %vm12909_vm1 = vnez %v12908_v23  ;;  %v12910_v41 = vld [vmem:[#allocation57_spill] sm:$0xff]  ;;  %v12912_v39 = vmov 0  ;;  %v12922_v23 = vld [vmem:[#allocation58_spill] sm:$0xff] }
 0xbeb   : > { %v12903_v42 = vsel %vm9913_vm5, 4294967295, %v12902_v42  ;;  %v6661_v40 = vpop.permute.xlu0 %6660  ;;  %v5586_v59 = vpack.c.bf16 %v2329_v28, %v9905_v5  ;;  %12906 = vst [vmem:[#allocation24_spill] sm:$0xff] %v9920_v35  ;;  %vm12911_vm9 = vnez %v12910_v41  ;;  %vm12915_vm10 = vmmov %vm12895_vm2  ;;  %v12920_v28 = vld [vmem:[#allocation50_spill] sm:$0xff]  ;;  %v12924_v41 = vmov 0 }
 0xbec   : > { %12904 = vst [vmem:[#allocation5_spill] sm:$0xff] %v12903_v42  ;;  %v2308_v63 = vpop.permute.xlu1 %2307  ;;  %v6663_v36 = vunpack.i.h.bf16 %v6661_v40  ;;  %v6662_v17 = vunpack.i.l.bf16 %v6661_v40  ;;  %vm9932_vm7 = vmpackc.low %vm12911_vm9, %vm12909_vm1  ;;  %vm12921_vm6 = vnez %v12920_v28  ;;  %vm12923_vm1 = vnez %v12922_v23 }
 0xbed   : > { %v9924_v57 = vsel %vm12895_vm2, %v2308_v63, %v2310_v9  ;;  %5588 = vmatprep.subr.msk.bf16.mxu0 %vm9913_vm5, %v5586_v59  ;;  %v12913_v39 = vsel %vm9932_vm7, 4294967295, %v12912_v39  ;;  %v9938_v40 = vsel %vm12915_vm10, %v2306_v49, %v2308_v63  ;;  %vm12918_vm2 = vmmov %vm12917_vm13 }
 0xbee   : > { %12907 = vst [vmem:[#allocation6_spill] sm:$0xff] %v9924_v57  ;;  %12914 = vst [vmem:[#allocation29_spill] sm:$0xff] %v12913_v39  ;;  %v2327_v10 = vsel %vm12917_vm13, %v6663_v36, %v6662_v17  ;;  %v2328_v9 = vsel %vm12918_vm2, %v6658_v60, %v6663_v36  ;;  %v12927_v60 = vld [vmem:[#allocation51_spill] sm:$0xff] }
 0xbef   : > { %12916 = vst [vmem:[#allocation7_spill] sm:$0xff] %v9938_v40  ;;  %vm12919_vm5 = vmmov %vm12918_vm2  ;;  %v5667_v63 = vpack.c.bf16 %v2328_v9, %v9938_v40  ;;  %v6666_v5 = vpop.permute.xlu0 %6665  ;;  %v5664_v54 = vpack.c.bf16 %v2327_v10, %v9924_v57  ;;  %vm12928_vm10 = vnez %v12927_v60  ;;  %v12929_v36 = vld [vmem:[#allocation59_spill] sm:$0xff]  ;;  %vm12935_vm2 = vcmp.lt.s32.totalorder %v7574_v15, 8 }
 0xbf0   : > { %v2330_v59 = vsel %vm12919_vm5, %v6662_v17, %v6657_v25  ;;  %vm9950_vm9 = vmpackc.low %vm12923_vm1, %vm12921_vm6  ;;  %v6671_v42 = vpop.permute.xlu1 %6670  ;;  %vm12930_vm5 = vnez %v12929_v36  ;;  %v12931_v17 = vmov 0  ;;  %v6668_v23 = vunpack.i.h.bf16 %v6666_v5 }
 0xbf1   : > { %v12925_v41 = vsel %vm9950_vm9, 4294967295, %v12924_v41  ;;  %v5589_v49 = vpack.c.bf16 %v2330_v59, %v9920_v35  ;;  %vm9961_vm13 = vmpackc.low %vm12930_vm5, %vm12928_vm10  ;;  %v6673_v25 = vunpack.i.h.bf16 %v6671_v42  ;;  %v6672_v28 = vunpack.i.l.bf16 %v6671_v42  ;;  %5666 = vmatprep.subr.msk.bf16.mxu1 %vm9950_vm9, %v5664_v54  ;;  %v12937_v42 = vld [vmem:[#allocation60_spill] sm:$0xff] }
 0xbf2   : > { %12926 = vst [vmem:[#allocation30_spill] sm:$0xff] %v12925_v41  ;;  %v12932_v17 = vsel %vm9961_vm13, 4294967295, %v12931_v17  ;;  %v6667_v51 = vunpack.i.l.bf16 %v6666_v5  ;;  %vm12934_vm6 = vcmp.lt.s32.totalorder %v7574_v15, 7  ;;  %5669 = vmatpush1.bf16.msk.msra.mxu1 %vm9961_vm13, %v5667_v63  ;;  %vm12936_vm1 = vcmp.ge.s32.totalorder %v7592_v18, 1  ;;  %v12943_v63 = vld [vmem:[#allocation61_spill] sm:$0xff] }
 0xbf3   : > { %12933 = vst [vmem:[#allocation31_spill] sm:$0xff] %v12932_v17  ;;  %5591 = vmatpush1.bf16.msk.msra.mxu0 %vm9932_vm7, %v5589_v49  ;;  %v2361_v10 = vsel %vm12934_vm6, %v6672_v28, %v6673_v25  ;;  %vm12938_vm10 = vnez %v12937_v42  ;;  %v12939_v5 = vmov 0  ;;  %v6676_v49 = vpop.permute.xlu0 %6675  ;;  %vm12942_vm6 = vcmp.ge.s32.totalorder %v7634_v29, 1 }
 0xbf4   : > { %v2345_v9 = vsel %vm12935_vm2, %v6667_v51, %v6668_v23  ;;  %vm9979_vm5 = vmpackc.low %vm12938_vm10, %vm12936_vm1  ;;  %v6681_v59 = vpop.permute.xlu1 %6680  ;;  %v6678_v41 = vunpack.i.h.bf16 %v6676_v49  ;;  %v6677_v39 = vunpack.i.l.bf16 %v6676_v49  ;;  %vm12944_vm2 = vnez %v12943_v63  ;;  %v12952_v49 = vld [vmem:[#allocation62_spill] sm:$0xff] }
 0xbf5   : > { %v12940_v5 = vsel %vm9979_vm5, 4294967295, %v12939_v5  ;;  %v5592_v54 = vpack.c.bf16 %v2361_v10, %v2345_v9  ;;  %v6683_v60 = vunpack.i.h.bf16 %v6681_v59  ;;  %v6682_v36 = vunpack.i.l.bf16 %v6681_v59  ;;  %vm9989_vm13 = vmpackc.low %vm12944_vm2, %vm12942_vm6 }
 0xbf6   : > { %12941 = vst [vmem:[#allocation28_spill] sm:$0xff] %v12940_v5  ;;  %v12945_v42 = vmov 0  ;;  %vm12947_vm1 = vcmp.lt.s32.totalorder %v7574_v15, 7  ;;  %vm12950_vm7 = vcmp.lt.s32.totalorder %v7574_v15, 8  ;;  %vm12953_vm8 = vnez %v12952_v49 }
 0xbf7   : > { %5594 = vmatprep.subr.msk.bf16.mxu0 %vm9979_vm5, %v5592_v54  ;;  %v12946_v42 = vsel %vm9989_vm13, 4294967295, %v12945_v42  ;;  %v2359_v17 = vsel %vm12947_vm1, %v6683_v60, %v6682_v36  ;;  %vm12948_vm10 = vmmov %vm12947_vm1  ;;  %v2343_v59 = vsel %vm12950_vm7, %v6678_v41, %v6677_v39  ;;  %vm12951_vm5 = vcmp.ge.s32.totalorder %v7637_v31, 1  ;;  %v6686_v5 = vpop.permute.xlu0 %6685 }
 0xbf8   : > { %v2360_v10 = vsel %vm12948_vm10, %v6673_v25, %v6683_v60  ;;  %vm12949_vm9 = vmmov %vm12947_vm1  ;;  %v12954_v54 = vmov 0  ;;  %v6691_v60 = vpop.permute.xlu1 %6690  ;;  %v12961_v57 = vmov 0  ;;  %v6688_v61 = vunpack.i.h.bf16 %v6686_v5 }
 0xbf9   : > { %v2362_v9 = vsel %vm12949_vm9, %v6682_v36, %v6672_v28  ;;  %vm10005_vm6 = vmpackc.low %vm12953_vm8, %vm12951_vm5  ;;  %v5670_v28 = vpack.c.bf16 %v2359_v17, %v2343_v59  ;;  %vm12958_vm9 = vcmp.ge.s32.totalorder %v7641_v34, 1  ;;  %v12959_v36 = vld [vmem:[#allocation63_spill] sm:$0xff]  ;;  %v6693_v40 = vunpack.i.h.bf16 %v6691_v60 }
 0xbfa   : > { %v12955_v54 = vsel %vm10005_vm6, 4294967295, %v12954_v54  ;;  %vm12956_vm2 = vmmov %vm12950_vm7  ;;  %vm12960_vm7 = vnez %v12959_v36  ;;  %v6692_v7 = vunpack.i.l.bf16 %v6691_v60  ;;  %vm12963_vm8 = vcmp.lt.s32.totalorder %v7574_v15, 1 }
 0xbfb   : > { %v2344_v63 = vsel %vm12956_vm2, %v6668_v23, %v6678_v41  ;;  %vm12957_vm1 = vmmov %vm12956_vm2  ;;  %v6687_v41 = vunpack.i.l.bf16 %v6686_v5  ;;  %5672 = vmatprep.subr.msk.bf16.mxu1 %vm10005_vm6, %v5670_v28  ;;  %vm7254_vm5 = vmmov 1   ;;  %vm12964_vm2 = vnez %v12154_v50 }
 0xbfc   : > { %v2346_v25 = vsel %vm12957_vm1, %v6677_v39, %v6667_v51  ;;  %vm10017_vm10 = vmpackc.low %vm12960_vm7, %vm12958_vm9  ;;  %v5673_v35 = vpack.c.bf16 %v2360_v10, %v2344_v63  ;;  %v2375_v39 = vsel %vm12963_vm8, %v6693_v40, %v6692_v7  ;;  %v12965_v51 = vmov 0  ;;  %v6701_v10 = vpop.permute.xlu1 %6700 }
 0xbfd   : > { %v12962_v57 = vsel %vm10017_vm10, 4294967295, %v12961_v57  ;;  %v5595_v49 = vpack.c.bf16 %v2362_v9, %v2346_v25  ;;  %vm10032_vm1 = vmpackc.low %vm7254_vm5, %vm12964_vm2  ;;  %v6696_v9 = vpop.permute.xlu0 %6695  ;;  %v12971_v50 = vmov 0  ;;  %v6703_v63 = vunpack.i.h.bf16 %v6701_v10 }
 0xbfe   : > { %5675 = vmatpush1.bf16.msk.msra.mxu1 %vm10017_vm10, %v5673_v35  ;;  %v12966_v51 = vsel %vm10032_vm1, 4294967295, %v12965_v51  ;;  %vm12967_vm9 = vmmov %vm12963_vm8  ;;  %v5676_v35 = vpack.c.bf16 %v9573_v45, %v2375_v39  ;;  %vm12970_vm10 = vnez %v12159_v56  ;;  %v6698_v45 = vunpack.i.h.bf16 %v6696_v9 }
 0xbff   : > { %5597 = vmatpush1.bf16.msk.msra.mxu0 %vm9989_vm13, %v5595_v49  ;;  %v2376_v17 = vsel %vm12967_vm9, %v6688_v61, %v6693_v40  ;;  %vm12968_vm7 = vmmov %vm12963_vm8  ;;  %vm12973_vm9 = vnez %v12132_v27  ;;  %v6697_v56 = vunpack.i.l.bf16 %v6696_v9  ;;  %vm12979_vm6 = vcmp.lt.s32.totalorder %v7574_v15, 121 }
 0xc00   : > { %v2377_v23 = vsel %vm12968_vm7, %v6687_v41, %v6688_v61  ;;  %vm12969_vm8 = vmmov %vm12968_vm7  ;;  %v5679_v59 = vpack.c.bf16 %v9571_v16, %v2376_v17  ;;  %v6702_v61 = vunpack.i.l.bf16 %v6701_v10  ;;  %5678 = vmatprep.subr.msk.bf16.mxu1 %vm10032_vm1, %v5676_v35  ;;  %v12977_v16 = vmov 0 }
 0xc01   : > { %v2378_v5 = vsel %vm12969_vm8, %v6692_v7, %v6687_v41  ;;  %vm10046_vm2 = vmpackc.low %vm7254_vm5, %vm12970_vm10  ;;  %v12974_v7 = vmov 0  ;;  %v5598_v25 = vpack.c.bf16 %v9569_v24, %v2377_v23  ;;  %vm12976_vm10 = vnez %v12146_v43  ;;  %v6711_v24 = vpop.permute.xlu1 %6710  ;;  %v6706_v60 = vpop.permute.xlu0 %6705  ;;  %v12981_v41 = vld [vmem:[#allocation64_spill] sm:$0xff] }
 0xc02   : > { %v12972_v50 = vsel %vm10046_vm2, 4294967295, %v12971_v50  ;;  %v5601_v40 = vpack.c.bf16 %v9567_v13, %v2378_v5  ;;  %vm10055_vm7 = vmpackc.low %vm7254_vm5, %vm12973_vm9  ;;  %v2408_v27 = vsel %vm12979_vm6, %v6702_v61, %v6703_v63  ;;  %5681 = vmatpush1.bf16.msk.msra.mxu1 %vm10046_vm2, %v5679_v59  ;;  %vm12980_vm9 = vcmp.lt.s32.totalorder %v7574_v15, 127 }
 0xc03   : > { %v12975_v7 = vsel %vm10055_vm7, 4294967295, %v12974_v7  ;;  %vm10065_vm8 = vmpackc.low %vm7254_vm5, %vm12976_vm10  ;;  %v2392_v13 = vsel %vm12980_vm9, %v6697_v56, %v6698_v45  ;;  %5600 = vmatprep.subr.msk.bf16.mxu0 %vm10055_vm7, %v5598_v25  ;;  %v6713_v43 = vunpack.i.h.bf16 %v6711_v24  ;;  %v6712_v28 = vunpack.i.l.bf16 %v6711_v24  ;;  %v12995_v24 = vld [vmem:[#allocation66_spill] sm:$0xff] }
 0xc04   : > { %v12978_v16 = vsel %vm10065_vm8, 4294967295, %v12977_v16  ;;  %5603 = vmatpush1.bf16.msk.msra.mxu0 %vm10065_vm8, %v5601_v40  ;;  %v6708_v36 = vunpack.i.h.bf16 %v6706_v60  ;;  %v6707_v49 = vunpack.i.l.bf16 %v6706_v60  ;;  %vm12982_vm6 = vnez %v12981_v41 }
 0xc05   : > { %vm10083_vm5 = vmpackc.low %vm12982_vm6, %vm12703_vm0  ;;  %v12983_v39 = vmov 0  ;;  %v5604_v17 = vpack.c.bf16 %v2408_v27, %v2392_v13  ;;  %vm12985_vm10 = vcmp.lt.s32.totalorder %v7574_v15, 121  ;;  %vm12988_vm1 = vcmp.lt.s32.totalorder %v7574_v15, 127  ;;  %v6721_v40 = vpop.permute.xlu1 %6720 }
 0xc06   : > { %v12984_v39 = vsel %vm10083_vm5, 4294967295, %v12983_v39  ;;  %v2407_v23 = vsel %vm12985_vm10, %v6703_v63, %v6713_v43  ;;  %vm12986_vm9 = vmmov %vm12985_vm10  ;;  %v2391_v9 = vsel %vm12988_vm1, %v6698_v45, %v6708_v36  ;;  %v6716_v63 = vpop.permute.xlu0 %6715  ;;  %v12993_v25 = vmov 0 }
 0xc07   : > { %v2409_v5 = vsel %vm12986_vm9, %v6712_v28, %v6702_v61  ;;  %vm12987_vm2 = vmmov %vm12986_vm9  ;;  %v5685_v59 = vpack.c.bf16 %v2407_v23, %v2391_v9  ;;  %5606 = vmatprep.subr.msk.bf16.mxu0 %vm10083_vm5, %v5604_v17  ;;  %v12991_v61 = vld [vmem:[#allocation65_spill] sm:$0xff]  ;;  %v6723_v27 = vunpack.i.h.bf16 %v6721_v40  ;;  %v6718_v13 = vunpack.i.h.bf16 %v6716_v63 }
 0xc08   : > { %v2410_v10 = vsel %vm12987_vm2, %v6713_v43, %v6712_v28  ;;  %vm12989_vm8 = vmmov %vm12988_vm1  ;;  %vm12992_vm6 = vnez %v12991_v61  ;;  %v12997_v60 = vmov 0  ;;  %v6717_v43 = vunpack.i.l.bf16 %v6716_v63  ;;  %v12999_v28 = vld [vmem:[#allocation67_spill] sm:$0xff] }
 0xc09   : > { %v2393_v58 = vsel %vm12989_vm8, %v6707_v49, %v6697_v56  ;;  %vm12990_vm0 = vmmov %vm12988_vm1  ;;  %v6722_v56 = vunpack.i.l.bf16 %v6721_v40  ;;  %vm12996_vm1 = vnez %v12995_v24  ;;  %vm13003_vm9 = vcmp.lt.s32.totalorder %v7574_v15, 119  ;;  %v2432_v41 = vpop.permute.xlu1 %2431  ;;  %v13094_v24 = vld [vmem:[#allocation11_spill] sm:$0xff] }
 0xc0a   : > { %v2394_v35 = vsel %vm12990_vm0, %v6708_v36, %v6707_v49  ;;  %vm10105_vm2 = vmpackc.low %vm12992_vm6, %vm12722_vm14  ;;  %v5607_v45 = vpack.c.bf16 %v2409_v5, %v2393_v58  ;;  %vm13000_vm14 = vnez %v12999_v28  ;;  %v13001_v36 = vmov 0  ;;  %v6726_v47 = vpop.permute.xlu0 %6725 }
 0xc0b   : > { %v12994_v25 = vsel %vm10105_vm2, 4294967295, %v12993_v25  ;;  %vm10113_vm8 = vmpackc.low %vm12996_vm1, %vm12712_vm11  ;;  %v5682_v22 = vpack.c.bf16 %v2410_v10, %v2394_v35  ;;  %v2440_v49 = vsel %vm13003_vm9, %v6722_v56, %v6723_v27  ;;  %vm13004_vm11 = vcmp.lt.s32.totalorder %v7574_v15, 120 }
 0xc0c   : > { %v12998_v60 = vsel %vm10113_vm8, 4294967295, %v12997_v60  ;;  %vm10121_vm10 = vmpackc.low %vm13000_vm14, %vm12726_vm15  ;;  %5609 = vmatpush1.bf16.msk.msra.mxu0 %vm10105_vm2, %v5607_v45  ;;  %v2424_v8 = vsel %vm13004_vm11, %v6717_v43, %v6718_v13  ;;  %vm13005_vm0 = vcmp.lt.s32.totalorder %v7592_v18, 7  ;;  %vm13006_vm15 = vnez %v12500_v62  ;;  %v13086_v45 = vld [vmem:[#allocation52_spill] sm:$0xff] }
 0xc0d   : > { %v13002_v36 = vsel %vm10121_vm10, 4294967295, %v13001_v36  ;;  %5684 = vmatprep.subr.msk.bf16.mxu1 %vm10113_vm8, %v5682_v22  ;;  %vm10137_vm6 = vmpackc.low %vm13006_vm15, %vm13005_vm0  ;;  %v13007_v17 = vmov 0  ;;  %v6728_v23 = vunpack.i.h.bf16 %v6726_v47  ;;  %v6727_v5 = vunpack.i.l.bf16 %v6726_v47  ;;  %v13096_v22 = vld [vmem:[#allocation22_spill] sm:$0xff] }
 0xc0e   : > { %v13008_v17 = vsel %vm10137_vm6, 4294967295, %v13007_v17  ;;  %5687 = vmatpush1.bf16.msk.msra.mxu1 %vm10121_vm10, %v5685_v59  ;;  %v5610_v10 = vpack.c.bf16 %v2440_v49, %v2424_v8  ;;  %vm13009_vm1 = vcmp.lt.s32.totalorder %v7634_v29, 7  ;;  %vm13010_vm14 = vnez %v12514_v26  ;;  %v2438_v58 = vpop.permute.xlu0 %2437  ;;  %v13102_v8 = vld [vmem:[#allocation2_spill] sm:$0xff] }
 0xc0f   : > { %vm10147_vm9 = vmpackc.low %vm13010_vm14, %vm13009_vm1  ;;  %v13011_v9 = vmov 0  ;;  %vm13013_vm11 = vcmp.lt.s32.totalorder %v7574_v15, 119  ;;  %vm13014_vm0 = vcmp.lt.s32.totalorder %v7574_v15, 120  ;;  %vm13015_vm15 = vnez %v12527_v20  ;;  %v13105_v47 = vld [vmem:[#allocation78_spill] sm:$0xff] }
 0xc10   : > { %v13012_v9 = vsel %vm10147_vm9, 4294967295, %v13011_v9  ;;  %v2441_v18 = vsel %vm13013_vm11, %v2432_v41, %v6722_v56  ;;  %v2425_v62 = vsel %vm13014_vm0, %v6727_v5, %v6717_v43  ;;  %5612 = vmatprep.subr.msk.bf16.mxu0 %vm10137_vm6, %v5610_v10  ;;  %vm13016_vm10 = vnez %v12509_v55  ;;  %vm13023_vm6 = vmmov %vm13014_vm0  ;;  %v13089_v56 = vld [vmem:[#allocation77_spill] sm:$0xff]  ;;  %v13095_v43 = vld [vmem:[#allocation10_spill] sm:$0xff] }
 0xc11   : > { %vm10161_vm8 = vmpackc.low %vm13016_vm10, %vm13015_vm15  ;;  %v13017_v29 = vmov 0  ;;  %v5613_v26 = vpack.c.bf16 %v2441_v18, %v2425_v62  ;;  %vm13019_vm1 = vcmp.lt.s32.totalorder %v7637_v31, 7  ;;  %vm13020_vm14 = vnez %v12519_v3  ;;  %v13111_v10 = vld [vmem:[#allocation16_spill] sm:$0xff]  ;;  %v13112_v18 = vld [vmem:[#allocation21_spill] sm:$0xff] }
 0xc12   : > { %v13018_v29 = vsel %vm10161_vm8, 4294967295, %v13017_v29  ;;  %vm10169_vm11 = vmpackc.low %vm13020_vm14, %vm13019_vm1  ;;  %v13021_v35 = vmov 0  ;;  %v2423_v59 = vsel %vm13014_vm0, %v6718_v13, %v6728_v23  ;;  %v2426_v55 = vsel %vm13023_vm6, %v6728_v23, %v6727_v5  ;;  %v13110_v5 = vld [vmem:[#allocation9_spill] sm:$0xff]  ;;  %v13113_v62 = vld [vmem:[#allocation27_spill] sm:$0xff] }
 0xc13   : > { %v13022_v35 = vsel %vm10169_vm11, 4294967295, %v13021_v35  ;;  %vm13024_vm10 = vcmp.lt.s32.totalorder %v7574_v15, 119  ;;  %vm13026_vm2 = vcmp.lt.s32.totalorder %v7641_v34, 7  ;;  %vm13027_vm5 = vnez %v12537_v33  ;;  %5615 = vmatpush1.bf16.msk.msra.mxu0 %vm10147_vm9, %v5613_v26  ;;  %v13115_v26 = vld [vmem:[#allocation81_spill] sm:$0xff] }
 0xc14   : > { %v2439_v20 = vsel %vm13024_vm10, %v6723_v27, %v2438_v58  ;;  %vm13025_vm15 = vmmov %vm13024_vm10  ;;  %v13028_v31 = vmov 0  ;;  %vm13030_vm6 = vnez %v12564_v6  ;;  %vm13031_vm14 = vnez %v12548_v52  ;;  %5618 = vmatprep.subr.msk.bf16.mxu0 %vm10161_vm8, %v9688_v32  ;;  %v13058_v6 = vld [vmem:[#allocation71_spill] sm:$0xff]  ;;  %v13075_v32 = vld [vmem:[#allocation74_spill] sm:$0xff] }
 0xc15   : > { %v2442_v40 = vsel %vm13025_vm15, %v2438_v58, %v2432_v41  ;;  %vm10185_vm1 = vmpackc.low %vm13027_vm5, %vm13026_vm2  ;;  %v5691_v63 = vpack.c.bf16 %v2439_v20, %v2423_v59  ;;  %v13032_v61 = vmov 0  ;;  %vm13034_vm5 = vnez %v12561_v44  ;;  %v13087_v27 = vld [vmem:[#allocation70_spill] sm:$0xff]  ;;  %v13103_v41 = vld [vmem:[#allocation80_spill] sm:$0xff] }
 0xc16   : > { %v13029_v31 = vsel %vm10185_vm1, 4294967295, %v13028_v31  ;;  %v5688_v3 = vpack.c.bf16 %v2442_v40, %v2426_v55  ;;  %vm10195_vm0 = vmpackc.low %vm13031_vm14, %vm13030_vm6  ;;  %vm13035_vm2 = vnez %v12545_v21  ;;  %v13036_v34 = vmov 0  ;;  %v13120_v59 = vld [vmem:[#allocation7_spill] sm:$0xff]  ;;  %v13121_v55 = vld [vmem:[#allocation25_spill] sm:$0xff] }
 0xc17   : > { %v13033_v61 = vsel %vm10195_vm0, 4294967295, %v13032_v61  ;;  %vm10206_vm10 = vmpackc.low %vm13035_vm2, %vm13034_vm5  ;;  %vm13038_vm15 = vnez %v12576_v1  ;;  %vm13039_vm6 = vnez %v12593_v2  ;;  %v13040_v33 = vmov 0  ;;  %5621 = vmatpush1.bf16.msk.msra.mxu0 %vm10195_vm0, %v9643_v48  ;;  %v2173_v20 = vld [vmem:[%s11637_s4] sm:$0xff]  ;;  %v13123_v40 = vld [vmem:[#allocation20_spill] sm:$0xff] }
 0xc18   : > { %v13037_v34 = vsel %vm10206_vm10, 4294967295, %v13036_v34  ;;  %5690 = vmatprep.subr.msk.bf16.mxu1 %vm10169_vm11, %v5688_v3  ;;  %vm10216_vm14 = vmpackc.low %vm13039_vm6, %vm13038_vm15  ;;  %vm13042_vm8 = vnez %v12568_v37  ;;  %vm13043_vm5 = vnez %v12555_v19  ;;  %v13044_v21 = vmov 0  ;;  %v13060_v37 = vld [vmem:[#allocation72_spill] sm:$0xff]  ;;  %v13124_v3 = vld [vmem:[#allocation23_spill] sm:$0xff] }
 0xc19   : > { %v13041_v33 = vsel %vm10216_vm14, 4294967295, %v13040_v33  ;;  %5693 = vmatpush1.bf16.msk.msra.mxu1 %vm10185_vm1, %v5691_v63  ;;  %vm10226_vm2 = vmpackc.low %vm13043_vm5, %vm13042_vm8  ;;  %vm13046_vm15 = vnez %v12589_v38  ;;  %vm13047_vm6 = vnez %v12610_v46  ;;  %v13048_v52 = vmov 0  ;;  %5624 = vmatprep.subr.msk.bf16.mxu0 %vm10216_vm14, %v9756_v11  ;;  %v13066_v38 = vld [vmem:[#allocation69_spill] sm:$0xff]  ;;  %v13072_v46 = vld [vmem:[#allocation14_spill] sm:$0xff] }
 0xc1a   : > { %v13045_v21 = vsel %vm10226_vm2, 4294967295, %v13044_v21  ;;  %5696 = vmatprep.subr.msk.bf16.mxu1 %vm10206_vm10, %v9686_v14  ;;  %vm10240_vm1 = vmpackc.low %vm13047_vm6, %vm13046_vm15  ;;  %vm13050_vm8 = vnez %v12583_v53  ;;  %vm13051_vm5 = vnez %v12605_v0  ;;  %v13052_v19 = vmov 0  ;;  %v13064_v53 = vld [vmem:[#allocation54_spill] sm:$0xff]  ;;  %v13081_v14 = vld [vmem:[#allocation73_spill] sm:$0xff] }
 0xc1b   : > { %v13049_v52 = vsel %vm10240_vm1, 4294967295, %v13048_v52  ;;  %vm10251_vm0 = vmpackc.low %vm13051_vm5, %vm13050_vm8  ;;  %vm13054_vm10 = vnez %v12489_v30  ;;  %vm13055_vm11 = vnez %v12626_v4  ;;  %v13056_v44 = vmov 0  ;;  %5627 = vmatpush1.bf16.msk.msra.mxu0 %vm10240_vm1, %v13064_v53  ;;  %v13065_v30 = vld [vmem:[#allocation4_spill] sm:$0xff]  ;;  %v13125_v63 = vld [vmem:[#allocation35_spill] sm:$0xff] }
 0xc1c   : > { %v13053_v19 = vsel %vm10251_vm0, 4294967295, %v13052_v19  ;;  %vm10259_vm15 = vmpackc.low %vm13055_vm11, %vm13054_vm10  ;;  %vm13059_vm6 = vnez %v13058_v6  ;;  %vm13061_vm14 = vnez %v13060_v37  ;;  %v13062_v1 = vmov 0  ;;  %v13073_v4 = vld [vmem:[#allocation68_spill] sm:$0xff]  ;;  %v13128_v37 = vld [vmem:[#allocation26_spill] sm:$0xff] }
 0xc1d   : > { %v13057_v44 = vsel %vm10259_vm15, 4294967295, %v13056_v44  ;;  %5699 = vmatpush1.bf16.msk.msra.mxu1 %vm10226_vm2, %v9676_v12  ;;  %vm10270_vm8 = vmpackc.low %vm13061_vm14, %vm13059_vm6  ;;  %vm13067_vm11 = vnez %v13066_v38  ;;  %v13069_v0 = vmov 0  ;;  %5630 = vmatprep.subr.msk.bf16.mxu0 %vm10259_vm15, %v13072_v46  ;;  %vm13074_vm14 = vnez %v13073_v4  ;;  %v13079_v12 = vld [vmem:[#allocation76_spill] sm:$0xff]  ;;  %v594_v2 = vld [vmem:[%s266_s30] sm:$0xff] }
 0xc1e   : > { %v13063_v1 = vsel %vm10270_vm8, 4294967295, %v13062_v1  ;;  %5702 = vmatprep.subr.msk.bf16.mxu1 %vm10251_vm0, %v13065_v30  ;;  %vm10284_vm10 = vmpackc.low %vm9275_vm4, %vm13067_vm11  ;;  %vm13076_vm5 = vnez %v13075_v32  ;;  %v13077_v48 = vmov 0  ;;  %vm13080_vm1 = vnez %v13079_v12  ;;  %v13127_v6 = vld [vmem:[#allocation24_spill] sm:$0xff]  ;;  %v13132_v30 = vld [vmem:[#allocation6_spill] sm:$0xff] }
 0xc1f   : > { %v13070_v0 = vsel %vm10284_vm10, 4294967295, %v13069_v0  ;;  %vm10295_vm6 = vmpackc.low %vm13076_vm5, %vm13074_vm14  ;;  %vm13082_vm0 = vnez %v13081_v14  ;;  %v13083_v11 = vmov 0  ;;  %vm13088_vm11 = vnez %v13087_v27  ;;  %5633 = vmatpush1.bf16.msk.msra.mxu0 %vm10284_vm10, %v13094_v24  ;;  %v13133_v38 = vld [vmem:[#allocation32_spill] sm:$0xff]  ;;  %v595_v32 = vld [vmem:[%s266_s30 + $0x8] sm:$0xff] }
 0xc20   : > { %13071 = vst [vmem:[#allocation38_spill] sm:$0xff] %v13070_v0  ;;  %v13078_v48 = vsel %vm10295_vm6, 4294967295, %v13077_v48  ;;  %vm10303_vm4 = vmpackc.low %vm13082_vm0, %vm13080_vm1  ;;  %vm13090_vm15 = vnez %v13089_v56  ;;  %v13091_v13 = vmov 0  ;;  %vm13097_vm1 = vnez %v13096_v22  ;;  %v596_v27 = vld [vmem:[%s266_s30 + $0x10] sm:$0xff]  ;;  %v597_v22 = vld [vmem:[%s266_s30 + $0x18] sm:$0xff]  ;;  %s7257_s30 = smov 122  }
 0xc21   : > { %v13084_v11 = vsel %vm10303_vm4, 4294967295, %v13083_v11  ;;  %5705 = vmatpush1.bf16.msk.msra.mxu1 %vm10270_vm8, %v13086_v45  ;;  %vm10314_vm14 = vmpackc.low %vm13090_vm15, %vm13088_vm11  ;;  %v13099_v49 = vmov 0  ;;  %5636 = vmatprep.subr.msk.bf16.mxu0 %vm10303_vm4, %v13102_v8  ;;  %vm13104_vm15 = vnez %v13103_v41  ;;  %vm13106_vm5 = vnez %v13105_v47 }
 0xc22   : > { %13085 = vst [vmem:[#allocation34_spill] sm:$0xff] %v13084_v11  ;;  %v13092_v13 = vsel %vm10314_vm14, 4294967295, %v13091_v13  ;;  %5708 = vmatprep.subr.msk.bf16.mxu1 %vm10295_vm6, %v13095_v43  ;;  %vm10328_vm0 = vmpackc.low %vm9355_vm3, %vm13097_vm1  ;;  %v13107_v23 = vmov 0  ;;  %vm13114_vm3 = vnez %v13113_v62  ;;  %vm13116_vm1 = vnez %v13115_v26  ;;  %v13139_v26 = vld [vmem:[#allocation43_spill] sm:$0xff] }
 0xc23   : > { %13093 = vst [vmem:[#allocation39_spill] sm:$0xff] %v13092_v13  ;;  %v13100_v49 = vsel %vm10328_vm0, 4294967295, %v13099_v49  ;;  %vm10339_vm11 = vmpackc.low %vm13106_vm5, %vm13104_vm15  ;;  %5639 = vmatpush1.bf16.msk.msra.mxu0 %vm10328_vm0, %v13111_v10  ;;  %v13117_v58 = vmov 0  ;;  %vm13122_vm5 = vnez %v13121_v55  ;;  %vm13126_vm0 = vnez %v13125_v63 }
 0xc24   : > { %13101 = vst [vmem:[#allocation36_spill] sm:$0xff] %v13100_v49  ;;  %v13108_v23 = vsel %vm10339_vm11, 4294967295, %v13107_v23  ;;  %vm10356_vm15 = vmpackc.low %vm13116_vm1, %vm13114_vm3  ;;  %4749 = vmatprep.subr.msk.mxu0 %vm13122_vm5, %v13120_v59  ;;  %vm13129_vm3 = vnez %v13128_v37  ;;  %v13130_v53 = vmov 0.0   ;;  %vm13131_vm1 = vmmov 0  }
 0xc25   : > { %13109 = vst [vmem:[#allocation40_spill] sm:$0xff] %v13108_v23  ;;  %5711 = vmatpush1.bf16.msk.msra.mxu1 %vm10314_vm14, %v13110_v5  ;;  %v13118_v58 = vsel %vm10356_vm15, 4294967295, %v13117_v58  ;;  %vm13134_vm5 = vnez %v13133_v38 }
 0xc26   : > { %5714 = vmatprep.subr.msk.bf16.mxu1 %vm10339_vm11, %v13112_v18  ;;  %13119 = vst [vmem:[#allocation37_spill] sm:$0xff] %v13118_v58 }
 0xc27   : > { %4750 = vmatpush1.msk.msra.mxu0 %vm13126_vm0, %v13124_v3  ;;  %vm13144_vm0 = vcmp.lt.s32.totalorder %v7574_v15, 73 }
 0xc28   : > { %2552 = vmatmul.mubr.f32.vlgmr.msra.gmra.mrb[10].mxu0 %v2173_v20  ;;  %5182 = vmatprep.subr.mxu0 %v13130_v53 }
 0xc29   : > { %5717 = vmatpush1.bf16.msk.msra.mxu1 %vm10356_vm15, %v13123_v40  ;;  %5184 = vmatprep.mubr.msk.f32.mxu0 %vm13131_vm1, %v13130_v53  ;;  %vm13149_vm15 = vmmov %vm13144_vm0 }
 0xc2a   : > { %4802 = vmatprep.subr.msk.mxu1 %vm13129_vm3, %v13127_v6  ;;  %vm13145_vm3 = vcmp.lt.s32.totalorder %v7574_v15, 72 }
 0xc2d   : > { %4803 = vmatpush1.msk.msra.mxu1 %vm13134_vm5, %v13132_v30 }
 0xc2e   : > { %2623 = vmatmul.mubr.f32.vlgmr.msra.gmra.mrb[10].mxu1 %v2173_v20  ;;  %5187 = vmatprep.subr.mxu1 %v13130_v53 }
 0xc2f   : > { %5189 = vmatprep.mubr.msk.f32.mxu1 %vm13131_vm1, %v13130_v53  ;;  %vm13140_vm1 = vcmask 64512  }
 0xcfb   : > { %v2553_v46 = vpop.f32.mrb[10].mxu0 }
 0xcfc   : > { %v2629_v4 = vmax.f32 %v2553_v46, 0.0  ;;  %v2555_v12 = vpop.f32.mrb[11].mxu0 }
 0xcfd   : > { %v2630_v14 = vmax.f32 %v2555_v12, 0.0 }
 0xcfe   : > { %v10390_v45 = vadd.f32 %v2629_v4, %v594_v2 }
 0xcff   : > { %v10392_v24 = vadd.f32 %v2630_v14, %v595_v32 }
 0xd00   : > { %13135 = vst [vmem:[#allocation45_spill] sm:$0xff] %v10390_v45 }
 0xd01   : > { %v2624_v56 = vpop.f32.mrb[10].mxu1  ;;  %13136 = vst [vmem:[#allocation53_spill] sm:$0xff] %v10392_v24  ;;  %v2637_v41 = vadd.f32 %v10392_v24, %v10390_v45 }
 0xd02   : > { %v2631_v43 = vmax.f32 %v2624_v56, 0.0  ;;  %v2626_v28 = vpop.f32.mrb[11].mxu1 }
 0xd03   : > { %v2632_v8 = vmax.f32 %v2626_v28, 0.0  ;;  %v7256_v28 = vmov 5  }
 0xd04   : > { %v10396_v47 = vadd.f32 %v2631_v43, %v596_v27  ;;  %v13141_v43 = vld [vmem:[#allocation33_spill] sm:$0xff]  ;;  %6730 = vset.pattern.permute.xlu1 %v7256_v28 }
 0xd05   : > { %v10398_v5 = vadd.f32 %v2632_v8, %v597_v22 }
 0xd06   : > { %13137 = vst [vmem:[#allocation49_spill] sm:$0xff] %v10396_v47  ;;  %v2638_v10 = vadd.f32 %v2637_v41, %v10396_v47 }
 0xd07   : > { %13138 = vst [vmem:[#allocation57_spill] sm:$0xff] %v10398_v5 }
 0xd08   : > { %v2639_v18 = vadd.f32 %v2638_v10, %v10398_v5 }
 0xd0a   : > { %2640 = vadd.xlane.f32.xlu1 %v2639_v18 }
 0xd1b   : > { %2802 = vrot.lane.b32.xlu1 %v13141_v43, %s7255_s25 }
 0xd1f   : > { %2816 = vperm.xlu1 %6730, %v13141_v43  }
 0xd97   : > { %v2641_v62 = vpop.xlane.xlu1 %2640 }
 0xd98   : > { %5183 = vmatpush3.msra.mxu0 %v2641_v62 }
 0xd99   : > { %5185 = vmatmul.mubr.msk.f32.vlgmr.msra.gmra.mrb[12].mxu0 %vm13140_vm1, %v13139_v26 }
 0xd9b   : > { %v2803_v18 = vpop.permute.xlu1 %2802 }
 0xe6c   : > { %v2708_v59 = vpop.f32.mrb[12].mxu0 }
 0xe6d   : > { %2714 = vperm.xlu0 %6729, %v2708_v59   ;;  %v5186_v20 = vpop.f32.mrb[13].mxu0 }
 0xeec   : > { %v2715_v40 = vpop.permute.xlu0 %2714 }
 0xeed   : > { %v2717_v3 = vsub.f32 %v10390_v45, %v2715_v40  ;;  %v2718_v6 = vsub.f32 %v10392_v24, %v2715_v40  ;;  %v2719_v30 = vsub.f32 %v10396_v47, %v2715_v40  ;;  %v2720_v2 = vsub.f32 %v10398_v5, %v2715_v40  ;;  %v2817_v40 = vpop.permute.xlu1 %2816 }
 0xeef   : > { %v2721_v46 = vmul.f32 %v2717_v3, %v2717_v3  ;;  %v2722_v4 = vmul.f32 %v2718_v6, %v2718_v6  ;;  %v2723_v32 = vmul.f32 %v2719_v30, %v2719_v30  ;;  %v2724_v14 = vmul.f32 %v2720_v2, %v2720_v2 }
 0xef1   : > { %v2725_v12 = vadd.f32 %v2722_v4, %v2721_v46 }
 0xef3   : > { %v2726_v27 = vadd.f32 %v2725_v12, %v2723_v32 }
 0xef5   : > { %v2727_v56 = vadd.f32 %v2726_v27, %v2724_v14 }
 0xef7   : > { %2728 = vadd.xlane.f32.xlu0 %v2727_v56 }
 0xf84   : > { %v2729_v22 = vpop.xlane.xlu0 %2728 }
 0xf85   : > { %5188 = vmatpush3.msra.mxu1 %v2729_v22 }
 0xf86   : > { %5190 = vmatmul.mubr.msk.f32.vlgmr.msra.gmra.mrb[12].mxu1 %vm13140_vm1, %v13139_v26  ;;  %vm13142_vm1 = vcmask 719872  }
 0xf87   : > { %vm13143_vm5 = vmmov %vm13142_vm1 }
0x1059   : > { %v2796_v8 = vpop.f32.mrb[12].mxu1 }
0x105a   : > { %v2800_v41 = vadd.f32 1e-05, %v2796_v8  ;;  %v5191_v10 = vpop.f32.mrb[13].mxu1 }
0x105c   : > { %7215 = vrsqrt.f32 %v2800_v41 }
0x1066   : > { %v7216_v62 = vpop.eup %7215 }
0x1067   : > { %v2805_v59 = vmul.f32 %v7216_v62, %v2803_v18 }
0x1069   : > { %2808 = vperm.xlu0 %6729, %v2805_v59  }
0x10e8   : > { %v2809_v20 = vpop.permute.xlu0 %2808 }
0x10e9   : > { %v2811_v46 = vmul.f32 %v2809_v20, %v2717_v3  ;;  %v2812_v4 = vmul.f32 %v2809_v20, %v2718_v6  ;;  %v2813_v32 = vmul.f32 %v2809_v20, %v2719_v30  ;;  %v2814_v12 = vmul.f32 %v2809_v20, %v2720_v2  ;;  %v4808_v30 = vld [vmem:[%s11637_s4 + $0x18] sm:$0xff] }
0x10ea   : > { %4861 = vmatprep.mubr.msk.f32.mxu0 %vm13142_vm1, %v4808_v30  ;;  %4914 = vmatprep.mubr.msk.f32.mxu1 %vm13143_vm5, %v4808_v30  ;;  %v13146_v30 = vld [vmem:[#allocation41_spill] sm:$0xff]  ;;  %vm13148_vm1 = vmmov %vm13144_vm0 }
0x10eb   : > { %v10412_v14 = vadd.f32 %v2817_v40, %v2811_v46  ;;  %v10414_v27 = vadd.f32 %v2817_v40, %v2812_v4  ;;  %v10416_v56 = vadd.f32 %v2817_v40, %v2813_v32  ;;  %v10418_v43 = vadd.f32 %v2817_v40, %v2814_v12 }
0x10ec   : > { %vm13147_vm5 = vnez %v13146_v30 }
0x10ed   : > { %v6741_v22 = vpack.i.bf16 %v10416_v56, %v10418_v43  ;;  %v6731_v28 = vpack.i.bf16 %v10414_v27, %v10412_v14  ;;  %v6851_v3 = vpack.i.bf16 %v10416_v56, %v10414_v27  ;;  %v6861_v6 = vpack.i.bf16 %v10418_v43, %v10412_v14 }
0x10ef   : > { %6742 = vrot.lane.b32.xlu0 %v6741_v22, %s7233_s7  ;;  %6732 = vrot.lane.b32.xlu1 %v6731_v28, %s7233_s7 }
0x10f3   : > { %6752 = vrot.lane.b32.xlu0 %v6731_v28, %s7235_s9  ;;  %6737 = vrot.lane.b32.xlu1 %v6731_v28, %s7234_s8 }
0x10f7   : > { %6762 = vrot.lane.b32.xlu0 %v6741_v22, %s7235_s9  ;;  %6747 = vrot.lane.b32.xlu1 %v6741_v22, %s7234_s8 }
0x10fb   : > { %6772 = vrot.lane.b32.xlu0 %v6731_v28, %s7237_s11  ;;  %6757 = vrot.lane.b32.xlu1 %v6731_v28, %s7236_s10 }
0x10ff   : > { %6782 = vrot.lane.b32.xlu0 %v6741_v22, %s7237_s11  ;;  %6767 = vrot.lane.b32.xlu1 %v6741_v22, %s7236_s10 }
0x1103   : > { %6792 = vrot.lane.b32.xlu0 %v6731_v28, %s7239_s13  ;;  %6777 = vrot.lane.b32.xlu1 %v6731_v28, %s7238_s12 }
0x1107   : > { %6802 = vrot.lane.b32.xlu0 %v6741_v22, %s7239_s13  ;;  %6787 = vrot.lane.b32.xlu1 %v6741_v22, %s7238_s12 }
0x110b   : > { %2954 = vrot.lane.b32.xlu0 %v10412_v14, %s7241_s15  ;;  %6797 = vrot.lane.b32.xlu1 %v6731_v28, %s7240_s14 }
0x110f   : > { %6812 = vrot.lane.b32.xlu0 %v6731_v28, %s7242_s16  ;;  %6807 = vrot.lane.b32.xlu1 %v6741_v22, %s7240_s14 }
0x1113   : > { %6817 = vrot.lane.b32.xlu0 %v6741_v22, %s7242_s16  ;;  %2956 = vrot.lane.b32.xlu1 %v10414_v27, %s7241_s15 }
0x1117   : > { %6822 = vrot.lane.b32.xlu0 %v6731_v28, %s7243_s18  ;;  %2960 = vrot.lane.b32.xlu1 %v10418_v43, %s7241_s15 }
0x111b   : > { %6832 = vrot.lane.b32.xlu0 %v6741_v22, %s7243_s18  ;;  %2958 = vrot.lane.b32.xlu1 %v10416_v56, %s7241_s15 }
0x111f   : > { %6842 = vrot.lane.b32.xlu0 %v6731_v28, %s7245_s20  ;;  %6827 = vrot.lane.b32.xlu1 %v6731_v28, %s7244_s19 }
0x1123   : > { %6852 = vrot.lane.b32.xlu0 %v6851_v3, %s7246_s23  ;;  %6837 = vrot.lane.b32.xlu1 %v6741_v22, %s7244_s19 }
0x1127   : > { %6862 = vrot.lane.b32.xlu0 %v6861_v6, %s7246_s23  ;;  %6847 = vrot.lane.b32.xlu1 %v6741_v22, %s7245_s20 }
0x112b   : > { %6872 = vrot.lane.b32.xlu0 %v6851_v3, %s7248_s27  ;;  %6857 = vrot.lane.b32.xlu1 %v6851_v3, %s7247_s24 }
0x112f   : > { %6882 = vrot.lane.b32.xlu0 %v6861_v6, %s7248_s27  ;;  %6867 = vrot.lane.b32.xlu1 %v6861_v6, %s7247_s24 }
0x1133   : > { %3088 = vrot.lane.b32.xlu0 %v10418_v43, %s7249_s28  ;;  %6877 = vrot.lane.b32.xlu1 %v6851_v3, %s7249_s28 }
0x1137   : > { %3082 = vrot.lane.b32.xlu1 %v10412_v14, %s7249_s28 }
0x1161   : > { %v6743_v2 = vpop.permute.xlu0 %6742  ;;  %v6733_v8 = vpop.permute.xlu1 %6732 }
0x1162   : > { %v6735_v41 = vunpack.i.h.bf16 %v6733_v8  ;;  %v6734_v10 = vunpack.i.l.bf16 %v6733_v8  ;;  %v6745_v40 = vunpack.i.h.bf16 %v6743_v2  ;;  %v6744_v46 = vunpack.i.l.bf16 %v6743_v2 }
0x1164   : > { %v2836_v4 = vsel %vm13144_vm0, %v6734_v10, %v6735_v41  ;;  %v2834_v8 = vsel %vm13148_vm1, %v6745_v40, %v6744_v46  ;;  %v2835_v2 = vsel %vm13149_vm15, %v6735_v41, %v6745_v40  ;;  %vm13150_vm0 = vmmov %vm13145_vm3 }
0x1165   : > { %v6753_v18 = vpop.permute.xlu0 %6752  ;;  %v6738_v62 = vpop.permute.xlu1 %6737  ;;  %vm13152_vm11 = vmmov %vm13150_vm0 }
0x1166   : > { %v6740_v59 = vunpack.i.h.bf16 %v6738_v62  ;;  %v6739_v20 = vunpack.i.l.bf16 %v6738_v62  ;;  %vm13153_vm14 = vmmov %vm13150_vm0  ;;  %v6755_v45 = vunpack.i.h.bf16 %v6753_v18  ;;  %v6754_v30 = vunpack.i.l.bf16 %v6753_v18 }
0x1168   : > { %v2852_v32 = vsel %vm13145_vm3, %v6739_v20, %v6740_v59  ;;  %vm13151_vm3 = vmmov %vm13148_vm1  ;;  %vm13160_vm1 = vcmp.lt.s32.totalorder %v7574_v15, 65 }
0x1169   : > { %v6763_v12 = vpop.permute.xlu0 %6762  ;;  %v6748_v22 = vpop.permute.xlu1 %6747  ;;  %v10480_v28 = vpack.c.bf16 %v2852_v32, %v2836_v4  ;;  %v2837_v5 = vsel %vm13151_vm3, %v6744_v46, %v6734_v10  ;;  %v13154_v10 = vld [vmem:[#allocation42_spill] sm:$0xff] }
0x116a   : > { %v6750_v3 = vunpack.i.h.bf16 %v6748_v22  ;;  %v6749_v6 = vunpack.i.l.bf16 %v6748_v22  ;;  %vm13155_vm15 = vnez %v13154_v10  ;;  %v6764_v46 = vunpack.i.l.bf16 %v6763_v12 }
0x116b   : > { %5720 = vmatprep.subr.msk.bf16.mxu0 %vm13147_vm5, %v10480_v28 }
0x116c   : > { %v2850_v62 = vsel %vm13150_vm0, %v6750_v3, %v6749_v6  ;;  %v2851_v4 = vsel %vm13152_vm11, %v6740_v59, %v6750_v3  ;;  %v2853_v32 = vsel %vm13153_vm14, %v6749_v6, %v6739_v20  ;;  %v6765_v59 = vunpack.i.h.bf16 %v6763_v12  ;;  %v13156_v20 = vld [vmem:[#allocation46_spill] sm:$0xff]  ;;  %v13158_v3 = vld [vmem:[#allocation48_spill] sm:$0xff] }
0x116d   : > { %v6773_v22 = vpop.permute.xlu0 %6772  ;;  %v6758_v24 = vpop.permute.xlu1 %6757  ;;  %v10497_v47 = vpack.c.bf16 %v2850_v62, %v2834_v8  ;;  %v10499_v26 = vpack.c.bf16 %v2853_v32, %v2837_v5  ;;  %v10501_v41 = vpack.c.bf16 %v2851_v4, %v2835_v2  ;;  %vm13157_vm14 = vnez %v13156_v20 }
0x116e   : > { %v6760_v40 = vunpack.i.h.bf16 %v6758_v24  ;;  %v6759_v53 = vunpack.i.l.bf16 %v6758_v24  ;;  %vm13159_vm11 = vnez %v13158_v3  ;;  %vm13161_vm0 = vcmp.lt.s32.totalorder %v7574_v15, 71 }
0x116f   : > { %5798 = vmatprep.subr.msk.bf16.mxu1 %vm13155_vm15, %v10497_v47  ;;  %5723 = vmatpush1.bf16.msk.msra.mxu0 %vm13157_vm14, %v10499_v26  ;;  %v2868_v24 = vsel %vm13161_vm0, %v6754_v30, %v6755_v45  ;;  %vm13162_vm3 = vmmov %vm13161_vm0 }
0x1170   : > { %5801 = vmatpush1.bf16.msk.msra.mxu1 %vm13159_vm11, %v10501_v41  ;;  %v2884_v5 = vsel %vm13160_vm1, %v6759_v53, %v6760_v40  ;;  %v2866_v12 = vsel %vm13162_vm3, %v6765_v59, %v6764_v46  ;;  %vm13163_vm14 = vmmov %vm13161_vm0  ;;  %vm13176_vm3 = vcmp.lt.s32.totalorder %v7574_v15, 63 }
0x1171   : > { %v6783_v18 = vpop.permute.xlu0 %6782  ;;  %v6768_v6 = vpop.permute.xlu1 %6767  ;;  %v10516_v62 = vpack.c.bf16 %v2884_v5, %v2868_v24  ;;  %v2867_v4 = vsel %vm13163_vm14, %v6755_v45, %v6765_v59  ;;  %vm13164_vm11 = vmmov %vm13160_vm1  ;;  %v13168_v5 = vld [vmem:[#allocation44_spill] sm:$0xff]  ;;  %v6775_v45 = vunpack.i.h.bf16 %v6773_v22  ;;  %v6774_v59 = vunpack.i.l.bf16 %v6773_v22 }
0x1172   : > { %v6770_v8 = vunpack.i.h.bf16 %v6768_v6  ;;  %v6769_v2 = vunpack.i.l.bf16 %v6768_v6  ;;  %vm13165_vm1 = vmmov %vm13161_vm0  ;;  %vm13169_vm5 = vnez %v13168_v5 }
0x1173   : > { %v2869_v3 = vsel %vm13165_vm1, %v6764_v46, %v6754_v30  ;;  %vm13166_vm15 = vmmov %vm13164_vm11  ;;  %5726 = vmatprep.subr.msk.bf16.mxu0 %vm13169_vm5, %v10516_v62  ;;  %v6785_v30 = vunpack.i.h.bf16 %v6783_v18  ;;  %v6784_v46 = vunpack.i.l.bf16 %v6783_v18  ;;  %vm13177_vm1 = vcmp.lt.s32.totalorder %v7574_v15, 64 }
0x1174   : > { %v2882_v32 = vsel %vm13164_vm11, %v6770_v8, %v6769_v2  ;;  %v2883_v20 = vsel %vm13166_vm15, %v6760_v40, %v6770_v8  ;;  %vm13167_vm0 = vmmov %vm13164_vm11 }
0x1175   : > { %v2885_v6 = vsel %vm13167_vm0, %v6769_v2, %v6759_v53  ;;  %v6793_v24 = vpop.permute.xlu0 %6792  ;;  %v6778_v10 = vpop.permute.xlu1 %6777  ;;  %v10533_v38 = vpack.c.bf16 %v2882_v32, %v2866_v12  ;;  %v10537_v37 = vpack.c.bf16 %v2883_v20, %v2867_v4  ;;  %v13170_v53 = vld [vmem:[#allocation56_spill] sm:$0xff]  ;;  %v13172_v2 = vld [vmem:[#allocation47_spill] sm:$0xff]  ;;  %vm13178_vm0 = vmmov %vm13177_vm1 }
0x1176   : > { %v10535_v63 = vpack.c.bf16 %v2885_v6, %v2869_v3  ;;  %v6780_v40 = vunpack.i.h.bf16 %v6778_v10  ;;  %v6779_v8 = vunpack.i.l.bf16 %v6778_v10  ;;  %vm13171_vm15 = vnez %v13170_v53  ;;  %v13174_v12 = vld [vmem:[#allocation55_spill] sm:$0xff] }
0x1177   : > { %5804 = vmatprep.subr.msk.bf16.mxu1 %vm13171_vm15, %v10533_v38  ;;  %vm13173_vm14 = vnez %v13172_v2  ;;  %vm13175_vm11 = vnez %v13174_v12  ;;  %v2900_v10 = vsel %vm13177_vm1, %v6774_v59, %v6775_v45  ;;  %v2898_v32 = vsel %vm13178_vm0, %v6785_v30, %v6784_v46 }
0x1178   : > { %5729 = vmatpush1.bf16.msk.msra.mxu0 %vm13173_vm14, %v10535_v63  ;;  %5807 = vmatpush1.bf16.msk.msra.mxu1 %vm13175_vm11, %v10537_v37  ;;  %v2916_v22 = vsel %vm13176_vm3, %v6779_v8, %v6780_v40  ;;  %vm13180_vm14 = vmmov %vm13178_vm0  ;;  %v6795_v12 = vunpack.i.h.bf16 %v6793_v24  ;;  %v6794_v53 = vunpack.i.l.bf16 %v6793_v24 }
0x1179   : > { %v6803_v20 = vpop.permute.xlu0 %6802  ;;  %v6788_v3 = vpop.permute.xlu1 %6787  ;;  %v10554_v6 = vpack.c.bf16 %v2916_v22, %v2900_v10  ;;  %v2899_v2 = vsel %vm13180_vm14, %v6775_v45, %v6785_v30  ;;  %vm13181_vm11 = vmmov %vm13176_vm3  ;;  %v13185_v22 = vld [vmem:[#allocation3_spill] sm:$0xff] }
0x117a   : > { %v6790_v18 = vunpack.i.h.bf16 %v6788_v3  ;;  %v6789_v4 = vunpack.i.l.bf16 %v6788_v3  ;;  %vm13182_vm3 = vmmov %vm13178_vm0  ;;  %vm13186_vm0 = vnez %v13185_v22  ;;  %v6804_v13 = vunpack.i.l.bf16 %v6803_v20 }
0x117b   : > { %13179 = vst [vmem:[#allocation50_spill] sm:$0xff] %v10554_v6  ;;  %v2901_v58 = vsel %vm13182_vm3, %v6784_v46, %v6774_v59  ;;  %vm13183_vm1 = vmmov %vm13181_vm11  ;;  %5732 = vmatprep.subr.msk.bf16.mxu0 %vm13186_vm0, %v10554_v6  ;;  %v6805_v46 = vunpack.i.h.bf16 %v6803_v20 }
0x117c   : > { %v2914_v5 = vsel %vm13181_vm11, %v6790_v18, %v6789_v4  ;;  %v2915_v55 = vsel %vm13183_vm1, %v6780_v40, %v6790_v18  ;;  %vm13184_vm15 = vmmov %vm13183_vm1  ;;  %v13188_v40 = vld [vmem:[#allocation12_spill] sm:$0xff]  ;;  %vm13191_vm11 = vcmp.lt.s32.totalorder %v7574_v15, 56 }
0x117d   : > { %v2917_v3 = vsel %vm13184_vm15, %v6789_v4, %v6779_v8  ;;  %v2955_v10 = vpop.permute.xlu0 %2954  ;;  %v6798_v45 = vpop.permute.xlu1 %6797  ;;  %v10569_v30 = vpack.c.bf16 %v2914_v5, %v2898_v32  ;;  %v10573_v49 = vpack.c.bf16 %v2915_v55, %v2899_v2  ;;  %vm13189_vm14 = vnez %v13188_v40  ;;  %v13192_v5 = vld [vmem:[#allocation8_spill] sm:$0xff] }
0x117e   : > { %v10571_v24 = vpack.c.bf16 %v2917_v3, %v2901_v58  ;;  %v6800_v23 = vunpack.i.h.bf16 %v6798_v45  ;;  %v6799_v59 = vunpack.i.l.bf16 %v6798_v45  ;;  %vm13190_vm15 = vcmp.lt.s32.totalorder %v7574_v15, 57  ;;  %v13194_v58 = vld [vmem:[#allocation13_spill] sm:$0xff] }
0x117f   : > { %13187 = vst [vmem:[#allocation58_spill] sm:$0xff] %v10569_v30  ;;  %5810 = vmatprep.subr.msk.bf16.mxu1 %vm13189_vm14, %v10569_v30  ;;  %v2932_v8 = vsel %vm13190_vm15, %v6794_v53, %v6795_v12  ;;  %vm13193_vm3 = vnez %v13192_v5  ;;  %vm13195_vm1 = vnez %v13194_v58  ;;  %v2930_v40 = vsel %vm13190_vm15, %v6805_v46, %v6804_v13 }
0x1180   : > { %v2948_v18 = vsel %vm13191_vm11, %v6799_v59, %v6800_v23  ;;  %5735 = vmatpush1.bf16.msk.msra.mxu0 %vm13193_vm3, %v10571_v24  ;;  %5813 = vmatpush1.bf16.msk.msra.mxu1 %vm13195_vm1, %v10573_v49  ;;  %vm13197_vm11 = vmmov %vm13190_vm15  ;;  %vm13200_vm3 = vcmp.lt.s32.totalorder %v7574_v15, 56 }
0x1181   : > { %v6813_v55 = vpop.permute.xlu0 %6812  ;;  %v6808_v2 = vpop.permute.xlu1 %6807  ;;  %v10588_v20 = vpack.c.bf16 %v2948_v18, %v2932_v8  ;;  %v2931_v22 = vsel %vm13197_vm11, %v6795_v12, %v6805_v46  ;;  %vm13199_vm1 = vmmov %vm13197_vm11 }
0x1182   : > { %v6815_v4 = vunpack.i.h.bf16 %v6813_v55  ;;  %v6814_v32 = vunpack.i.l.bf16 %v6813_v55  ;;  %v6810_v3 = vunpack.i.h.bf16 %v6808_v2  ;;  %v6809_v45 = vunpack.i.l.bf16 %v6808_v2  ;;  %vm13201_vm14 = vmmov %vm13200_vm3 }
0x1183   : > { %13196 = vst [vmem:[#allocation51_spill] sm:$0xff] %v10588_v20  ;;  %5738 = vmatprep.subr.msk.bf16.mxu0 %vm9843_vm12, %v10588_v20  ;;  %v2933_v58 = vsel %vm13199_vm1, %v6804_v13, %v6794_v53  ;;  %vm13202_vm0 = vmmov %vm13200_vm3  ;;  %vm13206_vm1 = vcmp.lt.s32.totalorder %v7574_v15, 9 }
0x1184   : > { %v2946_v8 = vsel %vm13200_vm3, %v6810_v3, %v6809_v45  ;;  %v2947_v18 = vsel %vm13201_vm14, %v6800_v23, %v6810_v3  ;;  %v2949_v55 = vsel %vm13202_vm0, %v6809_v45, %v6799_v59  ;;  %v2980_v13 = vsel %vm13206_vm1, %v6814_v32, %v6815_v4  ;;  %v13209_v59 = vld [vmem:[#allocation19_spill] sm:$0xff]  ;;  %v13215_v45 = vld [vmem:[#allocation5_spill] sm:$0xff] }
0x1185   : > { %v10605_v2 = vpack.c.bf16 %v2949_v55, %v2933_v58  ;;  %v10607_v30 = vpack.c.bf16 %v2947_v18, %v2931_v22  ;;  %v6818_v12 = vpop.permute.xlu0 %6817  ;;  %v2957_v46 = vpop.permute.xlu1 %2956  ;;  %v10609_v5 = vpack.c.bf16 %v2946_v8, %v2930_v40  ;;  %vm13207_vm3 = vcmp.lt.s32.totalorder %v7574_v15, 55  ;;  %v13211_v22 = vld [vmem:[#allocation17_spill] sm:$0xff]  ;;  %v13213_v40 = vld [vmem:[#allocation18_spill] sm:$0xff] }
0x1186   : > { %v6819_v20 = vunpack.i.l.bf16 %v6818_v12  ;;  %v10615_v53 = vsel %vm13207_vm3, %v2955_v10, %v2957_v46  ;;  %vm13210_vm0 = vnez %v13209_v59  ;;  %vm13212_vm14 = vnez %v13211_v22 }
0x1187   : > { %13203 = vst [vmem:[#allocation59_spill] sm:$0xff] %v10605_v2  ;;  %13204 = vst [vmem:[#allocation60_spill] sm:$0xff] %v10607_v30  ;;  %v5742_v23 = vpack.c.bf16 %v2980_v13, %v10615_v53  ;;  %5741 = vmatpush1.bf16.msk.msra.mxu0 %vm13210_vm0, %v10605_v2  ;;  %5816 = vmatprep.subr.msk.bf16.mxu1 %vm13212_vm14, %v10609_v5  ;;  %vm13214_vm15 = vnez %v13213_v40  ;;  %vm13216_vm11 = vnez %v13215_v45  ;;  %v6820_v8 = vunpack.i.h.bf16 %v6818_v12 }
0x1188   : > { %13205 = vst [vmem:[#allocation61_spill] sm:$0xff] %v10609_v5  ;;  %13208 = vst [vmem:[#allocation62_spill] sm:$0xff] %v10615_v53  ;;  %5819 = vmatpush1.bf16.msk.msra.mxu1 %vm13214_vm15, %v10607_v30  ;;  %v2981_v18 = vsel %vm13206_vm1, %v6819_v20, %v6814_v32  ;;  %v13218_v53 = vld [vmem:[#allocation29_spill] sm:$0xff]  ;;  %v13228_v5 = vld [vmem:[#allocation31_spill] sm:$0xff] }
0x1189   : > { %v6823_v58 = vpop.permute.xlu0 %6822  ;;  %v2961_v3 = vpop.permute.xlu1 %2960  ;;  %5744 = vmatprep.subr.msk.bf16.mxu0 %vm13216_vm11, %v5742_v23  ;;  %vm13219_vm0 = vnez %v13218_v53  ;;  %vm13220_vm15 = vmmov %vm13206_vm1 }
0x118a   : > { %v10633_v55 = vsel %vm13207_vm3, %v2961_v3, %v2955_v10  ;;  %v2978_v40 = vsel %vm13220_vm15, %v6820_v8, %v6819_v20  ;;  %vm13221_vm11 = vmmov %vm13206_vm1  ;;  %v6825_v53 = vunpack.i.h.bf16 %v6823_v58  ;;  %v13226_v20 = vld [vmem:[#allocation30_spill] sm:$0xff] }
0x118b   : > { %13217 = vst [vmem:[#allocation63_spill] sm:$0xff] %v10633_v55  ;;  %v5745_v13 = vpack.c.bf16 %v2981_v18, %v10633_v55  ;;  %v2979_v12 = vsel %vm13221_vm11, %v6815_v4, %v6820_v8  ;;  %vm13222_vm14 = vmmov %vm13207_vm3  ;;  %vm13227_vm15 = vnez %v13226_v20  ;;  %vm13230_vm11 = vcmp.lt.s32.totalorder %v7574_v15, 8 }
0x118c   : > { %vm13224_vm1 = vmmov %vm13207_vm3  ;;  %vm13231_vm3 = vcmp.lt.s32.totalorder %v7574_v15, 7 }
0x118d   : > { %v6833_v59 = vpop.permute.xlu0 %6832  ;;  %v2959_v22 = vpop.permute.xlu1 %2958  ;;  %5747 = vmatpush1.bf16.msk.msra.mxu0 %vm13219_vm0, %v5745_v13  ;;  %v6824_v13 = vunpack.i.l.bf16 %v6823_v58  ;;  %vm13234_vm0 = vcmp.lt.s32.totalorder %v7574_v15, 1  ;;  %vm13238_vm12 = vmmov %vm13231_vm3 }
0x118e   : > { %v10644_v32 = vsel %vm13222_vm14, %v2959_v22, %v2961_v3  ;;  %v10648_v10 = vsel %vm13224_vm1, %v2957_v46, %v2959_v22  ;;  %vm13229_vm14 = vnez %v13228_v5  ;;  %v6835_v3 = vunpack.i.h.bf16 %v6833_v59  ;;  %vm13232_vm1 = vmmov %vm13230_vm11 }
0x118f   : > { %13223 = vst [vmem:[#allocation64_spill] sm:$0xff] %v10644_v32  ;;  %13225 = vst [vmem:[#allocation65_spill] sm:$0xff] %v10648_v10  ;;  %v5820_v23 = vpack.c.bf16 %v2978_v40, %v10644_v32  ;;  %v5823_v18 = vpack.c.bf16 %v2979_v12, %v10648_v10  ;;  %v6834_v2 = vunpack.i.l.bf16 %v6833_v59  ;;  %v2996_v40 = vsel %vm13230_vm11, %v6824_v13, %v6825_v53 }
0x1190   : > { %vm13237_vm11 = vmmov %vm13232_vm1 }
0x1191   : > { %v6843_v45 = vpop.permute.xlu0 %6842  ;;  %v6828_v55 = vpop.permute.xlu1 %6827  ;;  %5822 = vmatprep.subr.msk.bf16.mxu1 %vm13227_vm15, %v5820_v23  ;;  %v2997_v5 = vsel %vm13237_vm11, %v6834_v2, %v6824_v13 }
0x1192   : > { %v6830_v4 = vunpack.i.h.bf16 %v6828_v55  ;;  %v6829_v8 = vunpack.i.l.bf16 %v6828_v55  ;;  %5825 = vmatpush1.bf16.msk.msra.mxu1 %vm13229_vm14, %v5823_v18  ;;  %v6845_v46 = vunpack.i.h.bf16 %v6843_v45  ;;  %v6844_v22 = vunpack.i.l.bf16 %v6843_v45  ;;  %vm13233_vm14 = vmmov %vm13232_vm1  ;;  %v13235_v45 = vld [vmem:[#allocation28_spill] sm:$0xff] }
0x1193   : > { %v2994_v55 = vsel %vm13232_vm1, %v6835_v3, %v6834_v2  ;;  %v2995_v18 = vsel %vm13233_vm14, %v6825_v53, %v6835_v3  ;;  %vm13236_vm15 = vnez %v13235_v45  ;;  %vm13239_vm1 = vmmov %vm13231_vm3 }
0x1194   : > { %v3012_v58 = vsel %vm13231_vm3, %v6829_v8, %v6830_v4  ;;  %v3028_v59 = vsel %vm13234_vm0, %v6844_v22, %v6845_v46  ;;  %vm13240_vm0 = vnez %v12955_v54 }
0x1195   : > { %v5748_v12 = vpack.c.bf16 %v3012_v58, %v2996_v40  ;;  %v6853_v32 = vpop.permute.xlu0 %6852  ;;  %v6838_v10 = vpop.permute.xlu1 %6837  ;;  %v5754_v45 = vpack.c.bf16 %v10414_v27, %v3028_v59 }
0x1196   : > { %v6840_v20 = vunpack.i.h.bf16 %v6838_v10  ;;  %v6839_v23 = vunpack.i.l.bf16 %v6838_v10  ;;  %v6855_v2 = vunpack.i.h.bf16 %v6853_v32 }
0x1197   : > { %5750 = vmatprep.subr.msk.bf16.mxu0 %vm13236_vm15, %v5748_v12 }
0x1198   : > { %v3010_v40 = vsel %vm13231_vm3, %v6840_v20, %v6839_v23  ;;  %v3011_v10 = vsel %vm13238_vm12, %v6830_v4, %v6840_v20  ;;  %v3013_v58 = vsel %vm13239_vm1, %v6839_v23, %v6829_v8  ;;  %vm13241_vm12 = vcmp.lt.s32.totalorder %v7574_v15, 1 }
0x1199   : > { %v5751_v11 = vpack.c.bf16 %v3013_v58, %v2997_v5  ;;  %v5826_v53 = vpack.c.bf16 %v3010_v40, %v2994_v55  ;;  %v5829_v3 = vpack.c.bf16 %v3011_v10, %v2995_v18  ;;  %v6863_v30 = vpop.permute.xlu0 %6862  ;;  %v6848_v0 = vpop.permute.xlu1 %6847  ;;  %v6854_v5 = vunpack.i.l.bf16 %v6853_v32  ;;  %vm13242_vm14 = vmmov %vm13241_vm12 }
0x119a   : > { %v6850_v12 = vunpack.i.h.bf16 %v6848_v0  ;;  %v6849_v6 = vunpack.i.l.bf16 %v6848_v0  ;;  %vm13243_vm11 = vmmov %vm13241_vm12  ;;  %vm13244_vm3 = vnez %v12962_v57  ;;  %v6865_v23 = vunpack.i.h.bf16 %v6863_v30 }
0x119b   : > { %5753 = vmatpush1.bf16.msk.msra.mxu0 %vm9989_vm13, %v5751_v11  ;;  %5828 = vmatprep.subr.msk.bf16.mxu1 %vm13240_vm0, %v5826_v53  ;;  %v6864_v55 = vunpack.i.l.bf16 %v6863_v30  ;;  %vm13245_vm1 = vnez %v12978_v16 }
0x119c   : > { %v3027_v13 = vsel %vm13241_vm12, %v6845_v46, %v6850_v12  ;;  %5756 = vmatprep.subr.msk.bf16.mxu0 %vm10055_vm7, %v5754_v45  ;;  %v3026_v27 = vsel %vm13242_vm14, %v6850_v12, %v6849_v6  ;;  %v3029_v0 = vsel %vm13243_vm11, %v6849_v6, %v6844_v22  ;;  %5831 = vmatpush1.bf16.msk.msra.mxu1 %vm13244_vm3, %v5829_v3  ;;  %vm13247_vm14 = vcmp.lt.s32.totalorder %v7574_v15, 127 }
0x119d   : > { %v5835_v20 = vpack.c.bf16 %v10416_v56, %v3027_v13  ;;  %v6873_v11 = vpop.permute.xlu0 %6872  ;;  %v6858_v4 = vpop.permute.xlu1 %6857  ;;  %v5757_v8 = vpack.c.bf16 %v10412_v14, %v3029_v0  ;;  %v5832_v46 = vpack.c.bf16 %v10418_v43, %v3026_v27  ;;  %vm13246_vm12 = vnez %v12966_v51  ;;  %vm13250_vm3 = vmmov %vm13247_vm14 }
0x119e   : > { %v6860_v32 = vunpack.i.h.bf16 %v6858_v4  ;;  %v6859_v18 = vunpack.i.l.bf16 %v6858_v4  ;;  %v3043_v56 = vsel %vm13247_vm14, %v6854_v5, %v6855_v2  ;;  %vm13248_vm11 = vcmp.lt.s32.totalorder %v7574_v15, 121 }
0x119f   : > { %5759 = vmatpush1.bf16.msk.msra.mxu0 %vm13245_vm1, %v5757_v8  ;;  %5834 = vmatprep.subr.msk.bf16.mxu1 %vm13246_vm12, %v5832_v46  ;;  %vm13249_vm7 = vnez %v12972_v50  ;;  %v3042_v59 = vsel %vm13250_vm3, %v6855_v2, %v6865_v23  ;;  %vm13251_vm1 = vmmov %vm13250_vm3  ;;  %v6875_v58 = vunpack.i.h.bf16 %v6873_v11  ;;  %v6874_v53 = vunpack.i.l.bf16 %v6873_v11 }
0x11a0   : > { %v3059_v6 = vsel %vm13248_vm11, %v6859_v18, %v6860_v32  ;;  %5837 = vmatpush1.bf16.msk.msra.mxu1 %vm13249_vm7, %v5835_v20  ;;  %v3044_v45 = vsel %vm13251_vm1, %v6864_v55, %v6854_v5  ;;  %vm13252_vm12 = vmmov %vm13251_vm1  ;;  %vm13257_vm1 = vcmp.lt.s32.totalorder %v7574_v15, 120 }
0x11a1   : > { %v6883_v14 = vpop.permute.xlu0 %6882  ;;  %v6868_v43 = vpop.permute.xlu1 %6867  ;;  %v5760_v30 = vpack.c.bf16 %v3059_v6, %v3043_v56  ;;  %v3045_v40 = vsel %vm13252_vm12, %v6865_v23, %v6864_v55  ;;  %vm13253_vm14 = vmmov %vm13248_vm11  ;;  %vm13254_vm11 = vnez %v12984_v39  ;;  %v3075_v46 = vsel %vm13257_vm1, %v6874_v53, %v6875_v58 }
0x11a2   : > { %v6870_v22 = vunpack.i.h.bf16 %v6868_v43  ;;  %v6869_v10 = vunpack.i.l.bf16 %v6868_v43  ;;  %v6885_v3 = vunpack.i.h.bf16 %v6883_v14  ;;  %v6884_v13 = vunpack.i.l.bf16 %v6883_v14  ;;  %vm13255_vm7 = vmmov %vm13253_vm14 }
0x11a3   : > { %5762 = vmatprep.subr.msk.bf16.mxu0 %vm13254_vm11, %v5760_v30  ;;  %vm13256_vm3 = vmmov %vm13255_vm7  ;;  %vm13258_vm12 = vcmp.lt.s32.totalorder %v7574_v15, 119  ;;  %vm13262_vm11 = vnez %v13002_v36 }
0x11a4   : > { %v3058_v12 = vsel %vm13253_vm14, %v6860_v32, %v6870_v22  ;;  %v3060_v2 = vsel %vm13255_vm7, %v6869_v10, %v6859_v18  ;;  %v3061_v5 = vsel %vm13256_vm3, %v6870_v22, %v6869_v10  ;;  %vm13259_vm14 = vnez %v12994_v25  ;;  %vm13261_vm3 = vmmov %vm13258_vm12  ;;  %v13288_v10 = vld [vmem:[#allocation36_spill] sm:$0xff] }
0x11a5   : > { %v5841_v20 = vpack.c.bf16 %v3058_v12, %v3042_v59  ;;  %v6878_v27 = vpop.permute.xlu1 %6877  ;;  %v5763_v0 = vpack.c.bf16 %v3060_v2, %v3044_v45  ;;  %v5838_v4 = vpack.c.bf16 %v3061_v5, %v3045_v40  ;;  %v3089_v23 = vpop.permute.xlu0 %3088  ;;  %vm13260_vm7 = vnez %v12998_v60  ;;  %vm13263_vm13 = vmmov %vm13257_vm1  ;;  %v13296_v12 = vld [vmem:[#allocation63_spill] sm:$0xff]  ;;  %v4807_v2 = vld [vmem:[%s11637_s4 + $0x10] sm:$0xff] }
0x11a6   : > { %v6880_v8 = vunpack.i.h.bf16 %v6878_v27  ;;  %v6879_v11 = vunpack.i.l.bf16 %v6878_v27  ;;  %v3076_v6 = vsel %vm13257_vm1, %v6884_v13, %v6874_v53  ;;  %v3077_v14 = vsel %vm13263_vm13, %v6885_v3, %v6884_v13  ;;  %v13293_v53 = vld [vmem:[#allocation61_spill] sm:$0xff]  ;;  %v13297_v13 = vld [vmem:[#allocation26_spill] sm:$0xff]  ;;  %v13302_v27 = vld [vmem:[#allocation64_spill] sm:$0xff] }
0x11a7   : > { %5765 = vmatpush1.bf16.msk.msra.mxu0 %vm13259_vm14, %v5763_v0  ;;  %5840 = vmatprep.subr.msk.bf16.mxu1 %vm13260_vm7, %v5838_v4  ;;  %vm13265_vm14 = vmmov %vm13261_vm3  ;;  %vm13268_vm13 = vnez %v13022_v35  ;;  %v13299_v5 = vld [vmem:[#allocation62_spill] sm:$0xff]  ;;  %v13303_v0 = vld [vmem:[#allocation32_spill] sm:$0xff]  ;;  %v13305_v4 = vmov 0.0  }
0x11a8   : > { %v3091_v55 = vsel %vm13258_vm12, %v6879_v11, %v6880_v8  ;;  %v3090_v32 = vsel %vm13261_vm3, %v6880_v8, %v3089_v23  ;;  %5843 = vmatpush1.bf16.msk.msra.mxu1 %vm13262_vm11, %v5841_v20  ;;  %vm13264_vm12 = vmmov %vm13261_vm3  ;;  %vm13267_vm3 = vnez %v13008_v17  ;;  %v13300_v20 = vld [vmem:[#allocation35_spill] sm:$0xff]  ;;  %v13614_v17 = vld [vmem:[#allocation38_spill] sm:$0xff] }
0x11a9   : > { %v5766_v18 = vpack.c.bf16 %v3091_v55, %v3075_v46  ;;  %v3083_v56 = vpop.permute.xlu1 %3082  ;;  %vm13266_vm7 = vmmov %vm13257_vm1  ;;  %vm13269_vm1 = vnez %v13018_v29 }
0x11aa   : > { %v3092_v43 = vsel %vm13264_vm12, %v3083_v56, %v6879_v11  ;;  %v3093_v30 = vsel %vm13265_vm14, %v3089_v23, %v3083_v56  ;;  %v3074_v22 = vsel %vm13266_vm7, %v6875_v58, %v6885_v3  ;;  %vm13270_vm14 = vnez %v13029_v31  ;;  %v13291_v58 = vld [vmem:[#allocation25_spill] sm:$0xff] }
0x11ab   : > { %v5769_v59 = vpack.c.bf16 %v3092_v43, %v3076_v6  ;;  %v5844_v45 = vpack.c.bf16 %v3093_v30, %v3077_v14  ;;  %5768 = vmatprep.subr.msk.bf16.mxu0 %vm13267_vm3, %v5766_v18  ;;  %v5847_v40 = vpack.c.bf16 %v3090_v32, %v3074_v22  ;;  %vm13271_vm7 = vnez %v13037_v34  ;;  %v13294_v3 = vld [vmem:[#allocation37_spill] sm:$0xff]  ;;  %v13307_v22 = vld [vmem:[#allocation43_spill] sm:$0xff] }
0x11ac   : > { %vm13272_vm12 = vnez %v13033_v61 }
0x11ad   : > { %5771 = vmatpush1.bf16.msk.msra.mxu0 %vm10147_vm9, %v5769_v59  ;;  %5846 = vmatprep.subr.msk.bf16.mxu1 %vm13268_vm13, %v5844_v45  ;;  %vm13273_vm9 = vnez %v13041_v33 }
0x11ae   : > { %5774 = vmatprep.subr.msk.bf16.mxu0 %vm13269_vm1, %v10501_v41  ;;  %5849 = vmatpush1.bf16.msk.msra.mxu1 %vm13270_vm14, %v5847_v40  ;;  %vm13274_vm1 = vnez %v13053_v19  ;;  %vm13275_vm14 = vnez %v13049_v52  ;;  %v13282_v41 = vld [vmem:[#allocation39_spill] sm:$0xff] }
0x11af   : > { %5852 = vmatprep.subr.msk.bf16.mxu1 %vm13271_vm7, %v10499_v26  ;;  %vm13276_vm7 = vnez %v13057_v44 }
0x11b1   : > { %5777 = vmatpush1.bf16.msk.msra.mxu0 %vm13272_vm12, %v10480_v28  ;;  %v13281_v28 = vld [vmem:[#allocation58_spill] sm:$0xff] }
0x11b2   : > { %5780 = vmatprep.subr.msk.bf16.mxu0 %vm13273_vm9, %v10537_v37  ;;  %5855 = vmatpush1.bf16.msk.msra.mxu1 %vm10226_vm2, %v10497_v47  ;;  %v13277_v37 = vld [vmem:[#allocation50_spill] sm:$0xff] }
0x11b3   : > { %5858 = vmatprep.subr.msk.bf16.mxu1 %vm13274_vm1, %v10535_v63  ;;  %v13279_v63 = vld [vmem:[#allocation60_spill] sm:$0xff] }
0x11b5   : > { %5783 = vmatpush1.bf16.msk.msra.mxu0 %vm13275_vm14, %v10516_v62  ;;  %vm13283_vm14 = vnez %v13282_v41  ;;  %v13285_v62 = vld [vmem:[#allocation40_spill] sm:$0xff] }
0x11b6   : > { %5786 = vmatprep.subr.msk.bf16.mxu0 %vm13276_vm7, %v10573_v49  ;;  %5861 = vmatpush1.bf16.msk.msra.mxu1 %vm10270_vm8, %v10533_v38  ;;  %v13284_v49 = vld [vmem:[#allocation59_spill] sm:$0xff]  ;;  %vm13286_vm7 = vnez %v13285_v62  ;;  %vm13289_vm8 = vnez %v13288_v10 }
0x11b7   : > { %5864 = vmatprep.subr.msk.bf16.mxu1 %vm10295_vm6, %v10571_v24  ;;  %v13287_v38 = vld [vmem:[#allocation51_spill] sm:$0xff]  ;;  %v13290_v24 = vld [vmem:[#allocation65_spill] sm:$0xff]  ;;  %vm13292_vm6 = vnez %v13291_v58 }
0x11b8   : > { %v13353_v10 = vld [vmem:[#allocation3_spill] sm:$0xff] }
0x11b9   : > { %5789 = vmatpush1.bf16.msk.msra.mxu0 %vm10284_vm10, %v13277_v37  ;;  %vm13295_vm10 = vnez %v13294_v3  ;;  %v13373_v62 = vld [vmem:[#allocation15_spill] sm:$0xff] }
0x11ba   : > { %5792 = vmatprep.subr.msk.bf16.mxu0 %vm10303_vm4, %v13279_v63  ;;  %5867 = vmatpush1.bf16.msk.msra.mxu1 %vm13283_vm14, %v13281_v28  ;;  %vm13298_vm4 = vnez %v13297_v13 }
0x11bb   : > { %5870 = vmatprep.subr.msk.bf16.mxu1 %vm13286_vm7, %v13284_v49  ;;  %vm13301_vm7 = vnez %v13300_v20 }
0x11bd   : > { %5795 = vmatpush1.bf16.msk.msra.mxu0 %vm13289_vm8, %v13287_v38  ;;  %vm13317_vm8 = vcmp.lt.s32.totalorder %v7574_v15, 72 }
0x11be   : > { %4859 = vmatprep.subr.msk.mxu0 %vm13292_vm6, %v13290_v24  ;;  %5873 = vmatpush1.bf16.msk.msra.mxu1 %vm13295_vm10, %v13293_v53  ;;  %vm13304_vm6 = vnez %v13303_v0  ;;  %vm13306_vm10 = vmmov 0   ;;  %vm13318_vm14 = vmmov %vm13317_vm8 }
0x11bf   : > { %4912 = vmatprep.subr.msk.mxu1 %vm13298_vm4, %v13296_v12  ;;  %vm13319_vm1 = vmmov %vm13317_vm8 }
0x11c1   : > { %4860 = vmatpush1.msk.msra.mxu0 %vm13301_vm7, %v13299_v5  ;;  %vm13313_vm7 = vcmp.lt.s32.totalorder %v7574_v15, 73 }
0x11c2   : > { %3202 = vmatmul.mubr.f32.vlgmr.msra.gmra.mrb[14].mxu0 %v4807_v2  ;;  %4913 = vmatpush1.msk.msra.mxu1 %vm13304_vm6, %v13302_v27  ;;  %vm13308_vm6 = vcmask 64512   ;;  %vm13314_vm4 = vmmov %vm13313_vm7 }
0x11c3   : > { %3273 = vmatmul.mubr.f32.vlgmr.msra.gmra.mrb[14].mxu1 %v4807_v2  ;;  %5192 = vmatprep.subr.mxu0 %v13305_v4 }
0x11c4   : > { %5194 = vmatprep.mubr.msk.f32.mxu0 %vm13306_vm10, %v13305_v4  ;;  %5197 = vmatprep.subr.mxu1 %v13305_v4 }
0x11c5   : > { %5199 = vmatprep.mubr.msk.f32.mxu1 %vm13306_vm10, %v13305_v4  ;;  %v10822_v4 = vld [vmem:[%s11638_s5] sm:$0xff]  ;;  %vm13310_vm10 = vmmov %vm13308_vm6 }
0x11c6   : > { %13309 = vst [vmem:[#allocation66_spill] sm:$0xff] %v10822_v4 }
0x1295   : > { %v3203_v8 = vpop.f32.mrb[14].mxu0 }
0x1296   : > { %v3279_v11 = vmax.f32 %v3203_v8, 0.0  ;;  %v3205_v46 = vpop.f32.mrb[15].mxu0  ;;  %v3274_v23 = vpop.f32.mrb[14].mxu1 }
0x1297   : > { %v3280_v55 = vmax.f32 %v3205_v46, 0.0  ;;  %v3281_v32 = vmax.f32 %v3274_v23, 0.0  ;;  %v3276_v18 = vpop.f32.mrb[15].mxu1 }
0x1298   : > { %v3282_v14 = vmax.f32 %v3276_v18, 0.0 }
0x1299   : > { %v3283_v56 = vadd.f32 %v3280_v55, %v3279_v11 }
0x129b   : > { %v3284_v6 = vadd.f32 %v3283_v56, %v3281_v32 }
0x129d   : > { %v3285_v43 = vadd.f32 %v3284_v6, %v3282_v14 }
0x129f   : > { %3286 = vadd.xlane.f32.xlu1 %v3285_v43 }
0x12b0   : > { %3448 = vrot.lane.b32.xlu1 %v10822_v4, %s7257_s30 }
0x132c   : > { %v3287_v30 = vpop.xlane.xlu1 %3286 }
0x132d   : > { %5193 = vmatpush3.msra.mxu0 %v3287_v30 }
0x132e   : > { %5195 = vmatmul.mubr.msk.f32.vlgmr.msra.gmra.mrb[16].mxu0 %vm13308_vm6, %v13307_v22  ;;  %vm13311_vm6 = vcmask 719872  }
0x1401   : > { %v3354_v59 = vpop.f32.mrb[16].mxu0 }
0x1402   : > { %3360 = vperm.xlu0 %6729, %v3354_v59   ;;  %v5196_v45 = vpop.f32.mrb[17].mxu0 }
0x1481   : > { %v3361_v40 = vpop.permute.xlu0 %3360 }
0x1482   : > { %v3363_v37 = vsub.f32 %v3279_v11, %v3361_v40  ;;  %v3364_v63 = vsub.f32 %v3280_v55, %v3361_v40  ;;  %v3365_v28 = vsub.f32 %v3281_v32, %v3361_v40  ;;  %v3366_v49 = vsub.f32 %v3282_v14, %v3361_v40  ;;  %v3449_v32 = vpop.permute.xlu1 %3448 }
0x1483   : > { %v7258_v11 = vmov 7  }
0x1484   : > { %v3367_v38 = vmul.f32 %v3363_v37, %v3363_v37  ;;  %v3368_v24 = vmul.f32 %v3364_v63, %v3364_v63  ;;  %v3369_v53 = vmul.f32 %v3365_v28, %v3365_v28  ;;  %v3370_v2 = vmul.f32 %v3366_v49, %v3366_v49  ;;  %6886 = vset.pattern.permute.xlu1 %v7258_v11 }
0x1485   : > { %3462 = vperm.xlu1 %6886, %v10822_v4  }
0x1486   : > { %v3371_v12 = vadd.f32 %v3368_v24, %v3367_v38 }
0x1488   : > { %v3372_v5 = vadd.f32 %v3371_v12, %v3369_v53 }
0x148a   : > { %v3373_v27 = vadd.f32 %v3372_v5, %v3370_v2 }
0x148c   : > { %3374 = vadd.xlane.f32.xlu0 %v3373_v27 }
0x1504   : > { %v3463_v14 = vpop.permute.xlu1 %3462 }
0x1519   : > { %v3375_v8 = vpop.xlane.xlu0 %3374 }
0x151a   : > { %5198 = vmatpush3.msra.mxu1 %v3375_v8 }
0x151b   : > { %5200 = vmatmul.mubr.msk.f32.vlgmr.msra.gmra.mrb[16].mxu1 %vm13310_vm10, %v13307_v22  ;;  %vm13312_vm10 = vmmov %vm13311_vm6 }
0x15ee   : > { %v3442_v46 = vpop.f32.mrb[16].mxu1 }
0x15ef   : > { %v3446_v23 = vadd.f32 1e-05, %v3442_v46  ;;  %v5201_v55 = vpop.f32.mrb[17].mxu1 }
0x15f1   : > { %7217 = vrsqrt.f32 %v3446_v23 }
0x15fb   : > { %v7218_v18 = vpop.eup %7217 }
0x15fc   : > { %v3451_v56 = vmul.f32 %v7218_v18, %v3449_v32 }
0x15fe   : > { %3454 = vperm.xlu0 %6729, %v3451_v56  }
0x167d   : > { %v3455_v6 = vpop.permute.xlu0 %3454 }
0x167e   : > { %v3457_v43 = vmul.f32 %v3455_v6, %v3363_v37  ;;  %v3458_v30 = vmul.f32 %v3455_v6, %v3364_v63  ;;  %v3459_v59 = vmul.f32 %v3455_v6, %v3365_v28  ;;  %v3460_v45 = vmul.f32 %v3455_v6, %v3366_v49  ;;  %v4918_v37 = vld [vmem:[%s11637_s4 + $0x28] sm:$0xff] }
0x167f   : > { %4971 = vmatprep.mubr.msk.f32.mxu0 %vm13311_vm6, %v4918_v37  ;;  %5024 = vmatprep.mubr.msk.f32.mxu1 %vm13312_vm10, %v4918_v37  ;;  %vm13315_vm6 = vmmov %vm13314_vm4 }
0x1680   : > { %v10828_v40 = vadd.f32 %v3463_v14, %v3457_v43  ;;  %v10830_v22 = vadd.f32 %v3463_v14, %v3458_v30  ;;  %v10832_v38 = vadd.f32 %v3463_v14, %v3459_v59  ;;  %v10834_v24 = vadd.f32 %v3463_v14, %v3460_v45  ;;  %vm13316_vm10 = vmmov %vm13314_vm4 }
0x1682   : > { %v6892_v53 = vpack.i.bf16 %v10834_v24, %v10832_v38  ;;  %v6887_v12 = vpack.i.bf16 %v10830_v22, %v10828_v40 }
0x1684   : > { %6893 = vrot.lane.b32.xlu0 %v6892_v53, %s7233_s7  ;;  %6888 = vrot.lane.b32.xlu1 %v6887_v12, %s7233_s7 }
0x1688   : > { %6903 = vrot.lane.b32.xlu0 %v6892_v53, %s7234_s8  ;;  %6898 = vrot.lane.b32.xlu1 %v6887_v12, %s7234_s8 }
0x168c   : > { %6913 = vrot.lane.b32.xlu0 %v6892_v53, %s7235_s9  ;;  %6908 = vrot.lane.b32.xlu1 %v6887_v12, %s7235_s9 }
0x1690   : > { %6923 = vrot.lane.b32.xlu0 %v6892_v53, %s7236_s10  ;;  %6918 = vrot.lane.b32.xlu1 %v6887_v12, %s7236_s10 }
0x1694   : > { %6933 = vrot.lane.b32.xlu0 %v6892_v53, %s7237_s11  ;;  %6928 = vrot.lane.b32.xlu1 %v6887_v12, %s7237_s11 }
0x1698   : > { %6943 = vrot.lane.b32.xlu0 %v6892_v53, %s7238_s12  ;;  %6938 = vrot.lane.b32.xlu1 %v6887_v12, %s7238_s12 }
0x169c   : > { %6953 = vrot.lane.b32.xlu0 %v6892_v53, %s7239_s13  ;;  %6948 = vrot.lane.b32.xlu1 %v6887_v12, %s7239_s13 }
0x16a0   : > { %6963 = vrot.lane.b32.xlu0 %v6892_v53, %s7240_s14  ;;  %6958 = vrot.lane.b32.xlu1 %v6887_v12, %s7240_s14 }
0x16a4   : > { %3602 = vrot.lane.b32.xlu0 %v10830_v22, %s7241_s15  ;;  %3600 = vrot.lane.b32.xlu1 %v10828_v40, %s7241_s15 }
0x16a8   : > { %3606 = vrot.lane.b32.xlu0 %v10834_v24, %s7241_s15  ;;  %3604 = vrot.lane.b32.xlu1 %v10832_v38, %s7241_s15 }
0x16ac   : > { %6973 = vrot.lane.b32.xlu0 %v6892_v53, %s7242_s16  ;;  %6968 = vrot.lane.b32.xlu1 %v6887_v12, %s7242_s16 }
0x16b0   : > { %6983 = vrot.lane.b32.xlu0 %v6892_v53, %s7243_s18  ;;  %6978 = vrot.lane.b32.xlu1 %v6887_v12, %s7243_s18 }
0x16b4   : > { %6993 = vrot.lane.b32.xlu0 %v6892_v53, %s7244_s19  ;;  %6988 = vrot.lane.b32.xlu1 %v6887_v12, %s7244_s19 }
0x16b8   : > { %7003 = vrot.lane.b32.xlu0 %v6892_v53, %s7245_s20  ;;  %6998 = vrot.lane.b32.xlu1 %v6887_v12, %s7245_s20 }
0x16bc   : > { %7013 = vrot.lane.b32.xlu0 %v6892_v53, %s7246_s23  ;;  %7008 = vrot.lane.b32.xlu1 %v6887_v12, %s7246_s23 }
0x16c0   : > { %7023 = vrot.lane.b32.xlu0 %v6892_v53, %s7247_s24  ;;  %7018 = vrot.lane.b32.xlu1 %v6887_v12, %s7247_s24 }
0x16c4   : > { %7033 = vrot.lane.b32.xlu0 %v6892_v53, %s7248_s27  ;;  %7028 = vrot.lane.b32.xlu1 %v6887_v12, %s7248_s27 }
0x16c8   : > { %7043 = vrot.lane.b32.xlu0 %v6892_v53, %s7249_s28  ;;  %7038 = vrot.lane.b32.xlu1 %v6887_v12, %s7249_s28 }
0x16f6   : > { %v6894_v63 = vpop.permute.xlu0 %6893  ;;  %v6889_v28 = vpop.permute.xlu1 %6888 }
0x16f7   : > { %v6896_v49 = vunpack.i.h.bf16 %v6894_v63  ;;  %v6895_v2 = vunpack.i.l.bf16 %v6894_v63  ;;  %v6891_v5 = vunpack.i.h.bf16 %v6889_v28  ;;  %v6890_v27 = vunpack.i.l.bf16 %v6889_v28 }
0x16f9   : > { %v3480_v18 = vsel %vm13313_vm7, %v6895_v2, %v6896_v49  ;;  %v3481_v56 = vsel %vm13314_vm4, %v6891_v5, %v6895_v2  ;;  %v3482_v6 = vsel %vm13315_vm6, %v6890_v27, %v6891_v5  ;;  %v3483_v14 = vsel %vm13316_vm10, %v6896_v49, %v6890_v27  ;;  %vm13320_vm7 = vmmov %vm13319_vm1 }
0x16fa   : > { %v6904_v8 = vpop.permute.xlu0 %6903  ;;  %v6899_v11 = vpop.permute.xlu1 %6898  ;;  %vm13329_vm6 = vcmp.lt.s32.totalorder %v7574_v15, 71 }
0x16fb   : > { %v6906_v46 = vunpack.i.h.bf16 %v6904_v8  ;;  %v6905_v23 = vunpack.i.l.bf16 %v6904_v8  ;;  %v6901_v55 = vunpack.i.h.bf16 %v6899_v11  ;;  %v6900_v32 = vunpack.i.l.bf16 %v6899_v11  ;;  %v13321_v11 = vld [vmem:[#allocation41_spill] sm:$0xff]  ;;  %vm13330_vm10 = vmmov %vm13329_vm6 }
0x16fd   : > { %v3496_v43 = vsel %vm13317_vm8, %v6905_v23, %v6906_v46  ;;  %v3497_v30 = vsel %vm13318_vm14, %v6901_v55, %v6905_v23  ;;  %v3498_v59 = vsel %vm13319_vm1, %v6900_v32, %v6901_v55  ;;  %v3499_v45 = vsel %vm13320_vm7, %v6906_v46, %v6900_v32  ;;  %v13323_v46 = vld [vmem:[#allocation42_spill] sm:$0xff]  ;;  %v13327_v55 = vld [vmem:[#allocation48_spill] sm:$0xff]  ;;  %vm13331_vm7 = vmmov %vm13329_vm6 }
0x16fe   : > { %v10901_v53 = vpack.c.bf16 %v3496_v43, %v3480_v18  ;;  %v10903_v12 = vpack.c.bf16 %v3498_v59, %v3482_v6  ;;  %v10905_v37 = vpack.c.bf16 %v3499_v45, %v3483_v14  ;;  %v10907_v63 = vpack.c.bf16 %v3497_v30, %v3481_v56  ;;  %v6914_v28 = vpop.permute.xlu0 %6913  ;;  %v6909_v49 = vpop.permute.xlu1 %6908  ;;  %v13325_v23 = vld [vmem:[#allocation46_spill] sm:$0xff] }
0x16ff   : > { %v6916_v2 = vunpack.i.h.bf16 %v6914_v28  ;;  %v6915_v5 = vunpack.i.l.bf16 %v6914_v28  ;;  %v6911_v27 = vunpack.i.h.bf16 %v6909_v49  ;;  %v6910_v8 = vunpack.i.l.bf16 %v6909_v49 }
0x1700   : > { %vm13322_vm8 = vnez %v13321_v11  ;;  %vm13324_vm4 = vnez %v13323_v46  ;;  %vm13326_vm1 = vnez %v13325_v23  ;;  %vm13328_vm14 = vnez %v13327_v55 }
0x1701   : > { %5876 = vmatprep.subr.msk.bf16.mxu0 %vm13322_vm8, %v10903_v12  ;;  %5954 = vmatprep.subr.msk.bf16.mxu1 %vm13324_vm4, %v10901_v53  ;;  %v3512_v30 = vsel %vm13329_vm6, %v6915_v5, %v6916_v2  ;;  %v3513_v59 = vsel %vm13330_vm10, %v6911_v27, %v6915_v5  ;;  %v3514_v45 = vsel %vm13331_vm7, %v6910_v8, %v6911_v27 }
0x1702   : > { %5879 = vmatpush1.bf16.msk.msra.mxu0 %vm13326_vm1, %v10905_v37  ;;  %5957 = vmatpush1.bf16.msk.msra.mxu1 %vm13328_vm14, %v10907_v63  ;;  %v6924_v32 = vpop.permute.xlu0 %6923  ;;  %v6919_v18 = vpop.permute.xlu1 %6918  ;;  %vm13332_vm1 = vmmov %vm13329_vm6  ;;  %vm13333_vm14 = vcmp.lt.s32.totalorder %v7574_v15, 65 }
0x1703   : > { %v6926_v56 = vunpack.i.h.bf16 %v6924_v32  ;;  %v6925_v6 = vunpack.i.l.bf16 %v6924_v32  ;;  %v6921_v14 = vunpack.i.h.bf16 %v6919_v18  ;;  %v6920_v43 = vunpack.i.l.bf16 %v6919_v18  ;;  %vm13334_vm8 = vmmov %vm13333_vm14 }
0x1704   : > { %v3515_v28 = vsel %vm13332_vm1, %v6916_v2, %v6910_v8  ;;  %vm13335_vm4 = vmmov %vm13334_vm8 }
0x1705   : > { %v3528_v49 = vsel %vm13333_vm14, %v6925_v6, %v6926_v56  ;;  %v3529_v32 = vsel %vm13334_vm8, %v6921_v14, %v6925_v6  ;;  %v3530_v18 = vsel %vm13335_vm4, %v6920_v43, %v6921_v14  ;;  %vm13336_vm6 = vmmov %vm13335_vm4  ;;  %v13340_v14 = vld [vmem:[#allocation47_spill] sm:$0xff]  ;;  %vm13344_vm14 = vcmp.lt.s32.totalorder %v7574_v15, 64 }
0x1706   : > { %v3531_v23 = vsel %vm13336_vm6, %v6926_v56, %v6920_v43  ;;  %v10937_v55 = vpack.c.bf16 %v3528_v49, %v3512_v30  ;;  %v10939_v5 = vpack.c.bf16 %v3530_v18, %v3514_v45  ;;  %v10943_v11 = vpack.c.bf16 %v3529_v32, %v3513_v59  ;;  %v6934_v2 = vpop.permute.xlu0 %6933  ;;  %v6929_v8 = vpop.permute.xlu1 %6928  ;;  %v13338_v56 = vld [vmem:[#allocation56_spill] sm:$0xff]  ;;  %vm13345_vm10 = vmmov %vm13344_vm14 }
0x1707   : > { %v10941_v27 = vpack.c.bf16 %v3531_v23, %v3515_v28  ;;  %v6936_v46 = vunpack.i.h.bf16 %v6934_v2  ;;  %v6935_v4 = vunpack.i.l.bf16 %v6934_v2  ;;  %v6931_v0 = vunpack.i.h.bf16 %v6929_v8  ;;  %v13342_v23 = vld [vmem:[#allocation55_spill] sm:$0xff]  ;;  %vm13346_vm7 = vmmov %vm13345_vm10 }
0x1708   : > { %v6930_v6 = vunpack.i.l.bf16 %v6929_v8  ;;  %5882 = vmatprep.subr.msk.bf16.mxu0 %vm13169_vm5, %v10939_v5  ;;  %vm13339_vm8 = vnez %v13338_v56  ;;  %vm13341_vm4 = vnez %v13340_v14  ;;  %vm13343_vm1 = vnez %v13342_v23  ;;  %vm13347_vm6 = vmmov %vm13346_vm7 }
0x1709   : > { %5960 = vmatprep.subr.msk.bf16.mxu1 %vm13339_vm8, %v10937_v55  ;;  %5885 = vmatpush1.bf16.msk.msra.mxu0 %vm13341_vm4, %v10941_v27  ;;  %v3544_v32 = vsel %vm13344_vm14, %v6935_v4, %v6936_v46  ;;  %v3545_v18 = vsel %vm13345_vm10, %v6931_v0, %v6935_v4  ;;  %vm13348_vm4 = vcmp.lt.s32.totalorder %v7574_v15, 63 }
0x170a   : > { %5963 = vmatpush1.bf16.msk.msra.mxu1 %vm13343_vm1, %v10943_v11  ;;  %v6944_v43 = vpop.permute.xlu0 %6943  ;;  %v6939_v30 = vpop.permute.xlu1 %6938  ;;  %v3546_v2 = vsel %vm13346_vm7, %v6930_v6, %v6931_v0  ;;  %v3547_v8 = vsel %vm13347_vm6, %v6936_v46, %v6930_v6  ;;  %vm13349_vm1 = vmmov %vm13348_vm4  ;;  %vm13361_vm7 = vcmp.lt.s32.totalorder %v7574_v15, 57 }
0x170b   : > { %v6946_v59 = vunpack.i.h.bf16 %v6944_v43  ;;  %v6945_v45 = vunpack.i.l.bf16 %v6944_v43  ;;  %v6941_v28 = vunpack.i.h.bf16 %v6939_v30  ;;  %v6940_v49 = vunpack.i.l.bf16 %v6939_v30  ;;  %vm13350_vm5 = vmmov %vm13349_vm1 }
0x170c   : > { %vm13351_vm14 = vmmov %vm13349_vm1 }
0x170d   : > { %v3560_v14 = vsel %vm13348_vm4, %v6945_v45, %v6946_v59  ;;  %v3561_v43 = vsel %vm13349_vm1, %v6941_v28, %v6945_v45  ;;  %v3562_v30 = vsel %vm13350_vm5, %v6940_v49, %v6941_v28  ;;  %v3563_v23 = vsel %vm13351_vm14, %v6946_v59, %v6940_v49  ;;  %v13355_v59 = vld [vmem:[#allocation12_spill] sm:$0xff]  ;;  %vm13362_vm6 = vmmov %vm13361_vm7 }
0x170e   : > { %v10973_v20 = vpack.c.bf16 %v3560_v14, %v3544_v32  ;;  %v10975_v4 = vpack.c.bf16 %v3562_v30, %v3546_v2  ;;  %v10977_v0 = vpack.c.bf16 %v3563_v23, %v3547_v8  ;;  %v10979_v56 = vpack.c.bf16 %v3561_v43, %v3545_v18  ;;  %v6954_v46 = vpop.permute.xlu0 %6953  ;;  %v6949_v6 = vpop.permute.xlu1 %6948  ;;  %v13357_v14 = vld [vmem:[#allocation8_spill] sm:$0xff]  ;;  %v13359_v23 = vld [vmem:[#allocation13_spill] sm:$0xff]  ;;  %vm13363_vm14 = vmmov %vm13362_vm6 }
0x170f   : > { %v6956_v13 = vunpack.i.h.bf16 %v6954_v46  ;;  %v6955_v58 = vunpack.i.l.bf16 %v6954_v46  ;;  %v6951_v3 = vunpack.i.h.bf16 %v6949_v6  ;;  %v6950_v45 = vunpack.i.l.bf16 %v6949_v6 }
0x1710   : > { %13352 = vst [vmem:[#allocation67_spill] sm:$0xff] %v10973_v20  ;;  %vm13354_vm5 = vnez %v13353_v10  ;;  %vm13356_vm4 = vnez %v13355_v59  ;;  %vm13358_vm1 = vnez %v13357_v14  ;;  %vm13360_vm10 = vnez %v13359_v23 }
0x1711   : > { %5888 = vmatprep.subr.msk.bf16.mxu0 %vm13354_vm5, %v10975_v4  ;;  %5966 = vmatprep.subr.msk.bf16.mxu1 %vm13356_vm4, %v10973_v20  ;;  %v3576_v43 = vsel %vm13361_vm7, %v6955_v58, %v6956_v13  ;;  %v3577_v30 = vsel %vm13362_vm6, %v6951_v3, %v6955_v58  ;;  %v3578_v46 = vsel %vm13363_vm14, %v6950_v45, %v6951_v3  ;;  %v13393_v20 = vld [vmem:[#allocation5_spill] sm:$0xff] }
0x1712   : > { %5891 = vmatpush1.bf16.msk.msra.mxu0 %vm13358_vm1, %v10977_v0  ;;  %5969 = vmatpush1.bf16.msk.msra.mxu1 %vm13360_vm10, %v10979_v56  ;;  %v6964_v28 = vpop.permute.xlu0 %6963  ;;  %v6959_v49 = vpop.permute.xlu1 %6958  ;;  %vm13364_vm1 = vmmov %vm13362_vm6  ;;  %vm13365_vm10 = vcmp.lt.s32.totalorder %v7574_v15, 56  ;;  %vm13381_vm6 = vcmp.lt.s32.totalorder %v7574_v15, 55 }
0x1713   : > { %v6966_v32 = vunpack.i.h.bf16 %v6964_v28  ;;  %v6965_v18 = vunpack.i.l.bf16 %v6964_v28  ;;  %v6961_v2 = vunpack.i.h.bf16 %v6959_v49  ;;  %v6960_v8 = vunpack.i.l.bf16 %v6959_v49  ;;  %vm13366_vm5 = vmmov %vm13365_vm10 }
0x1714   : > { %v3579_v6 = vsel %vm13364_vm1, %v6956_v13, %v6950_v45  ;;  %vm13367_vm4 = vmmov %vm13366_vm5  ;;  %vm13374_vm1 = vnez %v13373_v62 }
0x1715   : > { %v3592_v14 = vsel %vm13365_vm10, %v6965_v18, %v6966_v32  ;;  %v3593_v28 = vsel %vm13366_vm5, %v6961_v2, %v6965_v18  ;;  %v3594_v49 = vsel %vm13367_vm4, %v6960_v8, %v6961_v2  ;;  %vm13368_vm7 = vmmov %vm13367_vm4  ;;  %v13375_v18 = vld [vmem:[#allocation17_spill] sm:$0xff] }
0x1716   : > { %v3595_v23 = vsel %vm13368_vm7, %v6966_v32, %v6960_v8  ;;  %v11009_v10 = vpack.c.bf16 %v3592_v14, %v3576_v43  ;;  %v11011_v58 = vpack.c.bf16 %v3594_v49, %v3578_v46  ;;  %v11015_v59 = vpack.c.bf16 %v3593_v28, %v3577_v30  ;;  %v3603_v13 = vpop.permute.xlu0 %3602  ;;  %v3601_v45 = vpop.permute.xlu1 %3600  ;;  %v13377_v32 = vld [vmem:[#allocation19_spill] sm:$0xff]  ;;  %v13379_v14 = vld [vmem:[#allocation18_spill] sm:$0xff]  ;;  %vm13383_vm14 = vmmov %vm13381_vm6 }
0x1717   : > { %v11013_v3 = vpack.c.bf16 %v3595_v23, %v3579_v6  ;;  %vm13376_vm5 = vnez %v13375_v18  ;;  %vm13378_vm4 = vnez %v13377_v32  ;;  %vm13380_vm10 = vnez %v13379_v14  ;;  %vm13385_vm7 = vmmov %vm13381_vm6 }
0x1718   : > { %13369 = vst [vmem:[#allocation71_spill] sm:$0xff] %v11009_v10  ;;  %13370 = vst [vmem:[#allocation72_spill] sm:$0xff] %v11011_v58  ;;  %5894 = vmatprep.subr.msk.bf16.mxu0 %vm13374_vm1, %v11011_v58  ;;  %5972 = vmatprep.subr.msk.bf16.mxu1 %vm13376_vm5, %v11009_v10  ;;  %v11031_v49 = vsel %vm13381_vm6, %v3601_v45, %v3603_v13 }
0x1719   : > { %13371 = vst [vmem:[#allocation54_spill] sm:$0xff] %v11013_v3  ;;  %13372 = vst [vmem:[#allocation4_spill] sm:$0xff] %v11015_v59  ;;  %5897 = vmatpush1.bf16.msk.msra.mxu0 %vm13378_vm4, %v11013_v3  ;;  %5975 = vmatpush1.bf16.msk.msra.mxu1 %vm13380_vm10, %v11015_v59  ;;  %vm13389_vm10 = vcmp.lt.s32.totalorder %v7574_v15, 9 }
0x171a   : > { %v3607_v23 = vpop.permute.xlu0 %3606  ;;  %v3605_v2 = vpop.permute.xlu1 %3604  ;;  %13382 = vst [vmem:[#allocation69_spill] sm:$0xff] %v11031_v49  ;;  %vm13387_vm4 = vmmov %vm13381_vm6 }
0x171b   : > { %v11035_v32 = vsel %vm13383_vm14, %v3607_v23, %v3601_v45  ;;  %v11039_v14 = vsel %vm13385_vm7, %v3605_v2, %v3607_v23  ;;  %v11043_v62 = vsel %vm13387_vm4, %v3603_v13, %v3605_v2  ;;  %vm13390_vm1 = vmmov %vm13389_vm10 }
0x171c   : > { %13384 = vst [vmem:[#allocation75_spill] sm:$0xff] %v11035_v32  ;;  %13386 = vst [vmem:[#allocation14_spill] sm:$0xff] %v11039_v14 }
0x171d   : > { %13388 = vst [vmem:[#allocation68_spill] sm:$0xff] %v11043_v62  ;;  %vm13391_vm6 = vmmov %vm13390_vm1 }
0x171e   : > { %v6974_v8 = vpop.permute.xlu0 %6973  ;;  %v6969_v43 = vpop.permute.xlu1 %6968  ;;  %vm13392_vm14 = vmmov %vm13390_vm1 }
0x171f   : > { %v6976_v30 = vunpack.i.h.bf16 %v6974_v8  ;;  %v6975_v46 = vunpack.i.l.bf16 %v6974_v8  ;;  %v6971_v6 = vunpack.i.h.bf16 %v6969_v43  ;;  %v6970_v28 = vunpack.i.l.bf16 %v6969_v43 }
0x1721   : > { %v3624_v8 = vsel %vm13389_vm10, %v6975_v46, %v6976_v30  ;;  %v3625_v43 = vsel %vm13390_vm1, %v6971_v6, %v6975_v46  ;;  %v3626_v18 = vsel %vm13391_vm6, %v6970_v28, %v6971_v6  ;;  %v3627_v45 = vsel %vm13392_vm14, %v6976_v30, %v6970_v28  ;;  %v13395_v6 = vld [vmem:[#allocation30_spill] sm:$0xff]  ;;  %v13397_v30 = vld [vmem:[#allocation29_spill] sm:$0xff]  ;;  %v13399_v28 = vld [vmem:[#allocation31_spill] sm:$0xff] }
0x1722   : > { %v5976_v10 = vpack.c.bf16 %v3624_v8, %v11039_v14  ;;  %v5979_v23 = vpack.c.bf16 %v3625_v43, %v11043_v62  ;;  %v5898_v58 = vpack.c.bf16 %v3626_v18, %v11031_v49  ;;  %v5901_v13 = vpack.c.bf16 %v3627_v45, %v11035_v32  ;;  %v6984_v2 = vpop.permute.xlu0 %6983  ;;  %v6979_v3 = vpop.permute.xlu1 %6978 }
0x1723   : > { %v6986_v26 = vunpack.i.h.bf16 %v6984_v2  ;;  %v6985_v59 = vunpack.i.l.bf16 %v6984_v2  ;;  %v6981_v41 = vunpack.i.h.bf16 %v6979_v3  ;;  %v6980_v46 = vunpack.i.l.bf16 %v6979_v3 }
0x1724   : > { %vm13394_vm1 = vnez %v13393_v20  ;;  %vm13396_vm4 = vnez %v13395_v6  ;;  %vm13398_vm10 = vnez %v13397_v30  ;;  %vm13400_vm7 = vnez %v13399_v28 }
0x1725   : > { %5900 = vmatprep.subr.msk.bf16.mxu0 %vm13394_vm1, %v5898_v58  ;;  %5978 = vmatprep.subr.msk.bf16.mxu1 %vm13396_vm4, %v5976_v10  ;;  %vm13401_vm6 = vcmp.lt.s32.totalorder %v7574_v15, 8 }
0x1726   : > { %5903 = vmatpush1.bf16.msk.msra.mxu0 %vm13398_vm10, %v5901_v13  ;;  %5981 = vmatpush1.bf16.msk.msra.mxu1 %vm13400_vm7, %v5979_v23  ;;  %v6994_v18 = vpop.permute.xlu0 %6993  ;;  %v6989_v8 = vpop.permute.xlu1 %6988  ;;  %v3640_v3 = vsel %vm13401_vm6, %v6985_v59, %v6986_v26  ;;  %vm13402_vm14 = vmmov %vm13401_vm6  ;;  %vm13405_vm7 = vcmp.lt.s32.totalorder %v7574_v15, 7 }
0x1727   : > { %v6996_v43 = vunpack.i.h.bf16 %v6994_v18  ;;  %v6995_v45 = vunpack.i.l.bf16 %v6994_v18  ;;  %v6991_v14 = vunpack.i.h.bf16 %v6989_v8  ;;  %v6990_v2 = vunpack.i.l.bf16 %v6989_v8  ;;  %vm13403_vm4 = vmmov %vm13401_vm6 }
0x1728   : > { %v3641_v58 = vsel %vm13402_vm14, %v6981_v41, %v6985_v59  ;;  %v3642_v10 = vsel %vm13403_vm4, %v6980_v46, %v6981_v41  ;;  %vm13404_vm10 = vmmov %vm13403_vm4  ;;  %vm13415_vm14 = vnez %v12962_v57 }
0x1729   : > { %v3643_v13 = vsel %vm13404_vm10, %v6986_v26, %v6980_v46  ;;  %v3656_v23 = vsel %vm13405_vm7, %v6995_v45, %v6996_v43  ;;  %vm13406_vm1 = vmmov %vm13405_vm7  ;;  %vm13414_vm7 = vnez %v12946_v42 }
0x172a   : > { %v3657_v18 = vsel %vm13406_vm1, %v6991_v14, %v6995_v45  ;;  %vm13407_vm5 = vmmov %vm13406_vm1  ;;  %v5982_v6 = vpack.c.bf16 %v3656_v23, %v3640_v3  ;;  %v7004_v41 = vpop.permute.xlu0 %7003  ;;  %v6999_v49 = vpop.permute.xlu1 %6998 }
0x172b   : > { %v3658_v8 = vsel %vm13407_vm5, %v6990_v2, %v6991_v14  ;;  %vm13408_vm6 = vmmov %vm13406_vm1  ;;  %v5985_v20 = vpack.c.bf16 %v3657_v18, %v3641_v58  ;;  %v7006_v32 = vunpack.i.h.bf16 %v7004_v41  ;;  %v7005_v26 = vunpack.i.l.bf16 %v7004_v41 }
0x172c   : > { %v3659_v28 = vsel %vm13408_vm6, %v6996_v43, %v6990_v2  ;;  %v5904_v59 = vpack.c.bf16 %v3658_v8, %v3642_v10  ;;  %v7001_v46 = vunpack.i.h.bf16 %v6999_v49  ;;  %v7000_v62 = vunpack.i.l.bf16 %v6999_v49  ;;  %5984 = vmatprep.subr.msk.bf16.mxu1 %vm13240_vm0, %v5982_v6 }
0x172d   : > { %v5907_v30 = vpack.c.bf16 %v3659_v28, %v3643_v13  ;;  %vm13410_vm5 = vcmp.lt.s32.totalorder %v7574_v15, 1  ;;  %5987 = vmatpush1.bf16.msk.msra.mxu1 %vm13415_vm14, %v5985_v20  ;;  %vm13416_vm6 = vnez %v12975_v7 }
0x172e   : > { %5906 = vmatprep.subr.msk.bf16.mxu0 %vm13236_vm15, %v5904_v59  ;;  %v3672_v14 = vsel %vm13410_vm5, %v7005_v26, %v7006_v32  ;;  %vm13411_vm1 = vmmov %vm13410_vm5  ;;  %v7014_v58 = vpop.permute.xlu0 %7013  ;;  %v7009_v10 = vpop.permute.xlu1 %7008  ;;  %vm13417_vm5 = vnez %v12966_v51 }
0x172f   : > { %v3673_v43 = vsel %vm13411_vm1, %v7001_v46, %v7005_v26  ;;  %vm13412_vm4 = vmmov %vm13411_vm1  ;;  %5909 = vmatpush1.bf16.msk.msra.mxu0 %vm13414_vm7, %v5907_v30  ;;  %v5988_v49 = vpack.c.bf16 %v10834_v24, %v3672_v14  ;;  %v7016_v13 = vunpack.i.h.bf16 %v7014_v58  ;;  %v7015_v23 = vunpack.i.l.bf16 %v7014_v58 }
0x1730   : > { %v3674_v28 = vsel %vm13412_vm4, %v7000_v62, %v7001_v46  ;;  %vm13413_vm10 = vmmov %vm13411_vm1  ;;  %v5991_v2 = vpack.c.bf16 %v10832_v38, %v3673_v43  ;;  %v7011_v18 = vunpack.i.h.bf16 %v7009_v10  ;;  %vm13418_vm1 = vnez %v12978_v16 }
0x1731   : > { %v3675_v45 = vsel %vm13413_vm10, %v7006_v32, %v7000_v62  ;;  %v5910_v6 = vpack.c.bf16 %v10830_v22, %v3674_v28  ;;  %v7010_v62 = vunpack.i.l.bf16 %v7009_v10  ;;  %5990 = vmatprep.subr.msk.bf16.mxu1 %vm13417_vm5, %v5988_v49  ;;  %vm13419_vm4 = vnez %v12972_v50 }
0x1732   : > { %v5913_v3 = vpack.c.bf16 %v10828_v40, %v3675_v45  ;;  %5993 = vmatpush1.bf16.msk.msra.mxu1 %vm13419_vm4, %v5991_v2  ;;  %v7024_v40 = vpop.permute.xlu0 %7023  ;;  %v7019_v20 = vpop.permute.xlu1 %7018  ;;  %vm13420_vm10 = vcmp.lt.s32.totalorder %v7574_v15, 127  ;;  %vm13424_vm4 = vcmp.lt.s32.totalorder %v7574_v15, 121 }
0x1733   : > { %5912 = vmatprep.subr.msk.bf16.mxu0 %vm13416_vm6, %v5910_v6  ;;  %v7026_v22 = vunpack.i.h.bf16 %v7024_v40  ;;  %v7025_v38 = vunpack.i.l.bf16 %v7024_v40  ;;  %v7021_v24 = vunpack.i.h.bf16 %v7019_v20  ;;  %v7020_v32 = vunpack.i.l.bf16 %v7019_v20  ;;  %vm13421_vm14 = vmmov %vm13420_vm10 }
0x1734   : > { %5915 = vmatpush1.bf16.msk.msra.mxu0 %vm13418_vm1, %v5913_v3  ;;  %v3688_v30 = vsel %vm13420_vm10, %v7015_v23, %v7016_v13  ;;  %v3689_v8 = vsel %vm13421_vm14, %v7011_v18, %v7015_v23  ;;  %vm13422_vm5 = vmmov %vm13420_vm10  ;;  %vm13428_vm14 = vnez %v12984_v39 }
0x1735   : > { %v3690_v59 = vsel %vm13422_vm5, %v7010_v62, %v7011_v18  ;;  %vm13423_vm1 = vmmov %vm13422_vm5  ;;  %v3704_v26 = vsel %vm13424_vm4, %v7025_v38, %v7026_v22  ;;  %vm13431_vm5 = vcmp.lt.s32.totalorder %v7574_v15, 120 }
0x1736   : > { %v3691_v41 = vsel %vm13423_vm1, %v7016_v13, %v7010_v62  ;;  %vm13425_vm6 = vmmov %vm13424_vm4  ;;  %v5997_v28 = vpack.c.bf16 %v3704_v26, %v3688_v30  ;;  %v7034_v6 = vpop.permute.xlu0 %7033  ;;  %v7029_v3 = vpop.permute.xlu1 %7028 }
0x1737   : > { %v3705_v46 = vsel %vm13425_vm6, %v7021_v24, %v7025_v38  ;;  %vm13426_vm0 = vmmov %vm13424_vm4  ;;  %v7036_v58 = vunpack.i.h.bf16 %v7034_v6  ;;  %v7035_v10 = vunpack.i.l.bf16 %v7034_v6  ;;  %v7031_v13 = vunpack.i.h.bf16 %v7029_v3  ;;  %v13468_v6 = vld [vmem:[#allocation75_spill] sm:$0xff] }
0x1738   : > { %v3706_v14 = vsel %vm13426_vm0, %v7020_v32, %v7021_v24  ;;  %vm13427_vm10 = vmmov %vm13426_vm0  ;;  %v5916_v45 = vpack.c.bf16 %v3705_v46, %v3689_v8  ;;  %v7030_v23 = vunpack.i.l.bf16 %v7029_v3  ;;  %vm13429_vm6 = vnez %v12998_v60  ;;  %v13469_v3 = vld [vmem:[#allocation26_spill] sm:$0xff] }
0x1739   : > { %v3707_v43 = vsel %vm13427_vm10, %v7026_v22, %v7020_v32  ;;  %v5919_v49 = vpack.c.bf16 %v3706_v14, %v3690_v59  ;;  %vm13430_vm0 = vnez %v12994_v25  ;;  %v3720_v24 = vsel %vm13431_vm5, %v7035_v10, %v7036_v58  ;;  %vm13432_vm1 = vmmov %vm13431_vm5 }
0x173a   : > { %v5994_v2 = vpack.c.bf16 %v3707_v43, %v3691_v41  ;;  %5918 = vmatprep.subr.msk.bf16.mxu0 %vm13428_vm14, %v5916_v45  ;;  %v7044_v18 = vpop.permute.xlu0 %7043  ;;  %v7039_v62 = vpop.permute.xlu1 %7038  ;;  %v3721_v32 = vsel %vm13432_vm1, %v7031_v13, %v7035_v10  ;;  %vm13433_vm4 = vmmov %vm13432_vm1  ;;  %v13471_v10 = vld [vmem:[#allocation69_spill] sm:$0xff] }
0x173b   : > { %5921 = vmatpush1.bf16.msk.msra.mxu0 %vm13430_vm0, %v5919_v49  ;;  %v7046_v40 = vunpack.i.h.bf16 %v7044_v18  ;;  %v7045_v20 = vunpack.i.l.bf16 %v7044_v18  ;;  %v7041_v22 = vunpack.i.h.bf16 %v7039_v62  ;;  %v7040_v38 = vunpack.i.l.bf16 %v7039_v62  ;;  %vm13434_vm10 = vmmov %vm13432_vm1  ;;  %v13463_v49 = vld [vmem:[#allocation37_spill] sm:$0xff]  ;;  %v13475_v18 = vld [vmem:[#allocation32_spill] sm:$0xff] }
0x173c   : > { %5996 = vmatprep.subr.msk.bf16.mxu1 %vm13429_vm6, %v5994_v2  ;;  %v3722_v30 = vsel %vm13433_vm4, %v7030_v23, %v7031_v13  ;;  %v3723_v8 = vsel %vm13434_vm10, %v7036_v58, %v7030_v23  ;;  %vm13442_vm1 = vnez %v13037_v34  ;;  %vm13443_vm4 = vnez %v13053_v19  ;;  %v13466_v2 = vld [vmem:[#allocation25_spill] sm:$0xff]  ;;  %v4917_v58 = vld [vmem:[%s11637_s4 + $0x20] sm:$0xff]  ;;  %v13472_v13 = vld [vmem:[#allocation35_spill] sm:$0xff] }
0x173d   : > { %5999 = vmatpush1.bf16.msk.msra.mxu1 %vm13262_vm11, %v5997_v28  ;;  %vm13435_vm11 = vcmp.lt.s32.totalorder %v7574_v15, 119  ;;  %vm13444_vm10 = vnez %v13049_v52  ;;  %v13474_v23 = vld [vmem:[#allocation14_spill] sm:$0xff] }
0x173e   : > { %v3736_v59 = vsel %vm13435_vm11, %v7045_v20, %v7046_v40  ;;  %vm13436_vm0 = vmmov %vm13435_vm11  ;;  %vm13439_vm11 = vnez %v13012_v9 }
0x173f   : > { %v3737_v41 = vsel %vm13436_vm0, %v7041_v22, %v7045_v20  ;;  %vm13437_vm6 = vmmov %vm13436_vm0  ;;  %v6003_v14 = vpack.c.bf16 %v3736_v59, %v3720_v24 }
0x1740   : > { %v3738_v26 = vsel %vm13437_vm6, %v7040_v38, %v7041_v22  ;;  %vm13438_vm5 = vmmov %vm13436_vm0  ;;  %v5922_v43 = vpack.c.bf16 %v3737_v41, %v3721_v32  ;;  %vm13440_vm0 = vnez %v13029_v31  ;;  %vm13441_vm6 = vnez %v13018_v29  ;;  %v5026_v41 = vld [vmem:[%s11637_s4 + $0x38] sm:$0xff]  ;;  %v13617_v29 = vld [vmem:[#allocation39_spill] sm:$0xff] }
0x1741   : > { %v3739_v46 = vsel %vm13438_vm5, %v7046_v40, %v7040_v38  ;;  %v5925_v28 = vpack.c.bf16 %v3738_v26, %v3722_v30  ;;  %vm13445_vm5 = vnez %v13063_v1  ;;  %v7259_v26 = vmov 8   ;;  %v13620_v31 = vld [vmem:[#allocation34_spill] sm:$0xff] }
0x1742   : > { %v6000_v45 = vpack.c.bf16 %v3739_v46, %v3723_v8  ;;  %5924 = vmatprep.subr.msk.bf16.mxu0 %vm13267_vm3, %v5922_v43  ;;  %7207 = vset.pattern.permute.xlu1 %v7259_v26  ;;  %v13479_v46 = vld [vmem:[#allocation66_spill] sm:$0xff] }
0x1743   : > { %5927 = vmatpush1.bf16.msk.msra.mxu0 %vm13439_vm11, %v5925_v28  ;;  %7208 = vset.pattern.permute.xlu0 %v7259_v26 }
0x1744   : > { %6002 = vmatprep.subr.msk.bf16.mxu1 %vm13268_vm13, %v6000_v45  ;;  %5930 = vmatprep.subr.msk.bf16.mxu0 %vm13441_vm6, %v10907_v63  ;;  %v13453_v63 = vld [vmem:[#allocation4_spill] sm:$0xff] }
0x1745   : > { %6005 = vmatpush1.bf16.msk.msra.mxu1 %vm13440_vm0, %v6003_v14 }
0x1746   : > { %6008 = vmatprep.subr.msk.bf16.mxu1 %vm13442_vm1, %v10905_v37  ;;  %v13451_v37 = vld [vmem:[#allocation39_spill] sm:$0xff] }
0x1747   : > { %5933 = vmatpush1.bf16.msk.msra.mxu0 %vm13272_vm12, %v10903_v12  ;;  %vm13446_vm12 = vnez %v13057_v44  ;;  %v13450_v12 = vld [vmem:[#allocation67_spill] sm:$0xff] }
0x1748   : > { %5936 = vmatprep.subr.msk.bf16.mxu0 %vm13273_vm9, %v10943_v11  ;;  %v13454_v11 = vld [vmem:[#allocation34_spill] sm:$0xff] }
0x1749   : > { %6011 = vmatpush1.bf16.msk.msra.mxu1 %vm10226_vm2, %v10901_v53  ;;  %vm13447_vm2 = vnez %v13078_v48  ;;  %v13448_v53 = vld [vmem:[#allocation38_spill] sm:$0xff] }
0x174a   : > { %6014 = vmatprep.subr.msk.bf16.mxu1 %vm13443_vm4, %v10941_v27  ;;  %vm13449_vm9 = vnez %v13448_v53  ;;  %vm13452_vm4 = vnez %v13451_v37  ;;  %v13459_v27 = vld [vmem:[#allocation72_spill] sm:$0xff] }
0x174b   : > { %5939 = vmatpush1.bf16.msk.msra.mxu0 %vm13444_vm10, %v10939_v5  ;;  %vm13455_vm10 = vnez %v13454_v11  ;;  %v13457_v5 = vld [vmem:[#allocation40_spill] sm:$0xff] }
0x174c   : > { %5942 = vmatprep.subr.msk.bf16.mxu0 %vm13446_vm12, %v10979_v56  ;;  %v13460_v56 = vld [vmem:[#allocation36_spill] sm:$0xff] }
0x174d   : > { %6017 = vmatpush1.bf16.msk.msra.mxu1 %vm13445_vm5, %v10937_v55  ;;  %v13456_v55 = vld [vmem:[#allocation54_spill] sm:$0xff]  ;;  %vm13458_vm5 = vnez %v13457_v5  ;;  %vm13461_vm12 = vnez %v13460_v56  ;;  %v13517_v56 = vld [vmem:[#allocation12_spill] sm:$0xff] }
0x174e   : > { %6020 = vmatprep.subr.msk.bf16.mxu1 %vm13447_vm2, %v10977_v0  ;;  %v13462_v0 = vld [vmem:[#allocation71_spill] sm:$0xff]  ;;  %vm13464_vm2 = vnez %v13463_v49 }
0x174f   : > { %5945 = vmatpush1.bf16.msk.msra.mxu0 %vm13449_vm9, %v10975_v4  ;;  %v13465_v4 = vld [vmem:[#allocation68_spill] sm:$0xff]  ;;  %vm13467_vm9 = vnez %v13466_v2 }
0x1750   : > { %5948 = vmatprep.subr.msk.bf16.mxu0 %vm13455_vm10, %v13453_v63 }
0x1751   : > { %6023 = vmatpush1.bf16.msk.msra.mxu1 %vm13452_vm4, %v13450_v12  ;;  %vm13470_vm4 = vnez %v13469_v3 }
0x1752   : > { %6026 = vmatprep.subr.msk.bf16.mxu1 %vm13458_vm5, %v13456_v55  ;;  %vm13473_vm5 = vnez %v13472_v13 }
0x1753   : > { %5951 = vmatpush1.bf16.msk.msra.mxu0 %vm13461_vm12, %v13459_v27  ;;  %vm13476_vm12 = vnez %v13475_v18 }
0x1754   : > { %4969 = vmatprep.subr.msk.mxu0 %vm13467_vm9, %v13465_v4 }
0x1755   : > { %6029 = vmatpush1.bf16.msk.msra.mxu1 %vm13464_vm2, %v13462_v0  ;;  %vm13487_vm2 = vcmp.lt.s32.totalorder %v7574_v15, 72 }
0x1756   : > { %5022 = vmatprep.subr.msk.mxu1 %vm13470_vm4, %v13468_v6  ;;  %vm13488_vm10 = vmmov %vm13487_vm2 }
0x1757   : > { %4970 = vmatpush1.msk.msra.mxu0 %vm13473_vm5, %v13471_v10  ;;  %vm13489_vm1 = vmmov %vm13487_vm2 }
0x1758   : > { %3848 = vmatmul.mubr.f32.vlgmr.msra.gmra.mrb[18].mxu0 %v4917_v58 }
0x1759   : > { %5023 = vmatpush1.msk.msra.mxu1 %vm13476_vm12, %v13474_v23  ;;  %vm13477_vm12 = vcmask 719872  }
0x175a   : > { %3919 = vmatmul.mubr.f32.vlgmr.msra.gmra.mrb[18].mxu1 %v4917_v58  ;;  %5079 = vmatprep.mubr.msk.f32.mxu0 %vm13477_vm12, %v5026_v41  ;;  %vm13478_vm5 = vmmov %vm13477_vm12  ;;  %vm13480_vm12 = vcmp.lt.s32.totalorder %v7574_v15, 73 }
0x175b   : > { %5132 = vmatprep.mubr.msk.f32.mxu1 %vm13478_vm5, %v5026_v41  ;;  %vm13481_vm5 = vcmp.lt.s32.totalorder %v7574_v15, 72  ;;  %vm13484_vm9 = vmmov %vm13480_vm12 }
0x182b   : > { %v3849_v62 = vpop.f32.mrb[18].mxu0 }
0x182c   : > { %v11220_v20 = vmax.f32 %v3849_v62, 0.0  ;;  %v3851_v24 = vpop.f32.mrb[19].mxu0 }
0x182d   : > { %v3920_v40 = vpop.f32.mrb[18].mxu1  ;;  %v11230_v8 = vmax.f32 %v3851_v24, 0.0 }
0x182e   : > { %v11222_v22 = vmax.f32 %v3920_v40, 0.0  ;;  %v3922_v38 = vpop.f32.mrb[19].mxu1  ;;  %4060 = vrot.lane.b32.xlu1 %v11220_v20, %s7241_s15 }
0x182f   : > { %v11224_v32 = vmax.f32 %v3922_v38, 0.0  ;;  %v7047_v59 = vpack.i.bf16 %v11230_v8, %v11220_v20 }
0x1831   : > { %v7052_v30 = vpack.i.bf16 %v11224_v32, %v11222_v22 }
0x1832   : > { %4064 = vrot.lane.b32.xlu1 %v11222_v22, %s7241_s15 }
0x1833   : > { %7053 = vrot.lane.b32.xlu0 %v7052_v30, %s7233_s7 }
0x1836   : > { %7048 = vrot.lane.b32.xlu1 %v7047_v59, %s7233_s7 }
0x1837   : > { %7063 = vrot.lane.b32.xlu0 %v7052_v30, %s7234_s8 }
0x183a   : > { %7058 = vrot.lane.b32.xlu1 %v7047_v59, %s7234_s8 }
0x183b   : > { %7073 = vrot.lane.b32.xlu0 %v7052_v30, %s7235_s9 }
0x183e   : > { %7068 = vrot.lane.b32.xlu1 %v7047_v59, %s7235_s9 }
0x183f   : > { %7083 = vrot.lane.b32.xlu0 %v7052_v30, %s7236_s10 }
0x1842   : > { %7078 = vrot.lane.b32.xlu1 %v7047_v59, %s7236_s10 }
0x1843   : > { %7093 = vrot.lane.b32.xlu0 %v7052_v30, %s7237_s11 }
0x1846   : > { %7088 = vrot.lane.b32.xlu1 %v7047_v59, %s7237_s11 }
0x1847   : > { %7103 = vrot.lane.b32.xlu0 %v7052_v30, %s7238_s12 }
0x184a   : > { %7098 = vrot.lane.b32.xlu1 %v7047_v59, %s7238_s12 }
0x184b   : > { %7113 = vrot.lane.b32.xlu0 %v7052_v30, %s7239_s13 }
0x184e   : > { %7108 = vrot.lane.b32.xlu1 %v7047_v59, %s7239_s13  ;;  %s271_s13 = scalar_lea.vmem %s11639_s6, %s5136_s26 }
0x184f   : > { %7123 = vrot.lane.b32.xlu0 %v7052_v30, %s7240_s14 }
0x1852   : > { %7118 = vrot.lane.b32.xlu1 %v7047_v59, %s7240_s14 }
0x1853   : > { %4062 = vrot.lane.b32.xlu0 %v11230_v8, %s7241_s15 }
0x1856   : > { %7128 = vrot.lane.b32.xlu1 %v7047_v59, %s7242_s16 }
0x1857   : > { %4066 = vrot.lane.b32.xlu0 %v11224_v32, %s7241_s15 }
0x185a   : > { %7138 = vrot.lane.b32.xlu1 %v7047_v59, %s7243_s18 }
0x185b   : > { %7133 = vrot.lane.b32.xlu0 %v7052_v30, %s7242_s16 }
0x185e   : > { %7148 = vrot.lane.b32.xlu1 %v7047_v59, %s7244_s19 }
0x185f   : > { %7143 = vrot.lane.b32.xlu0 %v7052_v30, %s7243_s18 }
0x1862   : > { %7158 = vrot.lane.b32.xlu1 %v7047_v59, %s7245_s20 }
0x1863   : > { %7153 = vrot.lane.b32.xlu0 %v7052_v30, %s7244_s19 }
0x1866   : > { %7168 = vrot.lane.b32.xlu1 %v7047_v59, %s7246_s23 }
0x1867   : > { %7163 = vrot.lane.b32.xlu0 %v7052_v30, %s7245_s20 }
0x186a   : > { %7178 = vrot.lane.b32.xlu1 %v7047_v59, %s7247_s24 }
0x186b   : > { %7173 = vrot.lane.b32.xlu0 %v7052_v30, %s7246_s23 }
0x186e   : > { %7188 = vrot.lane.b32.xlu1 %v7047_v59, %s7248_s27 }
0x186f   : > { %7183 = vrot.lane.b32.xlu0 %v7052_v30, %s7247_s24 }
0x1872   : > { %7198 = vrot.lane.b32.xlu1 %v7047_v59, %s7249_s28 }
0x1873   : > { %7193 = vrot.lane.b32.xlu0 %v7052_v30, %s7248_s27 }
0x1876   : > { %4241 = vperm.xlu1 %7207, %v13479_v46  }
0x1877   : > { %7203 = vrot.lane.b32.xlu0 %v7052_v30, %s7249_s28  ;;  %v13482_v30 = vld [vmem:[#allocation42_spill] sm:$0xff] }
0x1878   : > { %vm13483_vm4 = vnez %v13482_v30 }
0x18a0   : > { %v11278_v14 = vpop.permute.xlu1 %4060 }
0x18a4   : > { %v11280_v28 = vpop.permute.xlu1 %4064 }
0x18a5   : > { %v7054_v43 = vpop.permute.xlu0 %7053 }
0x18a6   : > { %v7056_v45 = vunpack.i.h.bf16 %v7054_v43  ;;  %v7055_v12 = vunpack.i.l.bf16 %v7054_v43 }
0x18a8   : > { %v7049_v0 = vpop.permute.xlu1 %7048  ;;  %v3940_v4 = vsel %vm13480_vm12, %v7055_v12, %v7056_v45  ;;  %vm13485_vm12 = vmmov %vm13484_vm9 }
0x18a9   : > { %v7064_v63 = vpop.permute.xlu0 %7063  ;;  %v7051_v58 = vunpack.i.h.bf16 %v7049_v0  ;;  %v7050_v10 = vunpack.i.l.bf16 %v7049_v0 }
0x18aa   : > { %v7066_v55 = vunpack.i.h.bf16 %v7064_v63  ;;  %v7065_v27 = vunpack.i.l.bf16 %v7064_v63 }
0x18ab   : > { %v3941_v59 = vsel %vm13484_vm9, %v7051_v58, %v7055_v12  ;;  %v3942_v41 = vsel %vm13485_vm12, %v7050_v10, %v7051_v58 }
0x18ac   : > { %v3956_v6 = vsel %vm13481_vm5, %v7065_v27, %v7066_v55  ;;  %v7059_v40 = vpop.permute.xlu1 %7058  ;;  %vm13486_vm5 = vmmov %vm13484_vm9 }
0x18ad   : > { %v11286_v23 = vpack.c.bf16 %v3956_v6, %v3940_v4  ;;  %v7074_v62 = vpop.permute.xlu0 %7073  ;;  %v7061_v38 = vunpack.i.h.bf16 %v7059_v40  ;;  %v7060_v24 = vunpack.i.l.bf16 %v7059_v40  ;;  %v3943_v26 = vsel %vm13486_vm5, %v7056_v45, %v7050_v10 }
0x18ae   : > { %v7076_v46 = vunpack.i.h.bf16 %v7074_v62  ;;  %v7075_v43 = vunpack.i.l.bf16 %v7074_v62 }
0x18af   : > { %6110 = vmatprep.subr.msk.bf16.mxu1 %vm13483_vm4, %v11286_v23  ;;  %v3957_v63 = vsel %vm13487_vm2, %v7061_v38, %v7065_v27  ;;  %v3958_v0 = vsel %vm13488_vm10, %v7060_v24, %v7061_v38  ;;  %v3959_v4 = vsel %vm13489_vm1, %v7066_v55, %v7060_v24  ;;  %v13490_v27 = vld [vmem:[#allocation41_spill] sm:$0xff]  ;;  %v13492_v38 = vld [vmem:[#allocation48_spill] sm:$0xff]  ;;  %vm13494_vm1 = vcmp.lt.s32.totalorder %v7574_v15, 71 }
0x18b0   : > { %v11303_v40 = vpack.c.bf16 %v3958_v0, %v3942_v41  ;;  %v11305_v12 = vpack.c.bf16 %v3959_v4, %v3943_v26  ;;  %v11307_v58 = vpack.c.bf16 %v3957_v63, %v3941_v59  ;;  %v7069_v45 = vpop.permute.xlu1 %7068  ;;  %vm13491_vm9 = vnez %v13490_v27  ;;  %v13496_v41 = vld [vmem:[#allocation46_spill] sm:$0xff]  ;;  %vm13498_vm12 = vmmov %vm13494_vm1 }
0x18b1   : > { %v7084_v6 = vpop.permute.xlu0 %7083  ;;  %v7071_v62 = vunpack.i.h.bf16 %v7069_v45  ;;  %v7070_v18 = vunpack.i.l.bf16 %v7069_v45  ;;  %vm13493_vm2 = vnez %v13492_v38  ;;  %v3972_v55 = vsel %vm13494_vm1, %v7075_v43, %v7076_v46  ;;  %vm13499_vm5 = vmmov %vm13494_vm1 }
0x18b2   : > { %v7086_v30 = vunpack.i.h.bf16 %v7084_v6  ;;  %v7085_v10 = vunpack.i.l.bf16 %v7084_v6  ;;  %6032 = vmatprep.subr.msk.bf16.mxu0 %vm13491_vm9, %v11303_v40  ;;  %6113 = vmatpush1.bf16.msk.msra.mxu1 %vm13493_vm2, %v11307_v58  ;;  %vm13495_vm4 = vcmp.lt.s32.totalorder %v7574_v15, 65  ;;  %vm13497_vm10 = vnez %v13496_v41  ;;  %vm13500_vm9 = vmmov %vm13494_vm1 }
0x18b3   : > { %6035 = vmatpush1.bf16.msk.msra.mxu0 %vm13497_vm10, %v11305_v12  ;;  %v3973_v6 = vsel %vm13498_vm12, %v7071_v62, %v7075_v43  ;;  %v3974_v45 = vsel %vm13499_vm5, %v7070_v18, %v7071_v62  ;;  %v3975_v27 = vsel %vm13500_vm9, %v7076_v46, %v7070_v18  ;;  %vm13502_vm2 = vmmov %vm13495_vm4  ;;  %vm13509_vm12 = vcmp.lt.s32.totalorder %v7574_v15, 64 }
0x18b4   : > { %v3988_v24 = vsel %vm13495_vm4, %v7085_v10, %v7086_v30  ;;  %v7079_v63 = vpop.permute.xlu1 %7078  ;;  %vm13503_vm1 = vmmov %vm13502_vm2  ;;  %vm13510_vm5 = vcmp.lt.s32.totalorder %v7574_v15, 63 }
0x18b5   : > { %v7094_v59 = vpop.permute.xlu0 %7093  ;;  %v11322_v26 = vpack.c.bf16 %v3988_v24, %v3972_v55  ;;  %v7081_v0 = vunpack.i.h.bf16 %v7079_v63  ;;  %v7080_v4 = vunpack.i.l.bf16 %v7079_v63  ;;  %vm13504_vm4 = vmmov %vm13503_vm1 }
0x18b6   : > { %v7096_v38 = vunpack.i.h.bf16 %v7094_v59  ;;  %v7095_v41 = vunpack.i.l.bf16 %v7094_v59 }
0x18b7   : > { %6116 = vmatprep.subr.msk.bf16.mxu1 %vm13339_vm8, %v11322_v26  ;;  %v3989_v55 = vsel %vm13502_vm2, %v7081_v0, %v7085_v10  ;;  %v3990_v24 = vsel %vm13503_vm1, %v7080_v4, %v7081_v0  ;;  %v3991_v43 = vsel %vm13504_vm4, %v7086_v30, %v7080_v4  ;;  %v13505_v10 = vld [vmem:[#allocation44_spill] sm:$0xff]  ;;  %v13507_v0 = vld [vmem:[#allocation55_spill] sm:$0xff]  ;;  %vm13514_vm2 = vmmov %vm13509_vm12 }
0x18b8   : > { %v11339_v62 = vpack.c.bf16 %v3990_v24, %v3974_v45  ;;  %v11341_v3 = vpack.c.bf16 %v3991_v43, %v3975_v27  ;;  %v11343_v18 = vpack.c.bf16 %v3989_v55, %v3973_v6  ;;  %v7089_v13 = vpop.permute.xlu1 %7088  ;;  %vm13506_vm8 = vnez %v13505_v10  ;;  %v13511_v45 = vld [vmem:[#allocation47_spill] sm:$0xff]  ;;  %vm13515_vm1 = vmmov %vm13514_vm2 }
0x18b9   : > { %v7104_v63 = vpop.permute.xlu0 %7103  ;;  %v7091_v59 = vunpack.i.h.bf16 %v7089_v13  ;;  %v7090_v49 = vunpack.i.l.bf16 %v7089_v13  ;;  %vm13508_vm10 = vnez %v13507_v0  ;;  %v4004_v30 = vsel %vm13509_vm12, %v7095_v41, %v7096_v38  ;;  %vm13516_vm4 = vmmov %vm13515_vm1 }
0x18ba   : > { %v7106_v46 = vunpack.i.h.bf16 %v7104_v63  ;;  %v7105_v2 = vunpack.i.l.bf16 %v7104_v63  ;;  %6038 = vmatprep.subr.msk.bf16.mxu0 %vm13506_vm8, %v11339_v62  ;;  %6119 = vmatpush1.bf16.msk.msra.mxu1 %vm13508_vm10, %v11343_v18  ;;  %vm13512_vm9 = vnez %v13511_v45  ;;  %vm13518_vm8 = vnez %v13517_v56  ;;  %vm13519_vm10 = vmmov %vm13510_vm5 }
0x18bb   : > { %6041 = vmatpush1.bf16.msk.msra.mxu0 %vm13512_vm9, %v11341_v3  ;;  %v4005_v63 = vsel %vm13514_vm2, %v7091_v59, %v7095_v41  ;;  %v4006_v13 = vsel %vm13515_vm1, %v7090_v49, %v7091_v59  ;;  %v4007_v10 = vsel %vm13516_vm4, %v7096_v38, %v7090_v49  ;;  %vm13520_vm12 = vmmov %vm13510_vm5  ;;  %vm13526_vm1 = vcmp.lt.s32.totalorder %v7574_v15, 57 }
0x18bc   : > { %v4020_v4 = vsel %vm13510_vm5, %v7105_v2, %v7106_v46  ;;  %v7099_v55 = vpop.permute.xlu1 %7098  ;;  %vm13527_vm4 = vcmp.lt.s32.totalorder %v7574_v15, 56 }
0x18bd   : > { %v7114_v6 = vpop.permute.xlu0 %7113  ;;  %v11358_v27 = vpack.c.bf16 %v4020_v4, %v4004_v30  ;;  %v7101_v24 = vunpack.i.h.bf16 %v7099_v55  ;;  %v7100_v43 = vunpack.i.l.bf16 %v7099_v55 }
0x18be   : > { %v7116_v0 = vunpack.i.h.bf16 %v7114_v6  ;;  %v7115_v45 = vunpack.i.l.bf16 %v7114_v6 }
0x18bf   : > { %13513 = vst [vmem:[#allocation74_spill] sm:$0xff] %v11358_v27  ;;  %6122 = vmatprep.subr.msk.bf16.mxu1 %vm13518_vm8, %v11358_v27  ;;  %v4021_v30 = vsel %vm13519_vm10, %v7101_v24, %v7105_v2  ;;  %v4022_v4 = vsel %vm13520_vm12, %v7100_v43, %v7101_v24  ;;  %v4023_v41 = vsel %vm13510_vm5, %v7106_v46, %v7100_v43  ;;  %v13522_v2 = vld [vmem:[#allocation3_spill] sm:$0xff]  ;;  %v13524_v24 = vld [vmem:[#allocation13_spill] sm:$0xff]  ;;  %vm13531_vm10 = vmmov %vm13526_vm1 }
0x18c0   : > { %v11375_v59 = vpack.c.bf16 %v4022_v4, %v4006_v13  ;;  %v11377_v5 = vpack.c.bf16 %v4023_v41, %v4007_v10  ;;  %v11379_v49 = vpack.c.bf16 %v4021_v30, %v4005_v63  ;;  %v7109_v56 = vpop.permute.xlu1 %7108  ;;  %vm13523_vm9 = vnez %v13522_v2  ;;  %v13528_v13 = vld [vmem:[#allocation8_spill] sm:$0xff]  ;;  %vm13532_vm12 = vmmov %vm13526_vm1  ;;  %v13533_v2 = vld [vmem:[#allocation17_spill] sm:$0xff] }
0x18c1   : > { %v7124_v55 = vpop.permute.xlu0 %7123  ;;  %v7111_v6 = vunpack.i.h.bf16 %v7109_v56  ;;  %v7110_v37 = vunpack.i.l.bf16 %v7109_v56  ;;  %vm13525_vm2 = vnez %v13524_v24  ;;  %v4036_v46 = vsel %vm13526_vm1, %v7115_v45, %v7116_v0 }
0x18c2   : > { %13521 = vst [vmem:[#allocation76_spill] sm:$0xff] %v11375_v59  ;;  %v7126_v38 = vunpack.i.h.bf16 %v7124_v55  ;;  %v7125_v11 = vunpack.i.l.bf16 %v7124_v55  ;;  %6044 = vmatprep.subr.msk.bf16.mxu0 %vm13523_vm9, %v11375_v59  ;;  %6125 = vmatpush1.bf16.msk.msra.mxu1 %vm13525_vm2, %v11379_v49  ;;  %vm13529_vm8 = vnez %v13528_v13  ;;  %vm13534_vm5 = vnez %v13533_v2  ;;  %vm13535_vm9 = vmmov %vm13526_vm1 }
0x18c3   : > { %6047 = vmatpush1.bf16.msk.msra.mxu0 %vm13529_vm8, %v11377_v5  ;;  %v4037_v55 = vsel %vm13531_vm10, %v7111_v6, %v7115_v45  ;;  %v4038_v56 = vsel %vm13532_vm12, %v7110_v37, %v7111_v6  ;;  %v4039_v24 = vsel %vm13535_vm9, %v7116_v0, %v7110_v37  ;;  %vm13536_vm2 = vmmov %vm13527_vm4  ;;  %v13542_v37 = vld [vmem:[#allocation15_spill] sm:$0xff]  ;;  %vm13546_vm12 = vcmp.lt.s32.totalorder %v7574_v15, 55 }
0x18c4   : > { %v4052_v43 = vsel %vm13527_vm4, %v7125_v11, %v7126_v38  ;;  %v7119_v30 = vpop.permute.xlu1 %7118  ;;  %vm13537_vm1 = vmmov %vm13536_vm2  ;;  %vm13543_vm8 = vnez %v13542_v37 }
0x18c5   : > { %v4063_v63 = vpop.permute.xlu0 %4062  ;;  %v11394_v10 = vpack.c.bf16 %v4052_v43, %v4036_v46  ;;  %v7121_v4 = vunpack.i.h.bf16 %v7119_v30  ;;  %v7120_v41 = vunpack.i.l.bf16 %v7119_v30  ;;  %vm13538_vm4 = vmmov %vm13537_vm1 }
0x18c6   : > { %v11426_v0 = vsel %vm13546_vm12, %v11278_v14, %v4063_v63  ;;  %v13616_v9 = vld [vmem:[#allocation74_spill] sm:$0xff] }
0x18c7   : > { %13530 = vst [vmem:[#allocation73_spill] sm:$0xff] %v11394_v10  ;;  %6128 = vmatprep.subr.msk.bf16.mxu1 %vm13534_vm5, %v11394_v10  ;;  %v4053_v46 = vsel %vm13536_vm2, %v7121_v4, %v7125_v11  ;;  %v4054_v43 = vsel %vm13537_vm1, %v7120_v41, %v7121_v4  ;;  %v4055_v13 = vsel %vm13538_vm4, %v7126_v38, %v7120_v41  ;;  %v13544_v11 = vld [vmem:[#allocation18_spill] sm:$0xff]  ;;  %13547 = vst [vmem:[#allocation11_spill] sm:$0xff] %v11426_v0  ;;  %v13549_v41 = vld [vmem:[#allocation19_spill] sm:$0xff] }
0x18c8   : > { %v11411_v30 = vpack.c.bf16 %v4054_v43, %v4038_v56  ;;  %v11413_v6 = vpack.c.bf16 %v4055_v13, %v4039_v24  ;;  %v11415_v27 = vpack.c.bf16 %v4053_v46, %v4037_v55  ;;  %v7129_v2 = vpop.permute.xlu1 %7128  ;;  %vm13545_vm10 = vnez %v13544_v11  ;;  %vm13551_vm2 = vmmov %vm13546_vm12 }
0x18c9   : > { %v4067_v45 = vpop.permute.xlu0 %4066  ;;  %v7131_v10 = vunpack.i.h.bf16 %v7129_v2  ;;  %v7130_v53 = vunpack.i.l.bf16 %v7129_v2  ;;  %vm13548_vm5 = vcmp.lt.s32.totalorder %v7574_v15, 9  ;;  %vm13550_vm9 = vnez %v13549_v41  ;;  %vm13552_vm1 = vmmov %vm13551_vm2 }
0x18ca   : > { %13539 = vst [vmem:[#allocation52_spill] sm:$0xff] %v11411_v30  ;;  %13540 = vst [vmem:[#allocation70_spill] sm:$0xff] %v11413_v6  ;;  %6050 = vmatprep.subr.msk.bf16.mxu0 %vm13543_vm8, %v11411_v30  ;;  %6131 = vmatpush1.bf16.msk.msra.mxu1 %vm13545_vm10, %v11415_v27  ;;  %v11437_v43 = vsel %vm13551_vm2, %v4063_v63, %v11280_v28  ;;  %v11442_v13 = vsel %vm13552_vm1, %v11280_v28, %v4067_v45 }
0x18cb   : > { %13541 = vst [vmem:[#allocation77_spill] sm:$0xff] %v11415_v27  ;;  %v4086_v38 = vsel %vm13548_vm5, %v7130_v53, %v7131_v10  ;;  %6053 = vmatpush1.bf16.msk.msra.mxu0 %vm13550_vm9, %v11413_v6  ;;  %13553 = vst [vmem:[#allocation10_spill] sm:$0xff] %v11442_v13 }
0x18cc   : > { %v6054_v55 = vpack.c.bf16 %v4086_v38, %v11426_v0  ;;  %v7139_v46 = vpop.permute.xlu1 %7138  ;;  %vm13554_vm4 = vmmov %vm13552_vm1 }
0x18cd   : > { %v7134_v4 = vpop.permute.xlu0 %7133  ;;  %v11447_v2 = vsel %vm13554_vm4, %v4067_v45, %v11278_v14  ;;  %vm13556_vm8 = vmmov %vm13548_vm5  ;;  %v7141_v38 = vunpack.i.h.bf16 %v7139_v46  ;;  %v7140_v45 = vunpack.i.l.bf16 %v7139_v46  ;;  %vm13567_vm4 = vcmp.lt.s32.totalorder %v7574_v15, 8 }
0x18ce   : > { %v7136_v56 = vunpack.i.h.bf16 %v7134_v4  ;;  %v7135_v24 = vunpack.i.l.bf16 %v7134_v4  ;;  %13555 = vst [vmem:[#allocation22_spill] sm:$0xff] %v11447_v2  ;;  %vm13557_vm10 = vmmov %vm13548_vm5  ;;  %v13559_v4 = vld [vmem:[#allocation5_spill] sm:$0xff] }
0x18cf   : > { %vm13558_vm12 = vmmov %vm13548_vm5  ;;  %vm13560_vm5 = vnez %v13559_v4 }
0x18d0   : > { %v4084_v37 = vsel %vm13556_vm8, %v7135_v24, %v7136_v56  ;;  %v4085_v11 = vsel %vm13557_vm10, %v7131_v10, %v7135_v24  ;;  %v4087_v63 = vsel %vm13558_vm12, %v7136_v56, %v7130_v53  ;;  %6056 = vmatprep.subr.msk.bf16.mxu0 %vm13560_vm5, %v6054_v55  ;;  %v7149_v30 = vpop.permute.xlu1 %7148  ;;  %v13561_v24 = vld [vmem:[#allocation29_spill] sm:$0xff]  ;;  %v13563_v53 = vld [vmem:[#allocation30_spill] sm:$0xff]  ;;  %v13565_v55 = vld [vmem:[#allocation31_spill] sm:$0xff]  ;;  %v4102_v56 = vsel %vm13567_vm4, %v7140_v45, %v7141_v38 }
0x18d1   : > { %v6057_v28 = vpack.c.bf16 %v4087_v63, %v11447_v2  ;;  %v6132_v41 = vpack.c.bf16 %v4084_v37, %v11442_v13  ;;  %v6135_v14 = vpack.c.bf16 %v4085_v11, %v11437_v43  ;;  %v7144_v0 = vpop.permute.xlu0 %7143  ;;  %v7151_v59 = vunpack.i.h.bf16 %v7149_v30  ;;  %vm13569_vm10 = vmmov %vm13567_vm4 }
0x18d2   : > { %v7146_v6 = vunpack.i.h.bf16 %v7144_v0  ;;  %v7145_v27 = vunpack.i.l.bf16 %v7144_v0  ;;  %v7150_v10 = vunpack.i.l.bf16 %v7149_v30  ;;  %vm13562_vm9 = vnez %v13561_v24  ;;  %vm13570_vm12 = vmmov %vm13567_vm4  ;;  %v13619_v35 = vld [vmem:[#allocation77_spill] sm:$0xff] }
0x18d3   : > { %6059 = vmatpush1.bf16.msk.msra.mxu0 %vm13562_vm9, %v6057_v28  ;;  %vm13564_vm2 = vnez %v13563_v53  ;;  %vm13566_vm1 = vnez %v13565_v55  ;;  %vm13568_vm8 = vcmp.lt.s32.totalorder %v7574_v15, 7  ;;  %vm13571_vm5 = vmmov %vm13567_vm4  ;;  %vm13575_vm4 = vcmp.lt.s32.totalorder %v7574_v15, 1 }
0x18d4   : > { %6134 = vmatprep.subr.msk.bf16.mxu1 %vm13564_vm2, %v6132_v41  ;;  %v4118_v46 = vsel %vm13568_vm8, %v7150_v10, %v7151_v59  ;;  %v7159_v30 = vpop.permute.xlu1 %7158  ;;  %v4100_v4 = vsel %vm13569_vm10, %v7145_v27, %v7146_v6  ;;  %v4101_v28 = vsel %vm13570_vm12, %v7141_v38, %v7145_v27  ;;  %vm13572_vm9 = vmmov %vm13568_vm8 }
0x18d5   : > { %6137 = vmatpush1.bf16.msk.msra.mxu1 %vm13566_vm1, %v6135_v14  ;;  %v7154_v37 = vpop.permute.xlu0 %7153  ;;  %v6060_v11 = vpack.c.bf16 %v4118_v46, %v4102_v56  ;;  %v7161_v41 = vunpack.i.h.bf16 %v7159_v30  ;;  %v7160_v24 = vunpack.i.l.bf16 %v7159_v30  ;;  %v4103_v14 = vsel %vm13571_vm5, %v7146_v6, %v7140_v45  ;;  %vm13573_vm2 = vmmov %vm13568_vm8 }
0x18d6   : > { %v7156_v0 = vunpack.i.h.bf16 %v7154_v37  ;;  %v7155_v63 = vunpack.i.l.bf16 %v7154_v37  ;;  %vm13574_vm1 = vmmov %vm13573_vm2  ;;  %vm13576_vm8 = vnez %v12955_v54  ;;  %vm13580_vm5 = vnez %v12975_v7 }
0x18d7   : > { %6062 = vmatprep.subr.msk.bf16.mxu0 %vm13236_vm15, %v6060_v11  ;;  %v4134_v38 = vsel %vm13575_vm4, %v7160_v24, %v7161_v41  ;;  %vm13577_vm15 = vmmov %vm13575_vm4 }
0x18d8   : > { %v4116_v53 = vsel %vm13572_vm9, %v7155_v63, %v7156_v0  ;;  %v4117_v55 = vsel %vm13573_vm2, %v7151_v59, %v7155_v63  ;;  %v4119_v56 = vsel %vm13574_vm1, %v7156_v0, %v7150_v10  ;;  %v6066_v6 = vpack.c.bf16 %v11230_v8, %v4134_v38  ;;  %v7169_v2 = vpop.permute.xlu1 %7168  ;;  %vm13578_vm10 = vmmov %vm13575_vm4 }
0x18d9   : > { %v6063_v46 = vpack.c.bf16 %v4119_v56, %v4103_v14  ;;  %v6138_v37 = vpack.c.bf16 %v4116_v53, %v4100_v4  ;;  %v6141_v27 = vpack.c.bf16 %v4117_v55, %v4101_v28  ;;  %v7164_v30 = vpop.permute.xlu0 %7163  ;;  %vm13579_vm12 = vmmov %vm13575_vm4  ;;  %vm13581_vm9 = vnez %v12962_v57 }
0x18da   : > { %v7166_v45 = vunpack.i.h.bf16 %v7164_v30  ;;  %v7165_v13 = vunpack.i.l.bf16 %v7164_v30  ;;  %vm13583_vm2 = vnez %v12966_v51  ;;  %vm13584_vm1 = vnez %v12972_v50 }
0x18db   : > { %6065 = vmatpush1.bf16.msk.msra.mxu0 %vm13414_vm7, %v6063_v46  ;;  %6140 = vmatprep.subr.msk.bf16.mxu1 %vm13576_vm8, %v6138_v37  ;;  %vm13582_vm7 = vnez %v12978_v16  ;;  %v7171_v57 = vunpack.i.h.bf16 %v7169_v2  ;;  %v7170_v7 = vunpack.i.l.bf16 %v7169_v2  ;;  %vm13585_vm4 = vcmp.lt.s32.totalorder %v7574_v15, 127 }
0x18dc   : > { %v4132_v47 = vsel %vm13577_vm15, %v7165_v13, %v7166_v45  ;;  %v4133_v59 = vsel %vm13578_vm10, %v7161_v41, %v7165_v13  ;;  %v4135_v10 = vsel %vm13579_vm12, %v7166_v45, %v7160_v24  ;;  %6068 = vmatprep.subr.msk.bf16.mxu0 %vm13580_vm5, %v6066_v6  ;;  %6143 = vmatpush1.bf16.msk.msra.mxu1 %vm13581_vm9, %v6141_v27  ;;  %v7179_v0 = vpop.permute.xlu1 %7178  ;;  %vm13586_vm8 = vmmov %vm13585_vm4  ;;  %vm13587_vm15 = vcmp.lt.s32.totalorder %v7574_v15, 121 }
0x18dd   : > { %v6069_v42 = vpack.c.bf16 %v11220_v20, %v4135_v10  ;;  %v6144_v54 = vpack.c.bf16 %v11224_v32, %v4132_v47  ;;  %v6147_v8 = vpack.c.bf16 %v11222_v22, %v4133_v59  ;;  %v7174_v11 = vpop.permute.xlu0 %7173  ;;  %v7181_v13 = vunpack.i.h.bf16 %v7179_v0  ;;  %vm13588_vm10 = vmmov %vm13585_vm4 }
0x18de   : > { %v7176_v63 = vunpack.i.h.bf16 %v7174_v11  ;;  %v7175_v4 = vunpack.i.l.bf16 %v7174_v11  ;;  %v7180_v28 = vunpack.i.l.bf16 %v7179_v0  ;;  %vm13589_vm12 = vmmov %vm13587_vm15 }
0x18df   : > { %6071 = vmatpush1.bf16.msk.msra.mxu0 %vm13582_vm7, %v6069_v42  ;;  %6146 = vmatprep.subr.msk.bf16.mxu1 %vm13583_vm2, %v6144_v54  ;;  %vm13590_vm5 = vmmov %vm13589_vm12  ;;  %vm13593_vm2 = vnez %v12998_v60 }
0x18e0   : > { %6149 = vmatpush1.bf16.msk.msra.mxu1 %vm13584_vm1, %v6147_v8  ;;  %v7189_v41 = vpop.permute.xlu1 %7188  ;;  %v4148_v24 = vsel %vm13585_vm4, %v7175_v4, %v7176_v63  ;;  %v4149_v14 = vsel %vm13586_vm8, %v7171_v57, %v7175_v4  ;;  %v4166_v16 = vsel %vm13587_vm15, %v7180_v28, %v7181_v13  ;;  %v4151_v51 = vsel %vm13588_vm10, %v7176_v63, %v7170_v7  ;;  %vm13591_vm9 = vmmov %vm13590_vm5 }
0x18e1   : > { %v7184_v20 = vpop.permute.xlu0 %7183  ;;  %vm13592_vm7 = vmmov %vm13585_vm4  ;;  %vm13594_vm1 = vnez %v12994_v25  ;;  %vm13595_vm4 = vnez %v13002_v36  ;;  %v7191_v10 = vunpack.i.h.bf16 %v7189_v41  ;;  %v7190_v42 = vunpack.i.l.bf16 %v7189_v41 }
0x18e2   : > { %v7186_v32 = vunpack.i.h.bf16 %v7184_v20  ;;  %v7185_v22 = vunpack.i.l.bf16 %v7184_v20  ;;  %v4150_v55 = vsel %vm13592_vm7, %v7170_v7, %v7171_v57  ;;  %vm13596_vm8 = vcmp.lt.s32.totalorder %v7574_v15, 120 }
0x18e3   : > { %v6075_v38 = vpack.c.bf16 %v4166_v16, %v4150_v55  ;;  %vm13597_vm15 = vmmov %vm13596_vm8  ;;  %v13643_v16 = vld [vmem:[#allocation49_spill] sm:$0xff] }
0x18e4   : > { %v4164_v50 = vsel %vm13589_vm12, %v7185_v22, %v7186_v32  ;;  %v4165_v2 = vsel %vm13590_vm5, %v7181_v13, %v7185_v22  ;;  %v4167_v53 = vsel %vm13591_vm9, %v7186_v32, %v7180_v28  ;;  %v7199_v30 = vpop.permute.xlu1 %7198  ;;  %vm13599_vm10 = vmmov %vm13596_vm8 }
0x18e5   : > { %v6072_v56 = vpack.c.bf16 %v4165_v2, %v4149_v14  ;;  %v6150_v46 = vpack.c.bf16 %v4167_v53, %v4151_v51  ;;  %v6153_v37 = vpack.c.bf16 %v4164_v50, %v4148_v24  ;;  %v7194_v27 = vpop.permute.xlu0 %7193  ;;  %v7201_v47 = vunpack.i.h.bf16 %v7199_v30  ;;  %vm13603_vm7 = vmmov %vm13596_vm8  ;;  %v13642_v24 = vld [vmem:[#allocation45_spill] sm:$0xff] }
0x18e6   : > { %v7196_v6 = vunpack.i.h.bf16 %v7194_v27  ;;  %v7195_v45 = vunpack.i.l.bf16 %v7194_v27  ;;  %v7200_v59 = vunpack.i.l.bf16 %v7199_v30  ;;  %v4182_v13 = vsel %vm13603_vm7, %v7190_v42, %v7191_v10  ;;  %v13644_v50 = vld [vmem:[#allocation53_spill] sm:$0xff] }
0x18e7   : > { %6074 = vmatprep.subr.msk.bf16.mxu0 %vm13428_vm14, %v6072_v56  ;;  %6152 = vmatprep.subr.msk.bf16.mxu1 %vm13593_vm2, %v6150_v46  ;;  %vm13598_vm14 = vcmp.lt.s32.totalorder %v7574_v15, 119  ;;  %vm13604_vm2 = vnez %v13037_v34  ;;  %v13613_v15 = vld [vmem:[#allocation76_spill] sm:$0xff]  ;;  %v13645_v53 = vld [vmem:[#allocation57_spill] sm:$0xff] }
0x18e8   : > { %6077 = vmatpush1.bf16.msk.msra.mxu0 %vm13594_vm1, %v6075_v38  ;;  %6155 = vmatpush1.bf16.msk.msra.mxu1 %vm13595_vm4, %v6153_v37  ;;  %v4180_v0 = vsel %vm13596_vm8, %v7195_v45, %v7196_v6  ;;  %v4181_v39 = vsel %vm13597_vm15, %v7191_v10, %v7195_v45  ;;  %v4198_v60 = vsel %vm13598_vm14, %v7200_v59, %v7201_v47  ;;  %vm13600_vm12 = vmmov %vm13598_vm14  ;;  %v13623_v34 = vld [vmem:[#allocation40_spill] sm:$0xff] }
0x18e9   : > { %v7204_v54 = vpop.permute.xlu0 %7203  ;;  %v4183_v25 = vsel %vm13599_vm10, %v7196_v6, %v7190_v42  ;;  %vm13601_vm5 = vmmov %vm13600_vm12  ;;  %v6081_v20 = vpack.c.bf16 %v4198_v60, %v4182_v13  ;;  %vm13610_vm1 = vnez %v13063_v1  ;;  %vm13611_vm4 = vnez %v13057_v44  ;;  %v13631_v44 = vld [vmem:[#allocation25_spill] sm:$0xff]  ;;  %v13633_v1 = vld [vmem:[#allocation22_spill] sm:$0xff] }
0x18ea   : > { %v7206_v8 = vunpack.i.h.bf16 %v7204_v54  ;;  %v7205_v11 = vunpack.i.l.bf16 %v7204_v54  ;;  %vm13602_vm9 = vmmov %vm13601_vm5  ;;  %vm13612_vm8 = vnez %v13078_v48  ;;  %vm13615_vm15 = vnez %v13614_v17  ;;  %v13634_v48 = vld [vmem:[#allocation26_spill] sm:$0xff] }
0x18eb   : > { %vm13618_vm14 = vnez %v13617_v29  ;;  %vm13621_vm10 = vnez %v13620_v31  ;;  %vm13632_vm7 = vnez %v13631_v44 }
0x18ec   : > { %v4196_v36 = vsel %vm13600_vm12, %v7205_v11, %v7206_v8  ;;  %v4197_v63 = vsel %vm13601_vm5, %v7201_v47, %v7205_v11  ;;  %v4199_v4 = vsel %vm13602_vm9, %v7206_v8, %v7200_v59  ;;  %vm13624_vm12 = vnez %v13623_v34 }
0x18ed   : > { %v6078_v28 = vpack.c.bf16 %v4197_v63, %v4181_v39  ;;  %v6156_v57 = vpack.c.bf16 %v4199_v4, %v4183_v25  ;;  %v6159_v7 = vpack.c.bf16 %v4196_v36, %v4180_v0 }
0x18ef   : > { %6080 = vmatprep.subr.msk.bf16.mxu0 %vm13267_vm3, %v6078_v28  ;;  %6158 = vmatprep.subr.msk.bf16.mxu1 %vm13268_vm13, %v6156_v57  ;;  %vm13605_vm3 = vnez %v13033_v61  ;;  %vm13606_vm13 = vnez %v13045_v21  ;;  %v13622_v61 = vld [vmem:[#allocation70_spill] sm:$0xff]  ;;  %v13626_v21 = vld [vmem:[#allocation36_spill] sm:$0xff] }
0x18f0   : > { %6083 = vmatpush1.bf16.msk.msra.mxu0 %vm13439_vm11, %v6081_v20  ;;  %6161 = vmatpush1.bf16.msk.msra.mxu1 %vm13440_vm0, %v6159_v7  ;;  %vm13607_vm11 = vnez %v13041_v33  ;;  %vm13608_vm0 = vnez %v13053_v19  ;;  %v13625_v33 = vld [vmem:[#allocation52_spill] sm:$0xff]  ;;  %vm13627_vm5 = vnez %v13626_v21  ;;  %v13629_v19 = vld [vmem:[#allocation37_spill] sm:$0xff] }
0x18f1   : > { %6086 = vmatprep.subr.msk.bf16.mxu0 %vm13441_vm6, %v11307_v58  ;;  %6164 = vmatprep.subr.msk.bf16.mxu1 %vm13604_vm2, %v11305_v12  ;;  %vm13609_vm6 = vnez %v13049_v52  ;;  %v13628_v52 = vld [vmem:[#allocation73_spill] sm:$0xff]  ;;  %vm13630_vm9 = vnez %v13629_v19  ;;  %vm13635_vm2 = vnez %v13634_v48  ;;  %v13640_v12 = vld [vmem:[#allocation32_spill] sm:$0xff] }
0x18f4   : > { %6089 = vmatpush1.bf16.msk.msra.mxu0 %vm13605_vm3, %v11303_v40  ;;  %6167 = vmatpush1.bf16.msk.msra.mxu1 %vm13606_vm13, %v11286_v23  ;;  %v13637_v23 = vld [vmem:[#allocation35_spill] sm:$0xff]  ;;  %v13639_v40 = vld [vmem:[#allocation10_spill] sm:$0xff]  ;;  %vm13641_vm13 = vnez %v13640_v12 }
0x18f5   : > { %6092 = vmatprep.subr.msk.bf16.mxu0 %vm13607_vm11, %v11343_v18  ;;  %6170 = vmatprep.subr.msk.bf16.mxu1 %vm13608_vm0, %v11341_v3  ;;  %v13636_v3 = vld [vmem:[#allocation11_spill] sm:$0xff]  ;;  %vm13638_vm3 = vnez %v13637_v23  ;;  %v4242_v58 = vpop.permute.xlu1 %4241 }
0x18f8   : > { %6095 = vmatpush1.bf16.msk.msra.mxu0 %vm13609_vm6, %v11339_v62  ;;  %6173 = vmatpush1.bf16.msk.msra.mxu1 %vm13610_vm1, %v11322_v26 }
0x18f9   : > { %6098 = vmatprep.subr.msk.bf16.mxu0 %vm13611_vm4, %v11379_v49  ;;  %6176 = vmatprep.subr.msk.bf16.mxu1 %vm13612_vm8, %v11377_v5  ;;  %v5025_v5 = vld [vmem:[%s11637_s4 + $0x30] sm:$0xff] }
0x18fc   : > { %6101 = vmatpush1.bf16.msk.msra.mxu0 %vm13615_vm15, %v13613_v15  ;;  %6179 = vmatpush1.bf16.msk.msra.mxu1 %vm13618_vm14, %v13616_v9 }
0x18fd   : > { %6104 = vmatprep.subr.msk.bf16.mxu0 %vm13621_vm10, %v13619_v35  ;;  %6182 = vmatprep.subr.msk.bf16.mxu1 %vm13624_vm12, %v13622_v61 }
0x1900   : > { %6107 = vmatpush1.bf16.msk.msra.mxu0 %vm13627_vm5, %v13625_v33  ;;  %6185 = vmatpush1.bf16.msk.msra.mxu1 %vm13630_vm9, %v13628_v52 }
0x1901   : > { %5077 = vmatprep.subr.msk.mxu0 %vm13632_vm7, %v11437_v43  ;;  %5130 = vmatprep.subr.msk.mxu1 %vm13635_vm2, %v13633_v1 }
0x1904   : > { %5078 = vmatpush1.msk.msra.mxu0 %vm13638_vm3, %v13636_v3  ;;  %5131 = vmatpush1.msk.msra.mxu1 %vm13641_vm13, %v13639_v40 }
0x1905   : > { %4312 = vmatmul.mubr.f32.vlgmr.msra.gmra.mrb[20].mxu0 %v5025_v5  ;;  %4383 = vmatmul.mubr.f32.vlgmr.msra.gmra.mrb[20].mxu1 %v5025_v5 }
0x19d8   : > { %v4313_v26 = vpop.f32.mrb[20].mxu0  ;;  %v4384_v62 = vpop.f32.mrb[20].mxu1 }
0x19d9   : > { %v4314_v18 = vadd.f32 %v4313_v26, %v4242_v58  ;;  %v4385_v49 = vadd.f32 %v4384_v62, %v4242_v58  ;;  %v4315_v43 = vpop.f32.mrb[21].mxu0  ;;  %v4386_v32 = vpop.f32.mrb[21].mxu1 }
0x19da   : > { %v4316_v22 = vadd.f32 %v4315_v43, %v4242_v58  ;;  %v4387_v41 = vadd.f32 %v4386_v32, %v4242_v58 }
0x19db   : > { %v4389_v14 = vadd.f32 %v4314_v18, %v13642_v24  ;;  %v4391_v51 = vadd.f32 %v4385_v49, %v13643_v16 }
0x19dc   : > { %v4390_v2 = vadd.f32 %v4316_v22, %v13644_v50  ;;  %v4392_v55 = vadd.f32 %v4387_v41, %v13645_v53 }
0x19dd   : > { %v4393_v56 = vmax.f32 %v4389_v14, 0.0  ;;  %v4395_v46 = vmax.f32 %v4391_v51, 0.0 }
0x19de   : > { %v4394_v37 = vmax.f32 %v4390_v2, 0.0  ;;  %v4396_v27 = vmax.f32 %v4392_v55, 0.0 }
0x19df   : > { %4397 = vst [vmem:[%s271_s13] sm:$0xff] %v4393_v56  ;;  %4399 = vst [vmem:[%s271_s13 + $0x10] sm:$0xff] %v4395_v46 }
0x19e0   : > { %4398 = vst [vmem:[%s271_s13 + $0x8] sm:$0xff] %v4394_v37  ;;  %4400 = vst [vmem:[%s271_s13 + $0x18] sm:$0xff] %v4396_v27 }
0x19e1 PF: > { %s16_s21 = sadd.s32 1, %s7227_s21  }
0x19e2   : > { %p13_p4 = scmp.ge.s32.totalorder %s16_s21, 4  }
0x19e4   :  { %15 = sbr.rel (!%p13_p4) target bundleno = 1 (0x1), region = 80 }

</bundles_post_ra>
